<compile_context>
chip_gen: v5e
topology: v5e:2x2
jax: 0.10.0
libtpu: 0.0.40
codegen_flags: <defaults>
</compile_context>

<pallas_src>
import functools

import jax
import jax.numpy as jnp
from jax.experimental import pallas as pl
from jax.experimental.pallas import tpu as pltpu

TEMPERATURE = 4.0
BN_EPS = 1e-5


def _cwd_kernel(xs_hbm, xt_ref, w_ref, b_ref, out_ref, xs_vmem, copy_sem,
                *, loss_scale):
    o = pl.program_id(0)
    i = pl.program_id(1)
    n_inner = pl.num_programs(1)
    t = o * n_inner + i                       # flat channel-tile index

    n_batch = xs_vmem.shape[0]
    tc = w_ref.shape[0]

    # Stage the whole bf16 student activation into VMEM once (single-buffered
    # residency).  Runs at the first inner step of every outer index, i.e.
    # exactly once per TensorCore under megacore sharding.
    @pl.when(i == 0)
    def _():
        cp = pltpu.make_async_copy(xs_hbm, xs_vmem, copy_sem)
        cp.start()
        cp.wait()

    # Per-channel bias (BN affine + ReLU + 1/T folding); the scale part is
    # already folded into the conv-weight rows in the wrapper.
    row0 = pl.multiple_of(t * tc, tc)
    b_tile = b_ref[pl.ds(row0, tc), :]                       # (tc, 1) f32

    w = w_ref[...]                                           # (tc, c_in) bf16

    kl_vec = jnp.zeros((tc, 1), jnp.float32)
    for bi in range(n_batch):                                # small, static
        # 1x1 conv for this batch: (tc, c_in) @ (c_in, hw) -> (tc, hw), f32 acc.
        y = jnp.dot(w, xs_vmem[bi], preferred_element_type=jnp.float32)
        zs = jnp.maximum(y + b_tile, 0.0)                    # = relu(BN(y))/T

        # Student log-softmax pieces (log_p_s = sh_s - lse_s, never formed).
        m_s = jnp.max(zs, axis=-1, keepdims=True)
        sh_s = zs - m_s
        lse_s = jnp.log(jnp.sum(jnp.exp(sh_s), axis=-1, keepdims=True))

        # Teacher softmax pieces (logits pre-scaled by 1/T in the wrapper).
        zt = xt_ref[bi].astype(jnp.float32)                  # (tc, hw)
        m_t = jnp.max(zt, axis=-1, keepdims=True)
        sh_t = zt - m_t
        et = jnp.exp(sh_t)
        denom_t = jnp.sum(et, axis=-1, keepdims=True)

        # Algebraic KL:
        #   sum_j p_t*(log p_t - log p_s)
        #     = sum_j(et*(sh_t - sh_s))/denom_t - log(denom_t) + lse_s
        # Exact per-row division (tiny); approx reciprocal would be amplified
        # by the cancellation between the O(log HW) terms.
        cross = jnp.sum(et * (sh_t - sh_s), axis=-1, keepdims=True)
        kl_vec = kl_vec + (cross / denom_t - jnp.log(denom_t) + lse_s)

    # One cross-sublane reduce per tile; write a lane-dense partial block.
    tile_kl = jnp.sum(kl_vec) * loss_scale
    out_ref[...] = jnp.full(out_ref.shape, tile_kl, dtype=out_ref.dtype)


def _vmem_estimate(n, c_in, hw, c_out, tc):
    bf16, f32 = 2, 4
    xs = n * c_in * hw * bf16                 # resident student (1 buffer)
    xt = 2 * n * tc * hw * bf16               # teacher tile (double-buffered)
    wt = 2 * tc * c_in * bf16                 # folded conv-weight tile
    bias = 2 * c_out * f32                    # resident bias
    out = 2 * 8 * 128 * f32                   # partial-sum block
    interm = 6 * tc * hw * f32                # live per-batch f32 temporaries
    return xs + xt + wt + bias + out + interm


def _choose_c_tile(n, c_in, hw, c_out, budget):
    """Largest multiple-of-8 divisor of c_out (capped at 256) fitting budget."""
    if c_out < 8:
        return c_out
    top = min(c_out, 256)
    top -= top % 8
    for tc in range(top, 7, -8):
        if c_out % tc == 0 and _vmem_estimate(n, c_in, hw, c_out, tc) <= budget:
            return tc
    for tc in range(8, top + 1, 8):           # nothing fits: smallest divisor
        if c_out % tc == 0:
            return tc
    return c_out


def criterion_cwd(preds_S, preds_T, conv_w, bn_gamma, bn_beta,
                  temperature=TEMPERATURE, c_tile=None,
                  vmem_budget_bytes=26 << 20):
    n, c_in, h, w = preds_S.shape
    c_out = conv_w.shape[0]
    hw = h * w
    inv_temp = float(1.0 / temperature)
    count = float(n * hw)
    hi = jax.lax.Precision.HIGHEST

    # ---- BN batch statistics via input-channel moments (Gram trick) ----
    # y = W @ x is linear, so mean/var per output channel are quadratic forms
    # in the input-channel first/second moments (tiny C_in x C_in objects).
    xs3 = jnp.reshape(preds_S, (n, c_in, hw)).astype(jnp.float32)
    w2 = jnp.reshape(conv_w, (c_out, c_in)).astype(jnp.float32)
    xbar = jnp.sum(xs3, axis=(0, 2)) / count                       # (c_in,)
    gram = jnp.einsum('nif,njf->ij', xs3, xs3, precision=hi)       # (c_in,c_in)
    cov_x = gram / count - jnp.outer(xbar, xbar)
    mean_y = w2 @ xbar                                             # (c_out,)
    var_y = jnp.maximum(
        jnp.sum(jnp.matmul(w2, cov_x, precision=hi) * w2, axis=1), 0.0)

    # ---- fold BN affine + ReLU + 1/T: relu(y*a + b) with a folded into W ----
    g = jnp.reshape(bn_gamma, (c_out,)).astype(jnp.float32)
    be = jnp.reshape(bn_beta, (c_out,)).astype(jnp.float32)
    inv_std = jax.lax.rsqrt(var_y + BN_EPS)
    scale = g * inv_std * inv_temp
    bias = (be - mean_y * g * inv_std) * inv_temp
    w_fold = (w2 * scale[:, None]).astype(jnp.bfloat16)            # bf16 MXU lhs
    bias_col = jnp.reshape(bias, (c_out, 1))                       # f32, resident

    # bf16 MXU operands / halved DMA; teacher pre-scaled by 1/T (free in the
    # same XLA cast pass).
    xs_bf = xs3.astype(jnp.bfloat16)                               # (n,c_in,hw)
    xt_bf = (jnp.reshape(preds_T, (n, c_out, hw)).astype(jnp.float32)
             * inv_temp).astype(jnp.bfloat16)

    # ---- generation-safe tiling + explicit VMEM limit ----
    if c_tile is None:
        tc = _choose_c_tile(n, c_in, hw, c_out, vmem_budget_bytes)
    else:
        assert c_out % c_tile == 0, "c_out must be divisible by c_tile"
        tc = c_tile
    n_tiles = c_out // tc
    n_outer = 2 if (n_tiles % 2 == 0 and n_tiles >= 2) else 1      # megacore
    n_inner = n_tiles // n_outer

    est = _vmem_estimate(n, c_in, hw, c_out, tc)
    vmem_limit = int(min(max(1.5 * est + (8 << 20), 32 << 20), 100 << 20))

    kernel = functools.partial(
        _cwd_kernel,
        loss_scale=float(temperature * temperature / (n * c_out)),
    )

    partials = pl.pallas_call(
        kernel,
        out_shape=jax.ShapeDtypeStruct((n_outer, n_inner, 8, 128), jnp.float32),
        grid=(n_outer, n_inner),
        in_specs=[
            pl.BlockSpec(memory_space=pl.ANY),                     # student, HBM
            pl.BlockSpec((n, tc, hw),
                         lambda o, i: (0, o * n_inner + i, 0)),    # teacher tile
            pl.BlockSpec((tc, c_in),
                         lambda o, i: (o * n_inner + i, 0)),       # folded W tile
            pl.BlockSpec((c_out, 1), lambda o, i: (0, 0)),         # bias, resident
        ],
        out_specs=pl.BlockSpec((1, 1, 8, 128), lambda o, i: (o, i, 0, 0)),
        scratch_shapes=[
            pltpu.VMEM((n, c_in, hw), jnp.bfloat16),               # resident xs
            pltpu.SemaphoreType.DMA(()),
        ],
        compiler_params=pltpu.CompilerParams(
            dimension_semantics=("parallel", "arbitrary"),
            vmem_limit_bytes=vmem_limit),
    )(xs_bf, xt_bf, w_fold, bias_col)

    return jnp.sum(partials[:, :, 0, 0])


def _reference(preds_S, preds_T, conv_w, gamma, beta, temperature=TEMPERATURE):
    """Pure-JAX f32 reference mirroring the PyTorch forward (training-mode BN)."""
    n, _, _, _ = preds_S.shape
    c_out = conv_w.shape[0]
    w2 = jnp.reshape(conv_w, (c_out, -1))
    y = jnp.einsum('oi,nihw->nohw', w2, preds_S,
                   precision=jax.lax.Precision.HIGHEST)
    mean = jnp.mean(y, axis=(0, 2, 3), keepdims=True)
    var = jnp.mean((y - mean) ** 2, axis=(0, 2, 3), keepdims=True)
    z = (y - mean) / jnp.sqrt(var + BN_EPS)
    z = z * gamma.reshape(1, -1, 1, 1) + beta.reshape(1, -1, 1, 1)
    z = jnp.maximum(z, 0.0)
    log_ps = jax.nn.log_softmax(z.reshape(n, c_out, -1) / temperature, axis=-1)
    pt = jax.nn.softmax(preds_T.reshape(n, c_out, -1) / temperature, axis=-1)
    kl = jnp.sum(pt * (jnp.log(pt) - log_ps))
    return kl * temperature ** 2 / (n * c_out)


if __name__ == "__main__":
    key = jax.random.PRNGKey(0)
    k1, k2, k3, k4, k5 = jax.random.split(key, 5)

    # The module's conv is fixed 128 -> 256; keep batch/spatial small.
    n, c_in, c_out, h, w = 2, 128, 256, 16, 16
    preds_S = jax.random.normal(k1, (n, c_in, h, w), jnp.float32)
    preds_T = jax.random.normal(k2, (n, c_out, h, w), jnp.float32)

    # PyTorch conv weight is (256, 128, 1, 1); stored here as (256, 128).
    conv_w = jax.random.normal(k3, (c_out, c_in), jnp.float32) * 0.05
    bn_gamma = 0.5 + jax.random.uniform(k4, (c_out,), jnp.float32)   # (0.5, 1.5)
    bn_beta = 0.1 * jax.random.normal(k5, (c_out,), jnp.float32)

    ref = jax.block_until_ready(
        _reference(preds_S, preds_T, conv_w, bn_gamma, bn_beta))

    # Default path (auto tile, single channel tile at this size).
    loss = jax.block_until_ready(
        criterion_cwd(preds_S, preds_T, conv_w, bn_gamma, bn_beta))
    assert bool(jnp.isfinite(loss)), loss
    assert jnp.allclose(loss, ref, rtol=5e-3, atol=5e-4), (loss, ref)

    # Multi-tile path (exercises the parallel grid, resident-bias slicing and
    # the per-core student staging).
    loss2 = jax.block_until_ready(
        criterion_cwd(preds_S, preds_T, conv_w, bn_gamma, bn_beta, c_tile=128))
    assert jnp.allclose(loss2, ref, rtol=5e-3, atol=5e-4), (loss2, ref)

    print("KERNEL_OK")
</pallas_src>

<mosaic_0001>
module attributes {stable_mosaic.version = 11 : i64} {
  func.func @_cwd_kernel(%arg0: i32, %arg1: i32, %arg2: memref<2x128x256xbf16, #tpu.memory_space<any>>, %arg3: memref<2x256x256xbf16, #tpu.memory_space<vmem>>, %arg4: memref<256x128xbf16, #tpu.memory_space<vmem>>, %arg5: memref<256x1xf32, #tpu.memory_space<vmem>>, %arg6: memref<1x1x8x128xf32, #tpu.memory_space<vmem>>, %arg7: memref<2x128x256xbf16, #tpu.memory_space<vmem>>, %arg8: memref<!tpu.dma_semaphore, #tpu.memory_space<semaphore_mem>>) attributes {dimension_semantics = [#tpu.dimension_semantics<parallel>, #tpu.dimension_semantics<arbitrary>], iteration_bounds = array<i64: 1, 1>, scalar_prefetch = 0 : i64, scratch_operands = 2 : i64, tpu.core_type = #tpu.core_type<tc>, window_params = [{}, {transform_indices = @transform_1, window_bounds = array<i64: 2, 256, 256>}, {transform_indices = @transform_2, window_bounds = array<i64: 256, 128>}, {pipeline_mode = #tpu.pipeline_mode<synchronous>, transform_indices = @transform_3, window_bounds = array<i64: 256, 1>}, {transform_indices = @transform_4, window_bounds = array<i64: 1, 1, 8, 128>}]} {
    %c1_i32 = arith.constant 1 : i32
    %0 = arith.muli %arg0, %c1_i32 : i32
    %1 = arith.addi %0, %arg1 : i32
    %c0_i32 = arith.constant 0 : i32
    %2 = arith.cmpi eq, %arg1, %c0_i32 : i32
    %3 = arith.extui %2 : i1 to i32
    %c0_i32_0 = arith.constant 0 : i32
    %4 = arith.cmpi ne, %3, %c0_i32_0 : i32
    scf.if %4 {
      tpu.enqueue_dma source(%arg2 : memref<2x128x256xbf16, #tpu.memory_space<any>>) target(%arg7 : memref<2x128x256xbf16, #tpu.memory_space<vmem>>) target_semaphore(%arg8 : memref<!tpu.dma_semaphore, #tpu.memory_space<semaphore_mem>>)
      tpu.wait_dma2 semaphore(%arg8 : memref<!tpu.dma_semaphore, #tpu.memory_space<semaphore_mem>>) src(%arg2 : memref<2x128x256xbf16, #tpu.memory_space<any>>) dst(%arg7 : memref<2x128x256xbf16, #tpu.memory_space<vmem>>)
    } else {
    }
    %c256_i32 = arith.constant 256 : i32
    %5 = arith.muli %1, %c256_i32 : i32
    %6 = tpu.assume_multiple %5, 256 : i32
    %7 = arith.index_cast %6 : i32 to index
    %c0 = arith.constant 0 : index
    %8 = vector.load %arg5[%7, %c0] : memref<256x1xf32, #tpu.memory_space<vmem>>, vector<256x1xf32>
    %c0_1 = arith.constant 0 : index
    %c0_2 = arith.constant 0 : index
    %9 = vector.load %arg4[%c0_1, %c0_2] : memref<256x128xbf16, #tpu.memory_space<vmem>>, vector<256x128xbf16>
    %cst = arith.constant 0.000000e+00 : f32
    %10 = vector.broadcast %cst : f32 to vector<256x1xf32>
    %c0_3 = arith.constant 0 : index
    %c0_4 = arith.constant 0 : index
    %c0_5 = arith.constant 0 : index
    %11 = vector.load %arg7[%c0_3, %c0_4, %c0_5] : memref<2x128x256xbf16, #tpu.memory_space<vmem>>, vector<1x128x256xbf16>
    %12 = vector.shape_cast %11 : vector<1x128x256xbf16> to vector<128x256xbf16>
    %cst_6 = arith.constant dense<0.000000e+00> : vector<256x256xf32>
    %13 = tpu.matmul %9, %12, %cst_6 {dimension_numbers = #tpu.dot_dimension_numbers<[1], [0], [0], [1], [0, 0, 1, 1], [], []>} : vector<256x128xbf16>, vector<128x256xbf16>, vector<256x256xf32> -> vector<256x256xf32>
    %14 = vector.broadcast %8 : vector<256x1xf32> to vector<256x256xf32>
    %15 = arith.addf %13, %14 : vector<256x256xf32>
    %cst_7 = arith.constant 0.000000e+00 : f32
    %16 = vector.broadcast %cst_7 : f32 to vector<256x256xf32>
    %17 = arith.maximumf %15, %16 : vector<256x256xf32>
    %cst_8 = arith.constant dense<0xFF800000> : vector<256xf32>
    %18 = vector.multi_reduction <maximumf>, %17, %cst_8 [1] : vector<256x256xf32> to vector<256xf32>
    %19 = vector.shape_cast %18 : vector<256xf32> to vector<256x1xf32>
    %20 = vector.broadcast %19 : vector<256x1xf32> to vector<256x256xf32>
    %21 = arith.subf %17, %20 : vector<256x256xf32>
    %22 = math.exp %21 : vector<256x256xf32>
    %cst_9 = arith.constant dense<0.000000e+00> : vector<256xf32>
    %23 = vector.multi_reduction <add>, %22, %cst_9 [1] : vector<256x256xf32> to vector<256xf32>
    %24 = vector.shape_cast %23 : vector<256xf32> to vector<256x1xf32>
    %25 = math.log %24 : vector<256x1xf32>
    %c0_10 = arith.constant 0 : index
    %c0_11 = arith.constant 0 : index
    %c0_12 = arith.constant 0 : index
    %26 = vector.load %arg3[%c0_10, %c0_11, %c0_12] : memref<2x256x256xbf16, #tpu.memory_space<vmem>>, vector<1x256x256xbf16>
    %27 = vector.shape_cast %26 : vector<1x256x256xbf16> to vector<256x256xbf16>
    %28 = arith.extf %27 : vector<256x256xbf16> to vector<256x256xf32>
    %cst_13 = arith.constant dense<0xFF800000> : vector<256xf32>
    %29 = vector.multi_reduction <maximumf>, %28, %cst_13 [1] : vector<256x256xf32> to vector<256xf32>
    %30 = vector.shape_cast %29 : vector<256xf32> to vector<256x1xf32>
    %31 = vector.broadcast %30 : vector<256x1xf32> to vector<256x256xf32>
    %32 = arith.subf %28, %31 : vector<256x256xf32>
    %33 = math.exp %32 : vector<256x256xf32>
    %cst_14 = arith.constant dense<0.000000e+00> : vector<256xf32>
    %34 = vector.multi_reduction <add>, %33, %cst_14 [1] : vector<256x256xf32> to vector<256xf32>
    %35 = vector.shape_cast %34 : vector<256xf32> to vector<256x1xf32>
    %36 = arith.subf %32, %21 : vector<256x256xf32>
    %37 = arith.mulf %33, %36 : vector<256x256xf32>
    %cst_15 = arith.constant dense<0.000000e+00> : vector<256xf32>
    %38 = vector.multi_reduction <add>, %37, %cst_15 [1] : vector<256x256xf32> to vector<256xf32>
    %39 = vector.shape_cast %38 : vector<256xf32> to vector<256x1xf32>
    %40 = arith.divf %39, %35 : vector<256x1xf32>
    %41 = math.log %35 : vector<256x1xf32>
    %42 = arith.subf %40, %41 : vector<256x1xf32>
    %43 = arith.addf %42, %25 : vector<256x1xf32>
    %44 = arith.addf %10, %43 : vector<256x1xf32>
    %c1 = arith.constant 1 : index
    %c0_16 = arith.constant 0 : index
    %c0_17 = arith.constant 0 : index
    %45 = vector.load %arg7[%c1, %c0_16, %c0_17] : memref<2x128x256xbf16, #tpu.memory_space<vmem>>, vector<1x128x256xbf16>
    %46 = vector.shape_cast %45 : vector<1x128x256xbf16> to vector<128x256xbf16>
    %cst_18 = arith.constant dense<0.000000e+00> : vector<256x256xf32>
    %47 = tpu.matmul %9, %46, %cst_18 {dimension_numbers = #tpu.dot_dimension_numbers<[1], [0], [0], [1], [0, 0, 1, 1], [], []>} : vector<256x128xbf16>, vector<128x256xbf16>, vector<256x256xf32> -> vector<256x256xf32>
    %48 = vector.broadcast %8 : vector<256x1xf32> to vector<256x256xf32>
    %49 = arith.addf %47, %48 : vector<256x256xf32>
    %cst_19 = arith.constant 0.000000e+00 : f32
    %50 = vector.broadcast %cst_19 : f32 to vector<256x256xf32>
    %51 = arith.maximumf %49, %50 : vector<256x256xf32>
    %cst_20 = arith.constant dense<0xFF800000> : vector<256xf32>
    %52 = vector.multi_reduction <maximumf>, %51, %cst_20 [1] : vector<256x256xf32> to vector<256xf32>
    %53 = vector.shape_cast %52 : vector<256xf32> to vector<256x1xf32>
    %54 = vector.broadcast %53 : vector<256x1xf32> to vector<256x256xf32>
    %55 = arith.subf %51, %54 : vector<256x256xf32>
    %56 = math.exp %55 : vector<256x256xf32>
    %cst_21 = arith.constant dense<0.000000e+00> : vector<256xf32>
    %57 = vector.multi_reduction <add>, %56, %cst_21 [1] : vector<256x256xf32> to vector<256xf32>
    %58 = vector.shape_cast %57 : vector<256xf32> to vector<256x1xf32>
    %59 = math.log %58 : vector<256x1xf32>
    %c1_22 = arith.constant 1 : index
    %c0_23 = arith.constant 0 : index
    %c0_24 = arith.constant 0 : index
    %60 = vector.load %arg3[%c1_22, %c0_23, %c0_24] : memref<2x256x256xbf16, #tpu.memory_space<vmem>>, vector<1x256x256xbf16>
    %61 = vector.shape_cast %60 : vector<1x256x256xbf16> to vector<256x256xbf16>
    %62 = arith.extf %61 : vector<256x256xbf16> to vector<256x256xf32>
    %cst_25 = arith.constant dense<0xFF800000> : vector<256xf32>
    %63 = vector.multi_reduction <maximumf>, %62, %cst_25 [1] : vector<256x256xf32> to vector<256xf32>
    %64 = vector.shape_cast %63 : vector<256xf32> to vector<256x1xf32>
    %65 = vector.broadcast %64 : vector<256x1xf32> to vector<256x256xf32>
    %66 = arith.subf %62, %65 : vector<256x256xf32>
    %67 = math.exp %66 : vector<256x256xf32>
    %cst_26 = arith.constant dense<0.000000e+00> : vector<256xf32>
    %68 = vector.multi_reduction <add>, %67, %cst_26 [1] : vector<256x256xf32> to vector<256xf32>
    %69 = vector.shape_cast %68 : vector<256xf32> to vector<256x1xf32>
    %70 = arith.subf %66, %55 : vector<256x256xf32>
    %71 = arith.mulf %67, %70 : vector<256x256xf32>
    %cst_27 = arith.constant dense<0.000000e+00> : vector<256xf32>
    %72 = vector.multi_reduction <add>, %71, %cst_27 [1] : vector<256x256xf32> to vector<256xf32>
    %73 = vector.shape_cast %72 : vector<256xf32> to vector<256x1xf32>
    %74 = arith.divf %73, %69 : vector<256x1xf32>
    %75 = math.log %69 : vector<256x1xf32>
    %76 = arith.subf %74, %75 : vector<256x1xf32>
    %77 = arith.addf %76, %59 : vector<256x1xf32>
    %78 = arith.addf %44, %77 : vector<256x1xf32>
    %79 = vector.shape_cast %78 : vector<256x1xf32> to vector<1x256x1xf32>
    %cst_28 = arith.constant dense<0.000000e+00> : vector<1xf32>
    %80 = vector.multi_reduction <add>, %79, %cst_28 [1, 2] : vector<1x256x1xf32> to vector<1xf32>
    %81 = vector.shape_cast %80 : vector<1xf32> to vector<1x1x1xf32>
    %82 = vector.extract %81[0, 0, 0] : f32 from vector<1x1x1xf32>
    %cst_29 = arith.constant 3.125000e-02 : f32
    %83 = arith.mulf %82, %cst_29 : f32
    %84 = vector.broadcast %83 : f32 to vector<1x1x8x128xf32>
    %c0_30 = arith.constant 0 : index
    %c0_31 = arith.constant 0 : index
    %c0_32 = arith.constant 0 : index
    %c0_33 = arith.constant 0 : index
    %85 = vector.load %arg6[%c0_30, %c0_31, %c0_32, %c0_33] : memref<1x1x8x128xf32, #tpu.memory_space<vmem>>, vector<1x1x8x128xf32>
    tpu.vector_store %arg6[%c0_30, %c0_31, %c0_32, %c0_33], %84 {strides = array<i32>} : memref<1x1x8x128xf32, #tpu.memory_space<vmem>>, vector<1x1x8x128xf32>,
    return
  }
  func.func @transform_1(%arg0: i32, %arg1: i32) -> (i32, i32, i32) {
    %c1_i32 = arith.constant 1 : i32
    %0 = arith.muli %arg0, %c1_i32 : i32
    %1 = arith.addi %0, %arg1 : i32
    %c0_i32 = arith.constant 0 : i32
    %c0_i32_0 = arith.constant 0 : i32
    %c0_i32_1 = arith.constant 0 : i32
    return %c0_i32, %1, %c0_i32_0 : i32, i32, i32
  }
  func.func @transform_2(%arg0: i32, %arg1: i32) -> (i32, i32) {
    %c1_i32 = arith.constant 1 : i32
    %0 = arith.muli %arg0, %c1_i32 : i32
    %1 = arith.addi %0, %arg1 : i32
    %c0_i32 = arith.constant 0 : i32
    %c0_i32_0 = arith.constant 0 : i32
    return %1, %c0_i32 : i32, i32
  }
  func.func @transform_3(%arg0: i32, %arg1: i32) -> (i32, i32) {
    %c0_i32 = arith.constant 0 : i32
    %c0_i32_0 = arith.constant 0 : i32
    %c0_i32_1 = arith.constant 0 : i32
    return %c0_i32, %c0_i32_0 : i32, i32
  }
  func.func @transform_4(%arg0: i32, %arg1: i32) -> (i32, i32, i32, i32) {
    %c0_i32 = arith.constant 0 : i32
    %c0_i32_0 = arith.constant 0 : i32
    %c0_i32_1 = arith.constant 0 : i32
    return %arg0, %arg1, %c0_i32, %c0_i32_0 : i32, i32, i32, i32
  }
}

</mosaic_0001>

<bundles_post_ra>
// kernel: tpu_custom_call.1
= control target key start
LH: loop header
LB: loop body
LE: loop exit
PB: predicated region body
PF: predicated region fallthrough
CT: control target
= control target key end

     0   :  { %9 = vsyncpa [#allocation5], 0  ;;  %s12899_s0 = inlined_call_operand.vmem [shape: bf16[2,128,256], index: 0, kind: input, shape index: {}]   ;;  %s12900_s1 = inlined_call_operand.hbm [shape: bf16[2,256,256], index: 1, kind: input, shape index: {}]   ;;  %s12901_s2 = inlined_call_operand.hbm [shape: bf16[256,128], index: 2, kind: input, shape index: {}]   ;;  %s12902_s3 = inlined_call_operand.vmem [shape: f32[256,1], index: 3, kind: input, shape index: {}]   ;;  %s12903_s4 = inlined_call_operand.hbm [shape: f32[1,1,8,128], index: 4, kind: output, shape index: {}]  }
   0x1   :  { %10 = vsyncpa [#allocation8], 0 }
   0x2   :  { %11 = vsyncpa [#allocation6], 0  ;;  %s21_s17 = sshll.u32 %s12900_s1, 4  ;;  %s6069_s18 = smov [#allocation4]   ;;  %s22_s17 = int_to_ptr.hbm [resolvable:$true] %s21_s17 }
   0x3   :  { %s23_s19 = sshll.u32 %s6069_s18, 4  ;;  %s38_s22 = sshll.u32 %s12901_s2, 4  ;;  %s24_s19 = int_to_ptr.vmem [resolvable:$true] %s23_s19  ;;  %s39_s22 = int_to_ptr.hbm [resolvable:$true] %s38_s22 }
   0x4   :  { %s6070_s23 = smov 128   ;;  %s6071_s24 = smov 8  }
   0x5   :  { %29 = dma.hbm_to_vmem [thread:$0]  %s22_s17, 8192, %s24_s19, [#allocation5], %s6070_s23, %s6070_s23, %s6071_s24  }
   0x6   :  { %s6072_s25 = smov [#allocation7]   ;;  %s6073_s27 = smov 64  }
   0x7   :  { %s40_s26 = sshll.u32 %s6072_s25, 4  ;;  %s6074_s28 = smov 4   ;;  %s41_s26 = int_to_ptr.vmem [resolvable:$true] %s40_s26 }
   0x8   :  { %46 = dma.hbm_to_vmem [thread:$0]  %s39_s22, 2048, %s41_s26, [#allocation8], %s6073_s27, %s6073_s27, %s6074_s28  }
   0x9   :  { %6061 = dma.done.wait [#allocation5], 8192  }
   0xa   :  { %6062 = vsyncadd [#allocation5], 4294959104 }
   0xb   :  { %6063 = dma.done.wait [#allocation8], 2048  }
   0xc   :  { %6064 = vsyncadd [#allocation8], 4294965248  ;;  %v76_v0 = vld [vmem:[%s12899_s0] sm:$0xff]  ;;  %v78_v1 = vld [vmem:[%s12899_s0 + $0x8] sm:$0xff] }
   0xd   :  { %v80_v2 = vld [vmem:[%s12899_s0 + $0x10] sm:$0xff]  ;;  %77 = vst [vmem:[#allocation2] sm:$0xff] %v76_v0  ;;  %v82_v3 = vld [vmem:[%s12899_s0 + $0x18] sm:$0xff]  ;;  %v84_v4 = vld [vmem:[%s12899_s0 + $0x20] sm:$0xff] }
   0xe   :  { %79 = vst [vmem:[#allocation2 + $0x8] sm:$0xff] %v78_v1  ;;  %v86_v5 = vld [vmem:[%s12899_s0 + $0x28] sm:$0xff]  ;;  %v88_v6 = vld [vmem:[%s12899_s0 + $0x30] sm:$0xff]  ;;  %v90_v7 = vld [vmem:[%s12899_s0 + $0x38] sm:$0xff] }
   0xf   :  { %81 = vst [vmem:[#allocation2 + $0x10] sm:$0xff] %v80_v2  ;;  %v92_v8 = vld [vmem:[%s12899_s0 + $0x40] sm:$0xff]  ;;  %v94_v9 = vld [vmem:[%s12899_s0 + $0x48] sm:$0xff]  ;;  %v96_v10 = vld [vmem:[%s12899_s0 + $0x50] sm:$0xff] }
  0x10   :  { %83 = vst [vmem:[#allocation2 + $0x18] sm:$0xff] %v82_v3  ;;  %v98_v11 = vld [vmem:[%s12899_s0 + $0x58] sm:$0xff]  ;;  %v100_v12 = vld [vmem:[%s12899_s0 + $0x60] sm:$0xff]  ;;  %v102_v13 = vld [vmem:[%s12899_s0 + $0x68] sm:$0xff] }
  0x11   :  { %85 = vst [vmem:[#allocation2 + $0x20] sm:$0xff] %v84_v4  ;;  %v104_v14 = vld [vmem:[%s12899_s0 + $0x70] sm:$0xff]  ;;  %v106_v15 = vld [vmem:[%s12899_s0 + $0x78] sm:$0xff]  ;;  %v108_v16 = vld [vmem:[%s12899_s0 + $0x80] sm:$0xff] }
  0x12   :  { %87 = vst [vmem:[#allocation2 + $0x28] sm:$0xff] %v86_v5  ;;  %v110_v17 = vld [vmem:[%s12899_s0 + $0x88] sm:$0xff]  ;;  %v112_v18 = vld [vmem:[%s12899_s0 + $0x90] sm:$0xff]  ;;  %v114_v19 = vld [vmem:[%s12899_s0 + $0x98] sm:$0xff] }
  0x13   :  { %89 = vst [vmem:[#allocation2 + $0x30] sm:$0xff] %v88_v6  ;;  %v116_v20 = vld [vmem:[%s12899_s0 + $0xa0] sm:$0xff]  ;;  %v118_v21 = vld [vmem:[%s12899_s0 + $0xa8] sm:$0xff]  ;;  %v120_v22 = vld [vmem:[%s12899_s0 + $0xb0] sm:$0xff] }
  0x14   :  { %91 = vst [vmem:[#allocation2 + $0x38] sm:$0xff] %v90_v7  ;;  %v122_v23 = vld [vmem:[%s12899_s0 + $0xb8] sm:$0xff]  ;;  %v124_v24 = vld [vmem:[%s12899_s0 + $0xc0] sm:$0xff]  ;;  %v126_v25 = vld [vmem:[%s12899_s0 + $0xc8] sm:$0xff] }
  0x15   :  { %93 = vst [vmem:[#allocation2 + $0x40] sm:$0xff] %v92_v8  ;;  %v128_v26 = vld [vmem:[%s12899_s0 + $0xd0] sm:$0xff]  ;;  %v130_v27 = vld [vmem:[%s12899_s0 + $0xd8] sm:$0xff]  ;;  %v132_v28 = vld [vmem:[%s12899_s0 + $0xe0] sm:$0xff] }
  0x16   :  { %95 = vst [vmem:[#allocation2 + $0x48] sm:$0xff] %v94_v9  ;;  %v134_v29 = vld [vmem:[%s12899_s0 + $0xe8] sm:$0xff]  ;;  %v136_v30 = vld [vmem:[%s12899_s0 + $0xf0] sm:$0xff]  ;;  %v138_v31 = vld [vmem:[%s12899_s0 + $0xf8] sm:$0xff] }
  0x17   :  { %97 = vst [vmem:[#allocation2 + $0x50] sm:$0xff] %v96_v10 }
  0x18   :  { %99 = vst [vmem:[#allocation2 + $0x58] sm:$0xff] %v98_v11 }
  0x19   :  { %101 = vst [vmem:[#allocation2 + $0x60] sm:$0xff] %v100_v12 }
  0x1a   :  { %103 = vst [vmem:[#allocation2 + $0x68] sm:$0xff] %v102_v13 }
  0x1b   :  { %105 = vst [vmem:[#allocation2 + $0x70] sm:$0xff] %v104_v14 }
  0x1c   :  { %107 = vst [vmem:[#allocation2 + $0x78] sm:$0xff] %v106_v15 }
  0x1d   :  { %109 = vst [vmem:[#allocation2 + $0x80] sm:$0xff] %v108_v16 }
  0x1e   :  { %111 = vst [vmem:[#allocation2 + $0x88] sm:$0xff] %v110_v17 }
  0x1f   :  { %113 = vst [vmem:[#allocation2 + $0x90] sm:$0xff] %v112_v18 }
  0x20   :  { %115 = vst [vmem:[#allocation2 + $0x98] sm:$0xff] %v114_v19 }
  0x21   :  { %117 = vst [vmem:[#allocation2 + $0xa0] sm:$0xff] %v116_v20 }
  0x22   :  { %119 = vst [vmem:[#allocation2 + $0xa8] sm:$0xff] %v118_v21 }
  0x23   :  { %121 = vst [vmem:[#allocation2 + $0xb0] sm:$0xff] %v120_v22 }
  0x24   :  { %123 = vst [vmem:[#allocation2 + $0xb8] sm:$0xff] %v122_v23 }
  0x25   :  { %125 = vst [vmem:[#allocation2 + $0xc0] sm:$0xff] %v124_v24 }
  0x26   :  { %127 = vst [vmem:[#allocation2 + $0xc8] sm:$0xff] %v126_v25 }
  0x27   :  { %129 = vst [vmem:[#allocation2 + $0xd0] sm:$0xff] %v128_v26 }
  0x28   :  { %131 = vst [vmem:[#allocation2 + $0xd8] sm:$0xff] %v130_v27 }
  0x29   :  { %133 = vst [vmem:[#allocation2 + $0xe0] sm:$0xff] %v132_v28 }
  0x2a   :  { %135 = vst [vmem:[#allocation2 + $0xe8] sm:$0xff] %v134_v29 }
  0x2b   :  { %137 = vst [vmem:[#allocation2 + $0xf0] sm:$0xff] %v136_v30 }
  0x2c   :  { %139 = vst [vmem:[#allocation2 + $0xf8] sm:$0xff] %v138_v31 }
  0x2d   :  { %145 = vsyncadd [#allocation3], 4096 }
  0x2e   :  { %6065 = dma.done.wait [#allocation3], 4096 }
  0x2f   :  { %6066 = vsyncadd [#allocation3], 4294963200  ;;  %v6075_v32 = vmov 0   ;;  %v157_v33 = vld [vmem:[%s12902_s3 + $0x20] sm:$0xff]  ;;  %v155_v34 = vld [vmem:[%s12902_s3 + $0x10] sm:$0xff]  ;;  %s4818_s17 = sshll.u32 %s12903_s4, 4  ;;  %s4819_s17 = int_to_ptr.hbm [resolvable:$true] %s4818_s17 }
  0x30   :  { %5092 = vset.pattern.permute.xlu2 %v6075_v32  ;;  %5091 = vset.pattern.permute.xlu1 %v6075_v32  ;;  %v153_v35 = vld [vmem:[%s12902_s3] sm:$0xff]  ;;  %v4961_v36 = vld [vmem:[#allocation2 + $0x70] sm:$0xf]  ;;  %v5063_v37 = vld [vmem:[#allocation2 + $0x74] sm:$0xf0] }
  0x31   :  { %5090 = vset.pattern.permute.xlu0 %v6075_v32  ;;  %255 = vperm.xlu2 %5092, %v157_v33   ;;  %v5062_v38 = vld [vmem:[#allocation2 + $0x74] sm:$0xf]  ;;  %v4962_v39 = vor.u32 %v5063_v37, %v4961_v36  ;;  %v4963_v40 = vld [vmem:[#allocation2 + $0x78] sm:$0xf0]  ;;  %v4953_v47 = vld [vmem:[#allocation2 + $0x60] sm:$0xf] }
  0x32   :  { %245 = vperm.xlu1 %5091, %v155_v34   ;;  %235 = vperm.xlu0 %5090, %v153_v35   ;;  %v5025_v41 = vld [vmem:[#allocation2 + $0xf0] sm:$0xf]  ;;  %v4966_v43 = vor.u32 %v5062_v38, %v4963_v40  ;;  %v5078_v45 = vld [vmem:[#allocation2 + $0xf4] sm:$0xf]  ;;  %v5061_v49 = vld [vmem:[#allocation2 + $0x64] sm:$0xf0] }
  0x33   :  { %v5079_v42 = vld [vmem:[#allocation2 + $0xf4] sm:$0xf0]  ;;  %v5027_v46 = vld [vmem:[#allocation2 + $0xf8] sm:$0xf0]  ;;  %569 = vmatpush.bf16.msra.mxu0 %v4962_v39  ;;  %v5060_v50 = vld [vmem:[#allocation2 + $0x64] sm:$0xf]  ;;  %v4954_v52 = vor.u32 %v5061_v49, %v4953_v47 }
  0x34   :  { %v5026_v44 = vor.u32 %v5079_v42, %v5025_v41  ;;  %v5030_v48 = vor.u32 %v5078_v45, %v5027_v46  ;;  %v4955_v51 = vld [vmem:[#allocation2 + $0x68] sm:$0xf0]  ;;  %658 = vmatpush.bf16.msra.mxu1 %v4966_v43  ;;  %v5017_v54 = vld [vmem:[#allocation2 + $0xe0] sm:$0xf]  ;;  %v5077_v55 = vld [vmem:[#allocation2 + $0xe4] sm:$0xf0] }
  0x35   :  { %v4958_v53 = vor.u32 %v5060_v50, %v4955_v51  ;;  %v5076_v56 = vld [vmem:[#allocation2 + $0xe4] sm:$0xf]  ;;  %v5018_v57 = vor.u32 %v5077_v55, %v5017_v54  ;;  %v5019_v58 = vld [vmem:[#allocation2 + $0xe8] sm:$0xf0]  ;;  %v156_v60 = vld [vmem:[%s12902_s3 + $0x18] sm:$0xff] }
  0x36   :  { %2700 = vmatpush.bf16.msra.mxu2 %v5026_v44  ;;  %2789 = vmatpush.bf16.msra.mxu3 %v5030_v48  ;;  %v158_v59 = vld [vmem:[%s12902_s3 + $0x28] sm:$0xff]  ;;  %v5022_v61 = vor.u32 %v5076_v56, %v5019_v58  ;;  %v4945_v63 = vld [vmem:[#allocation2 + $0x50] sm:$0xf]  ;;  %v5059_v0 = vld [vmem:[#allocation2 + $0x54] sm:$0xf0] }
  0x37   :  { %v154_v62 = vld [vmem:[%s12902_s3 + $0x8] sm:$0xff]  ;;  %570 = vmatpush.bf16.msra.mxu0 %v4954_v52  ;;  %v4946_v1 = vor.u32 %v5059_v0, %v4945_v63  ;;  %v5058_v2 = vld [vmem:[#allocation2 + $0x54] sm:$0xf]  ;;  %v4947_v3 = vld [vmem:[#allocation2 + $0x58] sm:$0xf0] }
  0x38   :  { %v5009_v4 = vld [vmem:[#allocation2 + $0xd0] sm:$0xf]  ;;  %659 = vmatpush.bf16.msra.mxu1 %v4958_v53  ;;  %v4950_v5 = vor.u32 %v5058_v2, %v4947_v3  ;;  %v5075_v6 = vld [vmem:[#allocation2 + $0xd4] sm:$0xf0]  ;;  %v5074_v7 = vld [vmem:[#allocation2 + $0xd4] sm:$0xf] }
  0x39   :  { %v5011_v8 = vld [vmem:[#allocation2 + $0xd8] sm:$0xf0]  ;;  %260 = vperm.xlu2 %5092, %v158_v59   ;;  %v5010_v9 = vor.u32 %v5075_v6, %v5009_v4  ;;  %v4937_v11 = vld [vmem:[#allocation2 + $0x40] sm:$0xf]  ;;  %v5057_v12 = vld [vmem:[#allocation2 + $0x44] sm:$0xf0] }
  0x3a   :  { %2701 = vmatpush.bf16.msra.mxu2 %v5018_v57  ;;  %2790 = vmatpush.bf16.msra.mxu3 %v5022_v61  ;;  %v5014_v10 = vor.u32 %v5074_v7, %v5011_v8  ;;  %v5056_v13 = vld [vmem:[#allocation2 + $0x44] sm:$0xf]  ;;  %v4939_v14 = vld [vmem:[#allocation2 + $0x48] sm:$0xf0]  ;;  %v5001_v15 = vld [vmem:[#allocation2 + $0xc0] sm:$0xf]  ;;  %v4938_v17 = vor.u32 %v5057_v12, %v4937_v11 }
  0x3b   :  { %250 = vperm.xlu1 %5091, %v156_v60   ;;  %240 = vperm.xlu0 %5090, %v154_v62   ;;  %v5073_v16 = vld [vmem:[#allocation2 + $0xc4] sm:$0xf0]  ;;  %v5072_v18 = vld [vmem:[#allocation2 + $0xc4] sm:$0xf]  ;;  %v5003_v19 = vld [vmem:[#allocation2 + $0xc8] sm:$0xf0]  ;;  %v4942_v20 = vor.u32 %v5056_v13, %v4939_v14 }
  0x3c   :  { %571 = vmatpush.bf16.msra.mxu0 %v4946_v1  ;;  %660 = vmatpush.bf16.msra.mxu1 %v4950_v5  ;;  %v5002_v21 = vor.u32 %v5073_v16, %v5001_v15  ;;  %v161_v22 = vld [vmem:[%s12902_s3 + $0x40] sm:$0xff]  ;;  %v4929_v23 = vld [vmem:[#allocation2 + $0x30] sm:$0xf]  ;;  %v5006_v24 = vor.u32 %v5072_v18, %v5003_v19  ;;  %v5055_v25 = vld [vmem:[#allocation2 + $0x34] sm:$0xf0] }
  0x3d   :  { %v5054_v26 = vld [vmem:[#allocation2 + $0x34] sm:$0xf]  ;;  %v4931_v27 = vld [vmem:[#allocation2 + $0x38] sm:$0xf0]  ;;  %v4993_v28 = vld [vmem:[#allocation2 + $0xb0] sm:$0xf]  ;;  %v4930_v33 = vor.u32 %v5055_v25, %v4929_v23 }
  0x3e   :  { %2702 = vmatpush.bf16.msra.mxu2 %v5010_v9  ;;  %2791 = vmatpush.bf16.msra.mxu3 %v5014_v10  ;;  %v5071_v29 = vld [vmem:[#allocation2 + $0xb4] sm:$0xf0]  ;;  %v5070_v30 = vld [vmem:[#allocation2 + $0xb4] sm:$0xf]  ;;  %v4995_v34 = vld [vmem:[#allocation2 + $0xb8] sm:$0xf0]  ;;  %v4934_v35 = vor.u32 %v5054_v26, %v4931_v27 }
  0x3f   :  { %v160_v31 = vld [vmem:[%s12902_s3 + $0x38] sm:$0xff]  ;;  %v159_v32 = vld [vmem:[%s12902_s3 + $0x30] sm:$0xff]  ;;  %v4994_v36 = vor.u32 %v5071_v29, %v4993_v28  ;;  %v4921_v37 = vld [vmem:[#allocation2 + $0x20] sm:$0xf]  ;;  %v4998_v40 = vor.u32 %v5070_v30, %v4995_v34 }
  0x40   :  { %572 = vmatpush.bf16.msra.mxu0 %v4938_v17  ;;  %661 = vmatpush.bf16.msra.mxu1 %v4942_v20  ;;  %v5053_v38 = vld [vmem:[#allocation2 + $0x24] sm:$0xf0]  ;;  %v5052_v39 = vld [vmem:[#allocation2 + $0x24] sm:$0xf]  ;;  %v4923_v41 = vld [vmem:[#allocation2 + $0x28] sm:$0xf0] }
  0x41   :  { %275 = vperm.xlu2 %5092, %v161_v22   ;;  %v4985_v42 = vld [vmem:[#allocation2 + $0xa0] sm:$0xf]  ;;  %v5069_v43 = vld [vmem:[#allocation2 + $0xa4] sm:$0xf0]  ;;  %v5068_v44 = vld [vmem:[#allocation2 + $0xa4] sm:$0xf]  ;;  %v4922_v46 = vor.u32 %v5053_v38, %v4921_v37  ;;  %v4926_v47 = vor.u32 %v5052_v39, %v4923_v41 }
  0x42   :  { %2703 = vmatpush.bf16.msra.mxu2 %v5002_v21  ;;  %2792 = vmatpush.bf16.msra.mxu3 %v5006_v24  ;;  %v4987_v45 = vld [vmem:[#allocation2 + $0xa8] sm:$0xf0]  ;;  %v4986_v48 = vor.u32 %v5069_v43, %v4985_v42  ;;  %v4913_v49 = vld [vmem:[#allocation2 + $0x10] sm:$0xf]  ;;  %v5051_v50 = vld [vmem:[#allocation2 + $0x14] sm:$0xf0] }
  0x43   :  { %270 = vperm.xlu1 %5091, %v160_v31   ;;  %265 = vperm.xlu0 %5090, %v159_v32   ;;  %v5050_v51 = vld [vmem:[#allocation2 + $0x14] sm:$0xf]  ;;  %v4990_v52 = vor.u32 %v5068_v44, %v4987_v45  ;;  %v4915_v53 = vld [vmem:[#allocation2 + $0x18] sm:$0xf0]  ;;  %v4977_v54 = vld [vmem:[#allocation2 + $0x90] sm:$0xf]  ;;  %v4914_v61 = vor.u32 %v5051_v50, %v4913_v49 }
  0x44   :  { %573 = vmatpush.bf16.msra.mxu0 %v4930_v33  ;;  %662 = vmatpush.bf16.msra.mxu1 %v4934_v35  ;;  %v5067_v55 = vld [vmem:[#allocation2 + $0x94] sm:$0xf0]  ;;  %v5066_v57 = vld [vmem:[#allocation2 + $0x94] sm:$0xf]  ;;  %v4979_v58 = vld [vmem:[#allocation2 + $0x98] sm:$0xf0]  ;;  %v4918_v62 = vor.u32 %v5050_v51, %v4915_v53 }
  0x45   :  { %v164_v56 = vld [vmem:[%s12902_s3 + $0x58] sm:$0xff]  ;;  %v163_v59 = vld [vmem:[%s12902_s3 + $0x50] sm:$0xff]  ;;  %v162_v60 = vld [vmem:[%s12902_s3 + $0x48] sm:$0xff]  ;;  %v4978_v63 = vor.u32 %v5067_v55, %v4977_v54  ;;  %v4982_v3 = vor.u32 %v5066_v57, %v4979_v58 }
  0x46   :  { %2704 = vmatpush.bf16.msra.mxu2 %v4994_v36  ;;  %2793 = vmatpush.bf16.msra.mxu3 %v4998_v40  ;;  %v4905_v0 = vld [vmem:[#allocation2] sm:$0xf]  ;;  %v5049_v1 = vld [vmem:[#allocation2 + $0x4] sm:$0xf0]  ;;  %v5048_v2 = vld [vmem:[#allocation2 + $0x4] sm:$0xf] }
  0x47   :  { %v4907_v4 = vld [vmem:[#allocation2 + $0x8] sm:$0xf0]  ;;  %v4969_v5 = vld [vmem:[#allocation2 + $0x80] sm:$0xf]  ;;  %v5065_v6 = vld [vmem:[#allocation2 + $0x84] sm:$0xf0]  ;;  %v4906_v9 = vor.u32 %v5049_v1, %v4905_v0 }
  0x48   :  { %574 = vmatpush.bf16.msra.mxu0 %v4922_v46  ;;  %663 = vmatpush.bf16.msra.mxu1 %v4926_v47  ;;  %v5064_v7 = vld [vmem:[#allocation2 + $0x84] sm:$0xf]  ;;  %v4971_v8 = vld [vmem:[#allocation2 + $0x88] sm:$0xf0]  ;;  %v4910_v10 = vor.u32 %v5048_v2, %v4907_v4  ;;  %v4970_v11 = vor.u32 %v5065_v6, %v4969_v5  ;;  %v167_v13 = vld [vmem:[%s12902_s3 + $0x70] sm:$0xff] }
  0x49   :  { %290 = vperm.xlu2 %5092, %v164_v56   ;;  %v4974_v12 = vor.u32 %v5064_v7, %v4971_v8  ;;  %v166_v14 = vld [vmem:[%s12902_s3 + $0x68] sm:$0xff]  ;;  %v165_v15 = vld [vmem:[%s12902_s3 + $0x60] sm:$0xff]  ;;  %v168_v19 = vld [vmem:[%s12902_s3 + $0x78] sm:$0xff] }
  0x4a   :  { %2705 = vmatpush.bf16.msra.mxu2 %v4986_v48  ;;  %2794 = vmatpush.bf16.msra.mxu3 %v4990_v52  ;;  %v5032_v16 = vld [vmem:[#allocation7] sm:$0xff]  ;;  %v170_v17 = vld [vmem:[%s12902_s3 + $0x88] sm:$0xff]  ;;  %v172_v21 = vld [vmem:[%s12902_s3 + $0x98] sm:$0xff] }
  0x4b   :  { %285 = vperm.xlu1 %5091, %v163_v59   ;;  %280 = vperm.xlu0 %5090, %v162_v60   ;;  %v169_v18 = vld [vmem:[%s12902_s3 + $0x80] sm:$0xff]  ;;  %v171_v22 = vld [vmem:[%s12902_s3 + $0x90] sm:$0xff]  ;;  %v5033_v23 = vld [vmem:[#allocation7 + $0x8] sm:$0xff] }
  0x4c   :  { %575 = vmatpush.bf16.msra.mxu0 %v4914_v61  ;;  %664 = vmatpush.bf16.msra.mxu1 %v4918_v62  ;;  %v173_v20 = vld [vmem:[%s12902_s3 + $0xa0] sm:$0xff]  ;;  %v176_v24 = vld [vmem:[%s12902_s3 + $0xb8] sm:$0xff]  ;;  %v175_v25 = vld [vmem:[%s12902_s3 + $0xb0] sm:$0xff] }
  0x4d   :  { %v174_v26 = vld [vmem:[%s12902_s3 + $0xa8] sm:$0xff]  ;;  %v179_v27 = vld [vmem:[%s12902_s3 + $0xd0] sm:$0xff]  ;;  %v177_v29 = vld [vmem:[%s12902_s3 + $0xc0] sm:$0xff] }
  0x4e   :  { %2706 = vmatpush.bf16.msra.mxu2 %v4978_v63  ;;  %2795 = vmatpush.bf16.msra.mxu3 %v4982_v3  ;;  %v178_v28 = vld [vmem:[%s12902_s3 + $0xc8] sm:$0xff]  ;;  %v5034_v30 = vld [vmem:[#allocation7 + $0x10] sm:$0xff]  ;;  %v181_v32 = vld [vmem:[%s12902_s3 + $0xe0] sm:$0xff] }
  0x4f   :  { %v182_v31 = vld [vmem:[%s12902_s3 + $0xe8] sm:$0xff]  ;;  %v180_v33 = vld [vmem:[%s12902_s3 + $0xd8] sm:$0xff]  ;;  %v183_v35 = vld [vmem:[%s12902_s3 + $0xf0] sm:$0xff] }
  0x50   :  { %576 = vmatpush.bf16.msra.mxu0 %v4906_v9  ;;  %665 = vmatpush.bf16.msra.mxu1 %v4910_v10  ;;  %v184_v34 = vld [vmem:[%s12902_s3 + $0xf8] sm:$0xff]  ;;  %v5036_v37 = vld [vmem:[#allocation7 + $0x20] sm:$0xff]  ;;  %v5037_v42 = vld [vmem:[#allocation7 + $0x28] sm:$0xff]  ;;  %s6076_s3 = smov [#allocation9]  }
  0x51   :  { %305 = vperm.xlu2 %5092, %v167_v13   ;;  %v5035_v36 = vld [vmem:[#allocation7 + $0x18] sm:$0xff]  ;;  %v6300_v38 = vld [vmem:[#allocation4] sm:$0xff]  ;;  %v6310_v44 = vld [vmem:[#allocation4 + $0x10] sm:$0xff]  ;;  %s4816_s14 = sshll.u32 %s6076_s3, 4  ;;  %s4817_s14 = int_to_ptr.vmem [resolvable:$true] %s4816_s14 }
  0x52   :  { %2707 = vmatpush.bf16.msra.mxu2 %v4970_v11  ;;  %2796 = vmatpush.bf16.msra.mxu3 %v4974_v12  ;;  %v12955_v39 = vunpack.c.l.bf16 %v6300_v38  ;;  %v12954_v40 = vunpack.c.h.bf16 %v6300_v38  ;;  %v6308_v43 = vld [vmem:[#allocation4 + $0x18] sm:$0xff]  ;;  %v6312_v45 = vld [vmem:[#allocation4 + $0x8] sm:$0xff]  ;;  %v12950_v48 = vunpack.c.l.bf16 %v6310_v44  ;;  %v12947_v49 = vunpack.c.h.bf16 %v6310_v44  ;;  %v6324_v53 = vld [vmem:[#allocation4 + $0x30] sm:$0xff] }
  0x53   :  { %300 = vperm.xlu1 %5091, %v166_v14   ;;  %295 = vperm.xlu0 %5090, %v165_v15   ;;  %v12951_v46 = vunpack.c.l.bf16 %v6308_v43  ;;  %v12942_v47 = vunpack.c.h.bf16 %v6308_v43  ;;  %v12946_v50 = vunpack.c.l.bf16 %v6312_v45  ;;  %v12943_v51 = vunpack.c.h.bf16 %v6312_v45  ;;  %v6336_v58 = vld [vmem:[#allocation4 + $0x28] sm:$0xff]  ;;  %v6338_v59 = vld [vmem:[#allocation4 + $0x20] sm:$0xff]  ;;  %v5038_v1 = vld [vmem:[#allocation7 + $0x30] sm:$0xff] }
  0x54   :  { %577 = vmatmul.bf16.vlgmr.msra.gmra.mxu0 %v5032_v16  ;;  %666 = vmatmul.bf16.vlgmr.msra.gmra.mxu1 %v5032_v16  ;;  %v1355_v41 = vmax.f32 %v12955_v39, %v12954_v40  ;;  %v1361_v54 = vmax.f32 %v12950_v48, %v12947_v49  ;;  %v12939_v56 = vunpack.c.l.bf16 %v6324_v53  ;;  %v12938_v57 = vunpack.c.h.bf16 %v6324_v53  ;;  %v6348_v2 = vld [vmem:[#allocation4 + $0x48] sm:$0xff]  ;;  %v6362_v8 = vld [vmem:[#allocation4 + $0x40] sm:$0xff]  ;;  %v6364_v9 = vld [vmem:[#allocation4 + $0x38] sm:$0xff] }
  0x55   :  { %2708 = vmatmul.bf16.vlgmr.msra.gmra.mxu2 %v5032_v16  ;;  %2797 = vmatmul.bf16.vlgmr.msra.gmra.mxu3 %v5032_v16  ;;  %v1364_v52 = vmax.f32 %v12951_v46, %v12942_v47  ;;  %v1358_v55 = vmax.f32 %v12946_v50, %v12943_v51  ;;  %v12937_v60 = vunpack.c.l.bf16 %v6336_v58  ;;  %v12931_v61 = vunpack.c.h.bf16 %v6336_v58  ;;  %v6574_v46 = vld [vmem:[#allocation4 + $0xc8] sm:$0xff] }
  0x56   :  { %v12936_v62 = vunpack.c.l.bf16 %v6338_v59  ;;  %v12928_v63 = vunpack.c.h.bf16 %v6338_v59  ;;  %v1373_v0 = vmax.f32 %v12939_v56, %v12938_v57  ;;  %v12923_v6 = vunpack.c.l.bf16 %v6348_v2  ;;  %13483 = vst [vmem:[#allocation38_spill] sm:$0xff] %v6574_v46 }
  0x57   :  { %v1370_v4 = vmax.f32 %v12937_v60, %v12931_v61  ;;  %v12918_v7 = vunpack.c.h.bf16 %v6348_v2  ;;  %v12927_v12 = vunpack.c.l.bf16 %v6362_v8  ;;  %v12926_v13 = vunpack.c.h.bf16 %v6362_v8  ;;  %v6530_v60 = vld [vmem:[#allocation4 + $0xc0] sm:$0xff] }
  0x58   :  { %v1367_v5 = vmax.f32 %v12936_v62, %v12928_v63  ;;  %v12925_v14 = vunpack.c.l.bf16 %v6364_v9  ;;  %v12924_v15 = vunpack.c.h.bf16 %v6364_v9  ;;  %v6510_v63 = vld [vmem:[#allocation4 + $0xb8] sm:$0xff]  ;;  %13476 = vst [vmem:[#allocation31_spill] sm:$0xff] %v6530_v60  ;;  %v12952_v56 = vunpack.c.h.bf16 %v6530_v60 }
  0x59   :  { %320 = vperm.xlu2 %5092, %v170_v17   ;;  %v1382_v16 = vmax.f32 %v12923_v6, %v12918_v7  ;;  %v6378_v17 = vld [vmem:[#allocation4 + $0x60] sm:$0xff]  ;;  %v6484_v7 = vld [vmem:[#allocation4 + $0x98] sm:$0xff]  ;;  %13473 = vst [vmem:[#allocation28_spill] sm:$0xff] %v6510_v63  ;;  %v12970_v40 = vunpack.c.h.bf16 %v6574_v46 }
  0x5b   :  { %315 = vperm.xlu1 %5091, %v169_v18   ;;  %310 = vperm.xlu0 %5090, %v168_v19   ;;  %v1379_v18 = vmax.f32 %v12927_v12, %v12926_v13  ;;  %v1376_v19 = vmax.f32 %v12925_v14, %v12924_v15 }
  0x61   :  { %335 = vperm.xlu2 %5092, %v173_v20   ;;  %v12913_v20 = vunpack.c.l.bf16 %v6378_v17 }
  0x63   :  { %330 = vperm.xlu1 %5091, %v172_v21   ;;  %325 = vperm.xlu0 %5090, %v171_v22   ;;  %v12912_v21 = vunpack.c.h.bf16 %v6378_v17  ;;  %v6390_v22 = vld [vmem:[#allocation4 + $0x58] sm:$0xff] }
  0x64   :  { %582 = vmatmul.bf16.gmra.mxu0 %v5033_v23  ;;  %671 = vmatmul.bf16.gmra.mxu1 %v5033_v23 }
  0x65   :  { %2713 = vmatmul.bf16.gmra.mxu2 %v5033_v23  ;;  %2802 = vmatmul.bf16.gmra.mxu3 %v5033_v23  ;;  %v6392_v23 = vld [vmem:[#allocation4 + $0x50] sm:$0xff] }
  0x69   :  { %350 = vperm.xlu2 %5092, %v176_v24  }
  0x6b   :  { %345 = vperm.xlu1 %5091, %v175_v25   ;;  %340 = vperm.xlu0 %5090, %v174_v26  }
  0x71   :  { %365 = vperm.xlu2 %5092, %v179_v27   ;;  %v12911_v27 = vunpack.c.l.bf16 %v6390_v22 }
  0x73   :  { %360 = vperm.xlu1 %5091, %v178_v28   ;;  %355 = vperm.xlu0 %5090, %v177_v29   ;;  %v12908_v28 = vunpack.c.h.bf16 %v6390_v22  ;;  %v12917_v29 = vunpack.c.l.bf16 %v6392_v23 }
  0x74   :  { %587 = vmatmul.bf16.gmra.mxu0 %v5034_v30  ;;  %676 = vmatmul.bf16.gmra.mxu1 %v5034_v30 }
  0x75   :  { %2718 = vmatmul.bf16.gmra.mxu2 %v5034_v30  ;;  %2807 = vmatmul.bf16.gmra.mxu3 %v5034_v30  ;;  %v12914_v30 = vunpack.c.h.bf16 %v6392_v23 }
  0x79   :  { %380 = vperm.xlu2 %5092, %v182_v31   ;;  %v1391_v31 = vmax.f32 %v12913_v20, %v12912_v21 }
  0x7b   :  { %375 = vperm.xlu1 %5091, %v181_v32   ;;  %370 = vperm.xlu0 %5090, %v180_v33   ;;  %v5039_v32 = vld [vmem:[#allocation7 + $0x38] sm:$0xff] }
  0x7c   :  { %v6408_v33 = vld [vmem:[#allocation4 + $0x78] sm:$0xff] }
  0x83   :  { %390 = vperm.xlu1 %5091, %v184_v34   ;;  %385 = vperm.xlu0 %5090, %v183_v35   ;;  %v1388_v34 = vmax.f32 %v12911_v27, %v12908_v28  ;;  %v1385_v35 = vmax.f32 %v12917_v29, %v12914_v30  ;;  %v6482_v29 = vld [vmem:[#allocation4 + $0xa0] sm:$0xff] }
  0x84   :  { %592 = vmatmul.bf16.gmra.mxu0 %v5035_v36  ;;  %681 = vmatmul.bf16.gmra.mxu1 %v5035_v36 }
  0x85   :  { %2723 = vmatmul.bf16.gmra.mxu2 %v5035_v36  ;;  %2812 = vmatmul.bf16.gmra.mxu3 %v5035_v36  ;;  %v12905_v36 = vunpack.c.l.bf16 %v6408_v33 }
  0x8b   :  { %v6350_v3 = vpop.permute.xlu2 %255 }
  0x8c   :  { %13460 = vst [vmem:[#allocation15_spill] sm:$0xff] %v6350_v3 }
  0x93   :  { %v6394_v24 = vpop.permute.xlu2 %260 }
  0x94   :  { %597 = vmatmul.bf16.gmra.mxu0 %v5036_v37  ;;  %686 = vmatmul.bf16.gmra.mxu1 %v5036_v37  ;;  %13463 = vst [vmem:[#allocation18_spill] sm:$0xff] %v6394_v24 }
  0x95   :  { %2728 = vmatmul.bf16.gmra.mxu2 %v5036_v37  ;;  %2817 = vmatmul.bf16.gmra.mxu3 %v5036_v37  ;;  %v12904_v37 = vunpack.c.h.bf16 %v6408_v33 }
  0xa2   :  { %1356 = vmax.xlane.f32.xlu2 %v1355_v41  ;;  %v6420_v41 = vld [vmem:[#allocation4 + $0x70] sm:$0xff] }
  0xa4   :  { %602 = vmatmul.bf16.gmra.mxu0 %v5037_v42  ;;  %691 = vmatmul.bf16.gmra.mxu1 %v5037_v42  ;;  %v6366_v10 = vpop.permute.xlu1 %245  ;;  %v6368_v11 = vpop.permute.xlu0 %235 }
  0xa5   :  { %2733 = vmatmul.bf16.gmra.mxu2 %v5037_v42  ;;  %2822 = vmatmul.bf16.gmra.mxu3 %v5037_v42  ;;  %13461 = vst [vmem:[#allocation16_spill] sm:$0xff] %v6366_v10  ;;  %v6422_v42 = vld [vmem:[#allocation4 + $0x68] sm:$0xff] }
  0xa6   :  { %13462 = vst [vmem:[#allocation17_spill] sm:$0xff] %v6368_v11 }
  0xaa   :  { %1365 = vmax.xlane.f32.xlu2 %v1364_v52  ;;  %v6424_v52 = vpop.permute.xlu2 %275 }
  0xab   :  { %13466 = vst [vmem:[#allocation21_spill] sm:$0xff] %v6424_v52 }
  0xad   :  { %1362 = vmax.xlane.f32.xlu1 %v1361_v54  ;;  %1359 = vmax.xlane.f32.xlu0 %v1358_v55  ;;  %v6396_v25 = vpop.permute.xlu1 %250  ;;  %v6398_v26 = vpop.permute.xlu0 %240  ;;  %v12907_v54 = vunpack.c.l.bf16 %v6420_v41  ;;  %v12906_v55 = vunpack.c.h.bf16 %v6420_v41 }
  0xae   :  { %13464 = vst [vmem:[#allocation19_spill] sm:$0xff] %v6396_v25 }
  0xaf   :  { %13465 = vst [vmem:[#allocation20_spill] sm:$0xff] %v6398_v26 }
  0xb2   :  { %1374 = vmax.xlane.f32.xlu2 %v1373_v0  ;;  %v12910_v0 = vunpack.c.l.bf16 %v6422_v42 }
  0xb4   :  { %607 = vmatmul.bf16.gmra.mxu0 %v5038_v1  ;;  %696 = vmatmul.bf16.gmra.mxu1 %v5038_v1 }
  0xb5   :  { %2738 = vmatmul.bf16.gmra.mxu2 %v5038_v1  ;;  %2827 = vmatmul.bf16.gmra.mxu3 %v5038_v1  ;;  %v12909_v1 = vunpack.c.h.bf16 %v6422_v42 }
  0xb6   :  { %1371 = vmax.xlane.f32.xlu1 %v1370_v4  ;;  %1368 = vmax.xlane.f32.xlu0 %v1367_v5  ;;  %v1400_v4 = vmax.f32 %v12905_v36, %v12904_v37  ;;  %v6434_v5 = vpop.permute.xlu1 %270  ;;  %v6452_v37 = vld [vmem:[#allocation4 + $0x80] sm:$0xff] }
  0xb7   :  { %13467 = vst [vmem:[#allocation22_spill] sm:$0xff] %v6434_v5  ;;  %v12921_v28 = vunpack.c.h.bf16 %v6452_v37 }
  0xba   :  { %1383 = vmax.xlane.f32.xlu2 %v1382_v16  ;;  %v6436_v16 = vpop.permute.xlu0 %265 }
  0xbb   :  { %13468 = vst [vmem:[#allocation23_spill] sm:$0xff] %v6436_v16 }
  0xbe   :  { %1380 = vmax.xlane.f32.xlu1 %v1379_v18  ;;  %1377 = vmax.xlane.f32.xlu0 %v1376_v19  ;;  %v6438_v18 = vld [vmem:[#allocation4 + $0x90] sm:$0xff]  ;;  %v1397_v19 = vmax.f32 %v12907_v54, %v12906_v55  ;;  %v12922_v54 = vunpack.c.l.bf16 %v6452_v37 }
  0xc2   :  { %1392 = vmax.xlane.f32.xlu2 %v1391_v31  ;;  %v1394_v31 = vmax.f32 %v12910_v0, %v12909_v1  ;;  %v6462_v1 = vpop.permute.xlu2 %290  ;;  %v5040_v0 = vld [vmem:[#allocation7 + $0x40] sm:$0xff] }
  0xc3   :  { %13469 = vst [vmem:[#allocation24_spill] sm:$0xff] %v6462_v1 }
  0xc4   :  { %612 = vmatmul.bf16.gmra.mxu0 %v5039_v32  ;;  %701 = vmatmul.bf16.gmra.mxu1 %v5039_v32 }
  0xc5   :  { %2743 = vmatmul.bf16.gmra.mxu2 %v5039_v32  ;;  %2832 = vmatmul.bf16.gmra.mxu3 %v5039_v32  ;;  %v12916_v32 = vunpack.c.l.bf16 %v6438_v18 }
  0xc6   :  { %1389 = vmax.xlane.f32.xlu1 %v1388_v34  ;;  %1386 = vmax.xlane.f32.xlu0 %v1385_v35  ;;  %v12915_v34 = vunpack.c.h.bf16 %v6438_v18  ;;  %v6450_v35 = vld [vmem:[#allocation4 + $0x88] sm:$0xff] }
  0xc7   :  { %v12920_v36 = vunpack.c.l.bf16 %v6450_v35  ;;  %v12919_v55 = vunpack.c.h.bf16 %v6450_v35 }
  0xca   :  { %1401 = vmax.xlane.f32.xlu2 %v1400_v4  ;;  %v1409_v4 = vmax.f32 %v12916_v32, %v12915_v34  ;;  %v1406_v34 = vmax.f32 %v12920_v36, %v12919_v55  ;;  %v1403_v32 = vmax.f32 %v12922_v54, %v12921_v28  ;;  %v12933_v55 = vunpack.c.l.bf16 %v6482_v29  ;;  %v6492_v54 = vld [vmem:[#allocation4 + $0xa8] sm:$0xff] }
  0xcb   :  { %v12932_v36 = vunpack.c.h.bf16 %v6482_v29  ;;  %v12934_v28 = vunpack.c.h.bf16 %v6484_v7  ;;  %v12941_v13 = vunpack.c.l.bf16 %v6492_v54  ;;  %v12940_v12 = vunpack.c.h.bf16 %v6492_v54 }
  0xce   :  { %1398 = vmax.xlane.f32.xlu1 %v1397_v19  ;;  %1395 = vmax.xlane.f32.xlu0 %v1394_v31  ;;  %v6464_v19 = vpop.permute.xlu1 %285  ;;  %v6466_v31 = vpop.permute.xlu0 %280 }
  0xcf   :  { %13470 = vst [vmem:[#allocation25_spill] sm:$0xff] %v6464_v19 }
  0xd0   :  { %13471 = vst [vmem:[#allocation26_spill] sm:$0xff] %v6466_v31 }
  0xd1   :  { %v578_v27 = vpop.f32.mrf.mxu0  ;;  %v667_v21 = vpop.f32.mrf.mxu1 }
  0xd2   :  { %v6469_v20 = vadd.f32 %v578_v27, %v6368_v11  ;;  %v6472_v30 = vadd.f32 %v667_v21, %v6368_v11  ;;  %1410 = vmax.xlane.f32.xlu2 %v1409_v4  ;;  %v12935_v4 = vunpack.c.l.bf16 %v6484_v7  ;;  %v6598_v11 = vld [vmem:[#allocation4 + $0xd0] sm:$0xff] }
  0xd3   :  { %13487 = vst [vmem:[#allocation42_spill] sm:$0xff] %v6598_v11 }
  0xd4   :  { %617 = vmatmul.bf16.gmra.mxu0 %v5040_v0  ;;  %706 = vmatmul.bf16.gmra.mxu1 %v5040_v0  ;;  %v12930_v21 = vmax.f32 %v6469_v20, 0.0  ;;  %v12929_v27 = vmax.f32 %v6472_v30, 0.0 }
  0xd5   :  { %2748 = vmatmul.bf16.gmra.mxu2 %v5040_v0  ;;  %2837 = vmatmul.bf16.gmra.mxu3 %v5040_v0  ;;  %v6498_v0 = vpop.permute.xlu2 %305 }
  0xd6   :  { %1407 = vmax.xlane.f32.xlu1 %v1406_v34  ;;  %1404 = vmax.xlane.f32.xlu0 %v1403_v32  ;;  %v811_v14 = vmax.f32 %v12930_v21, %v12929_v27  ;;  %13472 = vst [vmem:[#allocation27_spill] sm:$0xff] %v6498_v0  ;;  %v1415_v32 = vmax.f32 %v12933_v55, %v12932_v36  ;;  %v6512_v27 = vpop.permute.xlu1 %300  ;;  %v6514_v21 = vpop.permute.xlu0 %295  ;;  %v12944_v55 = vunpack.c.h.bf16 %v6510_v63 }
  0xd7   :  { %v1412_v34 = vmax.f32 %v12935_v4, %v12934_v28  ;;  %13474 = vst [vmem:[#allocation29_spill] sm:$0xff] %v6512_v27  ;;  %v1418_v28 = vmax.f32 %v12941_v13, %v12940_v12  ;;  %v6538_v12 = vld [vmem:[#allocation4 + $0xb0] sm:$0xff] }
  0xd8   :  { %13475 = vst [vmem:[#allocation30_spill] sm:$0xff] %v6514_v21 }
  0xd9   :  { %v580_v6 = vpop.f32.mrf.mxu0  ;;  %v669_v15 = vpop.f32.mrf.mxu1  ;;  %13477 = vst [vmem:[#allocation32_spill] sm:$0xff] %v6538_v12 }
  0xda   :  { %812 = vmax.xlane.f32.xlu2 %v811_v14  ;;  %v6517_v61 = vadd.f32 %v580_v6, %v6398_v26  ;;  %v6520_v36 = vadd.f32 %v669_v15, %v6398_v26  ;;  %v12945_v14 = vunpack.c.l.bf16 %v6510_v63  ;;  %v5041_v6 = vld [vmem:[#allocation7 + $0x48] sm:$0xff] }
  0xdc   :  { %v12949_v4 = vmax.f32 %v6517_v61, 0.0  ;;  %v12948_v62 = vmax.f32 %v6520_v36, 0.0 }
  0xdd   :  { %v6540_v13 = vpop.permute.xlu2 %320 }
  0xde   :  { %1416 = vmax.xlane.f32.xlu1 %v1415_v32  ;;  %1413 = vmax.xlane.f32.xlu0 %v1412_v34  ;;  %v1424_v32 = vmax.f32 %v12945_v14, %v12944_v55  ;;  %v12953_v34 = vunpack.c.l.bf16 %v6530_v60  ;;  %13478 = vst [vmem:[#allocation33_spill] sm:$0xff] %v6540_v13  ;;  %v6552_v55 = vpop.permute.xlu1 %315  ;;  %v6554_v14 = vpop.permute.xlu0 %310 }
  0xdf   :  { %13479 = vst [vmem:[#allocation34_spill] sm:$0xff] %v6552_v55 }
  0xe0   :  { %13480 = vst [vmem:[#allocation35_spill] sm:$0xff] %v6554_v14  ;;  %v1427_v50 = vmax.f32 %v12953_v34, %v12952_v56 }
  0xe1   :  { %v583_v15 = vpop.f32.mrf.mxu0  ;;  %v672_v57 = vpop.f32.mrf.mxu1 }
  0xe2   :  { %1419 = vmax.xlane.f32.xlu2 %v1418_v28  ;;  %v6543_v47 = vadd.f32 %v583_v15, %v6366_v10  ;;  %v6546_v51 = vadd.f32 %v672_v57, %v6366_v10  ;;  %v814_v28 = vmax.f32 %v12949_v4, %v12948_v62  ;;  %v12957_v15 = vunpack.c.l.bf16 %v6538_v12 }
  0xe3   :  { %v12956_v57 = vunpack.c.h.bf16 %v6538_v12  ;;  %v12979_v10 = vunpack.c.l.bf16 %v6598_v11 }
  0xe4   :  { %622 = vmatmul.bf16.gmra.mxu0 %v5041_v6  ;;  %711 = vmatmul.bf16.gmra.mxu1 %v5041_v6  ;;  %v12963_v49 = vmax.f32 %v6543_v47, 0.0  ;;  %v12962_v62 = vmax.f32 %v6546_v51, 0.0 }
  0xe5   :  { %2753 = vmatmul.bf16.gmra.mxu2 %v5041_v6  ;;  %2842 = vmatmul.bf16.gmra.mxu3 %v5041_v6  ;;  %v6584_v39 = vpop.permute.xlu2 %335 }
  0xe6   :  { %1425 = vmax.xlane.f32.xlu1 %v1424_v32  ;;  %815 = vmax.xlane.f32.xlu0 %v814_v28  ;;  %v1421_v28 = vmax.f32 %v12957_v15, %v12956_v57  ;;  %v817_v56 = vmax.f32 %v12963_v49, %v12962_v62  ;;  %13484 = vst [vmem:[#allocation39_spill] sm:$0xff] %v6584_v39  ;;  %v6586_v57 = vpop.permute.xlu1 %330  ;;  %v5042_v15 = vld [vmem:[#allocation7 + $0x50] sm:$0xff]  ;;  %v12978_v39 = vunpack.c.h.bf16 %v6598_v11 }
  0xe7   :  { %13485 = vst [vmem:[#allocation40_spill] sm:$0xff] %v6586_v57 }
  0xe9   :  { %v585_v6 = vpop.f32.mrf.mxu0  ;;  %v674_v4 = vpop.f32.mrf.mxu1 }
  0xea   :  { %v6565_v48 = vadd.f32 %v585_v6, %v6396_v25  ;;  %v6568_v32 = vadd.f32 %v674_v4, %v6396_v25  ;;  %1428 = vmax.xlane.f32.xlu2 %v1427_v50  ;;  %v12971_v4 = vunpack.c.l.bf16 %v6574_v46  ;;  %v6588_v50 = vpop.permute.xlu0 %325 }
  0xeb   :  { %13486 = vst [vmem:[#allocation41_spill] sm:$0xff] %v6588_v50  ;;  %v6608_v50 = vld [vmem:[#allocation4 + $0xe0] sm:$0xff] }
  0xec   :  { %13481 = vst [vmem:[#allocation36_spill] sm:$0xff] %v6565_v48  ;;  %v12973_v34 = vmax.f32 %v6565_v48, 0.0  ;;  %v12972_v6 = vmax.f32 %v6568_v32, 0.0  ;;  %v1430_v49 = vmax.f32 %v12971_v4, %v12970_v40  ;;  %v1433_v40 = vmax.f32 %v12979_v10, %v12978_v39  ;;  %v6626_v10 = vld [vmem:[#allocation4 + $0xe8] sm:$0xff] }
  0xed   :  { %13482 = vst [vmem:[#allocation37_spill] sm:$0xff] %v6568_v32  ;;  %v12996_v11 = vunpack.c.h.bf16 %v6626_v10 }
  0xee   :  { %818 = vmax.xlane.f32.xlu1 %v817_v56  ;;  %1422 = vmax.xlane.f32.xlu0 %v1421_v28  ;;  %v820_v62 = vmax.f32 %v12973_v34, %v12972_v6  ;;  %13490 = vst [vmem:[#allocation45_spill] sm:$0xff] %v6608_v50  ;;  %v6618_v6 = vpop.permute.xlu2 %350  ;;  %v6620_v34 = vld [vmem:[#allocation4 + $0xd8] sm:$0xff] }
  0xef   :  { %13491 = vst [vmem:[#allocation46_spill] sm:$0xff] %v6618_v6  ;;  %v12997_v6 = vunpack.c.l.bf16 %v6626_v10 }
  0xf0   :  { %13492 = vst [vmem:[#allocation47_spill] sm:$0xff] %v6620_v34 }
  0xf1   :  { %v588_v25 = vpop.f32.mrf.mxu0  ;;  %v677_v26 = vpop.f32.mrf.mxu1  ;;  %13493 = vst [vmem:[#allocation48_spill] sm:$0xff] %v6626_v10 }
  0xf2   :  { %v6601_v56 = vadd.f32 %v588_v25, %v6350_v3  ;;  %v6604_v28 = vadd.f32 %v677_v26, %v6350_v3  ;;  %821 = vmax.xlane.f32.xlu2 %v820_v62  ;;  %v12989_v26 = vunpack.c.l.bf16 %v6608_v50  ;;  %v12988_v62 = vunpack.c.h.bf16 %v6608_v50 }
  0xf4   :  { %13488 = vst [vmem:[#allocation43_spill] sm:$0xff] %v6601_v56  ;;  %627 = vmatmul.bf16.gmra.mxu0 %v5042_v15  ;;  %716 = vmatmul.bf16.gmra.mxu1 %v5042_v15  ;;  %v12985_v25 = vmax.f32 %v6601_v56, 0.0  ;;  %v12984_v4 = vmax.f32 %v6604_v28, 0.0  ;;  %v13526_v56 = vunpack.c.l.bf16 %v6310_v44 }
  0xf5   :  { %13489 = vst [vmem:[#allocation44_spill] sm:$0xff] %v6604_v28  ;;  %2758 = vmatmul.bf16.gmra.mxu2 %v5042_v15  ;;  %2847 = vmatmul.bf16.gmra.mxu3 %v5042_v15  ;;  %v6628_v15 = vpop.permute.xlu1 %345  ;;  %v12999_v28 = vunpack.c.l.bf16 %v6620_v34 }
  0xf6   :  { %1431 = vmax.xlane.f32.xlu0 %v1430_v49  ;;  %1434 = vmax.xlane.f32.xlu1 %v1433_v40  ;;  %v823_v39 = vmax.f32 %v12985_v25, %v12984_v4  ;;  %13494 = vst [vmem:[#allocation49_spill] sm:$0xff] %v6628_v15  ;;  %v6630_v49 = vpop.permute.xlu0 %340  ;;  %v1439_v40 = vmax.f32 %v12989_v26, %v12988_v62  ;;  %v12998_v4 = vunpack.c.h.bf16 %v6620_v34  ;;  %v6640_v25 = vpop.f32.mrf.mxu2 }
  0xf7   :  { %13495 = vst [vmem:[#allocation50_spill] sm:$0xff] %v6630_v49  ;;  %v1442_v62 = vmax.f32 %v12997_v6, %v12996_v11  ;;  %v6652_v26 = vpop.f32.mrf.mxu3  ;;  %v6666_v11 = vpop.permute.xlu2 %365 }
  0xf8   :  { %13496 = vst [vmem:[#allocation51_spill] sm:$0xff] %v6640_v25 }
  0xf9   :  { %v590_v3 = vpop.f32.mrf.mxu0  ;;  %v679_v46 = vpop.f32.mrf.mxu1  ;;  %13499 = vst [vmem:[#allocation54_spill] sm:$0xff] %v6652_v26  ;;  %v6678_v26 = vld [vmem:[#allocation4 + $0xf8] sm:$0xff] }
  0xfa   :  { %824 = vmax.xlane.f32.xlu2 %v823_v39  ;;  %v6643_v15 = vadd.f32 %v590_v3, %v6394_v24  ;;  %v6646_v49 = vadd.f32 %v679_v46, %v6394_v24  ;;  %v1436_v39 = vmax.f32 %v12999_v28, %v12998_v4  ;;  %v5043_v46 = vld [vmem:[#allocation7 + $0x58] sm:$0xff]  ;;  %v6660_v24 = vld [vmem:[#allocation4 + $0xf0] sm:$0xff]  ;;  %13501 = vst [vmem:[#allocation56_spill] sm:$0xff] %v6666_v11 }
  0xfb   :  { %13500 = vst [vmem:[#allocation55_spill] sm:$0xff] %v6660_v24  ;;  %v13506_v11 = vunpack.c.h.bf16 %v6660_v24 }
  0xfc   :  { %13497 = vst [vmem:[#allocation52_spill] sm:$0xff] %v6643_v15  ;;  %v13007_v3 = vmax.f32 %v6643_v15, 0.0  ;;  %v13006_v25 = vmax.f32 %v6646_v49, 0.0 }
  0xfd   :  { %13498 = vst [vmem:[#allocation53_spill] sm:$0xff] %v6646_v49  ;;  %v6670_v6 = vpop.permute.xlu1 %360 }
  0xfe   :  { %1440 = vmax.xlane.f32.xlu0 %v1439_v40  ;;  %1443 = vmax.xlane.f32.xlu1 %v1442_v62  ;;  %13502 = vst [vmem:[#allocation57_spill] sm:$0xff] %v6670_v6  ;;  %v6672_v4 = vpop.permute.xlu0 %355  ;;  %v826_v28 = vmax.f32 %v13007_v3, %v13006_v25  ;;  %v13014_v62 = vunpack.c.l.bf16 %v6678_v26  ;;  %v13013_v40 = vunpack.c.h.bf16 %v6678_v26  ;;  %v13507_v6 = vunpack.c.l.bf16 %v6660_v24 }
  0xff   :  { %13503 = vst [vmem:[#allocation58_spill] sm:$0xff] %v6672_v4  ;;  %v6688_v34 = vpop.f32.mrf.mxu3 }
 0x100   :  { %13504 = vst [vmem:[#allocation59_spill] sm:$0xff] %v6678_v26  ;;  %v1445_v4 = vmax.f32 %v13507_v6, %v13506_v11 }
 0x101   :  { %v6662_v50 = vpop.f32.mrf.mxu0  ;;  %v6664_v10 = vpop.f32.mrf.mxu1  ;;  %13508 = vst [vmem:[#allocation61_spill] sm:$0xff] %v6688_v34 }
 0x102   :  { %1437 = vmax.xlane.f32.xlu2 %v1436_v39  ;;  %v6680_v39 = vpop.f32.mrf.mxu2 }
 0x103   :  { %13505 = vst [vmem:[#allocation60_spill] sm:$0xff] %v6680_v39  ;;  %v6700_v39 = vpop.permute.xlu2 %380 }
 0x104   :  { %632 = vmatmul.bf16.gmra.mxu0 %v5043_v46  ;;  %721 = vmatmul.bf16.gmra.mxu1 %v5043_v46  ;;  %13511 = vst [vmem:[#allocation64_spill] sm:$0xff] %v6700_v39  ;;  %v13517_v39 = vunpack.c.h.bf16 %v6300_v38 }
 0x105   :  { %2763 = vmatmul.bf16.gmra.mxu2 %v5043_v46  ;;  %2852 = vmatmul.bf16.gmra.mxu3 %v5043_v46  ;;  %v6704_v34 = vpop.permute.xlu1 %375 }
 0x106   :  { %827 = vmax.xlane.f32.xlu0 %v826_v28  ;;  %v1448_v28 = vmax.f32 %v13014_v62, %v13013_v40  ;;  %13512 = vst [vmem:[#allocation65_spill] sm:$0xff] %v6704_v34  ;;  %v6706_v24 = vpop.permute.xlu0 %370  ;;  %v13516_v62 = vunpack.c.l.bf16 %v6300_v38 }
 0x107   :  { %13513 = vst [vmem:[#allocation66_spill] sm:$0xff] %v6706_v24  ;;  %v6718_v40 = vpop.f32.mrf.mxu3 }
 0x108   :  { %13515 = vst [vmem:[#allocation68_spill] sm:$0xff] %v6718_v40 }
 0x109   :  { %v595_v49 = vpop.f32.mrf.mxu0  ;;  %v684_v25 = vpop.f32.mrf.mxu1 }
 0x10a   :  { %v6691_v46 = vadd.f32 %v595_v49, %v6434_v5  ;;  %v6694_v3 = vadd.f32 %v684_v25, %v6434_v5  ;;  %1446 = vmax.xlane.f32.xlu2 %v1445_v4  ;;  %v6708_v49 = vpop.f32.mrf.mxu2  ;;  %v5044_v25 = vld [vmem:[#allocation7 + $0x60] sm:$0xff] }
 0x10b   :  { %13514 = vst [vmem:[#allocation67_spill] sm:$0xff] %v6708_v49 }
 0x10c   :  { %13509 = vst [vmem:[#allocation62_spill] sm:$0xff] %v6691_v46  ;;  %v13021_v11 = vmax.f32 %v6691_v46, 0.0  ;;  %v13020_v6 = vmax.f32 %v6694_v3, 0.0 }
 0x10d   :  { %13510 = vst [vmem:[#allocation63_spill] sm:$0xff] %v6694_v3  ;;  %v6728_v24 = vpop.permute.xlu1 %390 }
 0x10e   :  { %1449 = vmax.xlane.f32.xlu0 %v1448_v28  ;;  %v832_v4 = vmax.f32 %v13021_v11, %v13020_v6  ;;  %13519 = vst [vmem:[#allocation70_spill] sm:$0xff] %v6728_v24  ;;  %v6730_v26 = vpop.permute.xlu0 %385 }
 0x10f   :  { %13520 = vst [vmem:[#allocation71_spill] sm:$0xff] %v6730_v26 }
 0x111   :  { %v6710_v5 = vpop.f32.mrf.mxu0  ;;  %v6712_v15 = vpop.f32.mrf.mxu1 }
 0x112   :  { %833 = vmax.xlane.f32.xlu2 %v832_v4  ;;  %v6738_v40 = vpop.f32.mrf.mxu2 }
 0x113   :  { %13521 = vst [vmem:[#allocation72_spill] sm:$0xff] %v6738_v40  ;;  %v13527_v40 = vunpack.c.h.bf16 %v6310_v44 }
 0x114   :  { %637 = vmatmul.bf16.gmra.mxu0 %v5044_v25  ;;  %726 = vmatmul.bf16.gmra.mxu1 %v5044_v25 }
 0x115   :  { %2768 = vmatmul.bf16.gmra.mxu2 %v5044_v25  ;;  %2857 = vmatmul.bf16.gmra.mxu3 %v5044_v25  ;;  %v1357_v28 = vpop.xlane.xlu2 %1356 }
 0x116   :  { %v6722_v49 = vsub.f32 %v13516_v62, %v1357_v28  ;;  %v6726_v34 = vsub.f32 %v13517_v39, %v1357_v28  ;;  %v6740_v62 = vpop.f32.mrf.mxu3  ;;  %v5045_v39 = vld [vmem:[#allocation7 + $0x68] sm:$0xff]  ;;  %v13523_v28 = vunpack.c.l.bf16 %v6308_v43 }
 0x117   :  { %13522 = vst [vmem:[#allocation73_spill] sm:$0xff] %v6740_v62  ;;  %v13530_v62 = vunpack.c.h.bf16 %v6312_v45 }
 0x118   :  { %13518 = vst [vmem:[#allocation69_spill] sm:$0xff] %v6726_v34  ;;  %v1515_v6 = vmul.f32 1.442695, %v6722_v49  ;;  %v1517_v4 = vmul.f32 1.442695, %v6726_v34 }
 0x119   :  { %v6734_v11 = vpop.f32.mrf.mxu0  ;;  %v6736_v25 = vpop.f32.mrf.mxu1 }
 0x11a   :  { %5093 = vpow2.f32 %v1515_v6  ;;  %v13529_v6 = vunpack.c.l.bf16 %v6312_v45  ;;  %v6777_v45 = vpop.f32.mrf.mxu2 }
 0x11b   :  { %5095 = vpow2.f32 %v1517_v4  ;;  %13534 = vst [vmem:[#allocation79_spill] sm:$0xff] %v6777_v45 }
 0x11d   :  { %v1366_v38 = vpop.xlane.xlu2 %1365 }
 0x11e   :  { %v6744_v24 = vsub.f32 %v13523_v28, %v1366_v38 }
 0x120   :  { %13524 = vst [vmem:[#allocation74_spill] sm:$0xff] %v6744_v24  ;;  %v1363_v26 = vpop.xlane.xlu1 %1362  ;;  %v1360_v3 = vpop.xlane.xlu0 %1359 }
 0x121   :  { %v6746_v46 = vpop.eup %5093  ;;  %v6750_v63 = vsub.f32 %v13526_v56, %v1363_v26  ;;  %v6754_v34 = vsub.f32 %v13527_v40, %v1363_v26  ;;  %v6758_v4 = vsub.f32 %v13529_v6, %v1360_v3  ;;  %v6762_v28 = vsub.f32 %v13530_v62, %v1360_v3  ;;  %v6764_v60 = vpop.f32.mrf.mxu0 }
 0x122   :  { %13525 = vst [vmem:[#allocation75_spill] sm:$0xff] %v6746_v46  ;;  %v6766_v57 = vpop.f32.mrf.mxu1  ;;  %v6768_v32 = vpop.eup %5095  ;;  %v13532_v56 = vunpack.c.h.bf16 %v6308_v43  ;;  %v6781_v3 = vadd.f32 %v6662_v50, %v6436_v16  ;;  %v6785_v62 = vadd.f32 %v6664_v10, %v6436_v16  ;;  %v1527_v6 = vmul.f32 1.442695, %v6744_v24 }
 0x123   :  { %13528 = vst [vmem:[#allocation76_spill] sm:$0xff] %v6754_v34  ;;  %v1523_v44 = vmul.f32 1.442695, %v6750_v63  ;;  %v1525_v26 = vmul.f32 1.442695, %v6754_v34  ;;  %v13538_v34 = vunpack.c.l.bf16 %v6324_v53  ;;  %v13540_v16 = vunpack.c.h.bf16 %v6324_v53 }
 0x124   :  { %13531 = vst [vmem:[#allocation77_spill] sm:$0xff] %v6768_v32  ;;  %v6772_v48 = vsub.f32 %v13532_v56, %v1366_v38  ;;  %v1519_v40 = vmul.f32 1.442695, %v6758_v4  ;;  %642 = vmatmul.bf16.gmra.mxu0 %v5045_v39  ;;  %731 = vmatmul.bf16.gmra.mxu1 %v5045_v39  ;;  %v1521_v43 = vmul.f32 1.442695, %v6762_v28  ;;  %v6788_v38 = vpop.f32.mrf.mxu3  ;;  %v1643_v56 = vadd.f32 %v6768_v32, %v6746_v46 }
 0x125   :  { %13535 = vst [vmem:[#allocation80_spill] sm:$0xff] %v6781_v3  ;;  %2773 = vmatmul.bf16.gmra.mxu2 %v5045_v39  ;;  %2862 = vmatmul.bf16.gmra.mxu3 %v5045_v39  ;;  %5097 = vpow2.f32 %v1523_v44  ;;  %v1375_v45 = vpop.xlane.xlu2 %1374  ;;  %v13544_v53 = vunpack.c.l.bf16 %v6338_v59  ;;  %v13548_v39 = vunpack.c.h.bf16 %v6338_v59  ;;  %v6833_v32 = vadd.f32 %v6710_v5, %v6424_v52 }
 0x126   :  { %13533 = vst [vmem:[#allocation78_spill] sm:$0xff] %v6772_v48  ;;  %v1529_v50 = vmul.f32 1.442695, %v6772_v48  ;;  %5099 = vpow2.f32 %v1525_v26  ;;  %v6796_v10 = vsub.f32 %v13538_v34, %v1375_v45  ;;  %v6800_v12 = vsub.f32 %v13540_v16, %v1375_v45  ;;  %1644 = vadd.xlane.f32.xlu1 %v1643_v56 }
 0x127   :  { %13536 = vst [vmem:[#allocation81_spill] sm:$0xff] %v6785_v62  ;;  %5101 = vpow2.f32 %v1519_v40  ;;  %v13542_v48 = vunpack.c.l.bf16 %v6336_v58  ;;  %v13546_v56 = vunpack.c.h.bf16 %v6336_v58  ;;  %v13553_v58 = vmax.f32 %v6785_v62, 0.0 }
 0x128   :  { %13537 = vst [vmem:[#allocation82_spill] sm:$0xff] %v6788_v38  ;;  %5103 = vpow2.f32 %v1521_v43  ;;  %v1539_v26 = vmul.f32 1.442695, %v6796_v10  ;;  %v1541_v43 = vmul.f32 1.442695, %v6800_v12 }
 0x129   :  { %13539 = vst [vmem:[#allocation83_spill] sm:$0xff] %v6796_v10  ;;  %v1372_v38 = vpop.xlane.xlu1 %1371  ;;  %v1369_v24 = vpop.xlane.xlu0 %1368  ;;  %5105 = vpow2.f32 %v1527_v6 }
 0x12a   :  { %13541 = vst [vmem:[#allocation84_spill] sm:$0xff] %v6800_v12  ;;  %v6807_v34 = vsub.f32 %v13542_v48, %v1372_v38  ;;  %v6811_v16 = vsub.f32 %v13544_v53, %v1369_v24  ;;  %v6813_v40 = vpop.f32.mrf.mxu0  ;;  %v6815_v45 = vpop.f32.mrf.mxu1  ;;  %5107 = vpow2.f32 %v1529_v50  ;;  %v6820_v6 = vsub.f32 %v13546_v56, %v1372_v38 }
 0x12b   :  { %v6824_v44 = vsub.f32 %v13548_v39, %v1369_v24  ;;  %v6826_v48 = vpop.eup %5097  ;;  %13552 = vst [vmem:[#allocation91_spill] sm:$0xff] %v6833_v32  ;;  %v13554_v38 = vmax.f32 %v6781_v3, 0.0  ;;  %v6844_v24 = vadd.f32 %v6712_v15, %v6424_v52  ;;  %5109 = vpow2.f32 %v1539_v26  ;;  %v5046_v26 = vld [vmem:[#allocation7 + $0x70] sm:$0xff] }
 0x12c   :  { %13543 = vst [vmem:[#allocation85_spill] sm:$0xff] %v6807_v34  ;;  %v1531_v53 = vmul.f32 1.442695, %v6811_v16  ;;  %v6829_v10 = vpop.eup %5099  ;;  %v1535_v39 = vmul.f32 1.442695, %v6807_v34  ;;  %5111 = vpow2.f32 %v1541_v43 }
 0x12d   :  { %13545 = vst [vmem:[#allocation86_spill] sm:$0xff] %v6811_v16  ;;  %v1533_v50 = vmul.f32 1.442695, %v6824_v44  ;;  %v829_v56 = vmax.f32 %v13554_v38, %v13553_v58  ;;  %v6840_v59 = vpop.eup %5101  ;;  %v1649_v5 = vadd.f32 %v6829_v10, %v6826_v48  ;;  %v1384_v12 = vpop.xlane.xlu2 %1383  ;;  %v1537_v62 = vmul.f32 1.442695, %v6820_v6 }
 0x12e   :  { %13547 = vst [vmem:[#allocation87_spill] sm:$0xff] %v6820_v6  ;;  %v6849_v16 = vpop.eup %5103  ;;  %v6854_v58 = vpop.f32.mrf.mxu2  ;;  %5113 = vpow2.f32 %v1531_v53 }
 0x12f   :  { %13549 = vst [vmem:[#allocation88_spill] sm:$0xff] %v6824_v44  ;;  %v6852_v3 = vpop.eup %5105  ;;  %v6856_v38 = vpop.f32.mrf.mxu3  ;;  %830 = vmax.xlane.f32.xlu1 %v829_v56  ;;  %1650 = vadd.xlane.f32.xlu0 %v1649_v5  ;;  %v1646_v15 = vadd.f32 %v6849_v16, %v6840_v59  ;;  %5115 = vpow2.f32 %v1533_v50 }
 0x130   :  { %13550 = vst [vmem:[#allocation89_spill] sm:$0xff] %v6826_v48  ;;  %v6860_v52 = vpop.eup %5107  ;;  %5117 = vpow2.f32 %v1535_v39  ;;  %v13566_v48 = vunpack.c.l.bf16 %v6364_v9 }
 0x131   :  { %13551 = vst [vmem:[#allocation90_spill] sm:$0xff] %v6829_v10  ;;  %v1381_v10 = vpop.xlane.xlu1 %1380  ;;  %v1378_v43 = vpop.xlane.xlu0 %1377  ;;  %1647 = vadd.xlane.f32.xlu2 %v1646_v15  ;;  %5119 = vpow2.f32 %v1537_v62  ;;  %v1652_v39 = vadd.f32 %v6860_v52, %v6852_v3  ;;  %v13569_v15 = vunpack.c.h.bf16 %v6364_v9  ;;  %v6905_v9 = vadd.f32 %v6766_v57, %v6464_v19 }
 0x132   :  { %13555 = vst [vmem:[#allocation92_spill] sm:$0xff] %v6844_v24  ;;  %v6868_v56 = vpop.f32.mrf.mxu0  ;;  %v6870_v5 = vpop.f32.mrf.mxu1  ;;  %v6880_v6 = vsub.f32 %v13566_v48, %v1378_v43  ;;  %v13571_v48 = vmax.f32 %v6844_v24, 0.0  ;;  %v13575_v57 = vunpack.c.l.bf16 %v6348_v2 }
 0x133   :  { %13556 = vst [vmem:[#allocation93_spill] sm:$0xff] %v6849_v16  ;;  %v6876_v34 = vpop.eup %5109  ;;  %v6888_v62 = vsub.f32 %v13569_v15, %v1378_v43 }
 0x134   :  { %13557 = vst [vmem:[#allocation94_spill] sm:$0xff] %v6852_v3  ;;  %647 = vmatmul.bf16.gmra.mxu0 %v5046_v26  ;;  %736 = vmatmul.bf16.gmra.mxu1 %v5046_v26  ;;  %v1543_v15 = vmul.f32 1.442695, %v6880_v6  ;;  %v13579_v3 = vunpack.c.h.bf16 %v6348_v2  ;;  %v6948_v2 = vadd.f32 %v6736_v25, %v6466_v31 }
 0x135   :  { %13558 = vst [vmem:[#allocation95_spill] sm:$0xff] %v6854_v58  ;;  %v13563_v58 = vunpack.c.h.bf16 %v6362_v8  ;;  %2778 = vmatmul.bf16.gmra.mxu2 %v5046_v26  ;;  %2867 = vmatmul.bf16.gmra.mxu3 %v5046_v26  ;;  %v1393_v46 = vpop.xlane.xlu2 %1392 }
 0x136   :  { %13559 = vst [vmem:[#allocation96_spill] sm:$0xff] %v6856_v38  ;;  %v13561_v38 = vunpack.c.l.bf16 %v6362_v8 }
 0x137   :  { %13560 = vst [vmem:[#allocation97_spill] sm:$0xff] %v6860_v52  ;;  %v6874_v50 = vsub.f32 %v13563_v58, %v1381_v10  ;;  %v13572_v58 = vmax.f32 %v6833_v32, 0.0  ;;  %v6901_v52 = vadd.f32 %v6764_v60, %v6464_v19  ;;  %1653 = vadd.xlane.f32.xlu1 %v1652_v39  ;;  %v1545_v60 = vmul.f32 1.442695, %v6888_v62  ;;  %v6926_v39 = vpop.f32.mrf.mxu3 }
 0x138   :  { %v6866_v53 = vsub.f32 %v13561_v38, %v1381_v10  ;;  %13565 = vst [vmem:[#allocation100_spill] sm:$0xff] %v6876_v34  ;;  %v6884_v38 = vpop.eup %5111  ;;  %v6918_v19 = vsub.f32 %v13575_v57, %v1384_v12 }
 0x139   :  { %13564 = vst [vmem:[#allocation99_spill] sm:$0xff] %v6874_v50  ;;  %v6890_v8 = vpop.eup %5113  ;;  %v835_v44 = vmax.f32 %v13572_v58, %v13571_v48  ;;  %v1549_v26 = vmul.f32 1.442695, %v6874_v50  ;;  %v1387_v24 = vpop.xlane.xlu0 %1386  ;;  %v1661_v57 = vadd.f32 %v6884_v38, %v6876_v34 }
 0x13a   :  { %13562 = vst [vmem:[#allocation98_spill] sm:$0xff] %v6866_v53  ;;  %v1547_v10 = vmul.f32 1.442695, %v6866_v53  ;;  %v6897_v16 = vpop.eup %5115  ;;  %v1390_v53 = vpop.xlane.xlu1 %1389 }
 0x13b   :  { %13567 = vst [vmem:[#allocation101_spill] sm:$0xff] %v6880_v6  ;;  %v6908_v43 = vpop.eup %5117  ;;  %836 = vmax.xlane.f32.xlu0 %v835_v44  ;;  %v1655_v48 = vadd.f32 %v6897_v16, %v6890_v8  ;;  %v6920_v50 = vpop.f32.mrf.mxu0  ;;  %v6944_v6 = vadd.f32 %v6734_v11, %v6466_v31  ;;  %v13586_v11 = vunpack.c.l.bf16 %v6378_v17 }
 0x13c   :  { %13568 = vst [vmem:[#allocation102_spill] sm:$0xff] %v6884_v38  ;;  %v6913_v58 = vpop.eup %5119  ;;  %5121 = vpow2.f32 %v1547_v10  ;;  %v6922_v32 = vpop.f32.mrf.mxu1  ;;  %v13581_v10 = vunpack.c.l.bf16 %v6392_v23  ;;  %v13591_v38 = vunpack.c.h.bf16 %v6378_v17  ;;  %v13595_v17 = vunpack.c.h.bf16 %v6390_v22 }
 0x13d   :  { %13570 = vst [vmem:[#allocation103_spill] sm:$0xff] %v6888_v62  ;;  %1656 = vadd.xlane.f32.xlu2 %v1655_v48  ;;  %v6924_v44 = vpop.f32.mrf.mxu2  ;;  %5123 = vpow2.f32 %v1549_v26  ;;  %v1551_v26 = vmul.f32 1.442695, %v6918_v19 }
 0x13e   :  { %13573 = vst [vmem:[#allocation104_spill] sm:$0xff] %v6897_v16  ;;  %v6932_v16 = vsub.f32 %v13579_v3, %v1384_v12  ;;  %5125 = vpow2.f32 %v1543_v15  ;;  %v6936_v48 = vsub.f32 %v13581_v10, %v1387_v24  ;;  %v13583_v12 = vunpack.c.h.bf16 %v6392_v23  ;;  %v6955_v15 = vpop.xlane.xlu2 %1401 }
 0x13f   :  { %13574 = vst [vmem:[#allocation105_spill] sm:$0xff] %v6905_v9  ;;  %5127 = vpow2.f32 %v1545_v60  ;;  %1662 = vadd.xlane.f32.xlu1 %v1661_v57  ;;  %v13588_v23 = vmax.f32 %v6905_v9, 0.0 }
 0x140   :  { %13576 = vst [vmem:[#allocation106_spill] sm:$0xff] %v6918_v19  ;;  %v6952_v3 = vsub.f32 %v13583_v12, %v1387_v24  ;;  %v1553_v10 = vmul.f32 1.442695, %v6932_v16  ;;  %v1555_v25 = vmul.f32 1.442695, %v6936_v48  ;;  %v13589_v24 = vmax.f32 %v6901_v52, 0.0 }
 0x141   :  { %13577 = vst [vmem:[#allocation107_spill] sm:$0xff] %v6924_v44  ;;  %v6962_v44 = vsub.f32 %v13586_v11, %v1393_v46  ;;  %v5047_v12 = vld [vmem:[#allocation7 + $0x78] sm:$0xff]  ;;  %v6975_v11 = vsub.f32 %v13591_v38, %v1393_v46  ;;  %5129 = vpow2.f32 %v1551_v26  ;;  %v6992_v46 = vsub.f32 %v13595_v17, %v1390_v53 }
 0x142   :  { %13578 = vst [vmem:[#allocation108_spill] sm:$0xff] %v6926_v39  ;;  %v1658_v39 = vadd.f32 %v6913_v58, %v6908_v43  ;;  %v6958_v62 = vpop.eup %5121  ;;  %v841_v60 = vmax.f32 %v13589_v24, %v13588_v23  ;;  %v1399_v57 = vpop.xlane.xlu1 %1398  ;;  %v13593_v23 = vunpack.c.l.bf16 %v6390_v22  ;;  %5131 = vpow2.f32 %v1553_v10 }
 0x143   :  { %13580 = vst [vmem:[#allocation109_spill] sm:$0xff] %v6932_v16  ;;  %v6969_v31 = vpop.eup %5123  ;;  %v6984_v9 = vpop.f32.mrf.mxu0  ;;  %v1563_v38 = vmul.f32 1.442695, %v6962_v44  ;;  %5133 = vpow2.f32 %v1555_v25  ;;  %v13599_v22 = vmax.f32 %v6948_v2, 0.0  ;;  %v7008_v25 = vadd.f32 %v6813_v40, %v6462_v1 }
 0x144   :  { %13582 = vst [vmem:[#allocation110_spill] sm:$0xff] %v6936_v48  ;;  %1659 = vadd.xlane.f32.xlu0 %v1658_v39  ;;  %v1557_v48 = vmul.f32 1.442695, %v6952_v3  ;;  %v1396_v39 = vpop.xlane.xlu0 %1395  ;;  %v6978_v34 = vpop.eup %5125  ;;  %v6982_v24 = vsub.f32 %v13593_v23, %v1390_v53  ;;  %652 = vmatmul.bf16.gmra.mxu0 %v5047_v12  ;;  %v1667_v26 = vadd.f32 %v6969_v31, %v6958_v62  ;;  %v13600_v53 = vmax.f32 %v6944_v6, 0.0 }
 0x145   :  { %13584 = vst [vmem:[#allocation111_spill] sm:$0xff] %v6952_v3  ;;  %842 = vmax.xlane.f32.xlu2 %v841_v60  ;;  %v6986_v16 = vpop.f32.mrf.mxu1  ;;  %v6988_v19 = vpop.eup %5127  ;;  %741 = vmatmul.bf16.gmra.mxu1 %v5047_v12  ;;  %v1565_v3 = vmul.f32 1.442695, %v6975_v11  ;;  %v7012_v17 = vadd.f32 %v6815_v45, %v6462_v1  ;;  %v13611_v1 = vunpack.c.l.bf16 %v6422_v42 }
 0x146   :  { %13585 = vst [vmem:[#allocation112_spill] sm:$0xff] %v6958_v62  ;;  %v6997_v60 = vpop.f32.mrf.mxu2  ;;  %v6999_v23 = vpop.f32.mrf.mxu3  ;;  %5135 = vpow2.f32 %v1557_v48  ;;  %2783 = vmatmul.bf16.gmra.mxu2 %v5047_v12  ;;  %2872 = vmatmul.bf16.gmra.mxu3 %v5047_v12  ;;  %v838_v10 = vmax.f32 %v13600_v53, %v13599_v22  ;;  %v1664_v48 = vadd.f32 %v6988_v19, %v6978_v34  ;;  %v1561_v12 = vmul.f32 1.442695, %v6992_v46 }
 0x147   :  { %13587 = vst [vmem:[#allocation113_spill] sm:$0xff] %v6962_v44  ;;  %5137 = vpow2.f32 %v1563_v38  ;;  %v7046_v44 = vsub.f32 %v13611_v1, %v1396_v39  ;;  %v13617_v1 = vmax.f32 %v7008_v25, 0.0 }
 0x148   :  { %13590 = vst [vmem:[#allocation114_spill] sm:$0xff] %v6969_v31  ;;  %839 = vmax.xlane.f32.xlu1 %v838_v10  ;;  %5139 = vpow2.f32 %v1565_v3  ;;  %v13609_v10 = vunpack.c.h.bf16 %v6420_v41 }
 0x149   :  { %13592 = vst [vmem:[#allocation115_spill] sm:$0xff] %v6975_v11  ;;  %v7020_v11 = vpop.eup %5129 }
 0x14a   :  { %13594 = vst [vmem:[#allocation116_spill] sm:$0xff] %v6982_v24  ;;  %v7022_v40 = vpop.eup %5131  ;;  %v7024_v22 = vpop.xlane.xlu1 %1407  ;;  %v7042_v31 = vsub.f32 %v13609_v10, %v1399_v57 }
 0x14b   :  { %13596 = vst [vmem:[#allocation117_spill] sm:$0xff] %v6992_v46  ;;  %v7026_v53 = vpop.eup %5133  ;;  %v13606_v46 = vunpack.c.l.bf16 %v6420_v41  ;;  %v7034_v38 = vpop.f32.mrf.mxu0 }
 0x14c   :  { %13597 = vst [vmem:[#allocation118_spill] sm:$0xff] %v6997_v60  ;;  %v7017_v60 = vpop.xlane.xlu2 %1410  ;;  %1668 = vadd.xlane.f32.xlu0 %v1667_v26  ;;  %v1405_v45 = vpop.xlane.xlu0 %1404 }
 0x14d   :  { %13598 = vst [vmem:[#allocation119_spill] sm:$0xff] %v6999_v23  ;;  %v1559_v23 = vmul.f32 1.442695, %v6982_v24  ;;  %v7032_v24 = vsub.f32 %v13606_v46, %v1399_v57  ;;  %1665 = vadd.xlane.f32.xlu2 %v1664_v48  ;;  %v7036_v26 = vpop.f32.mrf.mxu1  ;;  %v7038_v3 = vpop.eup %5135  ;;  %v1670_v46 = vadd.f32 %v7022_v40, %v7020_v11  ;;  %v13616_v57 = vmax.f32 %v7012_v17, 0.0 }
 0x14e   :  { %13601 = vst [vmem:[#allocation120_spill] sm:$0xff] %v7008_v25  ;;  %v7054_v62 = vpop.eup %5137 }
 0x14f   :  { %13602 = vst [vmem:[#allocation121_spill] sm:$0xff] %v7012_v17  ;;  %5141 = vpow2.f32 %v1559_v23  ;;  %v13613_v23 = vunpack.c.h.bf16 %v6422_v42  ;;  %v1571_v41 = vmul.f32 1.442695, %v7032_v24  ;;  %v844_v10 = vmax.f32 %v13617_v1, %v13616_v57  ;;  %v7069_v42 = vpop.eup %5139 }
 0x150   :  { %13603 = vst [vmem:[#allocation122_spill] sm:$0xff] %v7020_v11  ;;  %5143 = vpow2.f32 %v1561_v12  ;;  %v7058_v12 = vadd.f32 %v6920_v50, %v6512_v27  ;;  %v1573_v50 = vmul.f32 1.442695, %v7042_v31  ;;  %1671 = vadd.xlane.f32.xlu1 %v1670_v46  ;;  %v1679_v17 = vadd.f32 %v7069_v42, %v7054_v62 }
 0x151   :  { %13604 = vst [vmem:[#allocation123_spill] sm:$0xff] %v7022_v40  ;;  %v7052_v48 = vsub.f32 %v13613_v23, %v1396_v39  ;;  %v1673_v40 = vadd.f32 %v7038_v3, %v7026_v53  ;;  %v7073_v39 = vadd.f32 %v6922_v32, %v6512_v27  ;;  %v13620_v32 = vunpack.c.l.bf16 %v6408_v33 }
 0x152   :  { %13605 = vst [vmem:[#allocation124_spill] sm:$0xff] %v7026_v53  ;;  %5145 = vpow2.f32 %v1571_v41 }
 0x153   :  { %13607 = vst [vmem:[#allocation125_spill] sm:$0xff] %v7032_v24  ;;  %v1567_v24 = vmul.f32 1.442695, %v7046_v44  ;;  %v1569_v1 = vmul.f32 1.442695, %v7052_v48  ;;  %v7090_v27 = vsub.f32 %v13620_v32, %v6955_v15  ;;  %5147 = vpow2.f32 %v1573_v50 }
 0x154   :  { %13608 = vst [vmem:[#allocation126_spill] sm:$0xff] %v7038_v3  ;;  %v7067_v11 = vpop.xlane.xlu2 %812  ;;  %845 = vmax.xlane.f32.xlu0 %v844_v10  ;;  %v7082_v3 = vpop.xlane.xlu1 %1416  ;;  %v13624_v32 = vunpack.c.l.bf16 %v6452_v37 }
 0x155   :  { %13610 = vst [vmem:[#allocation127_spill] sm:$0xff] %v7042_v31  ;;  %v7076_v23 = vpop.eup %5141  ;;  %v7084_v53 = vpop.xlane.xlu0 %1413  ;;  %1674 = vadd.xlane.f32.xlu2 %v1673_v40  ;;  %5149 = vpow2.f32 %v1567_v24  ;;  %v13626_v40 = vmax.f32 %v6469_v20, 0.0  ;;  %v13627_v24 = vunpack.c.h.bf16 %v6452_v37  ;;  %v1575_v20 = vmul.f32 1.442695, %v7090_v27 }
 0x156   :  { %13612 = vst [vmem:[#allocation128_spill] sm:$0xff] %v7046_v44  ;;  %v7079_v57 = vpop.eup %5143  ;;  %v7092_v44 = vpop.f32.mrf.mxu0  ;;  %v7106_v41 = vsub.f32 %v13624_v32, %v1405_v45  ;;  %5151 = vpow2.f32 %v1569_v1  ;;  %v13632_v37 = vmax.f32 %v7073_v39, 0.0 }
 0x157   :  { %13614 = vst [vmem:[#allocation129_spill] sm:$0xff] %v7052_v48  ;;  %v7094_v46 = vpop.f32.mrf.mxu1  ;;  %v13622_v48 = vunpack.c.h.bf16 %v6408_v33  ;;  %v7111_v25 = vsub.f32 %v13626_v40, %v7067_v11  ;;  %v1676_v10 = vadd.f32 %v7079_v57, %v7076_v23  ;;  %v7117_v33 = vadd.f32 %v6868_v56, %v6514_v21 }
 0x158   :  { %13615 = vst [vmem:[#allocation130_spill] sm:$0xff] %v7054_v62  ;;  %v7131_v40 = vpop.eup %5145  ;;  %v13630_v56 = vunpack.c.l.bf16 %v6438_v18  ;;  %1680 = vadd.xlane.f32.xlu1 %v1679_v17  ;;  %5153 = vpow2.f32 %v1575_v20  ;;  %v13642_v20 = vunpack.c.h.bf16 %v6450_v35 }
 0x159   :  { %13618 = vst [vmem:[#allocation131_spill] sm:$0xff] %v7069_v42  ;;  %v7100_v31 = vsub.f32 %v13622_v48, %v6955_v15  ;;  %v7121_v15 = vadd.f32 %v6870_v5, %v6514_v21  ;;  %v7125_v48 = vsub.f32 %v13627_v24, %v1405_v45  ;;  %v1579_v5 = vmul.f32 1.442695, %v7106_v41  ;;  %v7145_v21 = vpop.eup %5147 }
 0x15a   :  { %13619 = vst [vmem:[#allocation132_spill] sm:$0xff] %v7079_v57  ;;  %v7136_v42 = vsub.f32 %v13630_v56, %v7017_v60  ;;  %v13633_v45 = vmax.f32 %v7058_v12, 0.0  ;;  %v13635_v56 = vunpack.c.h.bf16 %v6438_v18  ;;  %v7188_v57 = vadd.f32 %v6984_v9, %v6498_v0 }
 0x15b   :  { %13621 = vst [vmem:[#allocation133_spill] sm:$0xff] %v7090_v27  ;;  %v1577_v50 = vmul.f32 1.442695, %v7100_v31  ;;  %v1581_v17 = vmul.f32 1.442695, %v7125_v48 }
 0x15c   :  { %13623 = vst [vmem:[#allocation134_spill] sm:$0xff] %v7100_v31  ;;  %v7129_v32 = vpop.xlane.xlu2 %1419  ;;  %1677 = vadd.xlane.f32.xlu0 %v1676_v10  ;;  %v850_v1 = vmax.f32 %v13633_v45, %v13632_v37  ;;  %v7155_v10 = vpop.xlane.xlu1 %1425  ;;  %v13638_v45 = vunpack.c.l.bf16 %v6450_v35  ;;  %v13640_v31 = vmax.f32 %v6517_v61, 0.0  ;;  %v13645_v35 = vmax.f32 %v7121_v15, 0.0 }
 0x15d   :  { %13625 = vst [vmem:[#allocation135_spill] sm:$0xff] %v7106_v41  ;;  %v7152_v41 = vsub.f32 %v13635_v56, %v7017_v60  ;;  %v816_v62 = vpop.xlane.xlu0 %815  ;;  %v7157_v37 = vpop.eup %5149  ;;  %5155 = vpow2.f32 %v1577_v50 }
 0x15e   :  { %13628 = vst [vmem:[#allocation136_spill] sm:$0xff] %v7125_v48  ;;  %v7162_v24 = vsub.f32 %v13638_v45, %v7024_v22  ;;  %851 = vmax.xlane.f32.xlu2 %v850_v1  ;;  %v7166_v27 = vsub.f32 %v13640_v31, %v816_v62  ;;  %v7168_v18 = vpop.f32.mrf.mxu0  ;;  %v7172_v56 = vpop.eup %5151  ;;  %v7177_v48 = vsub.f32 %v13642_v20, %v7024_v22  ;;  %v1587_v45 = vmul.f32 1.442695, %v7136_v42 }
 0x15f   :  { %13629 = vst [vmem:[#allocation137_spill] sm:$0xff] %v7131_v40  ;;  %v7170_v60 = vpop.f32.mrf.mxu1  ;;  %5157 = vpow2.f32 %v1579_v5  ;;  %v13644_v1 = vmax.f32 %v6520_v36, 0.0  ;;  %v1685_v31 = vadd.f32 %v7145_v21, %v7131_v40  ;;  %v1589_v50 = vmul.f32 1.442695, %v7152_v41  ;;  %v13721_v40 = vld [vmem:[#allocation52_spill] sm:$0xff] }
 0x160   :  { %13631 = vst [vmem:[#allocation138_spill] sm:$0xff] %v7136_v42  ;;  %5159 = vpow2.f32 %v1581_v17  ;;  %v13646_v22 = vmax.f32 %v7117_v33, 0.0  ;;  %v7197_v36 = vadd.f32 %v6986_v16, %v6498_v0  ;;  %v1682_v5 = vadd.f32 %v7172_v56, %v7157_v37  ;;  %v7205_v17 = vpop.eup %5153 }
 0x161   :  { %13634 = vst [vmem:[#allocation139_spill] sm:$0xff] %v7145_v21  ;;  %v7182_v61 = vsub.f32 %v13644_v1, %v816_v62  ;;  %v1583_v62 = vmul.f32 1.442695, %v7162_v24  ;;  %v1585_v1 = vmul.f32 1.442695, %v7177_v48  ;;  %5161 = vpow2.f32 %v1587_v45 }
 0x162   :  { %13636 = vst [vmem:[#allocation140_spill] sm:$0xff] %v7152_v41  ;;  %v847_v20 = vmax.f32 %v13646_v22, %v13645_v35  ;;  %5163 = vpow2.f32 %v1589_v50  ;;  %v13116_v42 = vmax.f32 %v7197_v36, 0.0  ;;  %v13650_v45 = vmax.f32 %v6543_v47, 0.0 }
 0x163   :  { %13637 = vst [vmem:[#allocation141_spill] sm:$0xff] %v7157_v37  ;;  %v7209_v16 = vpop.eup %5155  ;;  %5165 = vpow2.f32 %v1583_v62  ;;  %v13652_v50 = vmax.f32 %v6472_v30, 0.0  ;;  %v13655_v30 = vunpack.c.h.bf16 %v6484_v7  ;;  %v13658_v62 = vmax.f32 %v7188_v57, 0.0 }
 0x164   :  { %13639 = vst [vmem:[#allocation142_spill] sm:$0xff] %v7162_v24  ;;  %848 = vmax.xlane.f32.xlu1 %v847_v20  ;;  %1686 = vadd.xlane.f32.xlu0 %v1685_v31  ;;  %v7211_v22 = vpop.xlane.xlu2 %1428  ;;  %v819_v0 = vpop.xlane.xlu1 %818  ;;  %5167 = vpow2.f32 %v1585_v1  ;;  %v1688_v1 = vadd.f32 %v7209_v16, %v7205_v17  ;;  %v7269_v24 = vadd.f32 %v7094_v46, %v6552_v55 }
 0x165   :  { %13641 = vst [vmem:[#allocation143_spill] sm:$0xff] %v7172_v56  ;;  %v7213_v41 = vpop.eup %5157  ;;  %v7219_v31 = vsub.f32 %v13650_v45, %v819_v0  ;;  %v7226_v35 = vsub.f32 %v13652_v50, %v7067_v11  ;;  %v13653_v56 = vunpack.c.l.bf16 %v6484_v7  ;;  %v7244_v11 = vsub.f32 %v13655_v30, %v7084_v53  ;;  %v7246_v45 = vpop.xlane.xlu0 %1422 }
 0x166   :  { %13643 = vst [vmem:[#allocation144_spill] sm:$0xff] %v7177_v48  ;;  %1683 = vadd.xlane.f32.xlu2 %v1682_v5  ;;  %v7221_v20 = vpop.eup %5159  ;;  %v7235_v5 = vpop.f32.mrf.mxu0  ;;  %v853_v37 = vmax.f32 %v13658_v62, %v13116_v42 }
 0x167   :  { %13647 = vst [vmem:[#allocation145_spill] sm:$0xff] %v7205_v17  ;;  %v7231_v9 = vsub.f32 %v13653_v56, %v7084_v53  ;;  %v7237_v47 = vpop.f32.mrf.mxu1  ;;  %v7248_v50 = vpop.eup %5161  ;;  %v971_v56 = vmul.f32 1.442695, %v7111_v25  ;;  %v1691_v48 = vadd.f32 %v7221_v20, %v7213_v41  ;;  %v973_v7 = vmul.f32 1.442695, %v7226_v35 }
 0x168   :  { %13648 = vst [vmem:[#allocation146_spill] sm:$0xff] %v7209_v16  ;;  %v7257_v16 = vpop.eup %5163  ;;  %v7265_v17 = vadd.f32 %v7092_v44, %v6552_v55  ;;  %v1593_v42 = vmul.f32 1.442695, %v7244_v11  ;;  %v13665_v44 = vunpack.c.h.bf16 %v6492_v54 }
 0x169   :  { %13649 = vst [vmem:[#allocation147_spill] sm:$0xff] %v7213_v41  ;;  %v7260_v53 = vpop.eup %5165  ;;  %v1591_v30 = vmul.f32 1.442695, %v7231_v9  ;;  %5169 = vpow2.f32 %v971_v56 }
 0x16a   :  { %13651 = vst [vmem:[#allocation148_spill] sm:$0xff] %v7221_v20  ;;  %v7271_v62 = vpop.eup %5167  ;;  %v13663_v20 = vunpack.c.l.bf16 %v6492_v54  ;;  %5171 = vpow2.f32 %v973_v7  ;;  %v7298_v54 = vadd.f32 %v7036_v26, %v6554_v14  ;;  %v13670_v26 = vmax.f32 %v7265_v17, 0.0 }
 0x16b   :  { %13654 = vst [vmem:[#allocation149_spill] sm:$0xff] %v7231_v9  ;;  %v7282_v9 = vsub.f32 %v13665_v44, %v7129_v32  ;;  %5173 = vpow2.f32 %v1591_v30 }
 0x16c   :  { %13656 = vst [vmem:[#allocation150_spill] sm:$0xff] %v7244_v11  ;;  %1689 = vadd.xlane.f32.xlu1 %v1688_v1  ;;  %854 = vmax.xlane.f32.xlu0 %v853_v37  ;;  %v7277_v41 = vsub.f32 %v13663_v20, %v7129_v32  ;;  %v7284_v46 = vpop.xlane.xlu2 %821  ;;  %v1697_v37 = vadd.f32 %v7257_v16, %v7248_v50  ;;  %5175 = vpow2.f32 %v1593_v42  ;;  %v13668_v1 = vmax.f32 %v6546_v51, 0.0 }
 0x16d   :  { %13657 = vst [vmem:[#allocation151_spill] sm:$0xff] %v7248_v50  ;;  %v1694_v20 = vadd.f32 %v7271_v62, %v7260_v53  ;;  %v1601_v44 = vmul.f32 1.442695, %v7282_v9  ;;  %v7306_v55 = vpop.xlane.xlu0 %1431  ;;  %v13671_v51 = vunpack.c.l.bf16 %v6482_v29 }
 0x16e   :  { %13659 = vst [vmem:[#allocation152_spill] sm:$0xff] %v7257_v16  ;;  %1692 = vadd.xlane.f32.xlu2 %v1691_v48  ;;  %v7294_v48 = vadd.f32 %v7034_v38, %v6554_v14  ;;  %v1599_v32 = vmul.f32 1.442695, %v7277_v41  ;;  %v625_v7 = vpop.f32.mrf.mxu0  ;;  %v7304_v56 = vsub.f32 %v13668_v1, %v819_v0  ;;  %v13669_v38 = vmax.f32 %v7269_v24, 0.0 }
 0x16f   :  { %13660 = vst [vmem:[#allocation153_spill] sm:$0xff] %v7260_v53  ;;  %v714_v30 = vpop.f32.mrf.mxu1  ;;  %v5170_v16 = vpop.eup %5169  ;;  %v7317_v0 = vsub.f32 %v13671_v51, %v7082_v3  ;;  %v7333_v51 = vadd.f32 %v7168_v18, %v6540_v13 }
 0x170   :  { %13661 = vst [vmem:[#allocation154_spill] sm:$0xff] %v7269_v24  ;;  %v859_v42 = vmax.f32 %v13670_v26, %v13669_v38  ;;  %v5172_v14 = vpop.eup %5171  ;;  %5177 = vpow2.f32 %v1599_v32  ;;  %v13675_v38 = vunpack.c.h.bf16 %v6482_v29  ;;  %v7343_v29 = vadd.f32 %v7170_v60, %v6540_v13 }
 0x171   :  { %13662 = vst [vmem:[#allocation155_spill] sm:$0xff] %v7271_v62  ;;  %v7319_v1 = vpop.eup %5173  ;;  %5179 = vpow2.f32 %v1601_v44  ;;  %v1595_v50 = vmul.f32 1.442695, %v7317_v0 }
 0x172   :  { %13664 = vst [vmem:[#allocation156_spill] sm:$0xff] %v7277_v41  ;;  %v7327_v26 = vsub.f32 %v13675_v38, %v7082_v3  ;;  %v981_v41 = vmul.f32 1.442695, %v7304_v56  ;;  %v1099_v3 = vadd.f32 %v5172_v14, %v5170_v16  ;;  %v977_v14 = vmul.f32 1.442695, %v7182_v61 }
 0x173   :  { %13666 = vst [vmem:[#allocation157_spill] sm:$0xff] %v7282_v9  ;;  %v13679_v9 = vmax.f32 %v7294_v48, 0.0 }
 0x174   :  { %13667 = vst [vmem:[#allocation158_spill] sm:$0xff] %v7298_v54  ;;  %1698 = vadd.xlane.f32.xlu1 %v1697_v37  ;;  %1695 = vadd.xlane.f32.xlu0 %v1694_v20  ;;  %v979_v37 = vmul.f32 1.442695, %v7219_v31  ;;  %v7322_v20 = vpop.eup %5175  ;;  %v7335_v32 = vpop.xlane.xlu2 %824  ;;  %v1597_v38 = vmul.f32 1.442695, %v7327_v26 }
 0x175   :  { %13672 = vst [vmem:[#allocation159_spill] sm:$0xff] %v7317_v0  ;;  %v1700_v44 = vadd.f32 %v7322_v20, %v7319_v1  ;;  %v975_v0 = vmul.f32 1.442695, %v7166_v27 }
 0x176   :  { %13673 = vst [vmem:[#allocation160_spill] sm:$0xff] %v7319_v1  ;;  %860 = vmax.xlane.f32.xlu2 %v859_v42  ;;  %v13678_v42 = vmax.f32 %v7298_v54, 0.0  ;;  %5181 = vpow2.f32 %v979_v37  ;;  %v7348_v18 = vpop.eup %5177  ;;  %v7351_v62 = vpop.f32.mrf.mxu0  ;;  %v13683_v37 = vld [vmem:[#allocation32_spill] sm:$0xff] }
 0x177   :  { %13674 = vst [vmem:[#allocation161_spill] sm:$0xff] %v7322_v20  ;;  %5183 = vpow2.f32 %v981_v41  ;;  %v7353_v53 = vpop.f32.mrf.mxu1  ;;  %v7355_v60 = vpop.eup %5179 }
 0x178   :  { %13676 = vst [vmem:[#allocation162_spill] sm:$0xff] %v7327_v26  ;;  %v856_v11 = vmax.f32 %v13679_v9, %v13678_v42  ;;  %v7358_v9 = vpop.xlane.xlu0 %1440  ;;  %5185 = vpow2.f32 %v1595_v50  ;;  %v13684_v42 = vunpack.c.l.bf16 %v13683_v37  ;;  %v13688_v50 = vld [vmem:[#allocation36_spill] sm:$0xff]  ;;  %v1706_v41 = vadd.f32 %v7355_v60, %v7348_v18 }
 0x179   :  { %13677 = vst [vmem:[#allocation163_spill] sm:$0xff] %v7333_v51  ;;  %5187 = vpow2.f32 %v1597_v38  ;;  %v13689_v20 = vmax.f32 %v13688_v50, 0.0 }
 0x17a   :  { %13680 = vst [vmem:[#allocation164_spill] sm:$0xff] %v7343_v29  ;;  %v7365_v13 = vsub.f32 %v13684_v42, %v7246_v45  ;;  %5189 = vpow2.f32 %v975_v0  ;;  %v13693_v0 = vmax.f32 %v7333_v51, 0.0 }
 0x17b   :  { %13681 = vst [vmem:[#allocation165_spill] sm:$0xff] %v7348_v18  ;;  %v7375_v16 = vsub.f32 %v13689_v20, %v7284_v46  ;;  %5191 = vpow2.f32 %v977_v14  ;;  %v13694_v20 = vsub.f32 %v6758_v4, %v7166_v27  ;;  %v13695_v14 = vld [vmem:[#allocation40_spill] sm:$0xff]  ;;  %v13698_v27 = vsub.f32 %v6762_v28, %v7182_v61  ;;  %v13699_v4 = vld [vmem:[#allocation93_spill] sm:$0xff] }
 0x17c   :  { %857 = vmax.xlane.f32.xlu1 %v856_v11  ;;  %1100 = vadd.xlane.f32.xlu0 %v1099_v3  ;;  %13682 = vst [vmem:[#allocation166_spill] sm:$0xff] %v7355_v60  ;;  %v13686_v11 = vunpack.c.h.bf16 %v13683_v37  ;;  %v5182_v26 = vpop.eup %5181  ;;  %v13692_v37 = vmax.f32 %v7343_v29, 0.0  ;;  %v7395_v18 = vadd.f32 %v625_v7, %v13695_v14  ;;  %v13701_v7 = vld [vmem:[#allocation31_spill] sm:$0xff] }
 0x17d   :  { %13685 = vst [vmem:[#allocation32_spill] sm:$0xff] %v7365_v13  ;;  %v5184_v1 = vpop.eup %5183  ;;  %v1805_v50 = vmul.f32 %v6840_v59, %v13694_v20  ;;  %v1806_v59 = vmul.f32 %v13699_v4, %v13698_v27  ;;  %v13702_v20 = vunpack.c.l.bf16 %v13701_v7 }
 0x17e   :  { %1701 = vadd.xlane.f32.xlu2 %v1700_v44  ;;  %v7370_v3 = vsub.f32 %v13686_v11, %v7246_v45  ;;  %v13690_v44 = vld [vmem:[#allocation37_spill] sm:$0xff]  ;;  %v1603_v45 = vmul.f32 1.442695, %v7365_v13  ;;  %v862_v11 = vmax.f32 %v13693_v0, %v13692_v37  ;;  %v7403_v13 = vadd.f32 %v714_v30, %v13695_v14  ;;  %v7429_v27 = vpop.f32.mrf.mxu0 }
 0x17f   :  { %v13691_v38 = vmax.f32 %v13690_v44, 0.0  ;;  %v7397_v44 = vpop.xlane.xlu2 %1437  ;;  %v1105_v37 = vadd.f32 %v5184_v1, %v5182_v26  ;;  %v13704_v30 = vld [vmem:[#allocation69_spill] sm:$0xff]  ;;  %v13705_v1 = vld [vmem:[#allocation28_spill] sm:$0xff]  ;;  %v7431_v4 = vpop.f32.mrf.mxu1 }
 0x180   :  { %13687 = vst [vmem:[#allocation167_spill] sm:$0xff] %v7370_v3  ;;  %v1605_v60 = vmul.f32 1.442695, %v7370_v3  ;;  %v7414_v3 = vsub.f32 %v13702_v20, %v7211_v22  ;;  %v1740_v14 = vsub.f32 %v13704_v30, %v7226_v35  ;;  %v13706_v26 = vunpack.c.l.bf16 %v13705_v1 }
 0x181   :  { %v7382_v42 = vsub.f32 %v13691_v38, %v7284_v46  ;;  %v7399_v46 = vpop.eup %5185  ;;  %v983_v38 = vmul.f32 1.442695, %v7375_v16  ;;  %13697 = vst [vmem:[#allocation37_spill] sm:$0xff] %v7403_v13  ;;  %v13708_v28 = vunpack.c.h.bf16 %v13705_v1  ;;  %5193 = vpow2.f32 %v1603_v45  ;;  %v828_v45 = vpop.xlane.xlu0 %827 }
 0x182   :  { %13696 = vst [vmem:[#allocation36_spill] sm:$0xff] %v7399_v46  ;;  %v7409_v0 = vpop.eup %5187  ;;  %v7433_v20 = vadd.f32 %v1806_v59, %v1805_v50  ;;  %v13710_v30 = vunpack.c.h.bf16 %v13701_v7  ;;  %5195 = vpow2.f32 %v1605_v60  ;;  %v13714_v59 = vld [vmem:[#allocation43_spill] sm:$0xff]  ;;  %v1611_v60 = vmul.f32 1.442695, %v7414_v3 }
 0x183   :  { %13700 = vst [vmem:[#allocation93_spill] sm:$0xff] %v7409_v0  ;;  %v985_v29 = vmul.f32 1.442695, %v7382_v42  ;;  %v7427_v61 = vsub.f32 %v13708_v28, %v7155_v10  ;;  %5197 = vpow2.f32 %v983_v38  ;;  %v13715_v7 = vmax.f32 %v13714_v59, 0.0  ;;  %v13717_v28 = vld [vmem:[#allocation75_spill] sm:$0xff]  ;;  %v13719_v38 = vld [vmem:[#allocation44_spill] sm:$0xff] }
 0x184   :  { %1707 = vadd.xlane.f32.xlu1 %v1706_v41  ;;  %863 = vmax.xlane.f32.xlu0 %v862_v11  ;;  %13703 = vst [vmem:[#allocation31_spill] sm:$0xff] %v7414_v3  ;;  %v5190_v41 = vpop.eup %5189  ;;  %v7422_v11 = vsub.f32 %v13706_v26, %v7155_v10  ;;  %v7438_v51 = vsub.f32 %v13710_v30, %v7211_v22  ;;  %v13712_v26 = vld [vmem:[#allocation41_spill] sm:$0xff]  ;;  %v13720_v21 = vmax.f32 %v13719_v38, 0.0 }
 0x185   :  { %13709 = vst [vmem:[#allocation28_spill] sm:$0xff] %v7427_v61  ;;  %v5192_v35 = vpop.eup %5191  ;;  %v7442_v1 = vadd.f32 %v7235_v5, %v13712_v26  ;;  %v7446_v10 = vadd.f32 %v7237_v47, %v13712_v26  ;;  %v915_v22 = vsub.f32 %v13715_v7, %v7335_v32  ;;  %5199 = vpow2.f32 %v985_v29  ;;  %v13718_v47 = vld [vmem:[#allocation77_spill] sm:$0xff] }
 0x186   :  { %13707 = vst [vmem:[#allocation69_spill] sm:$0xff] %v7422_v11  ;;  %1106 = vadd.xlane.f32.xlu2 %v1105_v37  ;;  %v13716_v5 = vsub.f32 %v6722_v49, %v7111_v25  ;;  %v1804_v26 = vmul.f32 %v13718_v47, %v1740_v14  ;;  %v916_v50 = vsub.f32 %v13720_v21, %v7335_v32  ;;  %v13722_v37 = vmax.f32 %v13721_v40, 0.0  ;;  %v13723_v25 = vld [vmem:[#allocation53_spill] sm:$0xff] }
 0x187   :  { %13711 = vst [vmem:[#allocation168_spill] sm:$0xff] %v7438_v51  ;;  %v1102_v54 = vadd.f32 %v5192_v35, %v5190_v41  ;;  %v1703_v59 = vadd.f32 %v7409_v0, %v7399_v46  ;;  %v1607_v29 = vmul.f32 1.442695, %v7422_v11  ;;  %v1613_v7 = vmul.f32 1.442695, %v7438_v51  ;;  %v7473_v47 = vpop.eup %5193  ;;  %v7490_v21 = vpop.xlane.xlu2 %1446  ;;  %v13734_v3 = vld [vmem:[#allocation85_spill] sm:$0xff] }
 0x188   :  { %13713 = vst [vmem:[#allocation169_spill] sm:$0xff] %v7446_v10  ;;  %v1803_v30 = vmul.f32 %v13717_v28, %v13716_v5  ;;  %v917_v24 = vsub.f32 %v13722_v37, %v828_v45  ;;  %v13724_v5 = vmax.f32 %v13723_v25, 0.0  ;;  %v7471_v28 = vpop.xlane.xlu1 %1434  ;;  %v13726_v40 = vmax.f32 %v7403_v13, 0.0  ;;  %v13728_v37 = vld [vmem:[#allocation86_spill] sm:$0xff]  ;;  %v7483_v49 = vpop.eup %5195  ;;  %v13730_v25 = vld [vmem:[#allocation76_spill] sm:$0xff] }
 0x189   :  { %13725 = vst [vmem:[#allocation43_spill] sm:$0xff] %v7473_v47  ;;  %v13727_v32 = vmax.f32 %v7395_v18, 0.0  ;;  %v1747_v38 = vsub.f32 %v13728_v37, %v915_v22  ;;  %5201 = vpow2.f32 %v1611_v60  ;;  %v5198_v11 = vpop.eup %5197  ;;  %v13736_v46 = vmax.f32 %v7446_v10, 0.0 }
 0x18a   :  { %v918_v14 = vsub.f32 %v13724_v5, %v828_v45  ;;  %v7480_v35 = vadd.f32 %v1804_v26, %v1803_v30  ;;  %13729 = vst [vmem:[#allocation75_spill] sm:$0xff] %v7483_v49  ;;  %v1609_v45 = vmul.f32 1.442695, %v7427_v61  ;;  %v1744_v5 = vsub.f32 %v13730_v25, %v7304_v56  ;;  %v13735_v25 = vld [vmem:[#allocation87_spill] sm:$0xff] }
 0x18b   :  { %v868_v41 = vmax.f32 %v13727_v32, %v13726_v40  ;;  %v13732_v40 = vld [vmem:[#allocation78_spill] sm:$0xff]  ;;  %v991_v30 = vmul.f32 1.442695, %v917_v24  ;;  %v13733_v32 = vld [vmem:[#allocation88_spill] sm:$0xff]  ;;  %v1811_v51 = vmul.f32 %v6890_v8, %v1747_v38  ;;  %v5200_v61 = vpop.eup %5199  ;;  %5203 = vpow2.f32 %v1613_v7  ;;  %v13740_v7 = vld [vmem:[#allocation89_spill] sm:$0xff] }
 0x18c   :  { %1103 = vadd.xlane.f32.xlu1 %v1102_v54  ;;  %1704 = vadd.xlane.f32.xlu0 %v1703_v59  ;;  %v13731_v54 = vld [vmem:[#allocation74_spill] sm:$0xff]  ;;  %v1746_v26 = vsub.f32 %v13732_v40, %v7382_v42  ;;  %v1748_v37 = vsub.f32 %v13733_v32, %v916_v50  ;;  %v993_v60 = vmul.f32 1.442695, %v918_v14  ;;  %v1749_v56 = vsub.f32 %v13734_v3, %v917_v24  ;;  %v13738_v40 = vld [vmem:[#allocation104_spill] sm:$0xff]  ;;  %v13741_v24 = vld [vmem:[#allocation39_spill] sm:$0xff] }
 0x18d   :  { %v1745_v59 = vsub.f32 %v13731_v54, %v7375_v16  ;;  %v1750_v0 = vsub.f32 %v13735_v25, %v918_v14  ;;  %v633_v16 = vpop.f32.mrf.mxu0  ;;  %v722_v54 = vpop.f32.mrf.mxu1  ;;  %v13737_v13 = vmax.f32 %v7442_v1, 0.0  ;;  %v13739_v8 = vsub.f32 %v6750_v63, %v7219_v31  ;;  %v13742_v25 = vld [vmem:[#allocation90_spill] sm:$0xff] }
 0x18e   :  { %869 = vmax.xlane.f32.xlu2 %v868_v41  ;;  %v1709_v41 = vadd.f32 %v7483_v49, %v7473_v47  ;;  %v1812_v32 = vmul.f32 %v13738_v40, %v1748_v37  ;;  %v7511_v3 = vadd.f32 %v7351_v62, %v13741_v24  ;;  %v7515_v14 = vadd.f32 %v7353_v53, %v13741_v24  ;;  %v13744_v40 = vld [vmem:[#allocation97_spill] sm:$0xff]  ;;  %v13850_v47 = vld [vmem:[#allocation126_spill] sm:$0xff] }
 0x18f   :  { %v865_v42 = vmax.f32 %v13737_v13, %v13736_v46  ;;  %v1807_v38 = vmul.f32 %v13740_v7, %v13739_v8  ;;  %v1808_v13 = vmul.f32 %v13742_v25, %v1744_v5  ;;  %v13743_v46 = vld [vmem:[#allocation94_spill] sm:$0xff]  ;;  %5205 = vpow2.f32 %v991_v30  ;;  %v7522_v31 = vpop.eup %5201 }
 0x190   :  { %v1809_v10 = vmul.f32 %v13743_v46, %v1745_v59  ;;  %v1108_v49 = vadd.f32 %v5200_v61, %v5198_v11  ;;  %v7519_v37 = vadd.f32 %v1812_v32, %v1811_v51  ;;  %v1810_v63 = vmul.f32 %v13744_v40, %v1746_v26  ;;  %13745 = vst [vmem:[#allocation77_spill] sm:$0xff] %v7522_v31  ;;  %v7532_v11 = vpop.xlane.xlu1 %1443 }
 0x191   :  { %5207 = vpow2.f32 %v993_v60  ;;  %v7524_v8 = vadd.f32 %v1808_v13, %v1807_v38  ;;  %v1813_v62 = vmul.f32 %v6908_v43, %v1749_v56  ;;  %v1814_v53 = vmul.f32 %v6913_v58, %v1750_v0  ;;  %v7530_v59 = vpop.eup %5203  ;;  %v834_v43 = vpop.xlane.xlu2 %833 }
 0x192   :  { %v987_v7 = vmul.f32 1.442695, %v915_v22  ;;  %v7528_v5 = vadd.f32 %v1810_v63, %v1809_v10  ;;  %13746 = vst [vmem:[#allocation44_spill] sm:$0xff] %v7530_v59  ;;  %v989_v51 = vmul.f32 1.442695, %v916_v50  ;;  %5209 = vpow2.f32 %v1607_v29  ;;  %v13747_v10 = vld [vmem:[#allocation38_spill] sm:$0xff] }
 0x193   :  { %v7534_v61 = vadd.f32 %v1814_v53, %v1813_v62  ;;  %v13159_v26 = vmax.f32 %v7511_v3, 0.0  ;;  %v13158_v30 = vmax.f32 %v7515_v14, 0.0  ;;  %5211 = vpow2.f32 %v1609_v45  ;;  %v13750_v50 = vld [vmem:[#allocation62_spill] sm:$0xff]  ;;  %v13752_v29 = vld [vmem:[#allocation63_spill] sm:$0xff]  ;;  %v13757_v63 = vld [vmem:[#allocation49_spill] sm:$0xff] }
 0x194   :  { %866 = vmax.xlane.f32.xlu1 %v865_v42  ;;  %1109 = vadd.xlane.f32.xlu0 %v1108_v49  ;;  %5213 = vpow2.f32 %v987_v7  ;;  %v13748_v22 = vunpack.c.l.bf16 %v13747_v10  ;;  %v13751_v60 = vmax.f32 %v13750_v50, 0.0  ;;  %v13753_v42 = vmax.f32 %v13752_v29, 0.0 }
 0x195   :  { %v5206_v58 = vpop.eup %5205  ;;  %5215 = vpow2.f32 %v989_v51  ;;  %v7547_v38 = vpop.f32.mrf.mxu0  ;;  %v1715_v45 = vadd.f32 %v7530_v59, %v7522_v31  ;;  %v871_v25 = vmax.f32 %v13159_v26, %v13158_v30  ;;  %v13754_v13 = vunpack.c.h.bf16 %v13747_v10  ;;  %v13797_v31 = vld [vmem:[#allocation83_spill] sm:$0xff] }
 0x196   :  { %1710 = vadd.xlane.f32.xlu2 %v1709_v41  ;;  %v7541_v49 = vsub.f32 %v13748_v22, %v7306_v55  ;;  %v921_v56 = vsub.f32 %v13751_v60, %v834_v43  ;;  %v922_v32 = vsub.f32 %v13753_v42, %v834_v43  ;;  %v7549_v41 = vpop.f32.mrf.mxu1  ;;  %v7565_v62 = vadd.f32 %v633_v16, %v13757_v63  ;;  %v7573_v22 = vpop.xlane.xlu0 %1449  ;;  %v13760_v60 = vld [vmem:[#allocation103_spill] sm:$0xff] }
 0x197   :  { %v5208_v0 = vpop.eup %5207  ;;  %v7560_v46 = vsub.f32 %v13754_v13, %v7306_v55  ;;  %v7568_v53 = vadd.f32 %v722_v54, %v13757_v63  ;;  %v13759_v55 = vld [vmem:[#allocation101_spill] sm:$0xff] }
 0x198   :  { %13749 = vst [vmem:[#allocation52_spill] sm:$0xff] %v7541_v49  ;;  %v7562_v40 = vpop.eup %5209  ;;  %v1114_v7 = vadd.f32 %v5208_v0, %v5206_v58  ;;  %v1615_v43 = vmul.f32 1.442695, %v7541_v49  ;;  %v1753_v50 = vsub.f32 %v13759_v55, %v921_v56  ;;  %v1754_v29 = vsub.f32 %v13760_v60, %v922_v32 }
 0x199   :  { %13755 = vst [vmem:[#allocation53_spill] sm:$0xff] %v7560_v46  ;;  %v7570_v51 = vpop.eup %5211  ;;  %v1617_v42 = vmul.f32 1.442695, %v7560_v46  ;;  %v7578_v54 = vpop.xlane.xlu1 %1644 }
 0x19a   :  { %13756 = vst [vmem:[#allocation86_spill] sm:$0xff] %v7562_v40  ;;  %v5214_v10 = vpop.eup %5213  ;;  %5217 = vpow2.f32 %v1615_v43  ;;  %v1712_v26 = vadd.f32 %v7570_v51, %v7562_v40  ;;  %v1817_v13 = vmul.f32 %v6978_v34, %v1753_v50  ;;  %v1818_v43 = vmul.f32 %v6988_v19, %v1754_v29 }
 0x19b   :  { %13758 = vst [vmem:[#allocation76_spill] sm:$0xff] %v7570_v51  ;;  %v5216_v16 = vpop.eup %5215  ;;  %5219 = vpow2.f32 %v1617_v42 }
 0x19c   :  { %1716 = vadd.xlane.f32.xlu1 %v1715_v45  ;;  %872 = vmax.xlane.f32.xlu0 %v871_v25  ;;  %13761 = vst [vmem:[#allocation74_spill] sm:$0xff] %v7578_v54  ;;  %v13762_v45 = vld [vmem:[#allocation47_spill] sm:$0xff]  ;;  %v1111_v25 = vadd.f32 %v5216_v16, %v5214_v10  ;;  %v13769_v54 = vmax.f32 %v7565_v62, 0.0  ;;  %v7613_v63 = vadd.f32 %v1818_v43, %v1817_v13 }
 0x19d   :  { %v13763_v58 = vunpack.c.l.bf16 %v13762_v45  ;;  %v13765_v55 = vunpack.c.h.bf16 %v13762_v45  ;;  %v7605_v45 = vpop.f32.mrf.mxu0 }
 0x19e   :  { %1115 = vadd.xlane.f32.xlu2 %v1114_v7  ;;  %v13767_v7 = vld [vmem:[#allocation50_spill] sm:$0xff] }
 0x19f   :  { %v7583_v0 = vsub.f32 %v13763_v58, %v7397_v44  ;;  %v7590_v60 = vsub.f32 %v13765_v55, %v7397_v44  ;;  %v7594_v30 = vadd.f32 %v7429_v27, %v13767_v7  ;;  %v7600_v58 = vadd.f32 %v7431_v4, %v13767_v7  ;;  %v7607_v55 = vpop.f32.mrf.mxu1 }
 0x1a0   :  { %v13768_v27 = vmax.f32 %v7568_v53, 0.0  ;;  %v7618_v50 = vpop.eup %5217 }
 0x1a1   :  { %13764 = vst [vmem:[#allocation78_spill] sm:$0xff] %v7583_v0  ;;  %v1623_v44 = vmul.f32 1.442695, %v7583_v0  ;;  %v1625_v34 = vmul.f32 1.442695, %v7590_v60 }
 0x1a2   :  { %13766 = vst [vmem:[#allocation88_spill] sm:$0xff] %v7590_v60  ;;  %v877_v4 = vmax.f32 %v13769_v54, %v13768_v27  ;;  %v831_v29 = vpop.xlane.xlu1 %830  ;;  %v7620_v16 = vpop.xlane.xlu0 %1650  ;;  %v13774_v54 = vld [vmem:[#allocation81_spill] sm:$0xff] }
 0x1a3   :  { %13770 = vst [vmem:[#allocation85_spill] sm:$0xff] %v7618_v50  ;;  %5221 = vpow2.f32 %v1623_v44  ;;  %v13775_v13 = vmax.f32 %v13774_v54, 0.0  ;;  %v7630_v27 = vpop.eup %5219  ;;  %v13779_v44 = vmax.f32 %v7594_v30, 0.0  ;;  %v1001_v54 = vmul.f32 1.442695, %v922_v32  ;;  %v13787_v32 = vld [vmem:[#allocation42_spill] sm:$0xff] }
 0x1a4   :  { %1112 = vadd.xlane.f32.xlu1 %v1111_v25  ;;  %1713 = vadd.xlane.f32.xlu0 %v1712_v26  ;;  %13771 = vst [vmem:[#allocation87_spill] sm:$0xff] %v7620_v16  ;;  %v13772_v26 = vld [vmem:[#allocation80_spill] sm:$0xff]  ;;  %5223 = vpow2.f32 %v1625_v34  ;;  %v7632_v19 = vpop.xlane.xlu2 %1647  ;;  %v13778_v16 = vmax.f32 %v7600_v58, 0.0 }
 0x1a5   :  { %v13773_v42 = vmax.f32 %v13772_v26, 0.0  ;;  %v7628_v43 = vsub.f32 %v13775_v13, %v831_v29  ;;  %13776 = vst [vmem:[#allocation104_spill] sm:$0xff] %v7630_v27  ;;  %v640_v13 = vpop.f32.mrf.mxu0 }
 0x1a6   :  { %878 = vmax.xlane.f32.xlu2 %v877_v4  ;;  %13777 = vst [vmem:[#allocation89_spill] sm:$0xff] %v7632_v19  ;;  %v874_v26 = vmax.f32 %v13779_v44, %v13778_v16  ;;  %v13783_v16 = vld [vmem:[#allocation91_spill] sm:$0xff]  ;;  %v13785_v44 = vld [vmem:[#allocation92_spill] sm:$0xff] }
 0x1a7   :  { %v7624_v25 = vsub.f32 %v13773_v42, %v831_v29  ;;  %v997_v10 = vmul.f32 1.442695, %v7628_v43  ;;  %v999_v42 = vmul.f32 1.442695, %v921_v56  ;;  %v1718_v29 = vadd.f32 %v7630_v27, %v7618_v50  ;;  %v729_v19 = vpop.f32.mrf.mxu1 }
 0x1a8   :  { %v13784_v56 = vmax.f32 %v13783_v16, 0.0 }
 0x1a9   :  { %v995_v4 = vmul.f32 1.442695, %v7624_v25  ;;  %v7642_v34 = vpop.eup %5221 }
 0x1aa   :  { %13780 = vst [vmem:[#allocation90_spill] sm:$0xff] %v7642_v34  ;;  %v7644_v7 = vpop.eup %5223  ;;  %v7646_v24 = vpop.xlane.xlu1 %1653 }
 0x1ab   :  { %5225 = vpow2.f32 %v995_v4  ;;  %13781 = vst [vmem:[#allocation94_spill] sm:$0xff] %v7644_v7 }
 0x1ac   :  { %875 = vmax.xlane.f32.xlu1 %v874_v26  ;;  %5227 = vpow2.f32 %v997_v10  ;;  %13782 = vst [vmem:[#allocation97_spill] sm:$0xff] %v7646_v24  ;;  %v13786_v26 = vmax.f32 %v13785_v44, 0.0  ;;  %v13788_v10 = vunpack.c.l.bf16 %v13787_v32  ;;  %v13793_v44 = vld [vmem:[#allocation46_spill] sm:$0xff] }
 0x1ad   :  { %5229 = vpow2.f32 %v999_v42  ;;  %v13791_v42 = vunpack.c.h.bf16 %v13787_v32 }
 0x1ae   :  { %1719 = vadd.xlane.f32.xlu2 %v1718_v29  ;;  %v837_v60 = vpop.xlane.xlu0 %836  ;;  %5231 = vpow2.f32 %v1001_v54  ;;  %v7659_v51 = vsub.f32 %v13788_v10, %v7471_v28  ;;  %v7678_v10 = vadd.f32 %v7549_v41, %v13793_v44  ;;  %v1751_v41 = vsub.f32 %v13797_v31, %v7624_v25  ;;  %v13803_v31 = vld [vmem:[#allocation45_spill] sm:$0xff] }
 0x1af   :  { %v7650_v4 = vsub.f32 %v13784_v56, %v837_v60  ;;  %v7654_v0 = vsub.f32 %v13786_v26, %v837_v60  ;;  %v7666_v24 = vsub.f32 %v13791_v42, %v7471_v28  ;;  %v1724_v60 = vadd.f32 %v7644_v7, %v7642_v34  ;;  %v13794_v34 = vld [vmem:[#allocation55_spill] sm:$0xff] }
 0x1b0   :  { %13789 = vst [vmem:[#allocation38_spill] sm:$0xff] %v7659_v51  ;;  %v7661_v29 = vpop.xlane.xlu2 %1656  ;;  %v7674_v26 = vadd.f32 %v7547_v38, %v13793_v44  ;;  %v1619_v32 = vmul.f32 1.442695, %v7659_v51  ;;  %v13795_v59 = vunpack.c.l.bf16 %v13794_v34  ;;  %v7704_v51 = vpop.f32.mrf.mxu1  ;;  %v13804_v25 = vunpack.c.l.bf16 %v13803_v31 }
 0x1b1   :  { %13790 = vst [vmem:[#allocation62_spill] sm:$0xff] %v7661_v29  ;;  %v5226_v40 = vpop.eup %5225  ;;  %v1003_v16 = vmul.f32 1.442695, %v7650_v4  ;;  %v1005_v56 = vmul.f32 1.442695, %v7654_v0  ;;  %v13811_v49 = vmax.f32 %v7678_v10, 0.0 }
 0x1b2   :  { %13792 = vst [vmem:[#allocation63_spill] sm:$0xff] %v7666_v24  ;;  %v5228_v54 = vpop.eup %5227  ;;  %v1621_v29 = vmul.f32 1.442695, %v7666_v24  ;;  %v7685_v38 = vsub.f32 %v13795_v59, %v7490_v21  ;;  %v7702_v24 = vpop.f32.mrf.mxu0 }
 0x1b3   :  { %5233 = vpow2.f32 %v1003_v16  ;;  %v1117_v28 = vadd.f32 %v5228_v54, %v5226_v40  ;;  %v5230_v42 = vpop.eup %5229  ;;  %v13798_v16 = vld [vmem:[#allocation84_spill] sm:$0xff]  ;;  %v7691_v40 = vpop.xlane.xlu1 %1662 }
 0x1b4   :  { %1725 = vadd.xlane.f32.xlu1 %v1724_v60  ;;  %5235 = vpow2.f32 %v1005_v56  ;;  %v5232_v7 = vpop.eup %5231  ;;  %13796 = vst [vmem:[#allocation101_spill] sm:$0xff] %v7685_v38  ;;  %v1752_v60 = vsub.f32 %v13798_v16, %v7628_v43  ;;  %v13801_v56 = vunpack.c.h.bf16 %v13794_v34  ;;  %v7709_v43 = vsub.f32 %v13804_v25, %v7358_v9  ;;  %v13806_v34 = vld [vmem:[#allocation58_spill] sm:$0xff]  ;;  %v13809_v25 = vld [vmem:[#allocation100_spill] sm:$0xff] }
 0x1b5   :  { %1118 = vadd.xlane.f32.xlu0 %v1117_v28  ;;  %13799 = vst [vmem:[#allocation103_spill] sm:$0xff] %v7691_v40  ;;  %5237 = vpow2.f32 %v1619_v32  ;;  %v1120_v44 = vadd.f32 %v5232_v7, %v5230_v42  ;;  %v13807_v40 = vunpack.c.h.bf16 %v13803_v31  ;;  %v1635_v32 = vmul.f32 1.442695, %v7685_v38  ;;  %v13813_v42 = vld [vmem:[#allocation57_spill] sm:$0xff] }
 0x1b6   :  { %v7698_v28 = vsub.f32 %v13801_v56, %v7490_v21  ;;  %13805 = vst [vmem:[#allocation81_spill] sm:$0xff] %v7709_v43  ;;  %5239 = vpow2.f32 %v1621_v29  ;;  %v7713_v21 = vadd.f32 %v7605_v45, %v13806_v34  ;;  %v7717_v56 = vadd.f32 %v7607_v55, %v13806_v34  ;;  %v13810_v29 = vld [vmem:[#allocation102_spill] sm:$0xff] }
 0x1b7   :  { %v7693_v54 = vpop.xlane.xlu0 %1659  ;;  %v7722_v27 = vsub.f32 %v13807_v40, %v7358_v9  ;;  %v1815_v50 = vmul.f32 %v13809_v25, %v1751_v41  ;;  %v1816_v46 = vmul.f32 %v13810_v29, %v1752_v60  ;;  %v13812_v55 = vmax.f32 %v7674_v26, 0.0 }
 0x1b8   :  { %13800 = vst [vmem:[#allocation47_spill] sm:$0xff] %v7693_v54  ;;  %v843_v16 = vpop.xlane.xlu2 %842  ;;  %v1637_v45 = vmul.f32 1.442695, %v7698_v28  ;;  %v7733_v34 = vadd.f32 %v640_v13, %v13813_v42  ;;  %v7736_v9 = vadd.f32 %v729_v19, %v13813_v42  ;;  %v1627_v41 = vmul.f32 1.442695, %v7709_v43  ;;  %v13816_v13 = vld [vmem:[#allocation98_spill] sm:$0xff] }
 0x1b9   :  { %13802 = vst [vmem:[#allocation80_spill] sm:$0xff] %v7698_v28  ;;  %v5234_v54 = vpop.eup %5233  ;;  %v880_v7 = vmax.f32 %v13812_v55, %v13811_v49  ;;  %v7738_v31 = vadd.f32 %v1816_v46, %v1815_v50  ;;  %v1629_v49 = vmul.f32 1.442695, %v7722_v27  ;;  %5241 = vpow2.f32 %v1635_v32  ;;  %v13819_v50 = vld [vmem:[#allocation99_spill] sm:$0xff] }
 0x1ba   :  { %v5236_v59 = vpop.eup %5235  ;;  %13808 = vst [vmem:[#allocation91_spill] sm:$0xff] %v7722_v27  ;;  %v1755_v29 = vsub.f32 %v13816_v13, %v7650_v4  ;;  %v13820_v55 = vmax.f32 %v6901_v52, 0.0  ;;  %v13821_v60 = vmax.f32 %v6944_v6, 0.0  ;;  %v13822_v32 = vmax.f32 %v6948_v2, 0.0  ;;  %v13823_v13 = vld [vmem:[#allocation105_spill] sm:$0xff]  ;;  %v7770_v52 = vpop.f32.mrf.mxu0 }
 0x1bb   :  { %13814 = vst [vmem:[#allocation92_spill] sm:$0xff] %v7736_v9  ;;  %v1123_v40 = vadd.f32 %v5236_v59, %v5234_v54  ;;  %v7743_v25 = vpop.eup %5237  ;;  %v840_v19 = vpop.xlane.xlu1 %839  ;;  %v1756_v59 = vsub.f32 %v13819_v50, %v7654_v0  ;;  %5243 = vpow2.f32 %v1637_v45  ;;  %v13826_v45 = vmax.f32 %v7717_v56, 0.0 }
 0x1bc   :  { %1121 = vadd.xlane.f32.xlu1 %v1120_v44  ;;  %13815 = vst [vmem:[#allocation42_spill] sm:$0xff] %v7743_v25  ;;  %v7750_v46 = vpop.eup %5239  ;;  %v7758_v44 = vsub.f32 %v13821_v60, %v840_v19  ;;  %v7762_v42 = vsub.f32 %v13822_v32, %v840_v19  ;;  %5245 = vpow2.f32 %v1627_v41  ;;  %v7772_v6 = vpop.f32.mrf.mxu1  ;;  %v13827_v19 = vmax.f32 %v7713_v21, 0.0  ;;  %v13828_v41 = vld [vmem:[#allocation112_spill] sm:$0xff]  ;;  %v13829_v32 = vld [vmem:[#allocation114_spill] sm:$0xff] }
 0x1bd   :  { %881 = vmax.xlane.f32.xlu0 %v880_v7  ;;  %1124 = vadd.xlane.f32.xlu2 %v1123_v40  ;;  %13818 = vst [vmem:[#allocation83_spill] sm:$0xff] %v7750_v46  ;;  %v927_v7 = vsub.f32 %v13820_v55, %v843_v16  ;;  %5247 = vpow2.f32 %v1629_v49  ;;  %v1819_v55 = vmul.f32 %v13828_v41, %v1755_v29  ;;  %v13832_v38 = vmax.f32 %v7733_v34, 0.0 }
 0x1be   :  { %v1007_v60 = vmul.f32 1.442695, %v7758_v44  ;;  %v1009_v2 = vmul.f32 1.442695, %v7762_v42  ;;  %v883_v50 = vmax.f32 %v13827_v19, %v13826_v45 }
 0x1bf   :  { %v7748_v54 = vpop.xlane.xlu0 %1668  ;;  %v7784_v4 = vpop.eup %5241 }
 0x1c0   :  { %13817 = vst [vmem:[#allocation55_spill] sm:$0xff] %v7748_v54  ;;  %v13824_v54 = vmax.f32 %v13823_v13, 0.0  ;;  %v7768_v0 = vpop.xlane.xlu2 %1665  ;;  %5249 = vpow2.f32 %v1007_v60  ;;  %v1820_v13 = vmul.f32 %v13829_v32, %v1756_v59  ;;  %v13834_v60 = vld [vmem:[#allocation48_spill] sm:$0xff]  ;;  %v13837_v59 = vld [vmem:[#allocation110_spill] sm:$0xff] }
 0x1c1   :  { %13825 = vst [vmem:[#allocation84_spill] sm:$0xff] %v7768_v0  ;;  %5251 = vpow2.f32 %v1009_v2  ;;  %v13831_v0 = vmax.f32 %v7736_v9, 0.0  ;;  %v7792_v19 = vpop.eup %5243  ;;  %v1759_v41 = vsub.f32 %v13837_v59, %v927_v7 }
 0x1c2   :  { %v928_v28 = vsub.f32 %v13824_v54, %v843_v16  ;;  %v1721_v16 = vadd.f32 %v7750_v46, %v7743_v25  ;;  %v1011_v54 = vmul.f32 1.442695, %v927_v7  ;;  %13830 = vst [vmem:[#allocation45_spill] sm:$0xff] %v7784_v4  ;;  %v7790_v49 = vadd.f32 %v1820_v13, %v1819_v55  ;;  %v7802_v46 = vpop.eup %5245  ;;  %v13842_v25 = vld [vmem:[#allocation121_spill] sm:$0xff] }
 0x1c3   :  { %v886_v45 = vmax.f32 %v13832_v38, %v13831_v0  ;;  %13833 = vst [vmem:[#allocation100_spill] sm:$0xff] %v7792_v19  ;;  %v7800_v32 = vpop.xlane.xlu1 %1671  ;;  %v13839_v38 = vld [vmem:[#allocation111_spill] sm:$0xff]  ;;  %v13843_v27 = vmax.f32 %v13842_v25, 0.0  ;;  %v13845_v7 = vunpack.c.h.bf16 %v13834_v60  ;;  %v1733_v25 = vadd.f32 %v7792_v19, %v7784_v4 }
 0x1c4   :  { %884 = vmax.xlane.f32.xlu1 %v883_v50  ;;  %v1013_v40 = vmul.f32 1.442695, %v928_v28  ;;  %v13835_v50 = vunpack.c.l.bf16 %v13834_v60  ;;  %13838 = vst [vmem:[#allocation98_spill] sm:$0xff] %v7800_v32  ;;  %5253 = vpow2.f32 %v1011_v54  ;;  %v1760_v0 = vsub.f32 %v13839_v38, %v928_v28  ;;  %v737_v60 = vpop.f32.mrf.mxu1 }
 0x1c5   :  { %1722 = vadd.xlane.f32.xlu0 %v1721_v16  ;;  %887 = vmax.xlane.f32.xlu2 %v886_v45  ;;  %v13840_v16 = vld [vmem:[#allocation120_spill] sm:$0xff]  ;;  %v7818_v45 = vsub.f32 %v13845_v7, %v7532_v11 }
 0x1c6   :  { %v7797_v29 = vsub.f32 %v13835_v50, %v7532_v11  ;;  %v13841_v55 = vmax.f32 %v13840_v16, 0.0  ;;  %v7813_v50 = vpop.eup %5247  ;;  %5255 = vpow2.f32 %v1013_v40  ;;  %v13848_v16 = vld [vmem:[#allocation56_spill] sm:$0xff]  ;;  %v648_v40 = vpop.f32.mrf.mxu0  ;;  %v1824_v19 = vmul.f32 %v13850_v47, %v1760_v0  ;;  %v13860_v0 = vld [vmem:[#allocation122_spill] sm:$0xff] }
 0x1c7   :  { %v846_v2 = vpop.xlane.xlu0 %845  ;;  %13844 = vst [vmem:[#allocation99_spill] sm:$0xff] %v7813_v50  ;;  %v5250_v54 = vpop.eup %5249  ;;  %v7833_v11 = vadd.f32 %v7704_v51, %v13848_v16  ;;  %v1633_v4 = vmul.f32 1.442695, %v7818_v45 }
 0x1c8   :  { %13836 = vst [vmem:[#allocation102_spill] sm:$0xff] %v7797_v29  ;;  %v7807_v13 = vsub.f32 %v13841_v55, %v846_v2  ;;  %v7811_v43 = vsub.f32 %v13843_v27, %v846_v2  ;;  %v7820_v59 = vpop.xlane.xlu2 %1674  ;;  %v5252_v27 = vpop.eup %5251  ;;  %v1631_v2 = vmul.f32 1.442695, %v7797_v29  ;;  %v7829_v55 = vadd.f32 %v7702_v24, %v13848_v16  ;;  %v13851_v16 = vld [vmem:[#allocation106_spill] sm:$0xff] }
 0x1c9   :  { %13846 = vst [vmem:[#allocation105_spill] sm:$0xff] %v7818_v45  ;;  %v1126_v7 = vadd.f32 %v5252_v27, %v5250_v54  ;;  %v1727_v24 = vadd.f32 %v7813_v50, %v7802_v46  ;;  %v13852_v54 = vld [vmem:[#allocation109_spill] sm:$0xff] }
 0x1ca   :  { %13847 = vst [vmem:[#allocation112_spill] sm:$0xff] %v7820_v59  ;;  %v1015_v28 = vmul.f32 1.442695, %v7807_v13  ;;  %v1017_v38 = vmul.f32 1.442695, %v7811_v43  ;;  %v13849_v59 = vld [vmem:[#allocation124_spill] sm:$0xff]  ;;  %v5254_v29 = vpop.eup %5253 }
 0x1cb   :  { %v1823_v32 = vmul.f32 %v13849_v59, %v1759_v41  ;;  %v7846_v41 = vpop.xlane.xlu1 %1680  ;;  %v13864_v50 = vld [vmem:[#allocation65_spill] sm:$0xff] }
 0x1cc   :  { %5257 = vpow2.f32 %v1015_v28  ;;  %1734 = vadd.xlane.f32.xlu1 %v1733_v25  ;;  %v5256_v51 = vpop.eup %5255  ;;  %v1757_v28 = vsub.f32 %v13851_v16, %v7758_v44  ;;  %v1758_v25 = vsub.f32 %v13852_v54, %v7762_v42  ;;  %13853 = vst [vmem:[#allocation114_spill] sm:$0xff] %v7846_v41  ;;  %v13857_v16 = vld [vmem:[#allocation66_spill] sm:$0xff]  ;;  %v13862_v41 = vmax.f32 %v7833_v11, 0.0 }
 0x1cd   :  { %5259 = vpow2.f32 %v1017_v38  ;;  %1127 = vadd.xlane.f32.xlu0 %v1126_v7  ;;  %v7840_v9 = vadd.f32 %v1824_v19, %v1823_v32  ;;  %1728 = vadd.xlane.f32.xlu2 %v1727_v24  ;;  %v13855_v38 = vld [vmem:[#allocation59_spill] sm:$0xff]  ;;  %v7859_v42 = vadd.f32 %v7770_v52, %v13857_v16  ;;  %v7863_v7 = vadd.f32 %v7772_v6, %v13857_v16 }
 0x1ce   :  { %5261 = vpow2.f32 %v1631_v2  ;;  %v13856_v27 = vunpack.c.l.bf16 %v13855_v38  ;;  %v1129_v2 = vadd.f32 %v5256_v51, %v5254_v29  ;;  %v1821_v59 = vmul.f32 %v13860_v0, %v1757_v28  ;;  %v650_v0 = vpop.f32.mrf.mxu0 }
 0x1cf   :  { %v7848_v47 = vpop.xlane.xlu0 %1677  ;;  %5263 = vpow2.f32 %v1633_v4  ;;  %v13858_v4 = vunpack.c.h.bf16 %v13855_v38  ;;  %v13863_v52 = vmax.f32 %v7829_v55, 0.0  ;;  %v7877_v6 = vadd.f32 %v648_v40, %v13864_v50 }
 0x1d0   :  { %13854 = vst [vmem:[#allocation48_spill] sm:$0xff] %v7848_v47  ;;  %v7855_v44 = vsub.f32 %v13856_v27, %v7573_v22  ;;  %v13861_v47 = vld [vmem:[#allocation123_spill] sm:$0xff]  ;;  %v7880_v29 = vadd.f32 %v737_v60, %v13864_v50  ;;  %v13867_v60 = vld [vmem:[#allocation116_spill] sm:$0xff]  ;;  %v13872_v50 = vmax.f32 %v7121_v15, 0.0  ;;  %v13876_v15 = vmax.f32 %v7859_v42, 0.0 }
 0x1d1   :  { %v852_v19 = vpop.xlane.xlu2 %851  ;;  %v7868_v54 = vsub.f32 %v13858_v4, %v7573_v22  ;;  %v1822_v27 = vmul.f32 %v13861_v47, %v1758_v25  ;;  %v889_v45 = vmax.f32 %v13863_v52, %v13862_v41  ;;  %v13869_v4 = vld [vmem:[#allocation117_spill] sm:$0xff]  ;;  %v13870_v52 = vmax.f32 %v7058_v12, 0.0 }
 0x1d2   :  { %v5258_v32 = vpop.eup %5257  ;;  %v1639_v28 = vmul.f32 1.442695, %v7855_v44 }
 0x1d3   :  { %v5260_v24 = vpop.eup %5259  ;;  %13859 = vst [vmem:[#allocation110_spill] sm:$0xff] %v7868_v54  ;;  %v7882_v38 = vadd.f32 %v1822_v27, %v1821_v59  ;;  %v1641_v40 = vmul.f32 1.442695, %v7868_v54  ;;  %v1762_v27 = vsub.f32 %v13869_v4, %v7811_v43  ;;  %v7900_v25 = vsub.f32 %v13870_v52, %v852_v19 }
 0x1d4   :  { %1130 = vadd.xlane.f32.xlu1 %v1129_v2  ;;  %v1132_v51 = vadd.f32 %v5260_v24, %v5258_v32  ;;  %v7884_v22 = vpop.eup %5261  ;;  %v739_v2 = vpop.f32.mrf.mxu1  ;;  %v1761_v32 = vsub.f32 %v13867_v60, %v7807_v13  ;;  %v13211_v13 = vmax.f32 %v7877_v6, 0.0  ;;  %v13873_v60 = vmax.f32 %v7073_v39, 0.0 }
 0x1d5   :  { %13865 = vst [vmem:[#allocation111_spill] sm:$0xff] %v7884_v22  ;;  %890 = vmax.xlane.f32.xlu0 %v889_v45  ;;  %v7889_v41 = vpop.eup %5263  ;;  %v13871_v45 = vmax.f32 %v7117_v33, 0.0  ;;  %5265 = vpow2.f32 %v1639_v28  ;;  %v13875_v4 = vmax.f32 %v7863_v7, 0.0  ;;  %v1023_v39 = vmul.f32 1.442695, %v7900_v25  ;;  %v13877_v28 = vld [vmem:[#allocation132_spill] sm:$0xff] }
 0x1d6   :  { %13866 = vst [vmem:[#allocation120_spill] sm:$0xff] %v7889_v41  ;;  %1133 = vadd.xlane.f32.xlu2 %v1132_v51  ;;  %v13210_v51 = vmax.f32 %v7880_v29, 0.0  ;;  %5267 = vpow2.f32 %v1641_v40  ;;  %v1826_v52 = vmul.f32 %v13877_v28, %v1762_v27  ;;  %v7934_v40 = vpop.f32.mrf.mxu2  ;;  %v653_v27 = vpop.f32.mrf.mxu0 }
 0x1d7   :  { %v849_v59 = vpop.xlane.xlu1 %848  ;;  %v7894_v24 = vpop.xlane.xlu0 %1686  ;;  %13878 = vst [vmem:[#allocation126_spill] sm:$0xff] %v7934_v40 }
 0x1d8   :  { %13868 = vst [vmem:[#allocation121_spill] sm:$0xff] %v7894_v24  ;;  %v7904_v47 = vsub.f32 %v13871_v45, %v849_v59  ;;  %v7908_v16 = vsub.f32 %v13872_v50, %v849_v59  ;;  %v7914_v24 = vsub.f32 %v13873_v60, %v852_v19  ;;  %v892_v50 = vmax.f32 %v13876_v15, %v13875_v4  ;;  %v7936_v4 = vpop.f32.mrf.mxu3 }
 0x1d9   :  { %v7916_v43 = vpop.xlane.xlu2 %1683  ;;  %v1730_v59 = vadd.f32 %v7889_v41, %v7884_v22  ;;  %v1825_v19 = vmul.f32 %v7076_v23, %v1761_v32  ;;  %v895_v60 = vmax.f32 %v13211_v13, %v13210_v51  ;;  %13879 = vst [vmem:[#allocation106_spill] sm:$0xff] %v7936_v4  ;;  %v13883_v51 = vmax.f32 %v7197_v36, 0.0  ;;  %v13893_v41 = vld [vmem:[#allocation71_spill] sm:$0xff] }
 0x1da   :  { %13874 = vst [vmem:[#allocation124_spill] sm:$0xff] %v7916_v43  ;;  %v1019_v12 = vmul.f32 1.442695, %v7904_v47  ;;  %v1021_v33 = vmul.f32 1.442695, %v7908_v16  ;;  %v13895_v22 = vld [vmem:[#allocation131_spill] sm:$0xff] }
 0x1db   :  { %v1025_v45 = vmul.f32 1.442695, %v7914_v24  ;;  %v7938_v15 = vadd.f32 %v1826_v52, %v1825_v19  ;;  %v7942_v32 = vpop.eup %5265 }
 0x1dc   :  { %5269 = vpow2.f32 %v1019_v12  ;;  %893 = vmax.xlane.f32.xlu1 %v892_v50  ;;  %13881 = vst [vmem:[#allocation59_spill] sm:$0xff] %v7942_v32  ;;  %v13882_v50 = vmax.f32 %v7188_v57, 0.0 }
 0x1dd   :  { %5271 = vpow2.f32 %v1021_v33  ;;  %1731 = vadd.xlane.f32.xlu0 %v1730_v59  ;;  %v742_v33 = vpop.f32.mrf.mxu1  ;;  %v7952_v59 = vpop.eup %5267 }
 0x1de   :  { %896 = vmax.xlane.f32.xlu2 %v895_v60  ;;  %5273 = vpow2.f32 %v1023_v39  ;;  %13884 = vst [vmem:[#allocation122_spill] sm:$0xff] %v7952_v59  ;;  %v13886_v39 = vld [vmem:[#allocation64_spill] sm:$0xff] }
 0x1df   :  { %v7940_v12 = vpop.xlane.xlu1 %1689  ;;  %v855_v23 = vpop.xlane.xlu0 %854  ;;  %5275 = vpow2.f32 %v1025_v45  ;;  %v7959_v4 = vadd.f32 %v650_v0, %v13886_v39  ;;  %v7962_v57 = vadd.f32 %v739_v2, %v13886_v39  ;;  %v13888_v0 = vld [vmem:[#allocation115_spill] sm:$0xff] }
 0x1e0   :  { %13880 = vst [vmem:[#allocation109_spill] sm:$0xff] %v7940_v12  ;;  %v7946_v28 = vsub.f32 %v13882_v50, %v855_v23  ;;  %v7950_v13 = vsub.f32 %v13883_v51, %v855_v23  ;;  %v1736_v51 = vadd.f32 %v7952_v59, %v7942_v32  ;;  %v13887_v50 = vld [vmem:[#allocation113_spill] sm:$0xff]  ;;  %v1764_v40 = vsub.f32 %v13888_v0, %v7908_v16  ;;  %v13896_v32 = vld [vmem:[#allocation70_spill] sm:$0xff] }
 0x1e1   :  { %v7954_v19 = vpop.xlane.xlu2 %1692  ;;  %v7985_v16 = vadd.f32 %v742_v33, %v13893_v41 }
 0x1e2   :  { %13885 = vst [vmem:[#allocation123_spill] sm:$0xff] %v7954_v19  ;;  %v5270_v52 = vpop.eup %5269  ;;  %v1027_v60 = vmul.f32 1.442695, %v7946_v28  ;;  %v1029_v12 = vmul.f32 1.442695, %v7950_v13  ;;  %v1763_v19 = vsub.f32 %v13887_v50, %v7904_v47  ;;  %v7982_v47 = vadd.f32 %v653_v27, %v13893_v41 }
 0x1e3   :  { %v5272_v43 = vpop.eup %5271 }
 0x1e4   :  { %5277 = vpow2.f32 %v1027_v60  ;;  %1871 = vadd.xlane.f32.xlu1 %v7433_v20  ;;  %v1135_v36 = vadd.f32 %v5272_v43, %v5270_v52  ;;  %v5274_v45 = vpop.eup %5273  ;;  %v7975_v20 = vpop.f32.mrf.mxu2  ;;  %v13224_v52 = vmax.f32 %v7962_v57, 0.0 }
 0x1e5   :  { %5279 = vpow2.f32 %v1029_v12  ;;  %v5276_v23 = vpop.eup %5275  ;;  %13891 = vst [vmem:[#allocation132_spill] sm:$0xff] %v7975_v20  ;;  %v7977_v43 = vpop.f32.mrf.mxu3  ;;  %v13225_v12 = vmax.f32 %v7959_v4, 0.0 }
 0x1e6   :  { %1136 = vadd.xlane.f32.xlu0 %v1135_v36  ;;  %1737 = vadd.xlane.f32.xlu2 %v1736_v51  ;;  %13892 = vst [vmem:[#allocation113_spill] sm:$0xff] %v7977_v43  ;;  %v655_v51 = vpop.f32.mrf.mxu0  ;;  %v744_v50 = vpop.f32.mrf.mxu1  ;;  %v1138_v0 = vadd.f32 %v5276_v23, %v5274_v45  ;;  %v1828_v43 = vmul.f32 %v13895_v22, %v1764_v40  ;;  %v13897_v22 = vld [vmem:[#allocation125_spill] sm:$0xff] }
 0x1e7   :  { %v7971_v2 = vpop.xlane.xlu1 %1698  ;;  %v7973_v60 = vpop.xlane.xlu0 %1695  ;;  %v898_v59 = vmax.f32 %v13225_v12, %v13224_v52  ;;  %v7994_v27 = vadd.f32 %v655_v51, %v13896_v32  ;;  %v7997_v33 = vadd.f32 %v744_v50, %v13896_v32  ;;  %v1767_v40 = vsub.f32 %v13897_v22, %v7946_v28  ;;  %v13899_v51 = vld [vmem:[#allocation127_spill] sm:$0xff]  ;;  %v13904_v22 = vld [vmem:[#allocation154_spill] sm:$0xff] }
 0x1e8   :  { %13889 = vst [vmem:[#allocation116_spill] sm:$0xff] %v7971_v2  ;;  %v13894_v2 = vld [vmem:[#allocation130_spill] sm:$0xff]  ;;  %v13900_v50 = vmax.f32 %v7265_v17, 0.0  ;;  %v13905_v12 = vmax.f32 %v13904_v22, 0.0 }
 0x1e9   :  { %13890 = vst [vmem:[#allocation117_spill] sm:$0xff] %v7973_v60  ;;  %v861_v36 = vpop.xlane.xlu2 %860  ;;  %v1827_v20 = vmul.f32 %v13894_v2, %v1763_v19  ;;  %v13228_v19 = vmax.f32 %v7985_v16, 0.0  ;;  %v13229_v28 = vmax.f32 %v7997_v33, 0.0 }
 0x1ea   :  { %v5278_v39 = vpop.eup %5277  ;;  %v8025_v45 = vsub.f32 %v13905_v12, %v861_v36  ;;  %v13909_v12 = vld [vmem:[#allocation137_spill] sm:$0xff] }
 0x1eb   :  { %v5280_v60 = vpop.eup %5279  ;;  %v7999_v54 = vadd.f32 %v1828_v43, %v1827_v20  ;;  %v13902_v43 = vld [vmem:[#allocation158_spill] sm:$0xff] }
 0x1ec   :  { %1139 = vadd.xlane.f32.xlu1 %v1138_v0  ;;  %v1141_v41 = vadd.f32 %v5280_v60, %v5278_v39  ;;  %v1768_v0 = vsub.f32 %v13899_v51, %v7950_v13  ;;  %v8011_v39 = vsub.f32 %v13900_v50, %v861_v36  ;;  %v13901_v60 = vmax.f32 %v7294_v48, 0.0  ;;  %v8029_v17 = vpop.f32.mrf.mxu2 }
 0x1ed   :  { %v8031_v51 = vpop.f32.mrf.mxu3  ;;  %v1831_v36 = vmul.f32 %v13909_v12, %v1767_v40  ;;  %v13913_v40 = vld [vmem:[#allocation163_spill] sm:$0xff]  ;;  %v13915_v12 = vld [vmem:[#allocation164_spill] sm:$0xff] }
 0x1ee   :  { %899 = vmax.xlane.f32.xlu0 %v898_v59  ;;  %1142 = vadd.xlane.f32.xlu2 %v1141_v41  ;;  %v13903_v59 = vmax.f32 %v13902_v43, 0.0  ;;  %13907 = vst [vmem:[#allocation131_spill] sm:$0xff] %v8031_v51  ;;  %v1035_v43 = vmul.f32 1.442695, %v8011_v39  ;;  %v1037_v41 = vmul.f32 1.442695, %v8025_v45 }
 0x1ef   :  { %v858_v23 = vpop.xlane.xlu1 %857  ;;  %v8005_v2 = vpop.xlane.xlu0 %1100 }
 0x1f0   :  { %13898 = vst [vmem:[#allocation115_spill] sm:$0xff] %v8005_v2  ;;  %v8015_v20 = vsub.f32 %v13901_v60, %v858_v23  ;;  %v8019_v52 = vsub.f32 %v13903_v59, %v858_v23  ;;  %v13908_v23 = vmax.f32 %v7982_v47, 0.0  ;;  %v13910_v59 = vld [vmem:[#allocation139_spill] sm:$0xff] }
 0x1f1   :  { %v8027_v13 = vpop.xlane.xlu2 %1701  ;;  %v1832_v22 = vmul.f32 %v13910_v59, %v1768_v0  ;;  %v13916_v59 = vmax.f32 %v13915_v12, 0.0 }
 0x1f2   :  { %13906 = vst [vmem:[#allocation130_spill] sm:$0xff] %v8027_v13  ;;  %v1031_v48 = vmul.f32 1.442695, %v8015_v20  ;;  %v1033_v50 = vmul.f32 1.442695, %v8019_v52  ;;  %v901_v60 = vmax.f32 %v13908_v23, %v13228_v19  ;;  %v13911_v13 = vmax.f32 %v7994_v27, 0.0 }
 0x1f3   :  { %v8048_v32 = vadd.f32 %v1832_v22, %v1831_v36 }
 0x1f4   :  { %5281 = vpow2.f32 %v1031_v48  ;;  %902 = vmax.xlane.f32.xlu1 %v901_v60  ;;  %v904_v2 = vmax.f32 %v13911_v13, %v13229_v28  ;;  %v13914_v60 = vmax.f32 %v13913_v40, 0.0  ;;  %v8058_v36 = vpop.f32.mrf.mxu2 }
 0x1f5   :  { %5283 = vpow2.f32 %v1033_v50 }
 0x1f6   :  { %1868 = vadd.xlane.f32.xlu0 %v7480_v35  ;;  %905 = vmax.xlane.f32.xlu2 %v904_v2  ;;  %5285 = vpow2.f32 %v1035_v43  ;;  %v8060_v2 = vpop.f32.mrf.mxu3 }
 0x1f7   :  { %v8050_v23 = vpop.xlane.xlu1 %1707  ;;  %v864_v48 = vpop.xlane.xlu0 %863  ;;  %5287 = vpow2.f32 %v1037_v41 }
 0x1f8   :  { %13912 = vst [vmem:[#allocation125_spill] sm:$0xff] %v8050_v23  ;;  %v941_v0 = vsub.f32 %v13914_v60, %v864_v48  ;;  %v942_v50 = vsub.f32 %v13916_v59, %v864_v48 }
 0x1f9   :  { %v8056_v19 = vpop.xlane.xlu2 %1106 }
 0x1fa   :  { %13917 = vst [vmem:[#allocation127_spill] sm:$0xff] %v8056_v19  ;;  %v5282_v51 = vpop.eup %5281  ;;  %v1039_v13 = vmul.f32 1.442695, %v941_v0  ;;  %v1041_v28 = vmul.f32 1.442695, %v942_v50 }
 0x1fb   :  { %v5284_v35 = vpop.eup %5283 }
 0x1fc   :  { %5289 = vpow2.f32 %v1039_v13  ;;  %1880 = vadd.xlane.f32.xlu1 %v7519_v37  ;;  %v1144_v43 = vadd.f32 %v5284_v35, %v5282_v51  ;;  %v5286_v22 = vpop.eup %5285  ;;  %v8068_v13 = vpop.f32.mrf.mxu2 }
 0x1fd   :  { %5291 = vpow2.f32 %v1041_v28  ;;  %v5288_v40 = vpop.eup %5287  ;;  %v13921_v28 = vld [vmem:[#allocation142_spill] sm:$0xff] }
 0x1fe   :  { %1145 = vadd.xlane.f32.xlu0 %v1144_v43  ;;  %1874 = vadd.xlane.f32.xlu2 %v7524_v8  ;;  %v1147_v59 = vadd.f32 %v5288_v40, %v5286_v22  ;;  %v8070_v37 = vpop.f32.mrf.mxu3  ;;  %v1773_v51 = vsub.f32 %v13921_v28, %v941_v0  ;;  %v13923_v43 = vld [vmem:[#allocation144_spill] sm:$0xff] }
 0x1ff   :  { %v8064_v41 = vpop.xlane.xlu1 %1103  ;;  %v8066_v48 = vpop.xlane.xlu0 %1704  ;;  %13920 = vst [vmem:[#allocation137_spill] sm:$0xff] %v8070_v37 }
 0x200   :  { %13918 = vst [vmem:[#allocation158_spill] sm:$0xff] %v8064_v41  ;;  %v13924_v41 = vmax.f32 %v7395_v18, 0.0 }
 0x201   :  { %13919 = vst [vmem:[#allocation154_spill] sm:$0xff] %v8066_v48  ;;  %v870_v60 = vpop.xlane.xlu2 %869  ;;  %v1774_v48 = vsub.f32 %v13923_v43, %v942_v50 }
 0x202   :  { %v5290_v12 = vpop.eup %5289  ;;  %v8079_v22 = vsub.f32 %v13924_v41, %v870_v60 }
 0x203   :  { %v5292_v23 = vpop.eup %5291 }
 0x204   :  { %1148 = vadd.xlane.f32.xlu1 %v1147_v59  ;;  %v1150_v19 = vadd.f32 %v5292_v23, %v5290_v12  ;;  %v13925_v23 = vmax.f32 %v7442_v1, 0.0  ;;  %v13926_v12 = vld [vmem:[#allocation169_spill] sm:$0xff]  ;;  %v1047_v41 = vmul.f32 1.442695, %v8079_v22 }
 0x205   :  { %v13927_v59 = vmax.f32 %v13926_v12, 0.0  ;;  %v13931_v1 = vld [vmem:[#allocation153_spill] sm:$0xff] }
 0x206   :  { %1877 = vadd.xlane.f32.xlu0 %v7528_v5  ;;  %1151 = vadd.xlane.f32.xlu2 %v1150_v19  ;;  %v13928_v5 = vld [vmem:[#allocation37_spill] sm:$0xff]  ;;  %v1837_v43 = vmul.f32 %v13931_v1, %v1773_v51 }
 0x207   :  { %v867_v8 = vpop.xlane.xlu1 %866  ;;  %v8074_v35 = vpop.xlane.xlu0 %1109  ;;  %v13929_v0 = vmax.f32 %v13928_v5, 0.0 }
 0x208   :  { %13922 = vst [vmem:[#allocation139_spill] sm:$0xff] %v8074_v35  ;;  %v8083_v40 = vsub.f32 %v13925_v23, %v867_v8  ;;  %v8087_v37 = vsub.f32 %v13927_v59, %v867_v8  ;;  %v13932_v23 = vld [vmem:[#allocation155_spill] sm:$0xff]  ;;  %v14114_v35 = vld [vmem:[#allocation137_spill] sm:$0xff] }
 0x209   :  { %v8091_v19 = vsub.f32 %v13929_v0, %v870_v60  ;;  %v8093_v28 = vpop.xlane.xlu2 %1710  ;;  %v1838_v8 = vmul.f32 %v13932_v23, %v1774_v48  ;;  %v8108_v0 = vpop.f32.mrf.mxu2  ;;  %v13935_v48 = vmax.f32 %v7515_v14, 0.0 }
 0x20a   :  { %13930 = vst [vmem:[#allocation163_spill] sm:$0xff] %v8093_v28  ;;  %v1043_v50 = vmul.f32 1.442695, %v8083_v40  ;;  %v1045_v18 = vmul.f32 1.442695, %v8087_v37  ;;  %v13941_v28 = vld [vmem:[#allocation143_spill] sm:$0xff] }
 0x20b   :  { %v1049_v12 = vmul.f32 1.442695, %v8091_v19  ;;  %v8103_v60 = vadd.f32 %v1838_v8, %v1837_v43 }
 0x20c   :  { %5293 = vpow2.f32 %v1043_v50  ;;  %1889 = vadd.xlane.f32.xlu1 %v7613_v63  ;;  %v13934_v63 = vmax.f32 %v7511_v3, 0.0 }
 0x20d   :  { %5295 = vpow2.f32 %v1045_v18  ;;  %v8118_v18 = vpop.f32.mrf.mxu3 }
 0x20e   :  { %1886 = vadd.xlane.f32.xlu0 %v7738_v31  ;;  %1883 = vadd.xlane.f32.xlu2 %v7534_v61  ;;  %5297 = vpow2.f32 %v1047_v41 }
 0x20f   :  { %v8106_v59 = vpop.xlane.xlu1 %1716  ;;  %v873_v5 = vpop.xlane.xlu0 %872  ;;  %5299 = vpow2.f32 %v1049_v12  ;;  %v13938_v12 = vld [vmem:[#allocation128_spill] sm:$0xff] }
 0x210   :  { %13933 = vst [vmem:[#allocation164_spill] sm:$0xff] %v8106_v59  ;;  %v8112_v51 = vsub.f32 %v13934_v63, %v873_v5  ;;  %v8116_v50 = vsub.f32 %v13935_v48, %v873_v5  ;;  %v1765_v5 = vsub.f32 %v13938_v12, %v7900_v25  ;;  %v13939_v63 = vld [vmem:[#allocation129_spill] sm:$0xff] }
 0x211   :  { %v8122_v23 = vpop.xlane.xlu2 %1115  ;;  %v1766_v48 = vsub.f32 %v13939_v63, %v7914_v24  ;;  %v13942_v24 = vmax.f32 %v7565_v62, 0.0  ;;  %v13944_v63 = vmax.f32 %v7600_v58, 0.0 }
 0x212   :  { %v5294_v31 = vpop.eup %5293  ;;  %v1051_v61 = vmul.f32 1.442695, %v8112_v51  ;;  %v1053_v1 = vmul.f32 1.442695, %v8116_v50  ;;  %13936 = vst [vmem:[#allocation142_spill] sm:$0xff] %v8122_v23  ;;  %v8132_v23 = vpop.f32.mrf.mxu2 }
 0x213   :  { %v5296_v43 = vpop.eup %5295 }
 0x214   :  { %5301 = vpow2.f32 %v1051_v61  ;;  %1898 = vadd.xlane.f32.xlu1 %v7840_v9  ;;  %v1153_v3 = vadd.f32 %v5296_v43, %v5294_v31  ;;  %v5298_v41 = vpop.eup %5297 }
 0x215   :  { %5303 = vpow2.f32 %v1053_v1  ;;  %v5300_v14 = vpop.eup %5299  ;;  %v8134_v31 = vpop.f32.mrf.mxu3 }
 0x216   :  { %1154 = vadd.xlane.f32.xlu0 %v1153_v3  ;;  %1892 = vadd.xlane.f32.xlu2 %v7790_v49  ;;  %v1156_v61 = vadd.f32 %v5300_v14, %v5298_v41  ;;  %v13940_v3 = vld [vmem:[#allocation141_spill] sm:$0xff]  ;;  %v13943_v41 = vmax.f32 %v7594_v30, 0.0 }
 0x217   :  { %v8126_v8 = vpop.xlane.xlu1 %1112  ;;  %v1829_v49 = vmul.f32 %v13940_v3, %v1765_v5 }
 0x218   :  { %13937 = vst [vmem:[#allocation144_spill] sm:$0xff] %v8126_v8  ;;  %v1830_v8 = vmul.f32 %v13941_v28, %v1766_v48  ;;  %v8155_v28 = vpop.xlane.xlu0 %1713  ;;  %v13947_v48 = vld [vmem:[#allocation135_spill] sm:$0xff] }
 0x219   :  { %v879_v1 = vpop.xlane.xlu2 %878  ;;  %13946 = vst [vmem:[#allocation169_spill] sm:$0xff] %v8155_v28  ;;  %v1771_v62 = vsub.f32 %v13947_v48, %v8011_v39  ;;  %v13949_v39 = vld [vmem:[#allocation147_spill] sm:$0xff] }
 0x21a   :  { %v5302_v59 = vpop.eup %5301  ;;  %v8141_v12 = vsub.f32 %v13942_v24, %v879_v1  ;;  %v8163_v58 = vpop.f32.mrf.mxu2 }
 0x21b   :  { %v5304_v9 = vpop.eup %5303 }
 0x21c   :  { %1157 = vadd.xlane.f32.xlu1 %v1156_v61  ;;  %v1159_v43 = vadd.f32 %v5304_v9, %v5302_v59  ;;  %v13945_v59 = vmax.f32 %v7568_v53, 0.0  ;;  %v13948_v9 = vld [vmem:[#allocation136_spill] sm:$0xff] }
 0x21d   :  { %v8166_v53 = vpop.f32.mrf.mxu3 }
 0x21e   :  { %1895 = vadd.xlane.f32.xlu0 %v7882_v38  ;;  %1160 = vadd.xlane.f32.xlu2 %v1159_v43  ;;  %v8153_v5 = vsub.f32 %v13945_v59, %v879_v1  ;;  %v1906_v38 = vadd.f32 %v1830_v8, %v1829_v49  ;;  %v1772_v43 = vsub.f32 %v13948_v9, %v8025_v45  ;;  %v13950_v45 = vld [vmem:[#allocation148_spill] sm:$0xff]  ;;  %v13954_v9 = vld [vmem:[#allocation133_spill] sm:$0xff] }
 0x21f   :  { %v876_v25 = vpop.xlane.xlu1 %875  ;;  %v1835_v1 = vmul.f32 %v13949_v39, %v1771_v62  ;;  %v13955_v62 = vld [vmem:[#allocation134_spill] sm:$0xff] }
 0x220   :  { %v8145_v14 = vsub.f32 %v13943_v41, %v876_v25  ;;  %v8149_v61 = vsub.f32 %v13944_v63, %v876_v25  ;;  %v1059_v25 = vmul.f32 1.442695, %v8141_v12  ;;  %v1061_v8 = vmul.f32 1.442695, %v8153_v5 }
 0x221   :  { %v1836_v49 = vmul.f32 %v13950_v45, %v1772_v43  ;;  %v8177_v59 = vpop.xlane.xlu2 %1719 }
 0x222   :  { %v1055_v30 = vmul.f32 1.442695, %v8145_v14  ;;  %v1057_v3 = vmul.f32 1.442695, %v8149_v61  ;;  %13953 = vst [vmem:[#allocation155_spill] sm:$0xff] %v8177_v59 }
 0x224   :  { %5305 = vpow2.f32 %v1055_v30  ;;  %1907 = vadd.xlane.f32.xlu1 %v1906_v38  ;;  %v1915_v38 = vadd.f32 %v1836_v49, %v1835_v1  ;;  %v1770_v30 = vsub.f32 %v13955_v62, %v8019_v52  ;;  %v13957_v1 = vld [vmem:[#allocation145_spill] sm:$0xff]  ;;  %v13958_v49 = vld [vmem:[#allocation146_spill] sm:$0xff]  ;;  %v13961_v62 = vmax.f32 %v7674_v26, 0.0 }
 0x225   :  { %5307 = vpow2.f32 %v1057_v3  ;;  %v8183_v3 = vpop.f32.mrf.mxu2 }
 0x226   :  { %1904 = vadd.xlane.f32.xlu0 %v7999_v54  ;;  %1901 = vadd.xlane.f32.xlu2 %v7938_v15  ;;  %5309 = vpow2.f32 %v1059_v25  ;;  %v1769_v54 = vsub.f32 %v13954_v9, %v8015_v20  ;;  %v1834_v20 = vmul.f32 %v13958_v49, %v1770_v30  ;;  %v13959_v9 = vld [vmem:[#allocation149_spill] sm:$0xff]  ;;  %v13964_v30 = vld [vmem:[#allocation138_spill] sm:$0xff] }
 0x227   :  { %v8173_v24 = vpop.xlane.xlu1 %1725  ;;  %5311 = vpow2.f32 %v1061_v8  ;;  %v8185_v8 = vpop.f32.mrf.mxu3  ;;  %v1777_v52 = vsub.f32 %v13959_v9, %v8079_v22  ;;  %v1775_v49 = vsub.f32 %v13964_v30, %v8083_v40  ;;  %v13965_v22 = vld [vmem:[#allocation140_spill] sm:$0xff]  ;;  %v13968_v40 = vmax.f32 %v7713_v21, 0.0  ;;  %v13974_v21 = vld [vmem:[#allocation167_spill] sm:$0xff] }
 0x228   :  { %13951 = vst [vmem:[#allocation37_spill] sm:$0xff] %v8173_v24  ;;  %v8175_v41 = vpop.xlane.xlu0 %1118  ;;  %v1833_v45 = vmul.f32 %v13957_v1, %v1769_v54  ;;  %v1776_v9 = vsub.f32 %v13965_v22, %v8087_v37  ;;  %v13969_v37 = vmax.f32 %v7717_v56, 0.0  ;;  %v13971_v30 = vld [vmem:[#allocation152_spill] sm:$0xff] }
 0x229   :  { %13952 = vst [vmem:[#allocation153_spill] sm:$0xff] %v8175_v41  ;;  %v13962_v41 = vmax.f32 %v7678_v10, 0.0  ;;  %v13967_v10 = vld [vmem:[#allocation161_spill] sm:$0xff] }
 0x22a   :  { %v5306_v63 = vpop.eup %5305  ;;  %v1912_v1 = vadd.f32 %v1834_v20, %v1833_v45 }
 0x22b   :  { %v5308_v48 = vpop.eup %5307 }
 0x22c   :  { %1916 = vadd.xlane.f32.xlu1 %v1915_v38  ;;  %v1162_v43 = vadd.f32 %v5308_v48, %v5306_v63  ;;  %v5310_v15 = vpop.eup %5309  ;;  %v13960_v63 = vld [vmem:[#allocation150_spill] sm:$0xff] }
 0x22d   :  { %v5312_v25 = vpop.eup %5311  ;;  %v1778_v38 = vsub.f32 %v13960_v63, %v8091_v19  ;;  %v13966_v63 = vld [vmem:[#allocation160_spill] sm:$0xff] }
 0x22e   :  { %1163 = vadd.xlane.f32.xlu0 %v1162_v43  ;;  %1910 = vadd.xlane.f32.xlu2 %v8048_v32  ;;  %v1165_v54 = vadd.f32 %v5312_v25, %v5310_v15  ;;  %v8214_v25 = vpop.f32.mrf.mxu2 }
 0x22f   :  { %v8188_v39 = vpop.xlane.xlu1 %1121  ;;  %v8226_v22 = vpop.f32.mrf.mxu3 }
 0x230   :  { %13956 = vst [vmem:[#allocation128_spill] sm:$0xff] %v8188_v39  ;;  %v882_v48 = vpop.xlane.xlu0 %881  ;;  %v8204_v39 = vpop.xlane.xlu2 %1124 }
 0x231   :  { %v8198_v43 = vsub.f32 %v13961_v62, %v882_v48  ;;  %v8202_v32 = vsub.f32 %v13962_v41, %v882_v48  ;;  %13963 = vst [vmem:[#allocation129_spill] sm:$0xff] %v8204_v39  ;;  %v1841_v62 = vmul.f32 %v13966_v63, %v1777_v52  ;;  %v1842_v41 = vmul.f32 %v13967_v10, %v1778_v38  ;;  %v13970_v48 = vld [vmem:[#allocation151_spill] sm:$0xff] }
 0x232   :  { %v1840_v52 = vmul.f32 %v13971_v30, %v1776_v9  ;;  %v1784_v63 = vsub.f32 %v13974_v21, %v8153_v5  ;;  %v13976_v9 = vld [vmem:[#allocation92_spill] sm:$0xff]  ;;  %v13978_v21 = vld [vmem:[#allocation43_spill] sm:$0xff] }
 0x233   :  { %v1063_v19 = vmul.f32 1.442695, %v8198_v43  ;;  %v1065_v26 = vmul.f32 1.442695, %v8202_v32  ;;  %v13979_v39 = vld [vmem:[#allocation75_spill] sm:$0xff] }
 0x234   :  { %1166 = vadd.xlane.f32.xlu1 %v1165_v54  ;;  %v1839_v54 = vmul.f32 %v13970_v48, %v1775_v49  ;;  %v13975_v49 = vmax.f32 %v7733_v34, 0.0  ;;  %v1848_v24 = vmul.f32 %v13979_v39, %v1784_v63  ;;  %v13984_v39 = vld [vmem:[#allocation157_spill] sm:$0xff] }
 0x235   :  { %5313 = vpow2.f32 %v1063_v19  ;;  %v13973_v19 = vld [vmem:[#allocation32_spill] sm:$0xff]  ;;  %v1782_v63 = vsub.f32 %v13984_v39, %v8149_v61 }
 0x236   :  { %1913 = vadd.xlane.f32.xlu0 %v1912_v1  ;;  %5315 = vpow2.f32 %v1065_v26  ;;  %v1924_v1 = vadd.f32 %v1842_v41, %v1841_v62  ;;  %v1783_v26 = vsub.f32 %v13973_v19, %v8141_v12  ;;  %v1921_v62 = vadd.f32 %v1840_v52, %v1839_v54  ;;  %v13990_v61 = vld [vmem:[#allocation52_spill] sm:$0xff] }
 0x237   :  { %v885_v15 = vpop.xlane.xlu1 %884 }
 0x238   :  { %v8218_v45 = vsub.f32 %v13968_v40, %v885_v15  ;;  %v8222_v20 = vsub.f32 %v13969_v37, %v885_v15  ;;  %v8228_v38 = vpop.xlane.xlu0 %1722  ;;  %v888_v15 = vpop.xlane.xlu2 %887  ;;  %v13977_v37 = vmax.f32 %v13976_v9, 0.0 }
 0x239   :  { %13972 = vst [vmem:[#allocation141_spill] sm:$0xff] %v8228_v38  ;;  %v957_v40 = vsub.f32 %v13975_v49, %v888_v15  ;;  %v1847_v38 = vmul.f32 %v13978_v21, %v1783_v26  ;;  %v13983_v26 = vld [vmem:[#allocation156_spill] sm:$0xff]  ;;  %v13989_v21 = vld [vmem:[#allocation166_spill] sm:$0xff] }
 0x23a   :  { %v1067_v10 = vmul.f32 1.442695, %v8218_v45  ;;  %v1069_v56 = vmul.f32 1.442695, %v8222_v20  ;;  %v958_v48 = vsub.f32 %v13977_v37, %v888_v15  ;;  %v8250_v15 = vpop.f32.mrf.mxu3  ;;  %v1781_v49 = vsub.f32 %v13983_v26, %v8145_v14  ;;  %v13985_v37 = vld [vmem:[#allocation159_spill] sm:$0xff] }
 0x23b   :  { %v5314_v30 = vpop.eup %5313  ;;  %v1071_v12 = vmul.f32 1.442695, %v957_v40  ;;  %v1933_v52 = vadd.f32 %v1848_v24, %v1847_v38  ;;  %v1846_v14 = vmul.f32 %v13989_v21, %v1782_v63 }
 0x23c   :  { %5317 = vpow2.f32 %v1067_v10  ;;  %1925 = vadd.xlane.f32.xlu1 %v1924_v1  ;;  %v5316_v41 = vpop.eup %5315  ;;  %v1073_v19 = vmul.f32 1.442695, %v958_v48  ;;  %v8246_v1 = vpop.f32.mrf.mxu2 }
 0x23d   :  { %5319 = vpow2.f32 %v1069_v56  ;;  %v1168_v5 = vadd.f32 %v5316_v41, %v5314_v30  ;;  %v1779_v30 = vsub.f32 %v13985_v37, %v8112_v51  ;;  %v13992_v51 = vld [vmem:[#allocation93_spill] sm:$0xff] }
 0x23e   :  { %1922 = vadd.xlane.f32.xlu0 %v1921_v62  ;;  %5321 = vpow2.f32 %v1071_v12  ;;  %v13986_v62 = vld [vmem:[#allocation162_spill] sm:$0xff]  ;;  %v13993_v37 = vld [vmem:[#allocation53_spill] sm:$0xff] }
 0x23f   :  { %v8242_v59 = vpop.xlane.xlu1 %1734  ;;  %1169 = vadd.xlane.f32.xlu2 %v1168_v5  ;;  %5323 = vpow2.f32 %v1073_v19  ;;  %v1780_v41 = vsub.f32 %v13986_v62, %v8116_v50  ;;  %v13988_v19 = vld [vmem:[#allocation165_spill] sm:$0xff]  ;;  %v1790_v50 = vsub.f32 %v13993_v37, %v958_v48 }
 0x240   :  { %13980 = vst [vmem:[#allocation143_spill] sm:$0xff] %v8242_v59  ;;  %v8244_v34 = vpop.xlane.xlu0 %1127  ;;  %v8248_v54 = vpop.xlane.xlu2 %1728  ;;  %v1845_v5 = vmul.f32 %v13988_v19, %v1781_v49  ;;  %v14003_v37 = vld [vmem:[#allocation77_spill] sm:$0xff] }
 0x241   :  { %13981 = vst [vmem:[#allocation135_spill] sm:$0xff] %v8244_v34  ;;  %v1844_v39 = vmul.f32 %v13992_v51, %v1780_v41  ;;  %v13998_v41 = vld [vmem:[#allocation168_spill] sm:$0xff]  ;;  %v14099_v34 = vld [vmem:[#allocation113_spill] sm:$0xff] }
 0x242   :  { %v5318_v10 = vpop.eup %5317  ;;  %13982 = vst [vmem:[#allocation136_spill] sm:$0xff] %v8248_v54  ;;  %v13995_v54 = vmax.f32 %v7833_v11, 0.0  ;;  %v1930_v19 = vadd.f32 %v1846_v14, %v1845_v5  ;;  %v1788_v48 = vsub.f32 %v13998_v41, %v8222_v20  ;;  %v8287_v11 = vpop.f32.mrf.mxu3  ;;  %v14000_v5 = vld [vmem:[#allocation104_spill] sm:$0xff] }
 0x243   :  { %v5320_v56 = vpop.eup %5319  ;;  %v1854_v14 = vmul.f32 %v14000_v5, %v1790_v50  ;;  %v14006_v50 = vmax.f32 %v7877_v6, 0.0  ;;  %v14008_v5 = vld [vmem:[#allocation81_spill] sm:$0xff]  ;;  %v14010_v6 = vld [vmem:[#allocation28_spill] sm:$0xff] }
 0x244   :  { %1934 = vadd.xlane.f32.xlu1 %v1933_v52  ;;  %v1171_v9 = vadd.f32 %v5320_v56, %v5318_v10  ;;  %v5322_v12 = vpop.eup %5321  ;;  %v1789_v52 = vsub.f32 %v13990_v61, %v957_v40  ;;  %v13991_v56 = vld [vmem:[#allocation36_spill] sm:$0xff]  ;;  %v8279_v40 = vpop.f32.mrf.mxu2 }
 0x245   :  { %v5324_v24 = vpop.eup %5323  ;;  %v1843_v26 = vmul.f32 %v13991_v56, %v1779_v30  ;;  %v13997_v30 = vld [vmem:[#allocation31_spill] sm:$0xff]  ;;  %v14002_v56 = vmax.f32 %v7863_v7, 0.0 }
 0x246   :  { %1172 = vadd.xlane.f32.xlu0 %v1171_v9  ;;  %v13994_v9 = vmax.f32 %v7829_v55, 0.0  ;;  %v1787_v21 = vsub.f32 %v13997_v30, %v8218_v45  ;;  %v14001_v45 = vmax.f32 %v7859_v42, 0.0 }
 0x247   :  { %v8260_v38 = vpop.xlane.xlu1 %1130  ;;  %1919 = vadd.xlane.f32.xlu2 %v8103_v60  ;;  %v1174_v60 = vadd.f32 %v5324_v24, %v5322_v12  ;;  %v13999_v12 = vld [vmem:[#allocation85_spill] sm:$0xff] }
 0x248   :  { %13987 = vst [vmem:[#allocation147_spill] sm:$0xff] %v8260_v38  ;;  %v891_v10 = vpop.xlane.xlu0 %890  ;;  %v1853_v24 = vmul.f32 %v13999_v12, %v1789_v52  ;;  %v14098_v38 = vld [vmem:[#allocation132_spill] sm:$0xff] }
 0x249   :  { %v8271_v62 = vsub.f32 %v13994_v9, %v891_v10  ;;  %v8275_v49 = vsub.f32 %v13995_v54, %v891_v10  ;;  %v8277_v63 = vpop.xlane.xlu2 %1133  ;;  %v1927_v54 = vadd.f32 %v1844_v39, %v1843_v26  ;;  %v1851_v9 = vmul.f32 %v14003_v37, %v1787_v21 }
 0x24a   :  { %13996 = vst [vmem:[#allocation148_spill] sm:$0xff] %v8277_v63  ;;  %v14093_v63 = vld [vmem:[#allocation24_spill] sm:$0xff] }
 0x24b   :  { %v1075_v55 = vmul.f32 1.442695, %v8271_v62  ;;  %v1077_v61 = vmul.f32 1.442695, %v8275_v49 }
 0x24c   :  { %1175 = vadd.xlane.f32.xlu1 %v1174_v60  ;;  %v14004_v60 = vld [vmem:[#allocation44_spill] sm:$0xff] }
 0x24d   :  { %5325 = vpow2.f32 %v1075_v55  ;;  %v1852_v30 = vmul.f32 %v14004_v60, %v1788_v48 }
 0x24e   :  { %1931 = vadd.xlane.f32.xlu0 %v1930_v19  ;;  %5327 = vpow2.f32 %v1077_v61  ;;  %v1942_v19 = vadd.f32 %v1854_v14, %v1853_v24  ;;  %v14007_v61 = vmax.f32 %v7880_v29, 0.0  ;;  %v14009_v24 = vld [vmem:[#allocation69_spill] sm:$0xff]  ;;  %v14011_v29 = vld [vmem:[#allocation91_spill] sm:$0xff] }
 0x24f   :  { %v894_v10 = vpop.xlane.xlu1 %893  ;;  %1928 = vadd.xlane.f32.xlu2 %v1927_v54  ;;  %v1939_v7 = vadd.f32 %v1852_v30, %v1851_v9  ;;  %v1785_v14 = vsub.f32 %v14009_v24, %v8198_v43  ;;  %v14019_v24 = vld [vmem:[#allocation88_spill] sm:$0xff] }
 0x250   :  { %v961_v20 = vsub.f32 %v14001_v45, %v894_v10  ;;  %v962_v51 = vsub.f32 %v14002_v56, %v894_v10  ;;  %v8297_v41 = vpop.xlane.xlu0 %1731  ;;  %v8304_v45 = vpop.f32.mrf.mxu2  ;;  %v1786_v56 = vsub.f32 %v14010_v6, %v8202_v32 }
 0x251   :  { %14005 = vst [vmem:[#allocation133_spill] sm:$0xff] %v8297_v41  ;;  %v897_v52 = vpop.xlane.xlu2 %896 }
 0x252   :  { %v1079_v26 = vmul.f32 1.442695, %v961_v20  ;;  %v1081_v39 = vmul.f32 1.442695, %v962_v51  ;;  %v963_v55 = vsub.f32 %v14006_v50, %v897_v52  ;;  %v964_v42 = vsub.f32 %v14007_v61, %v897_v52 }
 0x253   :  { %v5326_v54 = vpop.eup %5325 }
 0x254   :  { %5329 = vpow2.f32 %v1079_v26  ;;  %1943 = vadd.xlane.f32.xlu1 %v1942_v19  ;;  %v5328_v12 = vpop.eup %5327  ;;  %v1083_v21 = vmul.f32 1.442695, %v963_v55  ;;  %v1085_v48 = vmul.f32 1.442695, %v964_v42  ;;  %v1795_v10 = vsub.f32 %v14008_v5, %v963_v55  ;;  %v8311_v26 = vpop.f32.mrf.mxu3  ;;  %v14016_v55 = vld [vmem:[#allocation86_spill] sm:$0xff] }
 0x255   :  { %5331 = vpow2.f32 %v1081_v39  ;;  %v1796_v37 = vsub.f32 %v14011_v29, %v964_v42  ;;  %v1177_v60 = vadd.f32 %v5328_v12, %v5326_v54  ;;  %v14013_v39 = vld [vmem:[#allocation99_spill] sm:$0xff]  ;;  %v1849_v61 = vmul.f32 %v14016_v55, %v1785_v14  ;;  %v14017_v42 = vld [vmem:[#allocation76_spill] sm:$0xff]  ;;  %v14018_v12 = vld [vmem:[#allocation78_spill] sm:$0xff] }
 0x256   :  { %1940 = vadd.xlane.f32.xlu0 %v1939_v7  ;;  %v1859_v30 = vmul.f32 %v7802_v46, %v1795_v10  ;;  %5333 = vpow2.f32 %v1083_v21  ;;  %v1850_v54 = vmul.f32 %v14017_v42, %v1786_v56  ;;  %v1793_v5 = vsub.f32 %v14018_v12, %v961_v20  ;;  %v14020_v10 = vld [vmem:[#allocation38_spill] sm:$0xff]  ;;  %v14021_v29 = vld [vmem:[#allocation63_spill] sm:$0xff] }
 0x257   :  { %v8313_v9 = vpop.xlane.xlu1 %1871  ;;  %1178 = vadd.xlane.f32.xlu2 %v1177_v60  ;;  %v1860_v52 = vmul.f32 %v14013_v39, %v1796_v37  ;;  %5335 = vpow2.f32 %v1085_v48  ;;  %v1794_v46 = vsub.f32 %v14019_v24, %v962_v51  ;;  %v1791_v48 = vsub.f32 %v14020_v10, %v8271_v62  ;;  %v14023_v20 = vld [vmem:[#allocation90_spill] sm:$0xff]  ;;  %v14027_v62 = vld [vmem:[#allocation68_spill] sm:$0xff] }
 0x258   :  { %14012 = vst [vmem:[#allocation134_spill] sm:$0xff] %v8313_v9  ;;  %v1792_v37 = vsub.f32 %v14021_v29, %v8275_v49  ;;  %v1936_v60 = vadd.f32 %v1850_v54, %v1849_v61  ;;  %v8331_v56 = vpop.f32.mrf.mxu2  ;;  %v1857_v39 = vmul.f32 %v14023_v20, %v1793_v5  ;;  %v14024_v51 = vld [vmem:[#allocation94_spill] sm:$0xff]  ;;  %v14029_v12 = vmax.f32 %v7959_v4, 0.0  ;;  %v14032_v29 = vld [vmem:[#allocation83_spill] sm:$0xff] }
 0x259   :  { %v8317_v19 = vpop.xlane.xlu0 %1136  ;;  %v8319_v50 = vpop.xlane.xlu2 %1737  ;;  %v1951_v32 = vadd.f32 %v1860_v52, %v1859_v30  ;;  %v1858_v52 = vmul.f32 %v14024_v51, %v1794_v46  ;;  %v14028_v54 = vld [vmem:[#allocation42_spill] sm:$0xff]  ;;  %v14030_v5 = vmax.f32 %v7962_v57, 0.0  ;;  %v14033_v57 = vmax.f32 %v7982_v47, 0.0 }
 0x25a   :  { %14014 = vst [vmem:[#allocation145_spill] sm:$0xff] %v8317_v19  ;;  %v5330_v43 = vpop.eup %5329  ;;  %v14087_v19 = vld [vmem:[#allocation22_spill] sm:$0xff] }
 0x25b   :  { %14015 = vst [vmem:[#allocation146_spill] sm:$0xff] %v8319_v50  ;;  %v5332_v7 = vpop.eup %5331  ;;  %v14088_v9 = vld [vmem:[#allocation118_spill] sm:$0xff] }
 0x25c   :  { %1952 = vadd.xlane.f32.xlu1 %v1951_v32  ;;  %v1180_v21 = vadd.f32 %v5332_v7, %v5330_v43  ;;  %v5334_v6 = vpop.eup %5333  ;;  %v14025_v43 = vld [vmem:[#allocation16_spill] sm:$0xff]  ;;  %v14026_v32 = vld [vmem:[#allocation67_spill] sm:$0xff]  ;;  %v8343_v49 = vpop.f32.mrf.mxu3  ;;  %v1855_v7 = vmul.f32 %v14028_v54, %v1791_v48 }
 0x25d   :  { %v5336_v30 = vpop.eup %5335  ;;  %v8337_v55 = vadd.f32 %v14026_v32, %v14025_v43  ;;  %v8341_v42 = vadd.f32 %v14027_v62, %v14025_v43  ;;  %v1948_v43 = vadd.f32 %v1858_v52, %v1857_v39 }
 0x25e   :  { %1181 = vadd.xlane.f32.xlu0 %v1180_v21  ;;  %v1183_v10 = vadd.f32 %v5336_v30, %v5334_v6  ;;  %v14034_v6 = vmax.f32 %v7985_v16, 0.0  ;;  %v14038_v16 = vmax.f32 %v7994_v27, 0.0 }
 0x25f   :  { %v8329_v14 = vpop.xlane.xlu1 %1139  ;;  %1937 = vadd.xlane.f32.xlu2 %v1936_v60  ;;  %v1856_v60 = vmul.f32 %v14032_v29, %v1792_v37  ;;  %v13239_v32 = vmax.f32 %v8337_v55, 0.0  ;;  %v13238_v62 = vmax.f32 %v8341_v42, 0.0  ;;  %v14037_v29 = vld [vmem:[#allocation80_spill] sm:$0xff] }
 0x260   :  { %14022 = vst [vmem:[#allocation149_spill] sm:$0xff] %v8329_v14  ;;  %v8365_v52 = vpop.f32.mrf.mxu2  ;;  %v14044_v14 = vld [vmem:[#allocation100_spill] sm:$0xff] }
 0x261   :  { %v900_v61 = vpop.xlane.xlu0 %899  ;;  %v8350_v46 = vpop.xlane.xlu2 %1142  ;;  %v1945_v4 = vadd.f32 %v1856_v60, %v1855_v7  ;;  %v2948_v39 = vmax.f32 %v13239_v32, %v13238_v62  ;;  %v14036_v7 = vld [vmem:[#allocation101_spill] sm:$0xff] }
 0x262   :  { %v965_v24 = vsub.f32 %v14029_v12, %v900_v61  ;;  %v966_v21 = vsub.f32 %v14030_v5, %v900_v61  ;;  %14031 = vst [vmem:[#allocation150_spill] sm:$0xff] %v8350_v46 }
 0x264   :  { %v1087_v20 = vmul.f32 1.442695, %v965_v24  ;;  %v1089_v51 = vmul.f32 1.442695, %v966_v21  ;;  %1184 = vadd.xlane.f32.xlu1 %v1183_v10  ;;  %v8368_v10 = vpop.f32.mrf.mxu3 }
 0x266   :  { %5337 = vpow2.f32 %v1087_v20  ;;  %1949 = vadd.xlane.f32.xlu0 %v1948_v43 }
 0x267   :  { %5339 = vpow2.f32 %v1089_v51  ;;  %v903_v48 = vpop.xlane.xlu1 %902  ;;  %1946 = vadd.xlane.f32.xlu2 %v1945_v4  ;;  %v14039_v51 = vmax.f32 %v7997_v33, 0.0 }
 0x268   :  { %v967_v61 = vsub.f32 %v14033_v57, %v903_v48  ;;  %v968_v37 = vsub.f32 %v14034_v6, %v903_v48  ;;  %v14040_v48 = vld [vmem:[#allocation102_spill] sm:$0xff]  ;;  %v14041_v6 = vld [vmem:[#allocation45_spill] sm:$0xff] }
 0x269   :  { %v8359_v30 = vpop.xlane.xlu0 %1868  ;;  %v906_v5 = vpop.xlane.xlu2 %905  ;;  %v1797_v57 = vsub.f32 %v14040_v48, %v965_v24 }
 0x26a   :  { %14035 = vst [vmem:[#allocation138_spill] sm:$0xff] %v8359_v30  ;;  %v1091_v54 = vmul.f32 1.442695, %v967_v61  ;;  %v1799_v12 = vsub.f32 %v14036_v7, %v967_v61  ;;  %v1093_v47 = vmul.f32 1.442695, %v968_v37  ;;  %v1800_v60 = vsub.f32 %v14037_v29, %v968_v37  ;;  %v14042_v61 = vld [vmem:[#allocation105_spill] sm:$0xff] }
 0x26b   :  { %v969_v20 = vsub.f32 %v14038_v16, %v906_v5  ;;  %v970_v43 = vsub.f32 %v14039_v51, %v906_v5  ;;  %v1798_v7 = vsub.f32 %v14042_v61, %v966_v21  ;;  %v14043_v29 = vld [vmem:[#allocation110_spill] sm:$0xff] }
 0x26c   :  { %v5338_v4 = vpop.eup %5337  ;;  %2949 = vmax.xlane.f32.xlu1 %v2948_v39  ;;  %v1863_v62 = vmul.f32 %v14041_v6, %v1799_v12  ;;  %5341 = vpow2.f32 %v1091_v54  ;;  %v1864_v33 = vmul.f32 %v14044_v14, %v1800_v60  ;;  %v14046_v39 = vld [vmem:[#allocation59_spill] sm:$0xff]  ;;  %v14048_v21 = vld [vmem:[#allocation122_spill] sm:$0xff]  ;;  %v8393_v48 = vpop.f32.mrf.mxu3 }
 0x26d   :  { %v5340_v32 = vpop.eup %5339  ;;  %v1095_v30 = vmul.f32 1.442695, %v969_v20  ;;  %v1097_v46 = vmul.f32 1.442695, %v970_v43  ;;  %v1801_v37 = vsub.f32 %v7855_v44, %v969_v20  ;;  %v1802_v27 = vsub.f32 %v14043_v29, %v970_v43  ;;  %v14050_v20 = vld [vmem:[#allocation111_spill] sm:$0xff]  ;;  %v14051_v43 = vld [vmem:[#allocation120_spill] sm:$0xff] }
 0x26e   :  { %v1186_v16 = vadd.f32 %v5340_v32, %v5338_v4  ;;  %5343 = vpow2.f32 %v1093_v47  ;;  %v1957_v24 = vadd.f32 %v1864_v33, %v1863_v62  ;;  %v1861_v32 = vmul.f32 %v14050_v20, %v1797_v57  ;;  %v8391_v4 = vpop.f32.mrf.mxu2  ;;  %v14053_v6 = vld [vmem:[#allocation51_spill] sm:$0xff]  ;;  %v14057_v33 = vld [vmem:[#allocation60_spill] sm:$0xff] }
 0x26f   :  { %v8381_v5 = vpop.xlane.xlu1 %1880  ;;  %v1865_v12 = vmul.f32 %v14046_v39, %v1801_v37  ;;  %5345 = vpow2.f32 %v1095_v30  ;;  %v1866_v54 = vmul.f32 %v14048_v21, %v1802_v27  ;;  %v1862_v14 = vmul.f32 %v14051_v43, %v1798_v7  ;;  %v14052_v30 = vld [vmem:[#allocation17_spill] sm:$0xff] }
 0x270   :  { %14045 = vst [vmem:[#allocation140_spill] sm:$0xff] %v8381_v5  ;;  %1187 = vadd.xlane.f32.xlu2 %v1186_v16  ;;  %5347 = vpow2.f32 %v1097_v46  ;;  %1958 = vadd.xlane.f32.xlu0 %v1957_v24  ;;  %v8397_v61 = vadd.f32 %v14053_v6, %v14052_v30  ;;  %v14054_v46 = vld [vmem:[#allocation54_spill] sm:$0xff]  ;;  %v14056_v16 = vld [vmem:[#allocation20_spill] sm:$0xff]  ;;  %v14058_v39 = vld [vmem:[#allocation61_spill] sm:$0xff] }
 0x271   :  { %v8384_v51 = vpop.xlane.xlu0 %1145  ;;  %v8387_v44 = vpop.xlane.xlu2 %1874  ;;  %v1960_v60 = vadd.f32 %v1866_v54, %v1865_v12  ;;  %v8401_v37 = vadd.f32 %v14054_v46, %v14052_v30  ;;  %v1954_v29 = vadd.f32 %v1862_v14, %v1861_v32  ;;  %v8407_v24 = vadd.f32 %v14057_v33, %v14056_v16  ;;  %v14061_v14 = vld [vmem:[#allocation18_spill] sm:$0xff]  ;;  %v14063_v6 = vld [vmem:[#allocation96_spill] sm:$0xff]  ;;  %v14064_v33 = vld [vmem:[#allocation19_spill] sm:$0xff] }
 0x272   :  { %14047 = vst [vmem:[#allocation160_spill] sm:$0xff] %v8384_v51  ;;  %v5342_v47 = vpop.eup %5341  ;;  %v8411_v12 = vadd.f32 %v14058_v39, %v14056_v16  ;;  %v13241_v20 = vmax.f32 %v8397_v61, 0.0  ;;  %v8425_v46 = vadd.f32 %v14063_v6, %v14061_v14  ;;  %v14065_v39 = vld [vmem:[#allocation72_spill] sm:$0xff] }
 0x273   :  { %14049 = vst [vmem:[#allocation161_spill] sm:$0xff] %v8387_v44  ;;  %v13240_v32 = vmax.f32 %v8401_v37, 0.0  ;;  %v14082_v5 = vld [vmem:[#allocation108_spill] sm:$0xff] }
 0x274   :  { %v5344_v62 = vpop.eup %5343  ;;  %1961 = vadd.xlane.f32.xlu1 %v1960_v60  ;;  %v14062_v60 = vld [vmem:[#allocation95_spill] sm:$0xff]  ;;  %v8445_v6 = vpop.f32.mrf.mxu3  ;;  %v14078_v51 = vmax.f32 %v8425_v46, 0.0 }
 0x275   :  { %v5346_v57 = vpop.eup %5345  ;;  %v1189_v21 = vadd.f32 %v5344_v62, %v5342_v47  ;;  %v8421_v30 = vadd.f32 %v14062_v60, %v14061_v14  ;;  %v14066_v60 = vld [vmem:[#allocation73_spill] sm:$0xff]  ;;  %v14068_v47 = vld [vmem:[#allocation15_spill] sm:$0xff] }
 0x276   :  { %v5348_v7 = vpop.eup %5347  ;;  %v8441_v14 = vpop.f32.mrf.mxu2 }
 0x277   :  { %v8403_v27 = vpop.xlane.xlu1 %1148  ;;  %v1192_v16 = vadd.f32 %v5348_v7, %v5346_v57 }
 0x278   :  { %14055 = vst [vmem:[#allocation151_spill] sm:$0xff] %v8403_v27  ;;  %1955 = vadd.xlane.f32.xlu2 %v1954_v29  ;;  %1190 = vadd.xlane.f32.xlu0 %v1189_v21  ;;  %v2942_v29 = vmax.f32 %v13241_v20, %v13240_v32  ;;  %v8435_v21 = vadd.f32 %v14065_v39, %v14064_v33  ;;  %v14069_v32 = vld [vmem:[#allocation79_spill] sm:$0xff]  ;;  %v14070_v39 = vld [vmem:[#allocation82_spill] sm:$0xff] }
 0x279   :  { %v8413_v54 = vpop.xlane.xlu0 %1877  ;;  %v8417_v43 = vpop.xlane.xlu2 %1151  ;;  %v8451_v20 = vadd.f32 %v14069_v32, %v14068_v47  ;;  %v8455_v62 = vadd.f32 %v14070_v39, %v14068_v47  ;;  %v14075_v32 = vld [vmem:[#allocation126_spill] sm:$0xff] }
 0x27a   :  { %14059 = vst [vmem:[#allocation152_spill] sm:$0xff] %v8413_v54  ;;  %v14074_v54 = vld [vmem:[#allocation21_spill] sm:$0xff]  ;;  %v14076_v47 = vld [vmem:[#allocation106_spill] sm:$0xff] }
 0x27b   :  { %14060 = vst [vmem:[#allocation32_spill] sm:$0xff] %v8417_v43  ;;  %v8439_v43 = vadd.f32 %v14066_v60, %v14064_v33  ;;  %v14071_v33 = vmax.f32 %v8411_v12, 0.0  ;;  %v14072_v60 = vmax.f32 %v8407_v24, 0.0  ;;  %v8467_v44 = vadd.f32 %v14075_v32, %v14074_v54 }
 0x27c   :  { %1193 = vadd.xlane.f32.xlu1 %v1192_v16  ;;  %v8471_v39 = vadd.f32 %v14076_v47, %v14074_v54 }
 0x27d   :  { %v2945_v57 = vmax.f32 %v14072_v60, %v14071_v33  ;;  %v14079_v33 = vmax.f32 %v8421_v30, 0.0  ;;  %v14083_v47 = vmax.f32 %v8439_v43, 0.0 }
 0x27f   :  { %v8447_v16 = vpop.xlane.xlu1 %1889  ;;  %v2957_v60 = vmax.f32 %v14079_v33, %v14078_v51 }
 0x280   :  { %14067 = vst [vmem:[#allocation167_spill] sm:$0xff] %v8447_v16  ;;  %2943 = vmax.xlane.f32.xlu2 %v2942_v29  ;;  %2946 = vmax.xlane.f32.xlu0 %v2945_v57  ;;  %v13244_v16 = vmax.f32 %v8455_v62, 0.0  ;;  %v14080_v57 = vld [vmem:[#allocation23_spill] sm:$0xff] }
 0x281   :  { %v8461_v27 = vpop.xlane.xlu0 %1886  ;;  %v8473_v29 = vpop.xlane.xlu2 %1883  ;;  %v8487_v54 = vadd.f32 %v14082_v5, %v14080_v57  ;;  %v8503_v5 = vadd.f32 %v14088_v9, %v14087_v19  ;;  %v14092_v9 = vmax.f32 %v8467_v44, 0.0 }
 0x282   :  { %14073 = vst [vmem:[#allocation92_spill] sm:$0xff] %v8461_v27  ;;  %v14081_v27 = vld [vmem:[#allocation107_spill] sm:$0xff] }
 0x283   :  { %14077 = vst [vmem:[#allocation43_spill] sm:$0xff] %v8473_v29  ;;  %v8483_v32 = vadd.f32 %v14081_v27, %v14080_v57  ;;  %v14084_v29 = vmax.f32 %v8435_v21, 0.0  ;;  %v14086_v27 = vmax.f32 %v8451_v20, 0.0  ;;  %v14089_v57 = vld [vmem:[#allocation119_spill] sm:$0xff] }
 0x284   :  { %2958 = vmax.xlane.f32.xlu1 %v2957_v60  ;;  %v8507_v41 = vadd.f32 %v14089_v57, %v14087_v19  ;;  %v8523_v19 = vadd.f32 %v8058_v36, %v14093_v63 }
 0x285   :  { %v2951_v50 = vmax.f32 %v14084_v29, %v14083_v47  ;;  %v2954_v60 = vmax.f32 %v14086_v27, %v13244_v16  ;;  %v8509_v29 = vpop.f32.mrf.mxu2  ;;  %v8511_v47 = vpop.f32.mrf.mxu3  ;;  %v14091_v27 = vmax.f32 %v8471_v39, 0.0 }
 0x287   :  { %v8495_v7 = vpop.xlane.xlu1 %1898  ;;  %v2966_v16 = vmax.f32 %v14092_v9, %v14091_v27  ;;  %v14097_v9 = vld [vmem:[#allocation26_spill] sm:$0xff] }
 0x288   :  { %14085 = vst [vmem:[#allocation75_spill] sm:$0xff] %v8495_v7  ;;  %2952 = vmax.xlane.f32.xlu2 %v2951_v50  ;;  %v13245_v7 = vmax.f32 %v8487_v54, 0.0  ;;  %2955 = vmax.xlane.f32.xlu0 %v2954_v60  ;;  %v8527_v50 = vadd.f32 %v8060_v2, %v14093_v63  ;;  %v14096_v60 = vmax.f32 %v8483_v32, 0.0  ;;  %v8539_v36 = vadd.f32 %v14098_v38, %v14097_v9 }
 0x289   :  { %v8513_v51 = vpop.xlane.xlu0 %1154  ;;  %v8543_v2 = vadd.f32 %v14099_v34, %v14097_v9  ;;  %v14104_v38 = vmax.f32 %v8507_v41, 0.0  ;;  %v14105_v34 = vmax.f32 %v8503_v5, 0.0 }
 0x28a   :  { %14090 = vst [vmem:[#allocation156_spill] sm:$0xff] %v8513_v51  ;;  %v8531_v51 = vpop.xlane.xlu2 %1892  ;;  %v2960_v27 = vmax.f32 %v14096_v60, %v13245_v7  ;;  %v14103_v60 = vld [vmem:[#allocation131_spill] sm:$0xff] }
 0x28b   :  { %14094 = vst [vmem:[#allocation157_spill] sm:$0xff] %v8527_v50  ;;  %v2963_v9 = vmax.f32 %v14105_v34, %v14104_v38 }
 0x28c   :  { %14095 = vst [vmem:[#allocation159_spill] sm:$0xff] %v8531_v51  ;;  %2967 = vmax.xlane.f32.xlu1 %v2966_v16  ;;  %v14102_v16 = vld [vmem:[#allocation25_spill] sm:$0xff] }
 0x28d   :  { %14100 = vst [vmem:[#allocation162_spill] sm:$0xff] %v8543_v2  ;;  %v8551_v51 = vadd.f32 %v8029_v17, %v14102_v16  ;;  %v8555_v7 = vadd.f32 %v14103_v60, %v14102_v16  ;;  %v14107_v17 = vmax.f32 %v8527_v50, 0.0  ;;  %v14108_v16 = vmax.f32 %v8523_v19, 0.0  ;;  %v8579_v34 = vpop.f32.mrf.mxu3 }
 0x28f   :  { %v8547_v33 = vpop.xlane.xlu1 %1157  ;;  %v2975_v60 = vmax.f32 %v14108_v16, %v14107_v17  ;;  %v13250_v57 = vmax.f32 %v8555_v7, 0.0  ;;  %v14112_v16 = vld [vmem:[#allocation30_spill] sm:$0xff] }
 0x290   :  { %14101 = vst [vmem:[#allocation165_spill] sm:$0xff] %v8547_v33  ;;  %2961 = vmax.xlane.f32.xlu2 %v2960_v27  ;;  %v8565_v33 = vpop.f32.mrf.mxu2  ;;  %2964 = vmax.xlane.f32.xlu0 %v2963_v9  ;;  %v14109_v27 = vld [vmem:[#allocation27_spill] sm:$0xff]  ;;  %v14110_v9 = vmax.f32 %v8543_v2, 0.0  ;;  %v14119_v2 = vld [vmem:[#allocation29_spill] sm:$0xff] }
 0x291   :  { %v8561_v59 = vpop.xlane.xlu0 %1895  ;;  %v8573_v28 = vadd.f32 %v8132_v23, %v14109_v27  ;;  %v8577_v38 = vadd.f32 %v8134_v31, %v14109_v27  ;;  %v8589_v23 = vadd.f32 %v8068_v13, %v14112_v16  ;;  %v8593_v31 = vadd.f32 %v14114_v35, %v14112_v16 }
 0x292   :  { %14106 = vst [vmem:[#allocation166_spill] sm:$0xff] %v8561_v59  ;;  %v14111_v59 = vmax.f32 %v8539_v36, 0.0  ;;  %v8597_v50 = vpop.xlane.xlu2 %1160  ;;  %v8607_v13 = vadd.f32 %v8108_v0, %v14119_v2  ;;  %v8611_v35 = vadd.f32 %v8118_v18, %v14119_v2 }
 0x293   :  { %14113 = vst [vmem:[#allocation52_spill] sm:$0xff] %v8589_v23  ;;  %v13253_v63 = vmax.f32 %v8593_v31, 0.0 }
 0x294   :  { %2976 = vmax.xlane.f32.xlu1 %v2975_v60  ;;  %v2969_v17 = vmax.f32 %v14111_v59, %v14110_v9  ;;  %14115 = vst [vmem:[#allocation36_spill] sm:$0xff] %v8593_v31  ;;  %v14118_v59 = vmax.f32 %v8551_v51, 0.0  ;;  %v14129_v31 = vmax.f32 %v8607_v13, 0.0 }
 0x295   :  { %14116 = vst [vmem:[#allocation93_spill] sm:$0xff] %v8597_v50  ;;  %v14124_v50 = vld [vmem:[#allocation33_spill] sm:$0xff] }
 0x296   :  { %v2972_v9 = vmax.f32 %v14118_v59, %v13250_v57  ;;  %14120 = vst [vmem:[#allocation31_spill] sm:$0xff] %v8611_v35  ;;  %v14123_v59 = vmax.f32 %v8573_v28, 0.0  ;;  %v8623_v0 = vadd.f32 %v8214_v25, %v14124_v50  ;;  %v8627_v18 = vadd.f32 %v8226_v22, %v14124_v50  ;;  %v14126_v25 = vld [vmem:[#allocation35_spill] sm:$0xff] }
 0x297   :  { %v8599_v60 = vpop.xlane.xlu1 %1907  ;;  %v8645_v22 = vadd.f32 %v8166_v53, %v14126_v25 }
 0x298   :  { %14117 = vst [vmem:[#allocation53_spill] sm:$0xff] %v8599_v60  ;;  %2970 = vmax.xlane.f32.xlu2 %v2969_v17  ;;  %2973 = vmax.xlane.f32.xlu0 %v2972_v9  ;;  %v14122_v60 = vmax.f32 %v8577_v38, 0.0  ;;  %v8631_v27 = vpop.f32.mrf.mxu2  ;;  %v8633_v9 = vpop.f32.mrf.mxu3 }
 0x299   :  { %v8613_v16 = vpop.xlane.xlu0 %1904  ;;  %v13255_v2 = vmax.f32 %v8645_v22, 0.0 }
 0x29a   :  { %14121 = vst [vmem:[#allocation168_spill] sm:$0xff] %v8613_v16  ;;  %v2984_v57 = vmax.f32 %v14123_v59, %v14122_v60  ;;  %v14125_v60 = vmax.f32 %v8589_v23, 0.0  ;;  %v8641_v16 = vadd.f32 %v8163_v58, %v14126_v25  ;;  %v8663_v53 = vpop.xlane.xlu2 %1901 }
 0x29b   :  { %14132 = vst [vmem:[#allocation77_spill] sm:$0xff] %v8663_v53  ;;  %v14137_v53 = vld [vmem:[#allocation41_spill] sm:$0xff] }
 0x29c   :  { %2985 = vmax.xlane.f32.xlu1 %v2984_v57  ;;  %v2978_v59 = vmax.f32 %v14125_v60, %v13253_v63  ;;  %v14128_v57 = vmax.f32 %v8611_v35, 0.0  ;;  %v14130_v60 = vld [vmem:[#allocation34_spill] sm:$0xff]  ;;  %v13256_v50 = vmax.f32 %v8641_v16, 0.0 }
 0x29d   :  { %v8657_v63 = vadd.f32 %v8183_v3, %v14130_v60  ;;  %v8661_v58 = vadd.f32 %v8185_v8, %v14130_v60 }
 0x29e   :  { %v2981_v23 = vmax.f32 %v14129_v31, %v14128_v57  ;;  %v14134_v31 = vmax.f32 %v8627_v18, 0.0  ;;  %v14135_v57 = vmax.f32 %v8623_v0, 0.0 }
 0x29f   :  { %v8649_v17 = vpop.xlane.xlu1 %1916  ;;  %14131 = vst [vmem:[#allocation104_spill] sm:$0xff] %v8661_v58  ;;  %v13257_v60 = vmax.f32 %v8661_v58, 0.0  ;;  %v14146_v58 = vld [vmem:[#allocation46_spill] sm:$0xff] }
 0x2a0   :  { %14127 = vst [vmem:[#allocation85_spill] sm:$0xff] %v8649_v17  ;;  %2979 = vmax.xlane.f32.xlu2 %v2978_v59  ;;  %2982 = vmax.xlane.f32.xlu0 %v2981_v23  ;;  %v2993_v3 = vmax.f32 %v14135_v57, %v14134_v31  ;;  %v14136_v17 = vld [vmem:[#allocation39_spill] sm:$0xff]  ;;  %v2987_v23 = vmax.f32 %v13256_v50, %v13255_v2  ;;  %v14139_v2 = vmax.f32 %v8657_v63, 0.0  ;;  %v14140_v50 = vld [vmem:[#allocation40_spill] sm:$0xff] }
 0x2a1   :  { %v8665_v25 = vpop.xlane.xlu0 %1163  ;;  %v8675_v35 = vadd.f32 %v8304_v45, %v14136_v17  ;;  %v8679_v8 = vadd.f32 %v8311_v26, %v14136_v17  ;;  %v8689_v31 = vadd.f32 %v8246_v1, %v14137_v53  ;;  %v8693_v45 = vadd.f32 %v8250_v15, %v14137_v53  ;;  %v8695_v26 = vpop.f32.mrf.mxu2 }
 0x2a2   :  { %14133 = vst [vmem:[#allocation44_spill] sm:$0xff] %v8665_v25  ;;  %v2990_v1 = vmax.f32 %v14139_v2, %v13257_v60  ;;  %v8709_v25 = vadd.f32 %v8279_v40, %v14140_v50  ;;  %v8713_v15 = vadd.f32 %v8287_v11, %v14140_v50  ;;  %v8725_v40 = vadd.f32 %v8391_v4, %v14146_v58  ;;  %v8731_v50 = vpop.xlane.xlu2 %1910 }
 0x2a3   :  { %v13259_v57 = vmax.f32 %v8693_v45, 0.0  ;;  %v14145_v2 = vmax.f32 %v8675_v35, 0.0  ;;  %v8729_v11 = vadd.f32 %v8393_v48, %v14146_v58  ;;  %14147 = vst [vmem:[#allocation99_spill] sm:$0xff] %v8731_v50 }
 0x2a4   :  { %2994 = vmax.xlane.f32.xlu1 %v2993_v3  ;;  %v8699_v3 = vpop.f32.mrf.mxu3  ;;  %14141 = vst [vmem:[#allocation69_spill] sm:$0xff] %v8709_v25  ;;  %v13260_v17 = vmax.f32 %v8713_v15, 0.0 }
 0x2a5   :  { %14142 = vst [vmem:[#allocation28_spill] sm:$0xff] %v8713_v15  ;;  %v14157_v15 = vld [vmem:[#allocation56_spill] sm:$0xff] }
 0x2a7   :  { %v8701_v59 = vpop.xlane.xlu1 %1166 }
 0x2a8   :  { %14138 = vst [vmem:[#allocation81_spill] sm:$0xff] %v8701_v59  ;;  %2988 = vmax.xlane.f32.xlu2 %v2987_v23  ;;  %2991 = vmax.xlane.f32.xlu0 %v2990_v1  ;;  %v14144_v59 = vmax.f32 %v8679_v8, 0.0  ;;  %v14148_v1 = vmax.f32 %v8689_v31, 0.0 }
 0x2a9   :  { %v8715_v53 = vpop.xlane.xlu0 %1913 }
 0x2aa   :  { %14143 = vst [vmem:[#allocation91_spill] sm:$0xff] %v8715_v53  ;;  %v3002_v60 = vmax.f32 %v14145_v2, %v14144_v59  ;;  %v2996_v59 = vmax.f32 %v14148_v1, %v13259_v57  ;;  %v14149_v2 = vld [vmem:[#allocation50_spill] sm:$0xff]  ;;  %v14152_v1 = vld [vmem:[#allocation49_spill] sm:$0xff] }
 0x2ab   :  { %v8741_v4 = vadd.f32 %v8331_v56, %v14149_v2  ;;  %v8745_v48 = vadd.f32 %v8343_v49, %v14149_v2  ;;  %v8757_v57 = vadd.f32 %v8365_v52, %v14152_v1  ;;  %v8761_v56 = vadd.f32 %v8368_v10, %v14152_v1  ;;  %v2781_v49 = vpop.f32.mrf.mxu2 }
 0x2ac   :  { %3003 = vmax.xlane.f32.xlu1 %v3002_v60  ;;  %v14151_v60 = vmax.f32 %v8709_v25, 0.0  ;;  %v2870_v2 = vpop.f32.mrf.mxu3  ;;  %v8773_v25 = vadd.f32 %v8565_v33, %v14157_v15  ;;  %v8777_v10 = vadd.f32 %v8579_v34, %v14157_v15 }
 0x2ad   :  { %14153 = vst [vmem:[#allocation76_spill] sm:$0xff] %v8761_v56  ;;  %v13264_v23 = vmax.f32 %v8761_v56, 0.0 }
 0x2ae   :  { %v2999_v50 = vmax.f32 %v14151_v60, %v13260_v17  ;;  %v14155_v60 = vmax.f32 %v8729_v11, 0.0  ;;  %v14156_v17 = vmax.f32 %v8725_v40, 0.0  ;;  %14158 = vst [vmem:[#allocation88_spill] sm:$0xff] %v8777_v10 }
 0x2af   :  { %v8749_v53 = vpop.xlane.xlu1 %1925 }
 0x2b0   :  { %14150 = vst [vmem:[#allocation86_spill] sm:$0xff] %v8749_v53  ;;  %2997 = vmax.xlane.f32.xlu2 %v2996_v59  ;;  %v13263_v53 = vmax.f32 %v8745_v48, 0.0  ;;  %3000 = vmax.xlane.f32.xlu0 %v2999_v50  ;;  %v3011_v52 = vmax.f32 %v14156_v17, %v14155_v60  ;;  %v14160_v50 = vmax.f32 %v8741_v4, 0.0  ;;  %v14161_v60 = vld [vmem:[#allocation58_spill] sm:$0xff] }
 0x2b1   :  { %v8763_v58 = vpop.xlane.xlu0 %1922  ;;  %v8789_v33 = vadd.f32 %v8441_v14, %v14161_v60  ;;  %v8793_v34 = vadd.f32 %v8445_v6, %v14161_v60 }
 0x2b2   :  { %14154 = vst [vmem:[#allocation78_spill] sm:$0xff] %v8763_v58  ;;  %v8779_v59 = vpop.xlane.xlu2 %1169  ;;  %v3005_v17 = vmax.f32 %v14160_v50, %v13263_v53  ;;  %v14164_v50 = vld [vmem:[#allocation57_spill] sm:$0xff] }
 0x2b3   :  { %14159 = vst [vmem:[#allocation38_spill] sm:$0xff] %v8779_v59  ;;  %v8805_v53 = vadd.f32 %v8509_v29, %v14164_v50  ;;  %v8809_v14 = vadd.f32 %v8511_v47, %v14164_v50  ;;  %v2784_v1 = vpop.f32.mrf.mxu2  ;;  %v14169_v29 = vld [vmem:[#allocation64_spill] sm:$0xff] }
 0x2b4   :  { %3012 = vmax.xlane.f32.xlu1 %v3011_v52  ;;  %v14163_v52 = vmax.f32 %v8757_v57, 0.0  ;;  %v8820_v56 = vadd.f32 %v2781_v49, %v14169_v29  ;;  %v8823_v47 = vadd.f32 %v2870_v2, %v14169_v29 }
 0x2b5   :  { %14165 = vst [vmem:[#allocation90_spill] sm:$0xff] %v8809_v14  ;;  %v13267_v15 = vmax.f32 %v8809_v14, 0.0 }
 0x2b6   :  { %v3008_v59 = vmax.f32 %v14163_v52, %v13264_v23  ;;  %v14168_v52 = vmax.f32 %v8773_v25, 0.0  ;;  %14170 = vst [vmem:[#allocation16_spill] sm:$0xff] %v8823_v47  ;;  %v13270_v29 = vmax.f32 %v8823_v47, 0.0 }
 0x2b7   :  { %v8797_v58 = vpop.xlane.xlu1 %1934 }
 0x2b8   :  { %14162 = vst [vmem:[#allocation63_spill] sm:$0xff] %v8797_v58  ;;  %3006 = vmax.xlane.f32.xlu2 %v3005_v17  ;;  %3009 = vmax.xlane.f32.xlu0 %v3008_v59  ;;  %v14167_v58 = vmax.f32 %v8777_v10, 0.0  ;;  %v2873_v17 = vpop.f32.mrf.mxu3  ;;  %v14172_v59 = vmax.f32 %v8793_v34, 0.0 }
 0x2b9   :  { %v8811_v6 = vpop.xlane.xlu0 %1172 }
 0x2ba   :  { %14166 = vst [vmem:[#allocation94_spill] sm:$0xff] %v8811_v6  ;;  %v3020_v23 = vmax.f32 %v14168_v52, %v14167_v58  ;;  %v8825_v50 = vpop.xlane.xlu2 %1919  ;;  %v14173_v6 = vmax.f32 %v8789_v33, 0.0  ;;  %v14174_v58 = vld [vmem:[#allocation66_spill] sm:$0xff] }
 0x2bb   :  { %14171 = vst [vmem:[#allocation67_spill] sm:$0xff] %v8825_v50  ;;  %v8835_v49 = vadd.f32 %v8631_v27, %v14174_v58  ;;  %v8839_v2 = vadd.f32 %v8633_v9, %v14174_v58 }
 0x2bc   :  { %3021 = vmax.xlane.f32.xlu1 %v3020_v23  ;;  %v3014_v10 = vmax.f32 %v14173_v6, %v14172_v59  ;;  %v14177_v23 = vmax.f32 %v8805_v53, 0.0  ;;  %v14178_v6 = vld [vmem:[#allocation65_spill] sm:$0xff] }
 0x2bd   :  { %14175 = vst [vmem:[#allocation68_spill] sm:$0xff] %v8839_v2  ;;  %v8851_v59 = vadd.f32 %v8695_v26, %v14178_v6  ;;  %v8855_v27 = vadd.f32 %v8699_v3, %v14178_v6  ;;  %v13273_v58 = vmax.f32 %v8835_v49, 0.0  ;;  %v13272_v52 = vmax.f32 %v8839_v2, 0.0  ;;  %v2786_v6 = vpop.f32.mrf.mxu2 }
 0x2be   :  { %v3017_v50 = vmax.f32 %v14177_v23, %v13267_v15  ;;  %v14180_v23 = vmax.f32 %v8820_v56, 0.0 }
 0x2bf   :  { %v8843_v60 = vpop.xlane.xlu1 %1175  ;;  %v13275_v26 = vmax.f32 %v8851_v59, 0.0  ;;  %v13274_v3 = vmax.f32 %v8855_v27, 0.0 }
 0x2c0   :  { %14176 = vst [vmem:[#allocation42_spill] sm:$0xff] %v8843_v60  ;;  %3015 = vmax.xlane.f32.xlu2 %v3014_v10  ;;  %3018 = vmax.xlane.f32.xlu0 %v3017_v50  ;;  %v3029_v15 = vmax.f32 %v14180_v23, %v13270_v29  ;;  %v2875_v10 = vpop.f32.mrf.mxu3  ;;  %v14182_v50 = vld [vmem:[#allocation71_spill] sm:$0xff] }
 0x2c1   :  { %v8857_v9 = vpop.xlane.xlu0 %1931  ;;  %v8874_v14 = vadd.f32 %v2784_v1, %v14182_v50  ;;  %v8877_v47 = vadd.f32 %v2873_v17, %v14182_v50  ;;  %v3026_v29 = vmax.f32 %v13275_v26, %v13274_v3 }
 0x2c2   :  { %14179 = vst [vmem:[#allocation83_spill] sm:$0xff] %v8857_v9  ;;  %v8865_v60 = vpop.xlane.xlu2 %1928  ;;  %v3023_v9 = vmax.f32 %v13273_v58, %v13272_v52 }
 0x2c3   :  { %14181 = vst [vmem:[#allocation101_spill] sm:$0xff] %v8865_v60  ;;  %v14184_v60 = vld [vmem:[#allocation70_spill] sm:$0xff]  ;;  %v13277_v1 = vmax.f32 %v8874_v14, 0.0  ;;  %v13276_v17 = vmax.f32 %v8877_v47, 0.0 }
 0x2c4   :  { %3030 = vmax.xlane.f32.xlu1 %v3029_v15  ;;  %v8886_v15 = vadd.f32 %v2786_v6, %v14184_v60  ;;  %v8889_v2 = vadd.f32 %v2875_v10, %v14184_v60 }
 0x2c5   :  { %v3032_v60 = vmax.f32 %v13277_v1, %v13276_v17  ;;  %v14193_v1 = vmax.f32 %v8337_v55, 0.0 }
 0x2c6   :  { %v13279_v58 = vmax.f32 %v8886_v15, 0.0  ;;  %v13278_v3 = vmax.f32 %v8889_v2, 0.0 }
 0x2c7   :  { %v8879_v23 = vpop.xlane.xlu1 %1943 }
 0x2c8   :  { %14183 = vst [vmem:[#allocation80_spill] sm:$0xff] %v8879_v23  ;;  %3024 = vmax.xlane.f32.xlu2 %v3023_v9  ;;  %3027 = vmax.xlane.f32.xlu0 %v3026_v29  ;;  %v3035_v9 = vmax.f32 %v13279_v58, %v13278_v3 }
 0x2c9   :  { %v8891_v52 = vpop.xlane.xlu0 %1940 }
 0x2ca   :  { %14185 = vst [vmem:[#allocation102_spill] sm:$0xff] %v8891_v52  ;;  %v8895_v50 = vpop.xlane.xlu2 %1178 }
 0x2cb   :  { %14186 = vst [vmem:[#allocation45_spill] sm:$0xff] %v8895_v50  ;;  %v14195_v50 = vmax.f32 %v8341_v42, 0.0 }
 0x2cf   :  { %v8903_v6 = vpop.xlane.xlu1 %1952 }
 0x2d0   :  { %14187 = vst [vmem:[#allocation105_spill] sm:$0xff] %v8903_v6  ;;  %3033 = vmax.xlane.f32.xlu2 %v3032_v60  ;;  %3036 = vmax.xlane.f32.xlu0 %v3035_v9 }
 0x2d1   :  { %v8909_v29 = vpop.xlane.xlu0 %1181 }
 0x2d2   :  { %14188 = vst [vmem:[#allocation110_spill] sm:$0xff] %v8909_v29  ;;  %v8911_v10 = vpop.xlane.xlu2 %1937  ;;  %v14417_v29 = vld [vmem:[#allocation127_spill] sm:$0xff] }
 0x2d3   :  { %14189 = vst [vmem:[#allocation100_spill] sm:$0xff] %v8911_v10 }
 0x2d7   :  { %v8913_v26 = vpop.xlane.xlu1 %1184 }
 0x2d8   :  { %14190 = vst [vmem:[#allocation59_spill] sm:$0xff] %v8913_v26 }
 0x2d9   :  { %v8917_v23 = vpop.xlane.xlu0 %1949 }
 0x2da   :  { %v8915_v52 = vpop.xlane.xlu2 %1946  ;;  %14192 = vst [vmem:[#allocation111_spill] sm:$0xff] %v8917_v23 }
 0x2db   :  { %14191 = vst [vmem:[#allocation122_spill] sm:$0xff] %v8915_v52 }
 0x2df   :  { %v2950_v17 = vpop.xlane.xlu1 %2949 }
 0x2e0   :  { %v8921_v6 = vsub.f32 %v14193_v1, %v2950_v17  ;;  %v8925_v3 = vsub.f32 %v14195_v50, %v2950_v17 }
 0x2e2   :  { %14194 = vst [vmem:[#allocation120_spill] sm:$0xff] %v8921_v6  ;;  %v3110_v60 = vmul.f32 1.442695, %v8921_v6  ;;  %v3112_v9 = vmul.f32 1.442695, %v8925_v3 }
 0x2e3   :  { %14196 = vst [vmem:[#allocation17_spill] sm:$0xff] %v8925_v3  ;;  %v8929_v58 = vpop.xlane.xlu2 %1187  ;;  %v8931_v52 = vpop.xlane.xlu0 %1958  ;;  %v14203_v3 = vmax.f32 %v8397_v61, 0.0 }
 0x2e4   :  { %14197 = vst [vmem:[#allocation51_spill] sm:$0xff] %v8929_v58  ;;  %5349 = vpow2.f32 %v3110_v60  ;;  %v14205_v60 = vmax.f32 %v8401_v37, 0.0 }
 0x2e5   :  { %5351 = vpow2.f32 %v3112_v9  ;;  %14198 = vst [vmem:[#allocation54_spill] sm:$0xff] %v8931_v52 }
 0x2e7   :  { %v8933_v23 = vpop.xlane.xlu1 %1961 }
 0x2e8   :  { %14199 = vst [vmem:[#allocation20_spill] sm:$0xff] %v8933_v23 }
 0x2ea   :  { %v5350_v10 = vpop.eup %5349 }
 0x2eb   :  { %v5352_v55 = vpop.eup %5351  ;;  %v8935_v1 = vpop.xlane.xlu2 %1955 }
 0x2ec   :  { %14200 = vst [vmem:[#allocation60_spill] sm:$0xff] %v8935_v1  ;;  %v3236_v26 = vadd.f32 %v5352_v55, %v5350_v10  ;;  %v8937_v42 = vpop.xlane.xlu0 %1190  ;;  %v14207_v10 = vmax.f32 %v8407_v24, 0.0 }
 0x2ed   :  { %14201 = vst [vmem:[#allocation61_spill] sm:$0xff] %v8937_v42  ;;  %v14213_v42 = vmax.f32 %v8425_v46, 0.0 }
 0x2ee   :  { %3237 = vadd.xlane.f32.xlu0 %v3236_v26  ;;  %v14209_v26 = vmax.f32 %v8411_v12, 0.0 }
 0x2ef   :  { %v8939_v17 = vpop.xlane.xlu1 %1193 }
 0x2f0   :  { %14202 = vst [vmem:[#allocation18_spill] sm:$0xff] %v8939_v17 }
 0x2f3   :  { %v2944_v50 = vpop.xlane.xlu2 %2943 }
 0x2f4   :  { %v8943_v6 = vsub.f32 %v14203_v3, %v2944_v50  ;;  %v8947_v9 = vsub.f32 %v14205_v60, %v2944_v50  ;;  %v2947_v23 = vpop.xlane.xlu0 %2946  ;;  %v14211_v50 = vmax.f32 %v8421_v30, 0.0 }
 0x2f5   :  { %v8953_v55 = vsub.f32 %v14207_v10, %v2947_v23  ;;  %v8957_v17 = vsub.f32 %v14209_v26, %v2947_v23  ;;  %v14215_v10 = vmax.f32 %v8435_v21, 0.0  ;;  %v14221_v21 = vmax.f32 %v8455_v62, 0.0 }
 0x2f6   :  { %14204 = vst [vmem:[#allocation95_spill] sm:$0xff] %v8943_v6  ;;  %v3102_v52 = vmul.f32 1.442695, %v8943_v6  ;;  %v3104_v1 = vmul.f32 1.442695, %v8947_v9  ;;  %v9568_v6 = vld [vmem:[#allocation4 + $0x140] sm:$0xff] }
 0x2f7   :  { %14206 = vst [vmem:[#allocation96_spill] sm:$0xff] %v8947_v9  ;;  %v3106_v61 = vmul.f32 1.442695, %v8953_v55  ;;  %v3108_v37 = vmul.f32 1.442695, %v8957_v17  ;;  %v2959_v3 = vpop.xlane.xlu1 %2958  ;;  %v14399_v9 = vld [vmem:[#allocation117_spill] sm:$0xff] }
 0x2f8   :  { %14208 = vst [vmem:[#allocation19_spill] sm:$0xff] %v8953_v55  ;;  %5353 = vpow2.f32 %v3102_v52  ;;  %v8963_v60 = vsub.f32 %v14211_v50, %v2959_v3  ;;  %v8967_v24 = vsub.f32 %v14213_v42, %v2959_v3 }
 0x2f9   :  { %14210 = vst [vmem:[#allocation72_spill] sm:$0xff] %v8957_v17  ;;  %5355 = vpow2.f32 %v3104_v1  ;;  %v14217_v1 = vmax.f32 %v8439_v43, 0.0 }
 0x2fa   :  { %14212 = vst [vmem:[#allocation73_spill] sm:$0xff] %v8963_v60  ;;  %5357 = vpow2.f32 %v3106_v61  ;;  %v3122_v12 = vmul.f32 1.442695, %v8963_v60  ;;  %v3124_v52 = vmul.f32 1.442695, %v8967_v24 }
 0x2fb   :  { %14214 = vst [vmem:[#allocation15_spill] sm:$0xff] %v8967_v24  ;;  %5359 = vpow2.f32 %v3108_v37  ;;  %v2953_v23 = vpop.xlane.xlu2 %2952  ;;  %v14219_v37 = vmax.f32 %v8451_v20, 0.0 }
 0x2fc   :  { %v8973_v26 = vsub.f32 %v14215_v10, %v2953_v23  ;;  %v8977_v30 = vsub.f32 %v14217_v1, %v2953_v23  ;;  %5361 = vpow2.f32 %v3122_v12  ;;  %v2956_v50 = vpop.xlane.xlu0 %2955 }
 0x2fd   :  { %5363 = vpow2.f32 %v3124_v52  ;;  %v8983_v3 = vsub.f32 %v14219_v37, %v2956_v50  ;;  %v8987_v10 = vsub.f32 %v14221_v21, %v2956_v50  ;;  %v14225_v37 = vmax.f32 %v8471_v39, 0.0 }
 0x2fe   :  { %14216 = vst [vmem:[#allocation79_spill] sm:$0xff] %v8973_v26  ;;  %v5354_v46 = vpop.eup %5353  ;;  %v3114_v42 = vmul.f32 1.442695, %v8973_v26  ;;  %v3116_v61 = vmul.f32 1.442695, %v8977_v30  ;;  %v14227_v21 = vmax.f32 %v8483_v32, 0.0 }
 0x2ff   :  { %14218 = vst [vmem:[#allocation82_spill] sm:$0xff] %v8977_v30  ;;  %v5356_v24 = vpop.eup %5355  ;;  %v3118_v12 = vmul.f32 1.442695, %v8983_v3  ;;  %v2968_v23 = vpop.xlane.xlu1 %2967  ;;  %v3120_v60 = vmul.f32 1.442695, %v8987_v10  ;;  %v14223_v30 = vmax.f32 %v8467_v44, 0.0 }
 0x300   :  { %14220 = vst [vmem:[#allocation21_spill] sm:$0xff] %v8983_v3  ;;  %v5358_v43 = vpop.eup %5357  ;;  %5365 = vpow2.f32 %v3114_v42  ;;  %v3230_v1 = vadd.f32 %v5356_v24, %v5354_v46  ;;  %v8997_v26 = vsub.f32 %v14225_v37, %v2968_v23 }
 0x301   :  { %14222 = vst [vmem:[#allocation126_spill] sm:$0xff] %v8987_v10  ;;  %v5360_v52 = vpop.eup %5359  ;;  %5367 = vpow2.f32 %v3116_v61  ;;  %v8993_v20 = vsub.f32 %v14223_v30, %v2968_v23  ;;  %v14229_v30 = vmax.f32 %v8487_v54, 0.0 }
 0x302   :  { %14226 = vst [vmem:[#allocation23_spill] sm:$0xff] %v8997_v26  ;;  %5369 = vpow2.f32 %v3118_v12  ;;  %3231 = vadd.xlane.f32.xlu1 %v3230_v1  ;;  %v3233_v62 = vadd.f32 %v5360_v52, %v5358_v43  ;;  %v5362_v50 = vpop.eup %5361  ;;  %v3136_v24 = vmul.f32 1.442695, %v8997_v26  ;;  %v14231_v52 = vmax.f32 %v8503_v5, 0.0 }
 0x303   :  { %14224 = vst [vmem:[#allocation106_spill] sm:$0xff] %v8993_v20  ;;  %5371 = vpow2.f32 %v3120_v60  ;;  %v3134_v42 = vmul.f32 1.442695, %v8993_v20  ;;  %v2962_v46 = vpop.xlane.xlu2 %2961  ;;  %v5364_v61 = vpop.eup %5363  ;;  %v14235_v5 = vmax.f32 %v8523_v19, 0.0 }
 0x304   :  { %v9003_v44 = vsub.f32 %v14227_v21, %v2962_v46  ;;  %v9007_v39 = vsub.f32 %v14229_v30, %v2962_v46  ;;  %3234 = vadd.xlane.f32.xlu2 %v3233_v62  ;;  %v2965_v12 = vpop.xlane.xlu0 %2964  ;;  %v3245_v43 = vadd.f32 %v5364_v61, %v5362_v50  ;;  %v14233_v21 = vmax.f32 %v8507_v41, 0.0 }
 0x305   :  { %5373 = vpow2.f32 %v3134_v42  ;;  %v9013_v37 = vsub.f32 %v14231_v52, %v2965_v12  ;;  %v14237_v52 = vld [vmem:[#allocation157_spill] sm:$0xff] }
 0x306   :  { %14228 = vst [vmem:[#allocation107_spill] sm:$0xff] %v9003_v44  ;;  %v5366_v23 = vpop.eup %5365  ;;  %5375 = vpow2.f32 %v3136_v24  ;;  %v3126_v60 = vmul.f32 1.442695, %v9003_v44  ;;  %v3128_v1 = vmul.f32 1.442695, %v9007_v39  ;;  %v9017_v54 = vsub.f32 %v14233_v21, %v2965_v12  ;;  %3246 = vadd.xlane.f32.xlu0 %v3245_v43 }
 0x307   :  { %14230 = vst [vmem:[#allocation108_spill] sm:$0xff] %v9007_v39  ;;  %v5368_v32 = vpop.eup %5367  ;;  %v3130_v50 = vmul.f32 1.442695, %v9013_v37  ;;  %v2977_v42 = vpop.xlane.xlu1 %2976  ;;  %v14238_v26 = vmax.f32 %v14237_v52, 0.0  ;;  %v14240_v21 = vmax.f32 %v8539_v36, 0.0 }
 0x308   :  { %14232 = vst [vmem:[#allocation22_spill] sm:$0xff] %v9013_v37  ;;  %v5370_v62 = vpop.eup %5369  ;;  %5377 = vpow2.f32 %v3126_v60  ;;  %v3239_v24 = vadd.f32 %v5368_v32, %v5366_v23  ;;  %v3132_v61 = vmul.f32 1.442695, %v9017_v54  ;;  %v9023_v30 = vsub.f32 %v14235_v5, %v2977_v42  ;;  %v14242_v5 = vld [vmem:[#allocation162_spill] sm:$0xff] }
 0x309   :  { %14234 = vst [vmem:[#allocation118_spill] sm:$0xff] %v9017_v54  ;;  %v5372_v46 = vpop.eup %5371  ;;  %5379 = vpow2.f32 %v3128_v1  ;;  %v9027_v41 = vsub.f32 %v14238_v26, %v2977_v42  ;;  %v14243_v54 = vmax.f32 %v14242_v5, 0.0 }
 0x30a   :  { %14236 = vst [vmem:[#allocation119_spill] sm:$0xff] %v9023_v30  ;;  %5381 = vpow2.f32 %v3130_v50  ;;  %3240 = vadd.xlane.f32.xlu1 %v3239_v24  ;;  %v3242_v12 = vadd.f32 %v5372_v46, %v5370_v62  ;;  %v3146_v60 = vmul.f32 1.442695, %v9023_v30  ;;  %v14245_v46 = vmax.f32 %v8551_v51, 0.0 }
 0x30b   :  { %14239 = vst [vmem:[#allocation24_spill] sm:$0xff] %v9027_v41  ;;  %v5374_v43 = vpop.eup %5373  ;;  %5383 = vpow2.f32 %v3132_v61  ;;  %v3148_v23 = vmul.f32 1.442695, %v9027_v41  ;;  %v2971_v1 = vpop.xlane.xlu2 %2970  ;;  %v14249_v51 = vmax.f32 %v8573_v28, 0.0  ;;  %v14254_v28 = vld [vmem:[#allocation52_spill] sm:$0xff] }
 0x30c   :  { %v5376_v32 = vpop.eup %5375  ;;  %v9033_v19 = vsub.f32 %v14240_v21, %v2971_v1  ;;  %v9037_v52 = vsub.f32 %v14243_v54, %v2971_v1  ;;  %3243 = vadd.xlane.f32.xlu2 %v3242_v12  ;;  %5385 = vpow2.f32 %v3146_v60  ;;  %v2974_v26 = vpop.xlane.xlu0 %2973  ;;  %v14247_v21 = vmax.f32 %v8555_v7, 0.0 }
 0x30d   :  { %v3254_v62 = vadd.f32 %v5376_v32, %v5374_v43  ;;  %5387 = vpow2.f32 %v3148_v23  ;;  %v9043_v61 = vsub.f32 %v14245_v46, %v2974_v26  ;;  %v14251_v46 = vmax.f32 %v8577_v38, 0.0  ;;  %v14257_v38 = vld [vmem:[#allocation36_spill] sm:$0xff] }
 0x30e   :  { %14241 = vst [vmem:[#allocation26_spill] sm:$0xff] %v9033_v19  ;;  %v5378_v50 = vpop.eup %5377  ;;  %v3138_v42 = vmul.f32 1.442695, %v9033_v19  ;;  %v3140_v24 = vmul.f32 1.442695, %v9037_v52  ;;  %v9047_v5 = vsub.f32 %v14247_v21, %v2974_v26  ;;  %v14253_v21 = vld [vmem:[#allocation74_spill] sm:$0xff] }
 0x30f   :  { %14244 = vst [vmem:[#allocation132_spill] sm:$0xff] %v9037_v52  ;;  %v5380_v36 = vpop.eup %5379  ;;  %3255 = vadd.xlane.f32.xlu0 %v3254_v62  ;;  %v3142_v12 = vmul.f32 1.442695, %v9043_v61  ;;  %v2986_v43 = vpop.xlane.xlu1 %2985  ;;  %vm1968_vm3 = vweird.f32 %v14253_v21  ;;  %v9463_v52 = vld [vmem:[#allocation4 + $0x120] sm:$0xff]  ;;  %v9482_v19 = vld [vmem:[#allocation4 + $0x128] sm:$0xff] }
 0x310   :  { %14246 = vst [vmem:[#allocation113_spill] sm:$0xff] %v9043_v61  ;;  %v5382_v54 = vpop.eup %5381  ;;  %5389 = vpow2.f32 %v3138_v42  ;;  %v3248_v60 = vadd.f32 %v5380_v36, %v5378_v50  ;;  %v3144_v1 = vmul.f32 1.442695, %v9047_v5  ;;  %v9053_v32 = vsub.f32 %v14249_v51, %v2986_v43  ;;  %v14329_v61 = vld [vmem:[#allocation16_spill] sm:$0xff] }
 0x311   :  { %14248 = vst [vmem:[#allocation25_spill] sm:$0xff] %v9047_v5  ;;  %v5384_v23 = vpop.eup %5383  ;;  %5391 = vpow2.f32 %v3140_v24  ;;  %v9057_v7 = vsub.f32 %v14251_v46, %v2986_v43  ;;  %v14255_v51 = vmax.f32 %v14254_v28, 0.0  ;;  %v14258_v43 = vmax.f32 %v14257_v38, 0.0  ;;  %v14263_v38 = vld [vmem:[#allocation31_spill] sm:$0xff] }
 0x312   :  { %14250 = vst [vmem:[#allocation131_spill] sm:$0xff] %v9053_v32  ;;  %5393 = vpow2.f32 %v3142_v12  ;;  %3249 = vadd.xlane.f32.xlu1 %v3248_v60  ;;  %v3251_v26 = vadd.f32 %v5384_v23, %v5382_v54  ;;  %v5386_v62 = vpop.eup %5385  ;;  %v3158_v42 = vmul.f32 1.442695, %v9053_v32 }
 0x313   :  { %14252 = vst [vmem:[#allocation27_spill] sm:$0xff] %v9057_v7  ;;  %5395 = vpow2.f32 %v3144_v1  ;;  %v3160_v50 = vmul.f32 1.442695, %v9057_v7  ;;  %v2980_v24 = vpop.xlane.xlu2 %2979  ;;  %v5388_v36 = vpop.eup %5387  ;;  %v14260_v7 = vmax.f32 %v8607_v13, 0.0 }
 0x314   :  { %5397 = vrcp.f32 %v14253_v21  ;;  %v9064_v5 = vsub.f32 %v14255_v51, %v2980_v24  ;;  %v9068_v46 = vsub.f32 %v14258_v43, %v2980_v24  ;;  %3252 = vadd.xlane.f32.xlu2 %v3251_v26  ;;  %v2983_v54 = vpop.xlane.xlu0 %2982  ;;  %v3263_v12 = vadd.f32 %v5388_v36, %v5386_v62  ;;  %v14262_v51 = vld [vmem:[#allocation87_spill] sm:$0xff] }
 0x315   :  { %5399 = vpow2.f32 %v3158_v42  ;;  %v9074_v32 = vsub.f32 %v14260_v7, %v2983_v54  ;;  %v14264_v24 = vmax.f32 %v14263_v38, 0.0  ;;  %v14266_v7 = vmax.f32 %v8623_v0, 0.0  ;;  %v14270_v0 = vld [vmem:[#allocation89_spill] sm:$0xff] }
 0x316   :  { %14256 = vst [vmem:[#allocation30_spill] sm:$0xff] %v9064_v5  ;;  %v5390_v60 = vpop.eup %5389  ;;  %5401 = vpow2.f32 %v3160_v50  ;;  %v3150_v23 = vmul.f32 1.442695, %v9064_v5  ;;  %v3152_v1 = vmul.f32 1.442695, %v9068_v46  ;;  %v14268_v5 = vmax.f32 %v8627_v18, 0.0 }
 0x317   :  { %14259 = vst [vmem:[#allocation137_spill] sm:$0xff] %v9068_v46  ;;  %v5392_v28 = vpop.eup %5391  ;;  %5403 = vrcp.f32 %v14262_v51  ;;  %v9079_v43 = vsub.f32 %v14264_v24, %v2983_v54  ;;  %3264 = vadd.xlane.f32.xlu0 %v3263_v12  ;;  %v3154_v62 = vmul.f32 1.442695, %v9074_v32  ;;  %v2995_v42 = vpop.xlane.xlu1 %2994  ;;  %vm1983_vm1 = vweird.f32 %v14270_v0 }
 0x318   :  { %14261 = vst [vmem:[#allocation29_spill] sm:$0xff] %v9074_v32  ;;  %v5394_v26 = vpop.eup %5393  ;;  %5405 = vpow2.f32 %v3150_v23  ;;  %v3257_v50 = vadd.f32 %v5392_v28, %v5390_v60  ;;  %v9085_v46 = vsub.f32 %v14266_v7, %v2995_v42  ;;  %v9089_v38 = vsub.f32 %v14268_v5, %v2995_v42 }
 0x319   :  { %14265 = vst [vmem:[#allocation33_spill] sm:$0xff] %v9079_v43  ;;  %v5396_v36 = vpop.eup %5395  ;;  %5407 = vpow2.f32 %v3152_v1  ;;  %v3156_v13 = vmul.f32 1.442695, %v9079_v43  ;;  %v14271_v7 = vmax.f32 %v8641_v16, 0.0  ;;  %v14273_v5 = vmax.f32 %v8645_v22, 0.0  ;;  %v14277_v22 = vld [vmem:[#allocation97_spill] sm:$0xff] }
 0x31a   :  { %14267 = vst [vmem:[#allocation35_spill] sm:$0xff] %v9085_v46  ;;  %v9091_v54 = vpop.eup %5397  ;;  %5409 = vpow2.f32 %v3154_v62  ;;  %3258 = vadd.xlane.f32.xlu1 %v3257_v50  ;;  %v3260_v12 = vadd.f32 %v5396_v36, %v5394_v26  ;;  %v3170_v60 = vmul.f32 1.442695, %v9085_v46  ;;  %v3172_v1 = vmul.f32 1.442695, %v9089_v38 }
 0x31b   :  { %14269 = vst [vmem:[#allocation34_spill] sm:$0xff] %v9089_v38  ;;  %v5400_v23 = vpop.eup %5399  ;;  %5411 = vpow2.f32 %v3156_v13  ;;  %v2989_v28 = vpop.xlane.xlu2 %2988  ;;  %v14275_v16 = vmax.f32 %v8657_v63, 0.0  ;;  %vm1969_vm0 = vweird.f32 %v9091_v54  ;;  %vm1998_vm11 = vweird.f32 %v14262_v51 }
 0x31c   :  { %v5402_v24 = vpop.eup %5401  ;;  %5413 = vrcp.f32 %v14270_v0  ;;  %v9098_v18 = vsub.f32 %v14271_v7, %v2989_v28  ;;  %v9102_v42 = vsub.f32 %v14273_v5, %v2989_v28  ;;  %3261 = vadd.xlane.f32.xlu2 %v3260_v12  ;;  %v2992_v62 = vpop.xlane.xlu0 %2991  ;;  %v14278_v28 = vld [vmem:[#allocation104_spill] sm:$0xff]  ;;  %vm9289_vm4 = vmor %vm1968_vm3, %vm1969_vm0  ;;  %vm2013_vm0 = vweird.f32 %v14277_v22 }
 0x31d   :  { %v9104_v26 = vpop.eup %5403  ;;  %5415 = vpow2.f32 %v3170_v60  ;;  %v3272_v50 = vadd.f32 %v5402_v24, %v5400_v23  ;;  %v9110_v7 = vsub.f32 %v14275_v16, %v2992_v62  ;;  %v14279_v12 = vmax.f32 %v14278_v28, 0.0 }
 0x31e   :  { %14272 = vst [vmem:[#allocation39_spill] sm:$0xff] %v9098_v18  ;;  %v5406_v36 = vpop.eup %5405  ;;  %5417 = vpow2.f32 %v3172_v1  ;;  %v3162_v13 = vmul.f32 1.442695, %v9098_v18  ;;  %v3164_v38 = vmul.f32 1.442695, %v9102_v42  ;;  %v14281_v16 = vmax.f32 %v8675_v35, 0.0 }
 0x31f   :  { %14274 = vst [vmem:[#allocation41_spill] sm:$0xff] %v9102_v42  ;;  %v5408_v46 = vpop.eup %5407  ;;  %5419 = vrcp.f32 %v14277_v22  ;;  %v9115_v5 = vsub.f32 %v14279_v12, %v2992_v62  ;;  %3273 = vadd.xlane.f32.xlu0 %v3272_v50  ;;  %v3166_v23 = vmul.f32 1.442695, %v9110_v7  ;;  %v3004_v1 = vpop.xlane.xlu1 %3003  ;;  %v14283_v42 = vmax.f32 %v8679_v8, 0.0  ;;  %v14285_v35 = vld [vmem:[#allocation62_spill] sm:$0xff] }
 0x320   :  { %14276 = vst [vmem:[#allocation40_spill] sm:$0xff] %v9110_v7  ;;  %v5410_v60 = vpop.eup %5409  ;;  %5421 = vpow2.f32 %v3162_v13  ;;  %v3266_v24 = vadd.f32 %v5408_v46, %v5406_v36  ;;  %v9121_v32 = vsub.f32 %v14281_v16, %v3004_v1  ;;  %v14286_v16 = vmax.f32 %v8689_v31, 0.0 }
 0x321   :  { %14280 = vst [vmem:[#allocation46_spill] sm:$0xff] %v9115_v5  ;;  %v5412_v43 = vpop.eup %5411  ;;  %5423 = vpow2.f32 %v3164_v38  ;;  %v3168_v63 = vmul.f32 1.442695, %v9115_v5  ;;  %v9125_v28 = vsub.f32 %v14283_v42, %v3004_v1  ;;  %v14288_v42 = vmax.f32 %v8693_v45, 0.0  ;;  %v14293_v45 = vld [vmem:[#allocation28_spill] sm:$0xff] }
 0x322   :  { %14282 = vst [vmem:[#allocation50_spill] sm:$0xff] %v9121_v32  ;;  %v9127_v62 = vpop.eup %5413  ;;  %5425 = vpow2.f32 %v3166_v23  ;;  %3267 = vadd.xlane.f32.xlu1 %v3266_v24  ;;  %v3269_v50 = vadd.f32 %v5412_v43, %v5410_v60  ;;  %v3182_v46 = vmul.f32 1.442695, %v9121_v32  ;;  %v14290_v32 = vld [vmem:[#allocation69_spill] sm:$0xff]  ;;  %vm2028_vm8 = vweird.f32 %v14285_v35 }
 0x323   :  { %14284 = vst [vmem:[#allocation49_spill] sm:$0xff] %v9125_v28  ;;  %v5416_v13 = vpop.eup %5415  ;;  %5427 = vpow2.f32 %v3168_v63  ;;  %v3184_v38 = vmul.f32 1.442695, %v9125_v28  ;;  %v2998_v36 = vpop.xlane.xlu2 %2997  ;;  %v14291_v31 = vmax.f32 %v14290_v32, 0.0  ;;  %vm1984_vm2 = vweird.f32 %v9127_v62 }
 0x324   :  { %v5418_v12 = vpop.eup %5417  ;;  %5429 = vrcp.f32 %v14285_v35  ;;  %v9134_v8 = vsub.f32 %v14286_v16, %v2998_v36  ;;  %v9138_v1 = vsub.f32 %v14288_v42, %v2998_v36  ;;  %3270 = vadd.xlane.f32.xlu2 %v3269_v50  ;;  %v3001_v60 = vpop.xlane.xlu0 %3000  ;;  %v14294_v50 = vmax.f32 %v14293_v45, 0.0  ;;  %vm9300_vm5 = vmor %vm1983_vm1, %vm1984_vm2 }
 0x325   :  { %v9140_v43 = vpop.eup %5419  ;;  %5431 = vpow2.f32 %v3182_v46  ;;  %v3281_v23 = vadd.f32 %v5418_v12, %v5416_v13  ;;  %v9146_v16 = vsub.f32 %v14291_v31, %v3001_v60  ;;  %v14296_v31 = vmax.f32 %v8725_v40, 0.0  ;;  %v14300_v40 = vld [vmem:[#allocation103_spill] sm:$0xff] }
 0x326   :  { %14287 = vst [vmem:[#allocation56_spill] sm:$0xff] %v9134_v8  ;;  %v5422_v24 = vpop.eup %5421  ;;  %5433 = vpow2.f32 %v3184_v38  ;;  %v3174_v63 = vmul.f32 1.442695, %v9134_v8  ;;  %v3176_v28 = vmul.f32 1.442695, %v9138_v1  ;;  %v9151_v36 = vsub.f32 %v14294_v50, %v3001_v60 }
 0x327   :  { %14289 = vst [vmem:[#allocation58_spill] sm:$0xff] %v9138_v1  ;;  %v5424_v5 = vpop.eup %5423  ;;  %5435 = vlog2.f32 %v14253_v21  ;;  %3282 = vadd.xlane.f32.xlu0 %v3281_v23  ;;  %v3178_v13 = vmul.f32 1.442695, %v9146_v16  ;;  %v3013_v38 = vpop.xlane.xlu1 %3012  ;;  %v14298_v1 = vmax.f32 %v8729_v11, 0.0  ;;  %vm1999_vm12 = vweird.f32 %v9104_v26 }
 0x328   :  { %14292 = vst [vmem:[#allocation57_spill] sm:$0xff] %v9146_v16  ;;  %v5426_v46 = vpop.eup %5425  ;;  %5437 = vpow2.f32 %v3174_v63  ;;  %v3275_v12 = vadd.f32 %v5424_v5, %v5422_v24  ;;  %v3180_v32 = vmul.f32 1.442695, %v9151_v36  ;;  %v9157_v7 = vsub.f32 %v14296_v31, %v3013_v38  ;;  %vm9411_vm14 = vmor %vm1998_vm11, %vm1999_vm12 }
 0x329   :  { %14295 = vst [vmem:[#allocation64_spill] sm:$0xff] %v9151_v36  ;;  %v5428_v42 = vpop.eup %5427  ;;  %5439 = vpow2.f32 %v3176_v28  ;;  %v9161_v45 = vsub.f32 %v14298_v1, %v3013_v38  ;;  %v14301_v31 = vmax.f32 %v8741_v4, 0.0  ;;  %v14303_v1 = vmax.f32 %v8745_v48, 0.0  ;;  %v14307_v48 = vld [vmem:[#allocation47_spill] sm:$0xff] }
 0x32a   :  { %14297 = vst [vmem:[#allocation66_spill] sm:$0xff] %v9157_v7  ;;  %v9163_v60 = vpop.eup %5429  ;;  %5441 = vpow2.f32 %v3178_v13  ;;  %3276 = vadd.xlane.f32.xlu1 %v3275_v12  ;;  %v3278_v23 = vadd.f32 %v5428_v42, %v5426_v46  ;;  %v3194_v5 = vmul.f32 1.442695, %v9157_v7  ;;  %v14305_v4 = vmax.f32 %v8757_v57, 0.0 }
 0x32b   :  { %14299 = vst [vmem:[#allocation65_spill] sm:$0xff] %v9161_v45  ;;  %v5432_v63 = vpop.eup %5431  ;;  %5443 = vpow2.f32 %v3180_v32  ;;  %v3196_v28 = vmul.f32 1.442695, %v9161_v45  ;;  %v3007_v24 = vpop.xlane.xlu2 %3006  ;;  %v14311_v16 = vmax.f32 %v8773_v25, 0.0  ;;  %vm2029_vm9 = vweird.f32 %v9163_v60 }
 0x32c   :  { %v5434_v50 = vpop.eup %5433  ;;  %5445 = vrcp.f32 %v14300_v40  ;;  %v9170_v11 = vsub.f32 %v14301_v31, %v3007_v24  ;;  %v9174_v38 = vsub.f32 %v14303_v1, %v3007_v24  ;;  %3279 = vadd.xlane.f32.xlu2 %v3278_v23  ;;  %v3010_v13 = vpop.xlane.xlu0 %3009  ;;  %v1964_v23 = vmul.f32 %v9091_v54, %v14253_v21  ;;  %v14308_v24 = vld [vmem:[#allocation76_spill] sm:$0xff]  ;;  %vm9384_vm10 = vmor %vm2028_vm8, %vm2029_vm9 }
 0x32d   :  { %v9176_v46 = vpop.eup %5435  ;;  %5447 = vpow2.f32 %v3194_v5  ;;  %v3290_v12 = vadd.f32 %v5434_v50, %v5432_v63  ;;  %v9182_v31 = vsub.f32 %v14305_v4, %v3010_v13  ;;  %v14309_v5 = vmax.f32 %v14308_v24, 0.0 }
 0x32e   :  { %14302 = vst [vmem:[#allocation71_spill] sm:$0xff] %v9170_v11  ;;  %v5438_v42 = vpop.eup %5437  ;;  %5449 = vpow2.f32 %v3196_v28  ;;  %v3186_v32 = vmul.f32 1.442695, %v9170_v11  ;;  %v3188_v45 = vmul.f32 1.442695, %v9174_v38  ;;  %v14313_v11 = vld [vmem:[#allocation88_spill] sm:$0xff]  ;;  %vm2014_vm1 = vweird.f32 %v9140_v43 }
 0x32f   :  { %14304 = vst [vmem:[#allocation70_spill] sm:$0xff] %v9174_v38  ;;  %v5440_v7 = vpop.eup %5439  ;;  %5451 = vrcp.f32 %v14307_v48  ;;  %v9189_v1 = vsub.f32 %v14309_v5, %v3010_v13  ;;  %3291 = vadd.xlane.f32.xlu0 %v3290_v12  ;;  %v3190_v28 = vmul.f32 1.442695, %v9182_v31  ;;  %v3022_v50 = vpop.xlane.xlu1 %3021  ;;  %v14314_v8 = vmax.f32 %v14313_v11, 0.0 }
 0x330   :  { %14306 = vst [vmem:[#allocation157_spill] sm:$0xff] %v9182_v31  ;;  %v5442_v63 = vpop.eup %5441  ;;  %5453 = vpow2.f32 %v3186_v32  ;;  %v3284_v36 = vadd.f32 %v5440_v7, %v5438_v42  ;;  %v9195_v38 = vsub.f32 %v14311_v16, %v3022_v50  ;;  %v1965_v5 = vsub.f32 1.0, %v1964_v23  ;;  %v14316_v16 = vld [vmem:[#allocation55_spill] sm:$0xff] }
 0x331   :  { %14310 = vst [vmem:[#allocation162_spill] sm:$0xff] %v9189_v1  ;;  %v5444_v57 = vpop.eup %5443  ;;  %5455 = vpow2.f32 %v3188_v45  ;;  %v3192_v4 = vmul.f32 1.442695, %v9189_v1  ;;  %v9199_v24 = vsub.f32 %v14314_v8, %v3022_v50  ;;  %v1979_v8 = vmul.f32 %v9127_v62, %v14270_v0 }
 0x332   :  { %14312 = vst [vmem:[#allocation74_spill] sm:$0xff] %v9195_v38  ;;  %v9201_v13 = vpop.eup %5445  ;;  %5457 = vpow2.f32 %v3190_v28  ;;  %3285 = vadd.xlane.f32.xlu1 %v3284_v36  ;;  %v3287_v12 = vadd.f32 %v5444_v57, %v5442_v63  ;;  %v3206_v7 = vmul.f32 1.442695, %v9195_v38  ;;  %v14317_v11 = vmax.f32 %v8789_v33, 0.0 }
 0x333   :  { %14315 = vst [vmem:[#allocation52_spill] sm:$0xff] %v9199_v24  ;;  %v5448_v32 = vpop.eup %5447  ;;  %5459 = vpow2.f32 %v3192_v4  ;;  %v3208_v45 = vmul.f32 1.442695, %v9199_v24  ;;  %v3016_v42 = vpop.xlane.xlu2 %3015  ;;  %v14319_v36 = vmax.f32 %v8793_v34, 0.0  ;;  %v14321_v33 = vmax.f32 %v8805_v53, 0.0  ;;  %v14323_v34 = vld [vmem:[#allocation84_spill] sm:$0xff] }
 0x334   :  { %v5450_v25 = vpop.eup %5449  ;;  %5461 = vrcp.f32 %v14316_v16  ;;  %v9210_v50 = vsub.f32 %v14317_v11, %v3016_v42  ;;  %3288 = vadd.xlane.f32.xlu2 %v3287_v12  ;;  %v3019_v28 = vpop.xlane.xlu0 %3018  ;;  %v1966_v12 = vmul.f32 %v9091_v54, %v1965_v5  ;;  %vm2073_vm3 = vweird.f32 %v14323_v34 }
 0x335   :  { %v9214_v63 = vsub.f32 %v14319_v36, %v3016_v42  ;;  %v9216_v23 = vpop.eup %5451  ;;  %5463 = vpow2.f32 %v3206_v7  ;;  %v3299_v57 = vadd.f32 %v5450_v25, %v5448_v32  ;;  %v9222_v11 = vsub.f32 %v14321_v33, %v3019_v28  ;;  %v14324_v32 = vld [vmem:[#allocation90_spill] sm:$0xff] }
 0x336   :  { %14318 = vst [vmem:[#allocation36_spill] sm:$0xff] %v9210_v50  ;;  %v5454_v4 = vpop.eup %5453  ;;  %5465 = vpow2.f32 %v3208_v45  ;;  %v3198_v24 = vmul.f32 1.442695, %v9210_v50  ;;  %v9228_v7 = vmul.f32 %v9104_v26, %v14262_v51  ;;  %v14325_v42 = vmax.f32 %v14324_v32, 0.0 }
 0x337   :  { %14320 = vst [vmem:[#allocation87_spill] sm:$0xff] %v9214_v63  ;;  %v3200_v38 = vmul.f32 1.442695, %v9214_v63  ;;  %v5456_v1 = vpop.eup %5455  ;;  %5467 = vrcp.f32 %v14323_v34  ;;  %3300 = vadd.xlane.f32.xlu0 %v3299_v57  ;;  %v1980_v36 = vsub.f32 1.0, %v1979_v8  ;;  %v3202_v53 = vmul.f32 1.442695, %v9222_v11  ;;  %v3031_v33 = vpop.xlane.xlu1 %3030 }
 0x338   :  { %14322 = vst [vmem:[#allocation31_spill] sm:$0xff] %v9222_v11  ;;  %v9232_v45 = vsub.f32 %v14325_v42, %v3019_v28  ;;  %v5458_v25 = vpop.eup %5457  ;;  %5469 = vpow2.f32 %v3198_v24  ;;  %v3293_v31 = vadd.f32 %v5456_v1, %v5454_v4  ;;  %v14327_v50 = vmax.f32 %v8820_v56, 0.0  ;;  %v14332_v42 = vld [vmem:[#allocation98_spill] sm:$0xff] }
 0x339   :  { %v5460_v63 = vpop.eup %5459  ;;  %5471 = vpow2.f32 %v3200_v38  ;;  %v14330_v32 = vmax.f32 %v14329_v61, 0.0  ;;  %v1972_v24 = vand.u32 2147483647, %v14253_v21  ;;  %v1974_v8 = vand.u32 2147483648, %v14253_v21 }
 0x33a   :  { %14326 = vst [vmem:[#allocation89_spill] sm:$0xff] %v9232_v45  ;;  %v3204_v5 = vmul.f32 1.442695, %v9232_v45  ;;  %v9238_v18 = vsub.f32 %v14327_v50, %v3031_v33  ;;  %v9244_v57 = vpop.eup %5461  ;;  %5473 = vpow2.f32 %v3202_v53  ;;  %3294 = vadd.xlane.f32.xlu1 %v3293_v31  ;;  %v3296_v1 = vadd.f32 %v5460_v63, %v5458_v25  ;;  %v14335_v31 = vld [vmem:[#allocation68_spill] sm:$0xff] }
 0x33b   :  { %v9242_v28 = vsub.f32 %v14330_v32, %v3031_v33  ;;  %v5464_v38 = vpop.eup %5463  ;;  %v3025_v61 = vpop.xlane.xlu2 %3024  ;;  %v9253_v33 = vadd.f32 %v9091_v54, %v1966_v12  ;;  %v14333_v32 = vmax.f32 %v8835_v49, 0.0  ;;  %v14336_v63 = vmax.f32 %v14335_v31, 0.0  ;;  %14376 = vst [vmem:[#allocation68_spill] sm:$0xff] %v9463_v52 }
 0x33c   :  { %14328 = vst [vmem:[#allocation97_spill] sm:$0xff] %v9238_v18  ;;  %5475 = vpow2.f32 %v3204_v5  ;;  %v3218_v56 = vmul.f32 1.442695, %v9238_v18  ;;  %v5466_v4 = vpop.eup %5465  ;;  %3297 = vadd.xlane.f32.xlu2 %v3296_v1  ;;  %v1995_v18 = vsub.f32 1.0, %v9228_v7  ;;  %v3028_v45 = vpop.xlane.xlu0 %3027  ;;  %v14338_v31 = vmax.f32 %v8851_v59, 0.0 }
 0x33d   :  { %14331 = vst [vmem:[#allocation104_spill] sm:$0xff] %v9242_v28  ;;  %v3220_v50 = vmul.f32 1.442695, %v9242_v28  ;;  %5477 = vrcp.f32 %v14332_v42  ;;  %v9257_v53 = vsub.f32 %v14333_v32, %v3025_v61  ;;  %v9261_v25 = vsub.f32 %v14336_v63, %v3025_v61  ;;  %v9263_v5 = vpop.eup %5467 }
 0x33e   :  { %v1981_v28 = vmul.f32 %v9127_v62, %v1980_v36  ;;  %5479 = vpow2.f32 %v3218_v56  ;;  %v3308_v11 = vadd.f32 %v5466_v4, %v5464_v38  ;;  %v5470_v12 = vpop.eup %5469  ;;  %v9271_v61 = vsub.f32 %v14338_v31, %v3028_v45 }
 0x33f   :  { %14334 = vst [vmem:[#allocation62_spill] sm:$0xff] %v9257_v53  ;;  %5481 = vpow2.f32 %v3220_v50  ;;  %v3210_v49 = vmul.f32 1.442695, %v9257_v53  ;;  %v3212_v32 = vmul.f32 1.442695, %v9261_v25  ;;  %v5472_v1 = vpop.eup %5471  ;;  %v2024_v7 = vmul.f32 %v9163_v60, %v14285_v35 }
 0x340   :  { %14337 = vst [vmem:[#allocation69_spill] sm:$0xff] %v9261_v25  ;;  %v14340_v36 = vmax.f32 %v8855_v27, 0.0  ;;  %3309 = vadd.xlane.f32.xlu0 %v3308_v11  ;;  %v5474_v56 = vpop.eup %5473  ;;  %v3214_v59 = vmul.f32 1.442695, %v9271_v61  ;;  %v3302_v50 = vadd.f32 %v5472_v1, %v5470_v12  ;;  %v9284_v63 = vadd.f32 %v9127_v62, %v1981_v28 }
 0x341   :  { %14339 = vst [vmem:[#allocation28_spill] sm:$0xff] %v9271_v61  ;;  %5483 = vpow2.f32 %v3210_v49  ;;  %v1989_v31 = vand.u32 2147483648, %v14270_v0  ;;  %v1975_v28 = vor.u32 1.1754944e-38, %v1974_v8  ;;  %vm9308_vm6 = vcmp.eq.f32.partialorder %v1972_v24, 8.507059e+37  ;;  %v14348_v8 = vld [vmem:[#allocation112_spill] sm:$0xff] }
 0x342   :  { %v9279_v38 = vsub.f32 %v14340_v36, %v3028_v45  ;;  %v5476_v4 = vpop.eup %5475  ;;  %5485 = vpow2.f32 %v3212_v32  ;;  %3303 = vadd.xlane.f32.xlu1 %v3302_v50  ;;  %v1971_v32 = vsel %vm9289_vm4, %v9091_v54, %v9253_v33  ;;  %v2025_v36 = vsub.f32 1.0, %v2024_v7  ;;  %v9323_v33 = vld [vmem:[#allocation4 + $0x100] sm:$0xff]  ;;  %14382 = vst [vmem:[#allocation112_spill] sm:$0xff] %v9482_v19 }
 0x343   :  { %v9294_v21 = vpop.eup %5477  ;;  %5487 = vpow2.f32 %v3214_v59  ;;  %v3305_v12 = vadd.f32 %v5476_v4, %v5474_v56  ;;  %v3034_v61 = vpop.xlane.xlu2 %3033  ;;  %v1987_v56 = vand.u32 2147483647, %v14270_v0  ;;  %v14349_v59 = vmax.f32 %v8874_v14, 0.0  ;;  %v14353_v7 = vld [vmem:[#allocation114_spill] sm:$0xff] }
 0x344   :  { %14341 = vst [vmem:[#allocation103_spill] sm:$0xff] %v9279_v38  ;;  %v3216_v11 = vmul.f32 1.442695, %v9279_v38  ;;  %v5480_v49 = vpop.eup %5479  ;;  %v1996_v38 = vmul.f32 %v9104_v26, %v1995_v18  ;;  %v14351_v54 = vmax.f32 %v8877_v47, 0.0  ;;  %v1986_v18 = vsel %vm9300_vm5, %v9127_v62, %v9284_v63  ;;  %v3037_v27 = vpop.xlane.xlu0 %3036  ;;  %vm9488_vm5 = vmor %vm2013_vm0, %vm2014_vm1 }
 0x345   :  { %v5482_v25 = vpop.eup %5481  ;;  %v9317_v50 = vsub.f32 %v14349_v59, %v3034_v61  ;;  %3306 = vadd.xlane.f32.xlu2 %v3305_v12  ;;  %v1990_v4 = vor.u32 1.1754944e-38, %v1989_v31  ;;  %v2026_v62 = vmul.f32 %v9163_v60, %v2025_v36  ;;  %v13327_v63 = vunpack.c.h.bf16 %v9323_v33 }
 0x346   :  { %5489 = vpow2.f32 %v3216_v11  ;;  %v9321_v24 = vsub.f32 %v14351_v54, %v3034_v61  ;;  %v3317_v11 = vadd.f32 %v5482_v25, %v5480_v49  ;;  %v14354_v61 = vmax.f32 %v8886_v15, 0.0 }
 0x347   :  { %5491 = vrcp.f32 %v14348_v8  ;;  %14350 = vst [vmem:[#allocation47_spill] sm:$0xff] %v9317_v50  ;;  %v5484_v14 = vpop.eup %5483  ;;  %v3222_v59 = vmul.f32 1.442695, %v9317_v50  ;;  %v14356_v54 = vmax.f32 %v8889_v2, 0.0  ;;  %v13328_v25 = vunpack.c.l.bf16 %v9323_v33 }
 0x348   :  { %14352 = vst [vmem:[#allocation76_spill] sm:$0xff] %v9321_v24  ;;  %5493 = vrcp.f32 %v14353_v7  ;;  %v3224_v47 = vmul.f32 1.442695, %v9321_v24  ;;  %v9334_v12 = vsub.f32 %v14354_v61, %v3037_v27  ;;  %v5486_v41 = vpop.eup %5485  ;;  %3318 = vadd.xlane.f32.xlu0 %v3317_v11  ;;  %vm9346_vm7 = vcmp.eq.f32.partialorder %v1987_v56, 8.507059e+37  ;;  %v14360_v61 = vld [vmem:[#allocation48_spill] sm:$0xff]  ;;  %v9401_v24 = vld [vmem:[#allocation4 + $0x108] sm:$0xff] }
 0x349   :  { %v9338_v53 = vsub.f32 %v14356_v54, %v3037_v27  ;;  %5495 = vlog2.f32 %v14270_v0  ;;  %v5488_v31 = vpop.eup %5487  ;;  %v3311_v49 = vadd.f32 %v5486_v41, %v5484_v14  ;;  %v2034_v0 = vand.u32 2147483648, %v14285_v35  ;;  %14368 = vst [vmem:[#allocation90_spill] sm:$0xff] %v9401_v24 }
 0x34a   :  { %14355 = vst [vmem:[#allocation88_spill] sm:$0xff] %v9334_v12  ;;  %5497 = vpow2.f32 %v3222_v59  ;;  %v3226_v15 = vmul.f32 1.442695, %v9334_v12  ;;  %v2032_v11 = vand.u32 2147483647, %v14285_v35  ;;  %v2009_v14 = vmul.f32 %v9140_v43, %v14277_v22 }
 0x34b   :  { %14357 = vst [vmem:[#allocation55_spill] sm:$0xff] %v9338_v53  ;;  %v3228_v45 = vmul.f32 1.442695, %v9338_v53  ;;  %5499 = vpow2.f32 %v3224_v47  ;;  %3312 = vadd.xlane.f32.xlu1 %v3311_v49  ;;  %v9359_v56 = vmul.f32 0.6931472, %v9176_v46  ;;  %v3487_v47 = vmax.f32 %v13328_v25, %v13327_v63  ;;  %v14362_v49 = vld [vmem:[#allocation121_spill] sm:$0xff] }
 0x34c   :  { %v5490_v2 = vpop.eup %5489  ;;  %5501 = vpow2.f32 %v3226_v15  ;;  %v9370_v54 = vsel %vm9346_vm7, %v1990_v4, %v1986_v18  ;;  %v2027_v46 = vadd.f32 %v9163_v60, %v2026_v62  ;;  %v9377_v15 = vld [vmem:[#allocation4 + $0x118] sm:$0xff]  ;;  %v1997_v1 = vadd.f32 %v9104_v26, %v1996_v38 }
 0x34d   :  { %v9352_v36 = vpop.eup %5491  ;;  %v3314_v59 = vadd.f32 %v5490_v2, %v5488_v31  ;;  %5503 = vpow2.f32 %v3228_v45  ;;  %v9374_v31 = vsel %vm9308_vm6, %v1975_v28, %v1971_v32  ;;  %14361 = vst [vmem:[#allocation84_spill] sm:$0xff] %v9377_v15  ;;  %v14365_v32 = vld [vmem:[#allocation124_spill] sm:$0xff]  ;;  %vm9392_vm13 = vcmp.eq.f32.partialorder %v2032_v11, 8.507059e+37 }
 0x34e   :  { %v9356_v41 = vpop.eup %5493  ;;  %5505 = vrcp.f32 %v14360_v61  ;;  %v2035_v4 = vor.u32 1.1754944e-38, %v2034_v0  ;;  %v2069_v62 = vmul.f32 %v9263_v5, %v14323_v34  ;;  %v2010_v63 = vsub.f32 1.0, %v2009_v14 }
 0x34f   :  { %3315 = vadd.xlane.f32.xlu2 %v3314_v59  ;;  %v5496_v45 = vpop.eup %5495  ;;  %5507 = vrcp.f32 %v14362_v49  ;;  %v2004_v59 = vand.u32 2147483648, %v14262_v51  ;;  %v2031_v11 = vsel %vm9384_vm10, %v9163_v60, %v2027_v46  ;;  %v2002_v14 = vand.u32 2147483647, %v14262_v51  ;;  %v9424_v46 = vld [vmem:[#allocation4 + $0x110] sm:$0xff] }
 0x350   :  { %v5498_v28 = vpop.eup %5497  ;;  %5509 = vrcp.f32 %v14365_v32  ;;  %3488 = vmax.xlane.f32.xlu0 %v3487_v47  ;;  %v9416_v25 = vmul.f32 0.6931472, %v5496_v45  ;;  %v2001_v60 = vsel %vm9411_vm14, %v9104_v26, %v1997_v1  ;;  %14371 = vst [vmem:[#allocation16_spill] sm:$0xff] %v9424_v46  ;;  %v2070_v53 = vsub.f32 1.0, %v2069_v62 }
 0x351   :  { %v5500_v27 = vpop.eup %5499  ;;  %5511 = vlog2.f32 %v14285_v35  ;;  %v2054_v35 = vmul.f32 %v9201_v13, %v14300_v40  ;;  %v13335_v45 = vunpack.c.h.bf16 %v9401_v24  ;;  %v9434_v26 = vsel %vm9392_vm13, %v2035_v4, %v2031_v11  ;;  %v9446_v4 = vld [vmem:[#allocation4 + $0x130] sm:$0xff] }
 0x352   :  { %v5502_v50 = vpop.eup %5501  ;;  %v3320_v47 = vadd.f32 %v5500_v27, %v5498_v28  ;;  %5513 = vlog2.f32 %v14262_v51  ;;  %v13336_v28 = vunpack.c.l.bf16 %v9401_v24  ;;  %v2005_v51 = vor.u32 1.1754944e-38, %v2004_v59  ;;  %14374 = vst [vmem:[#allocation98_spill] sm:$0xff] %v9446_v4  ;;  %v14375_v59 = vld [vmem:[#allocation109_spill] sm:$0xff] }
 0x353   :  { %v5504_v38 = vpop.eup %5503  ;;  %v2011_v1 = vmul.f32 %v9140_v43, %v2010_v63  ;;  %v14372_v0 = vunpack.c.h.bf16 %v9377_v15  ;;  %v14373_v30 = vunpack.c.l.bf16 %v9377_v15  ;;  %vm2003_vm15 = vcmp.eq.f32.partialorder %v2002_v14, 8.507059e+37  ;;  %14404 = vst [vmem:[#allocation109_spill] sm:$0xff] %v9568_v6 }
 0x354   :  { %v9426_v2 = vpop.eup %5505  ;;  %3321 = vadd.xlane.f32.xlu1 %v3320_v47  ;;  %v3323_v12 = vadd.f32 %v5504_v38, %v5502_v50  ;;  %v2017_v50 = vand.u32 2147483647, %v14277_v22  ;;  %5515 = vrcp.f32 %v14375_v59  ;;  %v9449_v63 = vsel %vm2003_vm15, %v2005_v51, %v2001_v60 }
 0x355   :  { %v9430_v27 = vpop.eup %5507  ;;  %v3496_v62 = vmax.f32 %v14373_v30, %v14372_v0  ;;  %v2019_v11 = vand.u32 2147483648, %v14277_v22  ;;  %v2071_v14 = vmul.f32 %v9263_v5, %v2070_v53  ;;  %v3490_v0 = vmax.f32 %v13336_v28, %v13335_v45  ;;  %v14381_v28 = vld [vmem:[#allocation123_spill] sm:$0xff] }
 0x356   :  { %v9441_v47 = vpop.eup %5509  ;;  %v2012_v18 = vadd.f32 %v9140_v43, %v2011_v1  ;;  %5517 = vlog2.f32 %v14277_v22  ;;  %vm9465_vm2 = vcmp.eq.f32.partialorder %v2017_v50, 8.507059e+37  ;;  %vm2074_vm4 = vweird.f32 %v9263_v5 }
 0x357   :  { %3324 = vadd.xlane.f32.xlu2 %v3323_v12  ;;  %v5512_v30 = vpop.eup %5511  ;;  %v2055_v12 = vsub.f32 1.0, %v2054_v35  ;;  %v2039_v35 = vmul.f32 %v9216_v23, %v14307_v48  ;;  %v14379_v1 = vunpack.c.h.bf16 %v9424_v46  ;;  %5519 = vrcp.f32 %v14381_v28  ;;  %vm9507_vm6 = vmor %vm2073_vm3, %vm2074_vm4 }
 0x358   :  { %v5514_v38 = vpop.eup %5513  ;;  %3497 = vmax.xlane.f32.xlu0 %v3496_v62  ;;  %v14380_v62 = vunpack.c.l.bf16 %v9424_v46  ;;  %v9478_v60 = vmul.f32 0.6931472, %v5512_v30  ;;  %v2077_v50 = vand.u32 2147483647, %v14323_v34  ;;  %v2079_v51 = vand.u32 2147483648, %v14323_v34 }
 0x359   :  { %v9498_v44 = vmul.f32 0.6931472, %v5514_v38  ;;  %v2016_v22 = vsel %vm9488_vm5, %v9140_v43, %v2012_v18  ;;  %v2020_v10 = vor.u32 1.1754944e-38, %v2019_v11  ;;  %5521 = vlog2.f32 %v14323_v34  ;;  %v9518_v18 = vld [vmem:[#allocation4 + $0x148] sm:$0xff] }
 0x35a   :  { %v3493_v45 = vmax.f32 %v14380_v62, %v14379_v1  ;;  %v2072_v1 = vadd.f32 %v9263_v5, %v2071_v14  ;;  %v2056_v62 = vmul.f32 %v9201_v13, %v2055_v12  ;;  %v9496_v39 = vpop.eup %5515  ;;  %v14387_v12 = vunpack.c.h.bf16 %v9446_v4  ;;  %14389 = vst [vmem:[#allocation114_spill] sm:$0xff] %v9518_v18 }
 0x35b   :  { %v2040_v38 = vsub.f32 1.0, %v2039_v35  ;;  %vm9520_vm7 = vcmp.eq.f32.partialorder %v2077_v50, 8.507059e+37  ;;  %v2080_v3 = vor.u32 1.1754944e-38, %v2079_v51  ;;  %vm2059_vm8 = vweird.f32 %v9201_v13  ;;  %v14394_v51 = vld [vmem:[#allocation115_spill] sm:$0xff] }
 0x35c   :  { %3491 = vmax.xlane.f32.xlu1 %v3490_v0  ;;  %v14388_v0 = vunpack.c.l.bf16 %v9446_v4  ;;  %v5518_v11 = vpop.eup %5517  ;;  %v2076_v34 = vsel %vm9507_vm6, %v9263_v5, %v2072_v1  ;;  %v2064_v35 = vand.u32 2147483648, %v14300_v40  ;;  %v14393_v50 = vunpack.c.l.bf16 %v9463_v52  ;;  %v9542_v1 = vld [vmem:[#allocation4 + $0x138] sm:$0xff] }
 0x35d   :  { %v9535_v43 = vpop.eup %5519  ;;  %5523 = vlog2.f32 %v14394_v51  ;;  %v2114_v17 = vmul.f32 %v9352_v36, %v14348_v8  ;;  %14395 = vst [vmem:[#allocation48_spill] sm:$0xff] %v9542_v1  ;;  %vm2058_vm9 = vweird.f32 %v14300_v40  ;;  %v14398_v51 = vunpack.c.l.bf16 %v9482_v19 }
 0x35e   :  { %v3505_v30 = vmax.f32 %v14388_v0, %v14387_v12  ;;  %v2062_v12 = vand.u32 2147483647, %v14300_v40  ;;  %v14392_v0 = vunpack.c.h.bf16 %v9463_v52  ;;  %v9556_v14 = vmul.f32 0.6931472, %v5518_v11  ;;  %vm9564_vm10 = vmor %vm2058_vm9, %vm2059_vm8 }
 0x35f   :  { %3494 = vmax.xlane.f32.xlu2 %v3493_v45  ;;  %v2057_v45 = vadd.f32 %v9201_v13, %v2056_v62  ;;  %v14396_v62 = vld [vmem:[#allocation116_spill] sm:$0xff]  ;;  %v9560_v5 = vsel %vm9520_vm7, %v2080_v3, %v2076_v34  ;;  %v13348_v20 = vunpack.c.h.bf16 %v9542_v1  ;;  %vm2043_vm12 = vweird.f32 %v14307_v48 }
 0x360   :  { %v3499_v37 = vmax.f32 %v14393_v50, %v14392_v0  ;;  %3506 = vmax.xlane.f32.xlu0 %v3505_v30  ;;  %5525 = vrcp.f32 %v14396_v62  ;;  %v2041_v0 = vmul.f32 %v9216_v23, %v2040_v38  ;;  %v14397_v50 = vunpack.c.h.bf16 %v9482_v19  ;;  %14400 = vst [vmem:[#allocation121_spill] sm:$0xff] %v9556_v14  ;;  %v14410_v38 = vld [vmem:[#allocation130_spill] sm:$0xff]  ;;  %v9840_v14 = vld [vmem:[#allocation4 + $0x198] sm:$0xff] }
 0x361   :  { %5527 = vrcp.f32 %v14399_v9  ;;  %v9554_v30 = vsel %vm9465_vm2, %v2020_v10, %v2016_v22  ;;  %14401 = vst [vmem:[#allocation124_spill] sm:$0xff] %v9560_v5  ;;  %v2061_v10 = vsel %vm9564_vm10, %v9201_v13, %v2057_v45  ;;  %vm9573_vm11 = vcmp.eq.f32.partialorder %v2062_v12, 8.507059e+37  ;;  %v9588_v45 = vld [vmem:[#allocation4 + $0x160] sm:$0xff] }
 0x362   :  { %v3502_v55 = vmax.f32 %v14398_v51, %v14397_v50  ;;  %v5522_v50 = vpop.eup %5521  ;;  %v2065_v22 = vor.u32 1.1754944e-38, %v2064_v35  ;;  %v2115_v11 = vsub.f32 1.0, %v2114_v17  ;;  %v14407_v34 = vunpack.c.h.bf16 %v9518_v18  ;;  %14409 = vst [vmem:[#allocation123_spill] sm:$0xff] %v9588_v45 }
 0x363   :  { %v14408_v51 = vunpack.c.l.bf16 %v9518_v18  ;;  %v2042_v13 = vadd.f32 %v9216_v23, %v2041_v0  ;;  %vm2044_vm13 = vweird.f32 %v9216_v23  ;;  %v5524_v35 = vpop.eup %5523  ;;  %5529 = vrcp.f32 %v14410_v38  ;;  %14480 = vst [vmem:[#allocation184_spill] sm:$0xff] %v9840_v14 }
 0x364   :  { %3500 = vmax.xlane.f32.xlu1 %v3499_v37  ;;  %v9591_v17 = vmul.f32 0.6931472, %v5522_v50  ;;  %v9595_v3 = vsel %vm9573_vm11, %v2065_v22, %v2061_v10  ;;  %v2084_v0 = vmul.f32 %v9244_v57, %v14316_v16  ;;  %5531 = vlog2.f32 %v14300_v40  ;;  %vm9614_vm14 = vmor %vm2043_vm12, %vm2044_vm13 }
 0x365   :  { %v3514_v58 = vmax.f32 %v14408_v51, %v14407_v34  ;;  %14412 = vst [vmem:[#allocation116_spill] sm:$0xff] %v9595_v3  ;;  %v2049_v51 = vand.u32 2147483648, %v14307_v48  ;;  %v14413_v50 = vunpack.c.l.bf16 %v9542_v1  ;;  %5533 = vlog2.f32 %v14307_v48 }
 0x366   :  { %14411 = vst [vmem:[#allocation115_spill] sm:$0xff] %v9591_v17  ;;  %v9599_v34 = vpop.eup %5525  ;;  %v2116_v40 = vmul.f32 %v9352_v36, %v2115_v11  ;;  %5535 = vlog2.f32 %v14417_v29  ;;  %v2046_v18 = vsel %vm9614_vm14, %v9216_v23, %v2042_v13  ;;  %v14418_v4 = vunpack.c.h.bf16 %v9568_v6  ;;  %v9663_v23 = vld [vmem:[#allocation4 + $0x178] sm:$0xff] }
 0x367   :  { %3503 = vmax.xlane.f32.xlu2 %v3502_v55  ;;  %v2047_v55 = vand.u32 2147483647, %v14307_v48  ;;  %v3508_v37 = vmax.f32 %v14413_v50, %v13348_v20  ;;  %v9608_v12 = vpop.eup %5527  ;;  %v9622_v50 = vld [vmem:[#allocation4 + $0x150] sm:$0xff]  ;;  %v9624_v20 = vmul.f32 0.6931472, %v5524_v35  ;;  %v14419_v48 = vunpack.c.l.bf16 %v9568_v6  ;;  %v9637_v35 = vld [vmem:[#allocation4 + $0x158] sm:$0xff] }
 0x368   :  { %3515 = vmax.xlane.f32.xlu0 %v3514_v58  ;;  %14416 = vst [vmem:[#allocation117_spill] sm:$0xff] %v9622_v50  ;;  %vm2118_vm15 = vweird.f32 %v14348_v8  ;;  %vm2119_vm0 = vweird.f32 %v9352_v36  ;;  %v2122_v58 = vand.u32 2147483647, %v14348_v8  ;;  %v2085_v53 = vsub.f32 1.0, %v2084_v0 }
 0x369   :  { %v3511_v11 = vmax.f32 %v14419_v48, %v14418_v4  ;;  %14420 = vst [vmem:[#allocation130_spill] sm:$0xff] %v9637_v35  ;;  %v2050_v22 = vor.u32 1.1754944e-38, %v2049_v51  ;;  %v2124_v29 = vand.u32 2147483648, %v14348_v8  ;;  %v9642_v10 = vpop.eup %5529  ;;  %v14421_v4 = vld [vmem:[#allocation125_spill] sm:$0xff]  ;;  %vm2048_vm1 = vcmp.eq.f32.partialorder %v2047_v55, 8.507059e+37  ;;  %vm9656_vm2 = vmor %vm2118_vm15, %vm2119_vm0 }
 0x36a   :  { %5537 = vrcp.f32 %v14421_v4  ;;  %v2117_v48 = vadd.f32 %v9352_v36, %v2116_v40  ;;  %v14422_v6 = vunpack.c.h.bf16 %v9588_v45  ;;  %v14423_v0 = vunpack.c.l.bf16 %v9588_v45  ;;  %v5532_v51 = vpop.eup %5531  ;;  %14427 = vst [vmem:[#allocation125_spill] sm:$0xff] %v9663_v23 }
 0x36b   :  { %v9650_v19 = vsel %vm2048_vm1, %v2050_v22, %v2046_v18  ;;  %5539 = vlog2.f32 %v14348_v8  ;;  %v14428_v18 = vld [vmem:[#allocation158_spill] sm:$0xff]  ;;  %vm9666_vm3 = vcmp.eq.f32.partialorder %v2122_v58, 8.507059e+37  ;;  %v2099_v13 = vmul.f32 %v9294_v21, %v14332_v42 }
 0x36c   :  { %3509 = vmax.xlane.f32.xlu1 %v3508_v37  ;;  %v3523_v1 = vmax.f32 %v14423_v0, %v14422_v6  ;;  %14424 = vst [vmem:[#allocation127_spill] sm:$0xff] %v9650_v19  ;;  %v5534_v6 = vpop.eup %5533  ;;  %5541 = vlog2.f32 %v14428_v18  ;;  %v2086_v0 = vmul.f32 %v9244_v57, %v2085_v53  ;;  %v2092_v55 = vand.u32 2147483647, %v14316_v16  ;;  %v9686_v19 = vld [vmem:[#allocation4 + $0x168] sm:$0xff] }
 0x36d   :  { %v5536_v8 = vpop.eup %5535  ;;  %v2094_v40 = vand.u32 2147483648, %v14316_v16  ;;  %v14431_v45 = vunpack.c.h.bf16 %v9622_v50  ;;  %v14432_v52 = vunpack.c.l.bf16 %v9622_v50  ;;  %v2121_v58 = vsel %vm9656_vm2, %v9352_v36, %v2117_v48  ;;  %14433 = vst [vmem:[#allocation158_spill] sm:$0xff] %v9686_v19 }
 0x36e   :  { %v2159_v53 = vmul.f32 %v9441_v47, %v14365_v32  ;;  %v9688_v3 = vmul.f32 0.6931472, %v5532_v51  ;;  %v9690_v17 = vmul.f32 0.6931472, %v5534_v6  ;;  %vm2088_vm4 = vweird.f32 %v14316_v16  ;;  %v9703_v51 = vld [vmem:[#allocation4 + $0x170] sm:$0xff] }
 0x36f   :  { %3512 = vmax.xlane.f32.xlu2 %v3511_v11  ;;  %v2125_v11 = vor.u32 1.1754944e-38, %v2124_v29  ;;  %v3517_v18 = vmax.f32 %v14432_v52, %v14431_v45  ;;  %v14436_v52 = vunpack.c.h.bf16 %v9637_v35  ;;  %v14437_v36 = vunpack.c.l.bf16 %v9637_v35  ;;  %14439 = vst [vmem:[#allocation173_spill] sm:$0xff] %v9703_v51  ;;  %v14440_v29 = vld [vmem:[#allocation154_spill] sm:$0xff]  ;;  %v9710_v35 = vpop.xlane.xlu0 %3237 }
 0x370   :  { %3524 = vmax.xlane.f32.xlu0 %v3523_v1  ;;  %14434 = vst [vmem:[#allocation170_spill] sm:$0xff] %v9688_v3  ;;  %v9697_v48 = vpop.eup %5537  ;;  %v9699_v1 = vmul.f32 0.6931472, %v5536_v8  ;;  %v2087_v37 = vadd.f32 %v9244_v57, %v2086_v0  ;;  %vm2089_vm5 = vweird.f32 %v9244_v57  ;;  %v2100_v46 = vsub.f32 1.0, %v2099_v13  ;;  %v9734_v8 = vld [vmem:[#allocation4 + $0x190] sm:$0xff] }
 0x371   :  { %14435 = vst [vmem:[#allocation171_spill] sm:$0xff] %v9690_v17  ;;  %v3520_v45 = vmax.f32 %v14437_v36, %v14436_v52  ;;  %v5540_v6 = vpop.eup %5539  ;;  %5543 = vrcp.f32 %v14440_v29  ;;  %v9708_v50 = vsel %vm9666_vm3, %v2125_v11, %v2121_v58  ;;  %vm9714_vm6 = vcmp.eq.f32.partialorder %v2092_v55, 8.507059e+37  ;;  %v14447_v58 = vld [vmem:[#allocation139_spill] sm:$0xff]  ;;  %vm9727_vm7 = vmor %vm2088_vm4, %vm2089_vm5 }
 0x372   :  { %14438 = vst [vmem:[#allocation172_spill] sm:$0xff] %v9699_v1  ;;  %v5542_v0 = vpop.eup %5541  ;;  %v2095_v13 = vor.u32 1.1754944e-38, %v2094_v40  ;;  %v2160_v17 = vsub.f32 1.0, %v2159_v53  ;;  %v14445_v3 = vunpack.c.h.bf16 %v9663_v23  ;;  %v14446_v22 = vunpack.c.l.bf16 %v9663_v23  ;;  %v9760_v23 = vld [vmem:[#allocation4 + $0x180] sm:$0xff] }
 0x373   :  { %14441 = vst [vmem:[#allocation154_spill] sm:$0xff] %v9708_v50  ;;  %5545 = vlog2.f32 %v14447_v58  ;;  %v2107_v55 = vand.u32 2147483647, %v14332_v42  ;;  %v2144_v58 = vmul.f32 %v9356_v41, %v14353_v7  ;;  %vm2103_vm8 = vweird.f32 %v14332_v42  ;;  %v9808_v50 = vld [vmem:[#allocation4 + $0x1a8] sm:$0xff] }
 0x374   :  { %14442 = vst [vmem:[#allocation174_spill] sm:$0xff] %v9710_v35  ;;  %3518 = vmax.xlane.f32.xlu1 %v3517_v18  ;;  %v3532_v11 = vmax.f32 %v14446_v22, %v14445_v3  ;;  %v2091_v3 = vsel %vm9727_vm7, %v9244_v57, %v2087_v37  ;;  %5547 = vlog2.f32 %v14316_v16  ;;  %v2101_v22 = vmul.f32 %v9294_v21, %v2100_v46  ;;  %v14457_v35 = vld [vmem:[#allocation163_spill] sm:$0xff] }
 0x375   :  { %14450 = vst [vmem:[#allocation139_spill] sm:$0xff] %v9734_v8  ;;  %v9743_v52 = vpop.xlane.xlu1 %3231  ;;  %vm2104_vm9 = vweird.f32 %v9294_v21  ;;  %v14453_v40 = vunpack.c.h.bf16 %v9686_v19  ;;  %v14454_v18 = vunpack.c.l.bf16 %v9686_v19  ;;  %v9753_v37 = vmul.f32 0.6931472, %v5542_v0 }
 0x376   :  { %14451 = vst [vmem:[#allocation175_spill] sm:$0xff] %v9743_v52  ;;  %v2161_v16 = vmul.f32 %v9441_v47, %v2160_v17  ;;  %5549 = vrcp.f32 %v14457_v35  ;;  %vm9769_vm10 = vcmp.eq.f32.partialorder %v2107_v55, 8.507059e+37  ;;  %v14461_v17 = vunpack.c.h.bf16 %v9703_v51  ;;  %vm9801_vm13 = vmor %vm2103_vm8, %vm2104_vm9 }
 0x377   :  { %3521 = vmax.xlane.f32.xlu2 %v3520_v45  ;;  %v9745_v45 = vmul.f32 0.6931472, %v5540_v6  ;;  %v3526_v57 = vmax.f32 %v14454_v18, %v14453_v40  ;;  %v9756_v46 = vpop.xlane.xlu2 %3234  ;;  %14456 = vst [vmem:[#allocation178_spill] sm:$0xff] %v9760_v23  ;;  %v9762_v52 = vpop.eup %5543  ;;  %v9767_v40 = vsel %vm9714_vm6, %v2095_v13, %v2091_v3  ;;  %v2102_v53 = vadd.f32 %v9294_v21, %v2101_v22 }
 0x378   :  { %14455 = vst [vmem:[#allocation177_spill] sm:$0xff] %v9756_v46  ;;  %3533 = vmax.xlane.f32.xlu0 %v3532_v11  ;;  %v14462_v11 = vunpack.c.l.bf16 %v9703_v51  ;;  %v2109_v6 = vand.u32 2147483648, %v14332_v42  ;;  %5551 = vlog2.f32 %v14332_v42  ;;  %v2145_v19 = vsub.f32 1.0, %v2144_v58  ;;  %v9780_v46 = vld [vmem:[#allocation4 + $0x188] sm:$0xff] }
 0x379   :  { %14452 = vst [vmem:[#allocation176_spill] sm:$0xff] %v9745_v45  ;;  %v5546_v36 = vpop.eup %5545  ;;  %vm2163_vm11 = vweird.f32 %v14365_v32  ;;  %vm2164_vm12 = vweird.f32 %v9441_v47  ;;  %v9784_v13 = vpop.xlane.xlu0 %3246  ;;  %v2129_v58 = vmul.f32 %v9426_v2, %v14360_v61  ;;  %v14465_v51 = vunpack.c.h.bf16 %v9734_v8 }
 0x37a   :  { %14458 = vst [vmem:[#allocation163_spill] sm:$0xff] %v9767_v40  ;;  %v3529_v18 = vmax.f32 %v14462_v11, %v14461_v17  ;;  %v5548_v22 = vpop.eup %5547  ;;  %v2162_v17 = vadd.f32 %v9441_v47, %v2161_v16  ;;  %v2169_v11 = vand.u32 2147483648, %v14365_v32  ;;  %v14466_v40 = vunpack.c.l.bf16 %v9734_v8  ;;  %vm9819_vm14 = vmor %vm2163_vm11, %vm2164_vm12 }
 0x37b   :  { %14463 = vst [vmem:[#allocation179_spill] sm:$0xff] %v9780_v46  ;;  %v2167_v16 = vand.u32 2147483647, %v14365_v32  ;;  %v2110_v42 = vor.u32 1.1754944e-38, %v2109_v6  ;;  %vm2148_vm15 = vweird.f32 %v14353_v7  ;;  %v14478_v6 = vunpack.c.l.bf16 %v9760_v23 }
 0x37c   :  { %3527 = vmax.xlane.f32.xlu1 %v3526_v57  ;;  %14464 = vst [vmem:[#allocation180_spill] sm:$0xff] %v9784_v13  ;;  %v3541_v45 = vmax.f32 %v14466_v40, %v14465_v51  ;;  %v14467_v57 = vld [vmem:[#allocation142_spill] sm:$0xff]  ;;  %v9810_v51 = vmul.f32 0.6931472, %v5546_v36  ;;  %v2106_v40 = vsel %vm9801_vm13, %v9294_v21, %v2102_v53  ;;  %v9826_v3 = vpop.eup %5549  ;;  %v14475_v36 = vld [vmem:[#allocation164_spill] sm:$0xff]  ;;  %v2146_v21 = vmul.f32 %v9356_v41, %v2145_v19 }
 0x37d   :  { %5553 = vlog2.f32 %v14467_v57  ;;  %14470 = vst [vmem:[#allocation142_spill] sm:$0xff] %v9808_v50  ;;  %v9829_v13 = vmul.f32 0.6931472, %v5548_v22  ;;  %v14477_v53 = vunpack.c.h.bf16 %v9760_v23  ;;  %v2170_v24 = vor.u32 1.1754944e-38, %v2169_v11 }
 0x37e   :  { %14471 = vst [vmem:[#allocation181_spill] sm:$0xff] %v9810_v51  ;;  %5555 = vrcp.f32 %v14475_v36  ;;  %v5552_v8 = vpop.eup %5551  ;;  %v2130_v51 = vsub.f32 1.0, %v2129_v58  ;;  %v13383_v5 = vunpack.c.h.bf16 %v9808_v50  ;;  %v2166_v19 = vsel %vm9819_vm14, %v9441_v47, %v2162_v17  ;;  %v9862_v17 = vld [vmem:[#allocation4 + $0x1a0] sm:$0xff] }
 0x37f   :  { %3530 = vmax.xlane.f32.xlu2 %v3529_v18  ;;  %v9824_v18 = vpop.xlane.xlu1 %3240  ;;  %14476 = vst [vmem:[#allocation164_spill] sm:$0xff] %v9829_v13  ;;  %v3535_v55 = vmax.f32 %v14478_v6, %v14477_v53  ;;  %v9836_v15 = vpop.xlane.xlu2 %3243  ;;  %vm9845_vm0 = vcmp.eq.f32.partialorder %v2167_v16, 8.507059e+37  ;;  %5557 = vlog2.f32 %v14365_v32  ;;  %v14483_v11 = vunpack.c.h.bf16 %v9780_v46 }
 0x380   :  { %14474 = vst [vmem:[#allocation182_spill] sm:$0xff] %v9824_v18  ;;  %3542 = vmax.xlane.f32.xlu0 %v3541_v45  ;;  %v13384_v18 = vunpack.c.l.bf16 %v9808_v50  ;;  %v14484_v45 = vunpack.c.l.bf16 %v9780_v46  ;;  %v9856_v53 = vsel %vm9769_vm10, %v2110_v42, %v2106_v40  ;;  %vm2149_vm1 = vweird.f32 %v9356_v41  ;;  %v14490_v46 = vld [vmem:[#allocation144_spill] sm:$0xff] }
 0x381   :  { %14479 = vst [vmem:[#allocation183_spill] sm:$0xff] %v9836_v15  ;;  %5559 = vlog2.f32 %v14353_v7  ;;  %v2204_v47 = vmul.f32 %v9535_v43, %v14381_v28  ;;  %v2147_v32 = vadd.f32 %v9356_v41, %v2146_v21  ;;  %v2154_v57 = vand.u32 2147483648, %v14353_v7  ;;  %vm9895_vm2 = vmor %vm2148_vm15, %vm2149_vm1 }
 0x382   :  { %v3538_v58 = vmax.f32 %v14484_v45, %v14483_v11  ;;  %14485 = vst [vmem:[#allocation185_spill] sm:$0xff] %v9856_v53  ;;  %v9866_v6 = vpop.xlane.xlu0 %3255  ;;  %v13389_v40 = vunpack.c.h.bf16 %v9840_v14  ;;  %v9870_v42 = vmul.f32 0.6931472, %v5552_v8  ;;  %v9874_v11 = vsel %vm9845_vm0, %v2170_v24, %v2166_v19  ;;  %v9887_v24 = vld [vmem:[#allocation4 + $0x1c0] sm:$0xff]  ;;  %v14543_v53 = vld [vmem:[#allocation129_spill] sm:$0xff] }
 0x383   :  { %14486 = vst [vmem:[#allocation186_spill] sm:$0xff] %v9862_v17  ;;  %v5554_v16 = vpop.eup %5553  ;;  %v2131_v45 = vmul.f32 %v9426_v2, %v2130_v51  ;;  %v3550_v21 = vmax.f32 %v13384_v18, %v13383_v5  ;;  %5561 = vlog2.f32 %v14490_v46  ;;  %v2152_v0 = vand.u32 2147483647, %v14353_v7  ;;  %v14496_v18 = vld [vmem:[#allocation169_spill] sm:$0xff]  ;;  %v9917_v51 = vld [vmem:[#allocation4 + $0x1b0] sm:$0xff] }
 0x384   :  { %3536 = vmax.xlane.f32.xlu1 %v3535_v55  ;;  %14487 = vst [vmem:[#allocation187_spill] sm:$0xff] %v9866_v6  ;;  %v9881_v55 = vpop.eup %5555  ;;  %v9889_v19 = vmul.f32 0.6931472, %v5554_v16  ;;  %vm2133_vm3 = vweird.f32 %v14360_v61  ;;  %vm2134_vm4 = vweird.f32 %v9426_v2  ;;  %v2205_v46 = vsub.f32 1.0, %v2204_v47  ;;  %v9932_v6 = vld [vmem:[#allocation4 + $0x1b8] sm:$0xff] }
 0x385   :  { %14488 = vst [vmem:[#allocation188_spill] sm:$0xff] %v9870_v42  ;;  %v5558_v5 = vpop.eup %5557  ;;  %5563 = vrcp.f32 %v14496_v18  ;;  %v2151_v16 = vsel %vm9895_vm2, %v9356_v41, %v2147_v32  ;;  %v2155_v8 = vor.u32 1.1754944e-38, %v2154_v57  ;;  %v14497_v7 = vunpack.c.l.bf16 %v9840_v14  ;;  %vm9940_vm6 = vmor %vm2133_vm3, %vm2134_vm4  ;;  %v14532_v42 = vld [vmem:[#allocation153_spill] sm:$0xff] }
 0x386   :  { %14489 = vst [vmem:[#allocation189_spill] sm:$0xff] %v9874_v11  ;;  %v2132_v23 = vadd.f32 %v9426_v2, %v2131_v45  ;;  %5565 = vlog2.f32 %v14360_v61  ;;  %vm2153_vm5 = vcmp.eq.f32.partialorder %v2152_v0, 8.507059e+37  ;;  %v2137_v41 = vand.u32 2147483647, %v14360_v61 }
 0x387   :  { %3539 = vmax.xlane.f32.xlu2 %v3538_v58  ;;  %14491 = vst [vmem:[#allocation144_spill] sm:$0xff] %v9887_v24  ;;  %v9901_v58 = vpop.xlane.xlu1 %3249  ;;  %v3544_v22 = vmax.f32 %v14497_v7, %v13389_v40  ;;  %v5560_v50 = vpop.eup %5559  ;;  %v2139_v32 = vand.u32 2147483648, %v14360_v61  ;;  %v14500_v57 = vunpack.c.h.bf16 %v9862_v17  ;;  %v14501_v45 = vunpack.c.l.bf16 %v9862_v17 }
 0x388   :  { %14492 = vst [vmem:[#allocation190_spill] sm:$0xff] %v9889_v19  ;;  %v9913_v47 = vpop.xlane.xlu2 %3252  ;;  %3551 = vmax.xlane.f32.xlu0 %v3550_v21  ;;  %v9925_v40 = vmul.f32 0.6931472, %v5558_v5  ;;  %v9927_v14 = vsel %vm2153_vm5, %v2155_v8, %v2151_v16  ;;  %v2206_v21 = vmul.f32 %v9535_v43, %v2205_v46  ;;  %vm2208_vm7 = vweird.f32 %v14381_v28  ;;  %v14538_v19 = vld [vmem:[#allocation128_spill] sm:$0xff] }
 0x389   :  { %14495 = vst [vmem:[#allocation191_spill] sm:$0xff] %v9901_v58  ;;  %v3547_v7 = vmax.f32 %v14501_v45, %v14500_v57  ;;  %v2174_v58 = vmul.f32 %v9430_v27, %v14362_v49  ;;  %v5562_v0 = vpop.eup %5561  ;;  %vm2209_vm8 = vweird.f32 %v9535_v43  ;;  %v2189_v61 = vmul.f32 %v9496_v39, %v14375_v59 }
 0x38a   :  { %14498 = vst [vmem:[#allocation169_spill] sm:$0xff] %v9913_v47  ;;  %v9934_v47 = vmul.f32 0.6931472, %v5560_v50  ;;  %v9945_v5 = vpop.xlane.xlu0 %3264  ;;  %v2136_v50 = vsel %vm9940_vm6, %v9426_v2, %v2132_v23  ;;  %v14509_v16 = vunpack.c.h.bf16 %v9887_v24  ;;  %v14510_v45 = vunpack.c.l.bf16 %v9887_v24  ;;  %v9963_v2 = vld [vmem:[#allocation4 + $0x1d8] sm:$0xff]  ;;  %vm9981_vm10 = vmor %vm2208_vm7, %vm2209_vm8 }
 0x38b   :  { %14499 = vst [vmem:[#allocation192_spill] sm:$0xff] %v9917_v51  ;;  %v9959_v17 = vpop.eup %5563  ;;  %vm2138_vm9 = vcmp.eq.f32.partialorder %v2137_v41, 8.507059e+37  ;;  %v2140_v8 = vor.u32 1.1754944e-38, %v2139_v32  ;;  %v2212_v15 = vand.u32 2147483647, %v14381_v28  ;;  %v2214_v24 = vand.u32 2147483648, %v14381_v28 }
 0x38c   :  { %14502 = vst [vmem:[#allocation193_spill] sm:$0xff] %v9925_v40  ;;  %3545 = vmax.xlane.f32.xlu1 %v3544_v22  ;;  %v3559_v22 = vmax.f32 %v14510_v45, %v14509_v16  ;;  %v5566_v23 = vpop.eup %5565  ;;  %v2175_v16 = vsub.f32 1.0, %v2174_v58  ;;  %v9972_v41 = vmul.f32 0.6931472, %v5562_v0  ;;  %v14514_v32 = vld [vmem:[#allocation155_spill] sm:$0xff]  ;;  %v14518_v46 = vunpack.c.h.bf16 %v9917_v51 }
 0x38d   :  { %14503 = vst [vmem:[#allocation194_spill] sm:$0xff] %v9927_v14  ;;  %5567 = vrcp.f32 %v14514_v32  ;;  %v14519_v58 = vunpack.c.l.bf16 %v9917_v51  ;;  %v2249_v0 = vmul.f32 %v9642_v10, %v14410_v38  ;;  %v9997_v40 = vmul.f32 0.6931472, %v5566_v23  ;;  %v10015_v51 = vld [vmem:[#allocation4 + $0x1d0] sm:$0xff] }
 0x38e   :  { %14504 = vst [vmem:[#allocation195_spill] sm:$0xff] %v9932_v6  ;;  %5569 = vlog2.f32 %v14381_v28  ;;  %vm2178_vm11 = vweird.f32 %v14362_v49  ;;  %vm10009_vm12 = vcmp.eq.f32.partialorder %v2212_v15, 8.507059e+37  ;;  %v2215_v23 = vor.u32 1.1754944e-38, %v2214_v24 }
 0x38f   :  { %14505 = vst [vmem:[#allocation196_spill] sm:$0xff] %v9934_v47  ;;  %3548 = vmax.xlane.f32.xlu2 %v3547_v7  ;;  %v9970_v45 = vpop.xlane.xlu1 %3258  ;;  %v9975_v7 = vsel %vm2138_vm9, %v2140_v8, %v2136_v50  ;;  %v3553_v57 = vmax.f32 %v14519_v58, %v14518_v46  ;;  %v14523_v46 = vunpack.c.h.bf16 %v9932_v6  ;;  %v2176_v50 = vmul.f32 %v9430_v27, %v2175_v16 }
 0x390   :  { %14508 = vst [vmem:[#allocation197_spill] sm:$0xff] %v9945_v5  ;;  %v9966_v5 = vadd.f32 %v9535_v43, %v2206_v21  ;;  %v9991_v47 = vpop.xlane.xlu2 %3261  ;;  %3560 = vmax.xlane.f32.xlu0 %v3559_v22  ;;  %v2184_v28 = vand.u32 2147483648, %v14362_v49  ;;  %vm2179_vm13 = vweird.f32 %v9430_v27  ;;  %v2182_v22 = vand.u32 2147483647, %v14362_v49 }
 0x391   :  { %14511 = vst [vmem:[#allocation198_spill] sm:$0xff] %v9963_v2  ;;  %v2250_v16 = vsub.f32 1.0, %v2249_v0  ;;  %vm2193_vm14 = vweird.f32 %v14375_v59  ;;  %vm2194_vm15 = vweird.f32 %v9496_v39  ;;  %vm10063_vm0 = vmor %vm2178_vm11, %vm2179_vm13  ;;  %vm2253_vm1 = vweird.f32 %v14410_v38 }
 0x392   :  { %14512 = vst [vmem:[#allocation199_spill] sm:$0xff] %v9970_v45  ;;  %v2190_v45 = vsub.f32 1.0, %v2189_v61  ;;  %v14524_v61 = vunpack.c.l.bf16 %v9932_v6  ;;  %v14530_v6 = vunpack.c.h.bf16 %v9963_v2  ;;  %v2185_v0 = vor.u32 1.1754944e-38, %v2184_v28  ;;  %vm10083_vm3 = vmor %vm2193_vm14, %vm2194_vm15 }
 0x393   :  { %14513 = vst [vmem:[#allocation200_spill] sm:$0xff] %v9972_v41  ;;  %v10029_v11 = vpop.eup %5567  ;;  %v2251_v28 = vmul.f32 %v9642_v10, %v2250_v16  ;;  %vm2254_vm2 = vweird.f32 %v9642_v10  ;;  %vm2183_vm4 = vcmp.eq.f32.partialorder %v2182_v22, 8.507059e+37  ;;  %vm2239_vm8 = vweird.f32 %v9599_v34  ;;  %v14564_v22 = vld [vmem:[#allocation147_spill] sm:$0xff] }
 0x394   :  { %14515 = vst [vmem:[#allocation155_spill] sm:$0xff] %v9975_v7  ;;  %v9995_v7 = vld [vmem:[#allocation4 + $0x1c8] sm:$0xff]  ;;  %v3556_v58 = vmax.f32 %v14524_v61, %v14523_v46  ;;  %3554 = vmax.xlane.f32.xlu1 %v3553_v57  ;;  %v10019_v46 = vpop.xlane.xlu0 %3273  ;;  %v2191_v24 = vmul.f32 %v9496_v39, %v2190_v45  ;;  %v2234_v57 = vmul.f32 %v9599_v34, %v14396_v62  ;;  %vm10129_vm6 = vmor %vm2253_vm1, %vm2254_vm2  ;;  %vm2238_vm9 = vweird.f32 %v14396_v62 }
 0x395   :  { %14520 = vst [vmem:[#allocation201_spill] sm:$0xff] %v9991_v47  ;;  %v14528_v47 = vld [vmem:[#allocation37_spill] sm:$0xff]  ;;  %v2177_v45 = vadd.f32 %v9430_v27, %v2176_v50  ;;  %v14536_v61 = vunpack.c.l.bf16 %v9995_v7  ;;  %vm2223_vm13 = vweird.f32 %v14399_v9  ;;  %vm2224_vm14 = vweird.f32 %v9608_v12 }
 0x396   :  { %14521 = vst [vmem:[#allocation202_spill] sm:$0xff] %v9995_v7  ;;  %5571 = vrcp.f32 %v14528_v47  ;;  %v2192_v50 = vadd.f32 %v9496_v39, %v2191_v24  ;;  %v2199_v24 = vand.u32 2147483648, %v14375_v59  ;;  %v2235_v16 = vsub.f32 1.0, %v2234_v57  ;;  %vm10229_vm2 = vmor %vm2223_vm13, %vm2224_vm14 }
 0x397   :  { %14522 = vst [vmem:[#allocation203_spill] sm:$0xff] %v9997_v40  ;;  %v14531_v40 = vunpack.c.l.bf16 %v9963_v2  ;;  %5573 = vlog2.f32 %v14532_v42  ;;  %3557 = vmax.xlane.f32.xlu2 %v3556_v58  ;;  %v2197_v42 = vand.u32 2147483647, %v14375_v59  ;;  %v14535_v58 = vunpack.c.h.bf16 %v9995_v7 }
 0x398   :  { %14527 = vst [vmem:[#allocation204_spill] sm:$0xff] %v10015_v51  ;;  %5575 = vlog2.f32 %v14362_v49  ;;  %v10052_v2 = vpop.xlane.xlu2 %3270  ;;  %vm2298_vm15 = vweird.f32 %v14457_v35  ;;  %vm2329_vm13 = vweird.f32 %v9881_v55  ;;  %vm2343_vm14 = vweird.f32 %v14514_v32 }
 0x399   :  { %14529 = vst [vmem:[#allocation37_spill] sm:$0xff] %v10019_v46  ;;  %v3568_v14 = vmax.f32 %v14531_v40, %v14530_v6  ;;  %v10036_v46 = vld [vmem:[#allocation4 + $0x1e0] sm:$0xff]  ;;  %v10041_v6 = vpop.xlane.xlu1 %3267  ;;  %v5570_v40 = vpop.eup %5569  ;;  %5577 = vlog2.f32 %v14375_v59  ;;  %v3562_v15 = vmax.f32 %v14536_v61, %v14535_v58  ;;  %v14542_v58 = vunpack.c.l.bf16 %v10015_v51 }
 0x39a   :  { %14533 = vst [vmem:[#allocation153_spill] sm:$0xff] %v10036_v46  ;;  %5579 = vlog2.f32 %v14538_v19  ;;  %v2181_v19 = vsel %vm10063_vm0, %v9430_v27, %v2177_v45  ;;  %v2257_v61 = vand.u32 2147483647, %v14410_v38  ;;  %v2259_v27 = vand.u32 2147483648, %v14410_v38 }
 0x39b   :  { %14534 = vst [vmem:[#allocation205_spill] sm:$0xff] %v10041_v6  ;;  %3569 = vmax.xlane.f32.xlu0 %v3568_v14  ;;  %v14541_v14 = vunpack.c.h.bf16 %v10015_v51  ;;  %5581 = vlog2.f32 %v14410_v38  ;;  %v2294_v45 = vmul.f32 %v9826_v3, %v14457_v35  ;;  %v2252_v59 = vadd.f32 %v9642_v10, %v2251_v28 }
 0x39c   :  { %14537 = vst [vmem:[#allocation206_spill] sm:$0xff] %v10052_v2  ;;  %v10056_v13 = vpop.eup %5571  ;;  %5583 = vlog2.f32 %v14543_v53  ;;  %3563 = vmax.xlane.f32.xlu1 %v3562_v15  ;;  %v2196_v53 = vsel %vm10083_vm3, %v9496_v39, %v2192_v50  ;;  %v2219_v51 = vmul.f32 %v9608_v12, %v14399_v9  ;;  %v14547_v7 = vunpack.c.h.bf16 %v10036_v46 }
 0x39d   :  { %v3565_v6 = vmax.f32 %v14542_v58, %v14541_v14  ;;  %v5574_v49 = vpop.eup %5573  ;;  %v10091_v14 = vpop.xlane.xlu0 %3282  ;;  %v14548_v2 = vunpack.c.l.bf16 %v10036_v46  ;;  %v14549_v15 = vsel %vm9981_vm10, %v9535_v43, %v9966_v5  ;;  %v2200_v39 = vor.u32 1.1754944e-38, %v2199_v24  ;;  %vm10166_vm10 = vmor %vm2238_vm9, %vm2239_vm8 }
 0x39e   :  { %14546 = vst [vmem:[#allocation128_spill] sm:$0xff] %v10091_v14  ;;  %v5576_v58 = vpop.eup %5575  ;;  %v10110_v57 = vsel %vm10009_vm12, %v2215_v23, %v14549_v15  ;;  %v2236_v50 = vmul.f32 %v9599_v34, %v2235_v16  ;;  %v10113_v28 = vmul.f32 0.6931472, %v5574_v49  ;;  %v10115_v14 = vmul.f32 0.6931472, %v5570_v40 }
 0x39f   :  { %v3571_v1 = vmax.f32 %v14548_v2, %v14547_v7  ;;  %v5578_v41 = vpop.eup %5577  ;;  %3566 = vmax.xlane.f32.xlu2 %v3565_v6  ;;  %v10117_v2 = vsel %vm2183_vm4, %v2185_v0, %v2181_v19  ;;  %vm2198_vm5 = vcmp.eq.f32.partialorder %v2197_v42, 8.507059e+37  ;;  %v10121_v43 = vmul.f32 0.6931472, %v5576_v58 }
 0x3a0   :  { %v5580_v21 = vpop.eup %5579  ;;  %v10123_v5 = vsel %vm2198_vm5, %v2200_v39, %v2196_v53  ;;  %vm10133_vm7 = vcmp.eq.f32.partialorder %v2257_v61, 8.507059e+37  ;;  %v2295_v23 = vsub.f32 1.0, %v2294_v45  ;;  %v2256_v6 = vsel %vm10129_vm6, %v9642_v10, %v2252_v59  ;;  %v10142_v38 = vpop.xlane.xlu2 %3279  ;;  %v14556_v61 = vld [vmem:[#allocation141_spill] sm:$0xff]  ;;  %v14559_v59 = vld [vmem:[#allocation135_spill] sm:$0xff] }
 0x3a1   :  { %v10119_v7 = vpop.xlane.xlu1 %3276  ;;  %v5582_v0 = vpop.eup %5581  ;;  %v2260_v40 = vor.u32 1.1754944e-38, %v2259_v27  ;;  %v2220_v42 = vsub.f32 1.0, %v2219_v51  ;;  %v2279_v24 = vmul.f32 %v9697_v48, %v14421_v4  ;;  %14555 = vst [vmem:[#allocation207_spill] sm:$0xff] %v10142_v38  ;;  %v2237_v19 = vadd.f32 %v9599_v34, %v2236_v50 }
 0x3a2   :  { %14550 = vst [vmem:[#allocation129_spill] sm:$0xff] %v10119_v7  ;;  %v5584_v16 = vpop.eup %5583  ;;  %v2242_v49 = vand.u32 2147483647, %v14396_v62  ;;  %5585 = vlog2.f32 %v14396_v62  ;;  %v10149_v10 = vmul.f32 0.6931472, %v5578_v41  ;;  %v2244_v51 = vand.u32 2147483648, %v14396_v62 }
 0x3a3   :  { %3572 = vmax.xlane.f32.xlu0 %v3571_v1  ;;  %5587 = vrcp.f32 %v14556_v61  ;;  %v10153_v27 = vmul.f32 0.6931472, %v5580_v21  ;;  %v14557_v1 = vld [vmem:[#allocation143_spill] sm:$0xff]  ;;  %v10158_v45 = vsel %vm10133_vm7, %v2260_v40, %v2256_v6  ;;  %v2296_v58 = vmul.f32 %v9826_v3, %v2295_v23  ;;  %v14586_v7 = vld [vmem:[#allocation134_spill] sm:$0xff] }
 0x3a4   :  { %5589 = vrcp.f32 %v14557_v1  ;;  %v10164_v41 = vmul.f32 0.6931472, %v5582_v0  ;;  %v2221_v62 = vmul.f32 %v9608_v12, %v2220_v42  ;;  %v2280_v39 = vsub.f32 1.0, %v2279_v24 }
 0x3a5   :  { %v10161_v53 = vpop.xlane.xlu0 %3291  ;;  %5591 = vlog2.f32 %v14559_v59  ;;  %v10171_v50 = vmul.f32 0.6931472, %v5584_v16  ;;  %v2241_v21 = vsel %vm10166_vm10, %v9599_v34, %v2237_v19  ;;  %vm10176_vm11 = vcmp.eq.f32.partialorder %v2242_v49, 8.507059e+37 }
 0x3a6   :  { %14558 = vst [vmem:[#allocation141_spill] sm:$0xff] %v10161_v53  ;;  %5593 = vlog2.f32 %v14457_v35  ;;  %v2245_v23 = vor.u32 1.1754944e-38, %v2244_v51  ;;  %vm2299_vm12 = vweird.f32 %v9826_v3  ;;  %v2264_v0 = vmul.f32 %v9762_v52, %v14440_v29 }
 0x3a7   :  { %5595 = vlog2.f32 %v14564_v22  ;;  %v2297_v42 = vadd.f32 %v9826_v3, %v2296_v58  ;;  %v2302_v34 = vand.u32 2147483647, %v14457_v35  ;;  %v2304_v24 = vand.u32 2147483648, %v14457_v35  ;;  %v14567_v58 = vld [vmem:[#allocation136_spill] sm:$0xff]  ;;  %vm10214_vm0 = vmor %vm2298_vm15, %vm2299_vm12 }
 0x3a8   :  { %v5586_v40 = vpop.eup %5585  ;;  %5597 = vlog2.f32 %v14399_v9  ;;  %v2222_v19 = vadd.f32 %v9608_v12, %v2221_v62  ;;  %v2281_v49 = vmul.f32 %v9697_v48, %v2280_v39  ;;  %v10197_v51 = vpop.xlane.xlu2 %3288  ;;  %v2227_v15 = vand.u32 2147483647, %v14399_v9  ;;  %v14568_v62 = vld [vmem:[#allocation148_spill] sm:$0xff] }
 0x3a9   :  { %v10185_v6 = vpop.xlane.xlu1 %3285  ;;  %v10191_v16 = vpop.eup %5587  ;;  %14566 = vst [vmem:[#allocation135_spill] sm:$0xff] %v10197_v51  ;;  %5599 = vrcp.f32 %v14567_v58  ;;  %v2229_v22 = vand.u32 2147483648, %v14399_v9  ;;  %v10210_v39 = vmul.f32 0.6931472, %v5586_v40  ;;  %v2265_v35 = vsub.f32 1.0, %v2264_v0 }
 0x3aa   :  { %14565 = vst [vmem:[#allocation143_spill] sm:$0xff] %v10185_v6  ;;  %v10199_v59 = vpop.eup %5589  ;;  %5601 = vlog2.f32 %v14568_v62  ;;  %v10208_v6 = vsel %vm10176_vm11, %v2245_v23, %v2241_v21  ;;  %v2301_v38 = vsel %vm10214_vm0, %v9826_v3, %v2297_v42  ;;  %vm10221_vm1 = vcmp.eq.f32.partialorder %v2302_v34, 8.507059e+37  ;;  %v14583_v62 = vld [vmem:[#allocation133_spill] sm:$0xff] }
 0x3ab   :  { %v5592_v46 = vpop.eup %5591  ;;  %14569 = vst [vmem:[#allocation147_spill] sm:$0xff] %v10210_v39  ;;  %v2305_v21 = vor.u32 1.1754944e-38, %v2304_v24  ;;  %5603 = vlog2.f32 %v14421_v4  ;;  %v2226_v3 = vsel %vm10229_vm2, %v9608_v12, %v2222_v19  ;;  %v2282_v40 = vadd.f32 %v9697_v48, %v2281_v49 }
 0x3ac   :  { %v5594_v53 = vpop.eup %5593  ;;  %vm2284_vm3 = vweird.f32 %v9697_v48  ;;  %v2289_v42 = vand.u32 2147483648, %v14421_v4  ;;  %vm2228_vm4 = vcmp.eq.f32.partialorder %v2227_v15, 8.507059e+37  ;;  %v2230_v34 = vor.u32 1.1754944e-38, %v2229_v22 }
 0x3ad   :  { %v10234_v23 = vpop.xlane.xlu0 %3300  ;;  %v5596_v0 = vpop.eup %5595  ;;  %vm2283_vm5 = vweird.f32 %v14421_v4  ;;  %v2324_v24 = vmul.f32 %v9881_v55, %v14475_v36  ;;  %v10245_v51 = vmul.f32 0.6931472, %v5592_v46  ;;  %v10249_v8 = vsel %vm10221_vm1, %v2305_v21, %v2301_v38 }
 0x3ae   :  { %14576 = vst [vmem:[#allocation136_spill] sm:$0xff] %v10234_v23  ;;  %v5598_v9 = vpop.eup %5597  ;;  %v10251_v12 = vmul.f32 0.6931472, %v5594_v53  ;;  %v2266_v19 = vmul.f32 %v9762_v52, %v2265_v35  ;;  %v10258_v15 = vmul.f32 0.6931472, %v5596_v0  ;;  %v10260_v22 = vsel %vm2228_vm4, %v2230_v34, %v2226_v3  ;;  %vm10264_vm6 = vmor %vm2283_vm5, %vm2284_vm3 }
 0x3af   :  { %14577 = vst [vmem:[#allocation148_spill] sm:$0xff] %v10249_v8  ;;  %v10256_v23 = vpop.eup %5599  ;;  %v2287_v38 = vand.u32 2147483647, %v14421_v4  ;;  %v2339_v53 = vmul.f32 %v10029_v11, %v14514_v32  ;;  %5605 = vrcp.f32 %v14583_v62  ;;  %v10272_v21 = vmul.f32 0.6931472, %v5598_v9  ;;  %v14587_v8 = vld [vmem:[#allocation145_spill] sm:$0xff] }
 0x3b0   :  { %14578 = vst [vmem:[#allocation208_spill] sm:$0xff] %v10251_v12  ;;  %v5602_v35 = vpop.eup %5601  ;;  %v2286_v0 = vsel %vm10264_vm6, %v9697_v48, %v2282_v40  ;;  %v2290_v3 = vor.u32 1.1754944e-38, %v2289_v42  ;;  %v10277_v34 = vpop.xlane.xlu2 %3297  ;;  %v1992_v12 = vmul.f32 %v9370_v54, %v14586_v7  ;;  %vm2269_vm7 = vweird.f32 %v9762_v52  ;;  %v14588_v40 = vld [vmem:[#allocation146_spill] sm:$0xff] }
 0x3b1   :  { %v10254_v49 = vpop.xlane.xlu1 %3294  ;;  %14580 = vst [vmem:[#allocation210_spill] sm:$0xff] %v10260_v22  ;;  %v2272_v4 = vand.u32 2147483647, %v14440_v29  ;;  %v2325_v22 = vsub.f32 1.0, %v2324_v24  ;;  %5607 = vlog2.f32 %v14587_v8  ;;  %v2267_v9 = vadd.f32 %v9762_v52, %v2266_v19 }
 0x3b2   :  { %14579 = vst [vmem:[#allocation209_spill] sm:$0xff] %v10254_v49  ;;  %v5604_v49 = vpop.eup %5603  ;;  %v2309_v48 = vmul.f32 %v9959_v17, %v14496_v18  ;;  %5609 = vrcp.f32 %v14588_v40  ;;  %vm2288_vm8 = vcmp.eq.f32.partialorder %v2287_v38, 8.507059e+37  ;;  %vm2268_vm9 = vweird.f32 %v14440_v29 }
 0x3b3   :  { %14584 = vst [vmem:[#allocation133_spill] sm:$0xff] %v10272_v21  ;;  %v2274_v21 = vand.u32 2147483648, %v14440_v29  ;;  %v2340_v54 = vsub.f32 1.0, %v2339_v53  ;;  %v10292_v42 = vmul.f32 0.6931472, %v5602_v35  ;;  %v10294_v24 = vsel %vm2288_vm8, %v2290_v3, %v2286_v0  ;;  %vm10302_vm10 = vmor %vm2268_vm9, %vm2269_vm7  ;;  %v14597_v0 = vld [vmem:[#allocation149_spill] sm:$0xff] }
 0x3b4   :  { %14585 = vst [vmem:[#allocation211_spill] sm:$0xff] %v10277_v34  ;;  %v10296_v8 = vmul.f32 0.6931472, %v5604_v49  ;;  %5611 = vlog2.f32 %v14440_v29  ;;  %v2508_v19 = vsub.f32 %v1992_v12, %v9416_v25  ;;  %vm10306_vm11 = vcmp.eq.f32.partialorder %v2272_v4, 8.507059e+37  ;;  %v14598_v34 = vld [vmem:[#allocation150_spill] sm:$0xff] }
 0x3b5   :  { %v10290_v7 = vpop.xlane.xlu0 %3309  ;;  %14590 = vst [vmem:[#allocation145_spill] sm:$0xff] %v10294_v24  ;;  %5613 = vlog2.f32 %v14514_v32  ;;  %v2326_v53 = vmul.f32 %v9881_v55, %v2325_v22  ;;  %v10312_v49 = vpop.eup %5605  ;;  %v2271_v25 = vsel %vm10302_vm10, %v9762_v52, %v2267_v9  ;;  %v2275_v29 = vor.u32 1.1754944e-38, %v2274_v21 }
 0x3b6   :  { %14589 = vst [vmem:[#allocation134_spill] sm:$0xff] %v10290_v7  ;;  %5615 = vlog2.f32 %v14475_v36  ;;  %v2310_v12 = vsub.f32 1.0, %v2309_v48  ;;  %v2341_v3 = vmul.f32 %v10029_v11, %v2340_v54  ;;  %v2347_v4 = vand.u32 2147483647, %v14514_v32 }
 0x3b7   :  { %14591 = vst [vmem:[#allocation212_spill] sm:$0xff] %v10296_v8  ;;  %5617 = vlog2.f32 %v14597_v0  ;;  %v2369_v22 = vmul.f32 %v10056_v13, %v14528_v47  ;;  %v5608_v7 = vpop.eup %5607  ;;  %v2349_v52 = vand.u32 2147483648, %v14514_v32  ;;  %v2332_v21 = vand.u32 2147483647, %v14475_v36 }
 0x3b8   :  { %5619 = vlog2.f32 %v14598_v34  ;;  %v2334_v9 = vand.u32 2147483648, %v14475_v36  ;;  %v10329_v48 = vpop.xlane.xlu2 %3306  ;;  %v10331_v46 = vpop.eup %5609  ;;  %v10334_v54 = vadd.f32 %v2508_v19, %v9753_v37  ;;  %v2327_v0 = vadd.f32 %v9881_v55, %v2326_v53 }
 0x3b9   :  { %v10318_v35 = vpop.xlane.xlu1 %3303  ;;  %14599 = vst [vmem:[#allocation149_spill] sm:$0xff] %v10329_v48  ;;  %vm2328_vm12 = vweird.f32 %v14475_v36  ;;  %v10343_v24 = vsel %vm10306_vm11, %v2275_v29, %v2271_v25  ;;  %v2311_v48 = vmul.f32 %v9959_v17, %v2310_v12  ;;  %v2342_v19 = vadd.f32 %v10029_v11, %v2341_v3 }
 0x3ba   :  { %14596 = vst [vmem:[#allocation213_spill] sm:$0xff] %v10318_v35  ;;  %v5612_v34 = vpop.eup %5611  ;;  %v14602_v35 = vld [vmem:[#allocation138_spill] sm:$0xff]  ;;  %vm2344_vm15 = vweird.f32 %v10029_v11  ;;  %vm10349_vm0 = vcmp.eq.f32.partialorder %v2347_v4, 8.507059e+37  ;;  %v10355_v38 = vmul.f32 0.6931472, %v5608_v7  ;;  %v2350_v25 = vor.u32 1.1754944e-38, %v2349_v52  ;;  %vm10361_vm1 = vmor %vm2328_vm12, %vm2329_vm13 }
 0x3bb   :  { %14600 = vst [vmem:[#allocation150_spill] sm:$0xff] %v10331_v46  ;;  %v1977_v8 = vmul.f32 %v9374_v31, %v14602_v35  ;;  %v5614_v37 = vpop.eup %5613  ;;  %vm10365_vm2 = vcmp.eq.f32.partialorder %v2332_v21, 8.507059e+37  ;;  %v2335_v35 = vor.u32 1.1754944e-38, %v2334_v9  ;;  %v2331_v7 = vsel %vm10361_vm1, %v9881_v55, %v2327_v0  ;;  %vm10382_vm4 = vmor %vm2343_vm14, %vm2344_vm15  ;;  %v14615_v0 = vld [vmem:[#allocation140_spill] sm:$0xff] }
 0x3bc   :  { %14601 = vst [vmem:[#allocation214_spill] sm:$0xff] %v10334_v54  ;;  %v2370_v54 = vsub.f32 1.0, %v2369_v22  ;;  %v5616_v31 = vpop.eup %5615  ;;  %vm2313_vm3 = vweird.f32 %v14496_v18  ;;  %v2317_v4 = vand.u32 2147483647, %v14496_v18  ;;  %5621 = vlog2.f32 %v14496_v18  ;;  %v14621_v21 = vld [vmem:[#allocation160_spill] sm:$0xff] }
 0x3bd   :  { %14603 = vst [vmem:[#allocation138_spill] sm:$0xff] %v10343_v24  ;;  %v10353_v39 = vpop.xlane.xlu0 %3318  ;;  %v5618_v3 = vpop.eup %5617  ;;  %v2507_v22 = vsub.f32 %v1977_v8, %v9359_v56  ;;  %v10376_v52 = vmul.f32 0.6931472, %v5612_v34  ;;  %v2312_v55 = vadd.f32 %v9959_v17, %v2311_v48  ;;  %vm2314_vm5 = vweird.f32 %v9959_v17 }
 0x3be   :  { %14606 = vst [vmem:[#allocation215_spill] sm:$0xff] %v10353_v39  ;;  %v5620_v36 = vpop.eup %5619  ;;  %v2037_v29 = vmul.f32 %v9434_v26, %v14615_v0  ;;  %v2346_v56 = vsel %vm10382_vm4, %v10029_v11, %v2342_v19  ;;  %v2319_v8 = vand.u32 2147483648, %v14496_v18  ;;  %v2371_v32 = vmul.f32 %v10056_v13, %v2370_v54  ;;  %v14622_v11 = vld [vmem:[#allocation161_spill] sm:$0xff]  ;;  %vm10416_vm6 = vmor %vm2313_vm3, %vm2314_vm5  ;;  %v14631_v0 = vld [vmem:[#allocation152_spill] sm:$0xff] }
 0x3bf   :  { %14611 = vst [vmem:[#allocation216_spill] sm:$0xff] %v10376_v52  ;;  %v10397_v34 = vmul.f32 0.6931472, %v5618_v3  ;;  %v10399_v39 = vmul.f32 0.6931472, %v5614_v37  ;;  %v10403_v48 = vsel %vm10365_vm2, %v2335_v35, %v2331_v7  ;;  %5623 = vlog2.f32 %v14621_v21  ;;  %v14636_v21 = vld [vmem:[#allocation151_spill] sm:$0xff] }
 0x3c0   :  { %14617 = vst [vmem:[#allocation218_spill] sm:$0xff] %v10403_v48  ;;  %v10409_v26 = vmul.f32 0.6931472, %v5620_v36  ;;  %v2007_v19 = vmul.f32 %v9449_v63, %v14622_v11  ;;  %vm10420_vm7 = vcmp.eq.f32.partialorder %v2317_v4, 8.507059e+37  ;;  %v10429_v12 = vsel %vm10349_vm0, %v2350_v25, %v2346_v56 }
 0x3c1   :  { %v10388_v9 = vpop.xlane.xlu1 %3312  ;;  %14616 = vst [vmem:[#allocation140_spill] sm:$0xff] %v10399_v39  ;;  %v2316_v63 = vsel %vm10416_vm6, %v9959_v17, %v2312_v55  ;;  %5625 = vlog2.f32 %v14528_v47  ;;  %v2511_v35 = vsub.f32 %v2037_v29, %v9478_v60  ;;  %v2320_v3 = vor.u32 1.1754944e-38, %v2319_v8 }
 0x3c2   :  { %14614 = vst [vmem:[#allocation217_spill] sm:$0xff] %v10388_v9  ;;  %v10405_v9 = vmul.f32 0.6931472, %v5616_v31  ;;  %v10407_v52 = vpop.xlane.xlu2 %3315  ;;  %v10425_v31 = vadd.f32 %v2507_v22, %v9624_v20  ;;  %v5622_v18 = vpop.eup %5621  ;;  %v2372_v7 = vadd.f32 %v10056_v13, %v2371_v32  ;;  %vm2374_vm8 = vweird.f32 %v10056_v13 }
 0x3c3   :  { %14619 = vst [vmem:[#allocation220_spill] sm:$0xff] %v10407_v52  ;;  %v2377_v4 = vand.u32 2147483647, %v14528_v47  ;;  %v2379_v53 = vand.u32 2147483648, %v14528_v47  ;;  %v14629_v25 = vunpack.c.l.bf16 %v9323_v33  ;;  %v14630_v17 = vunpack.c.h.bf16 %v9323_v33  ;;  %v14658_v52 = vld [vmem:[#allocation90_spill] sm:$0xff] }
 0x3c4   :  { %14618 = vst [vmem:[#allocation219_spill] sm:$0xff] %v10405_v9  ;;  %v2509_v60 = vsub.f32 %v2007_v19, %v9498_v44  ;;  %vm2373_vm9 = vweird.f32 %v14528_v47  ;;  %v2364_v55 = vand.u32 2147483648, %v14556_v61  ;;  %5627 = vlog2.f32 %v14556_v61 }
 0x3c5   :  { %14620 = vst [vmem:[#allocation221_spill] sm:$0xff] %v10409_v26  ;;  %v3489_v20 = vpop.xlane.xlu0 %3488  ;;  %v2022_v29 = vmul.f32 %v9554_v30, %v14631_v0  ;;  %v10454_v56 = vmul.f32 0.6931472, %v5622_v18  ;;  %vm10456_vm10 = vmor %vm2373_vm9, %vm2374_vm8  ;;  %v5624_v47 = vpop.eup %5623  ;;  %5629 = vlog2.f32 %v14636_v21  ;;  %v10467_v11 = vsel %vm10420_vm7, %v2320_v3, %v2316_v63  ;;  %v14638_v18 = vld [vmem:[#allocation200_spill] sm:$0xff] }
 0x3c6   :  { %14627 = vst [vmem:[#allocation160_spill] sm:$0xff] %v10425_v31  ;;  %v10442_v36 = vsub.f32 %v14629_v25, %v3489_v20  ;;  %v10446_v22 = vsub.f32 %v14630_v17, %v3489_v20  ;;  %v2376_v30 = vsel %vm10456_vm10, %v10056_v13, %v2372_v7  ;;  %v2354_v19 = vmul.f32 %v10191_v16, %v14556_v61  ;;  %v14641_v0 = vld [vmem:[#allocation172_spill] sm:$0xff]  ;;  %v14644_v7 = vld [vmem:[#allocation121_spill] sm:$0xff] }
 0x3c7   :  { %14628 = vst [vmem:[#allocation161_spill] sm:$0xff] %v10429_v12  ;;  %v5626_v54 = vpop.eup %5625  ;;  %v10475_v20 = vadd.f32 %v2511_v35, %v14638_v18  ;;  %vm2378_vm11 = vcmp.eq.f32.partialorder %v2377_v4, 8.507059e+37  ;;  %v2380_v25 = vor.u32 1.1754944e-38, %v2379_v53  ;;  %v10480_v37 = vadd.f32 %v2509_v60, %v14641_v0  ;;  %v14645_v21 = vld [vmem:[#allocation32_spill] sm:$0xff]  ;;  %v14671_v12 = vld [vmem:[#allocation75_spill] sm:$0xff] }
 0x3c8   :  { %14632 = vst [vmem:[#allocation152_spill] sm:$0xff] %v10454_v56  ;;  %v3647_v33 = vmul.f32 1.442695, %v10442_v36  ;;  %v3649_v32 = vmul.f32 1.442695, %v10446_v22  ;;  %v10483_v3 = vor.u32 1.1754944e-38, %v2364_v55  ;;  %v2510_v8 = vsub.f32 %v2022_v29, %v14644_v7 }
 0x3c9   :  { %v10462_v44 = vpop.xlane.xlu1 %3321  ;;  %14637 = vst [vmem:[#allocation151_spill] sm:$0xff] %v10467_v11  ;;  %v2362_v63 = vand.u32 2147483647, %v14556_v61  ;;  %v10485_v13 = vmul.f32 0.6931472, %v5624_v47  ;;  %v10489_v35 = vsel %vm2378_vm11, %v2380_v25, %v2376_v30  ;;  %vm2359_vm12 = vweird.f32 %v10191_v16  ;;  %v14648_v47 = vld [vmem:[#allocation167_spill] sm:$0xff] }
 0x3ca   :  { %14635 = vst [vmem:[#allocation222_spill] sm:$0xff] %v10462_v44  ;;  %5631 = vpow2.f32 %v3647_v33  ;;  %v10477_v17 = vpop.xlane.xlu2 %3324  ;;  %v5628_v4 = vpop.eup %5627  ;;  %v10491_v53 = vmul.f32 0.6931472, %v5626_v54  ;;  %v2355_v33 = vsub.f32 1.0, %v2354_v19  ;;  %v2414_v60 = vmul.f32 %v10199_v59, %v14557_v1  ;;  %v14649_v18 = vld [vmem:[#allocation124_spill] sm:$0xff] }
 0x3cb   :  { %14639 = vst [vmem:[#allocation200_spill] sm:$0xff] %v10475_v20  ;;  %5633 = vpow2.f32 %v3649_v32  ;;  %v2082_v0 = vmul.f32 %v14649_v18, %v14648_v47  ;;  %v2384_v29 = vmul.f32 %v10256_v23, %v14567_v58  ;;  %v14650_v30 = vld [vmem:[#allocation84_spill] sm:$0xff]  ;;  %v2394_v55 = vand.u32 2147483648, %v14567_v58  ;;  %v14655_v20 = vld [vmem:[#allocation181_spill] sm:$0xff] }
 0x3cc   :  { %14640 = vst [vmem:[#allocation223_spill] sm:$0xff] %v10477_v17  ;;  %5635 = vlog2.f32 %v14645_v21  ;;  %v14651_v25 = vunpack.c.l.bf16 %v14650_v30  ;;  %v14653_v19 = vunpack.c.h.bf16 %v14650_v30  ;;  %v5630_v21 = vpop.eup %5629  ;;  %vm2358_vm13 = vweird.f32 %v14556_v61 }
 0x3cd   :  { %14642 = vst [vmem:[#allocation172_spill] sm:$0xff] %v10480_v37  ;;  %v3498_v32 = vpop.xlane.xlu0 %3497  ;;  %5637 = vlog2.f32 %v14567_v58  ;;  %v2424_v47 = vand.u32 2147483648, %v14557_v1  ;;  %v10519_v37 = vmul.f32 0.6931472, %v5628_v4  ;;  %v2356_v31 = vmul.f32 %v10191_v16, %v2355_v33  ;;  %v14662_v33 = vld [vmem:[#allocation92_spill] sm:$0xff]  ;;  %vm10579_vm1 = vmor %vm2358_vm13, %vm2359_vm12 }
 0x3ce   :  { %14643 = vst [vmem:[#allocation224_spill] sm:$0xff] %v10485_v13  ;;  %v10503_v7 = vsub.f32 %v14651_v25, %v3498_v32  ;;  %v10507_v54 = vsub.f32 %v14653_v19, %v3498_v32  ;;  %v10517_v25 = vadd.f32 %v2510_v8, %v14655_v20  ;;  %v2415_v44 = vsub.f32 1.0, %v2414_v60  ;;  %v14663_v60 = vld [vmem:[#allocation116_spill] sm:$0xff]  ;;  %v14724_v13 = vld [vmem:[#allocation185_spill] sm:$0xff] }
 0x3cf   :  { %14646 = vst [vmem:[#allocation121_spill] sm:$0xff] %v10489_v35  ;;  %v14660_v35 = vunpack.c.h.bf16 %v14658_v52  ;;  %v10534_v4 = vmul.f32 0.6931472, %v5630_v21  ;;  %v2385_v11 = vsub.f32 1.0, %v2384_v29  ;;  %v2067_v39 = vmul.f32 %v14663_v60, %v14662_v33  ;;  %v14667_v29 = vld [vmem:[#allocation127_spill] sm:$0xff] }
 0x3d0   :  { %14647 = vst [vmem:[#allocation32_spill] sm:$0xff] %v10491_v53  ;;  %v10514_v18 = vpop.eup %5631  ;;  %v3659_v32 = vmul.f32 1.442695, %v10503_v7  ;;  %v3661_v30 = vmul.f32 1.442695, %v10507_v54  ;;  %v14659_v53 = vunpack.c.l.bf16 %v14658_v52  ;;  %vm10541_vm14 = vcmp.eq.f32.partialorder %v2362_v63, 8.507059e+37 }
 0x3d1   :  { %14652 = vst [vmem:[#allocation167_spill] sm:$0xff] %v10503_v7  ;;  %v3492_v19 = vpop.xlane.xlu1 %3491  ;;  %v10523_v17 = vpop.eup %5633  ;;  %vm2418_vm15 = vweird.f32 %v14557_v1  ;;  %vm2388_vm0 = vweird.f32 %v14567_v58  ;;  %v2357_v24 = vadd.f32 %v10191_v16, %v2356_v31  ;;  %v14675_v31 = vld [vmem:[#allocation171_spill] sm:$0xff]  ;;  %vm2419_vm2 = vweird.f32 %v10199_v59 }
 0x3d2   :  { %14654 = vst [vmem:[#allocation124_spill] sm:$0xff] %v10507_v54  ;;  %v10528_v56 = vsub.f32 %v14659_v53, %v3492_v19  ;;  %v10532_v20 = vsub.f32 %v14660_v35, %v3492_v19  ;;  %v5636_v8 = vpop.eup %5635  ;;  %v3495_v9 = vpop.xlane.xlu2 %3494  ;;  %v3775_v48 = vadd.f32 %v10523_v17, %v10514_v18  ;;  %5639 = vpow2.f32 %v3659_v32  ;;  %v14672_v54 = vld [vmem:[#allocation154_spill] sm:$0xff]  ;;  %vm10632_vm4 = vmor %vm2418_vm15, %vm2419_vm2 }
 0x3d3   :  { %14656 = vst [vmem:[#allocation84_spill] sm:$0xff] %v10517_v25  ;;  %v14661_v25 = vld [vmem:[#allocation115_spill] sm:$0xff]  ;;  %5641 = vpow2.f32 %v3661_v30  ;;  %v5638_v32 = vpop.eup %5637  ;;  %v2127_v7 = vmul.f32 %v14672_v54, %v14671_v12  ;;  %v2386_v30 = vmul.f32 %v10256_v23, %v2385_v11  ;;  %v10572_v12 = vmul.f32 0.6931472, %v5636_v8 }
 0x3d4   :  { %14657 = vst [vmem:[#allocation181_spill] sm:$0xff] %v10519_v37  ;;  %v2514_v37 = vsub.f32 %v2082_v0, %v14661_v25  ;;  %v3651_v52 = vmul.f32 1.442695, %v10528_v56  ;;  %v3653_v35 = vmul.f32 1.442695, %v10532_v20  ;;  %v14666_v0 = vld [vmem:[#allocation43_spill] sm:$0xff]  ;;  %3776 = vadd.xlane.f32.xlu1 %v3775_v48  ;;  %vm2389_vm3 = vweird.f32 %v10256_v23 }
 0x3d5   :  { %v2052_v21 = vmul.f32 %v14667_v29, %v14666_v0  ;;  %v14668_v25 = vld [vmem:[#allocation16_spill] sm:$0xff]  ;;  %v2416_v0 = vmul.f32 %v10199_v59, %v2415_v44  ;;  %v10569_v48 = vor.u32 1.1754944e-38, %v2424_v47  ;;  %14674 = vst [vmem:[#allocation90_spill] sm:$0xff] %v10572_v12  ;;  %v2361_v47 = vsel %vm10579_vm1, %v10191_v16, %v2357_v24  ;;  %vm10651_vm5 = vmor %vm2388_vm0, %vm2389_vm3 }
 0x3d6   :  { %v14669_v19 = vunpack.c.l.bf16 %v14668_v25  ;;  %v14670_v63 = vunpack.c.h.bf16 %v14668_v25  ;;  %5643 = vpow2.f32 %v3651_v52  ;;  %v14673_v25 = vld [vmem:[#allocation170_spill] sm:$0xff]  ;;  %v10587_v54 = vadd.f32 %v2514_v37, %v10153_v27  ;;  %v14681_v52 = vld [vmem:[#allocation176_spill] sm:$0xff] }
 0x3d7   :  { %5645 = vpow2.f32 %v3653_v35  ;;  %v2512_v44 = vsub.f32 %v2052_v21, %v14675_v31  ;;  %v10593_v8 = vadd.f32 %v10199_v59, %v2416_v0  ;;  %v2517_v35 = vsub.f32 %v2127_v7, %v14681_v52  ;;  %v14682_v21 = vld [vmem:[#allocation156_spill] sm:$0xff]  ;;  %v14689_v31 = vld [vmem:[#allocation190_spill] sm:$0xff]  ;;  %v14691_v52 = vld [vmem:[#allocation165_spill] sm:$0xff] }
 0x3d8   :  { %v10553_v33 = vsub.f32 %v14669_v19, %v3495_v9  ;;  %v10557_v60 = vsub.f32 %v14670_v63, %v3495_v9  ;;  %v2513_v9 = vsub.f32 %v2067_v39, %v14673_v25  ;;  %v10567_v63 = vor.u32 1.1754944e-38, %v2394_v55  ;;  %v10584_v55 = vpop.eup %5639  ;;  %14679 = vst [vmem:[#allocation92_spill] sm:$0xff] %v10587_v54  ;;  %v14685_v0 = vld [vmem:[#allocation68_spill] sm:$0xff]  ;;  %v10615_v25 = vld [vmem:[#allocation4 + $0x1f8] sm:$0xff] }
 0x3d9   :  { %5647 = vlog2.f32 %v14557_v1  ;;  %v3501_v39 = vpop.xlane.xlu1 %3500  ;;  %14678 = vst [vmem:[#allocation115_spill] sm:$0xff] %v10584_v55  ;;  %v10595_v61 = vpop.eup %5641  ;;  %v10608_v24 = vmul.f32 0.6931472, %v5638_v32  ;;  %v10620_v11 = vadd.f32 %v2512_v44, %v14689_v31  ;;  %v14699_v31 = vld [vmem:[#allocation163_spill] sm:$0xff]  ;;  %v10680_v54 = vadd.f32 %v2517_v35, %v10258_v15  ;;  %v14717_v35 = vld [vmem:[#allocation48_spill] sm:$0xff] }
 0x3da   :  { %v3655_v29 = vmul.f32 1.442695, %v10553_v33  ;;  %v3657_v19 = vmul.f32 1.442695, %v10557_v60  ;;  %14680 = vst [vmem:[#allocation116_spill] sm:$0xff] %v10595_v61  ;;  %v3504_v27 = vpop.xlane.xlu2 %3503  ;;  %v10606_v16 = vadd.f32 %v2513_v9, %v10113_v28  ;;  %v10626_v28 = vsel %vm10541_vm14, %v10483_v3, %v2361_v47  ;;  %v14700_v3 = vld [vmem:[#allocation93_spill] sm:$0xff] }
 0x3db   :  { %14684 = vst [vmem:[#allocation127_spill] sm:$0xff] %v10608_v24  ;;  %v14695_v9 = vunpack.c.h.bf16 %v14685_v0  ;;  %v14703_v47 = vand.u32 2147483647, %v14567_v58  ;;  %v10675_v58 = vld [vmem:[#allocation4 + $0x1e8] sm:$0xff]  ;;  %v14723_v24 = vld [vmem:[#allocation166_spill] sm:$0xff]  ;;  %vm2404_vm8 = vweird.f32 %v10312_v49  ;;  %vm2403_vm9 = vweird.f32 %v14583_v62 }
 0x3dc   :  { %5649 = vpow2.f32 %v3655_v29  ;;  %v10600_v29 = vadd.f32 %v10256_v23, %v2386_v30  ;;  %v10603_v37 = vpop.eup %5643  ;;  %14683 = vst [vmem:[#allocation43_spill] sm:$0xff] %v10606_v16  ;;  %vm10886_vm11 = vmor %vm2403_vm9, %vm2404_vm8  ;;  %vm2434_vm12 = vweird.f32 %v10331_v46  ;;  %vm2433_vm13 = vweird.f32 %v14588_v40 }
 0x3dd   :  { %5651 = vpow2.f32 %v3657_v19  ;;  %v14686_v19 = vunpack.c.l.bf16 %v14685_v0  ;;  %14688 = vst [vmem:[#allocation75_spill] sm:$0xff] %v10615_v25  ;;  %v10617_v30 = vpop.eup %5645  ;;  %vm10657_vm6 = vcmp.eq.f32.partialorder %v14703_v47, 8.507059e+37  ;;  %v2421_v0 = vsel %vm10632_vm4, %v10199_v59, %v10593_v8  ;;  %v3507_v59 = vpop.xlane.xlu0 %3506  ;;  %vm11009_vm14 = vmor %vm2433_vm13, %vm2434_vm12 }
 0x3de   :  { %5653 = vlog2.f32 %v14682_v21  ;;  %14690 = vst [vmem:[#allocation154_spill] sm:$0xff] %v10620_v11  ;;  %v10638_v21 = vsub.f32 %v14695_v9, %v3501_v39  ;;  %v14706_v9 = vand.u32 2147483647, %v14557_v1  ;;  %v2391_v1 = vsel %vm10651_vm5, %v10256_v23, %v10600_v29 }
 0x3df   :  { %5655 = vlog2.f32 %v14583_v62  ;;  %v10613_v7 = vsub.f32 %v14686_v19, %v3501_v39  ;;  %14692 = vst [vmem:[#allocation170_spill] sm:$0xff] %v10626_v28  ;;  %v10640_v44 = vpop.eup %5647  ;;  %v14698_v19 = vld [vmem:[#allocation159_spill] sm:$0xff]  ;;  %v3778_v15 = vadd.f32 %v10617_v30, %v10603_v37  ;;  %vm4735_vm13 = vcmask 7168  }
 0x3e0   :  { %5657 = vlog2.f32 %v14691_v52  ;;  %14696 = vst [vmem:[#allocation171_spill] sm:$0xff] %v10638_v21  ;;  %v10644_v52 = vmul.f32 %v14699_v31, %v14698_v19  ;;  %vm10667_vm7 = vcmp.eq.f32.partialorder %v14706_v9, 8.507059e+37  ;;  %v14709_v31 = vld [vmem:[#allocation112_spill] sm:$0xff]  ;;  %v3665_v29 = vmul.f32 1.442695, %v10638_v21 }
 0x3e1   :  { %14687 = vst [vmem:[#allocation16_spill] sm:$0xff] %v10613_v7  ;;  %5659 = vlog2.f32 %v14700_v3  ;;  %v14710_v3 = vunpack.c.l.bf16 %v14709_v31  ;;  %v3663_v9 = vmul.f32 1.442695, %v10613_v7  ;;  %v14715_v53 = vunpack.c.h.bf16 %v14709_v31  ;;  %v3510_v16 = vpop.xlane.xlu1 %3509  ;;  %3779 = vadd.xlane.f32.xlu2 %v3778_v15 }
 0x3e2   :  { %14697 = vst [vmem:[#allocation176_spill] sm:$0xff] %v10640_v44  ;;  %v10677_v47 = vpop.eup %5649  ;;  %5661 = vlog2.f32 %v14588_v40  ;;  %v14718_v7 = vunpack.c.l.bf16 %v14717_v35  ;;  %v14720_v21 = vunpack.c.h.bf16 %v14717_v35  ;;  %v14730_v15 = vunpack.c.h.bf16 %v10615_v25 }
 0x3e3   :  { %v10673_v44 = vsub.f32 %v14710_v3, %v3504_v27  ;;  %14712 = vst [vmem:[#allocation68_spill] sm:$0xff] %v10675_v58  ;;  %v10688_v32 = vpop.eup %5651  ;;  %v3784_v3 = vadd.f32 %v10595_v61, %v10584_v55  ;;  %v10701_v8 = vsub.f32 %v14715_v53, %v3504_v27  ;;  %v14722_v53 = vld [vmem:[#allocation164_spill] sm:$0xff] }
 0x3e4   :  { %14713 = vst [vmem:[#allocation190_spill] sm:$0xff] %v10680_v54  ;;  %v10696_v54 = vld [vmem:[#allocation4 + $0x1f0] sm:$0xff]  ;;  %v5654_v23 = vpop.eup %5653  ;;  %v10708_v61 = vsub.f32 %v14718_v7, %v3510_v16  ;;  %v10712_v55 = vsub.f32 %v14720_v21, %v3510_v16  ;;  %v3781_v27 = vadd.f32 %v10688_v32, %v10677_v47  ;;  %v2515_v11 = vsub.f32 %v10644_v52, %v14722_v53  ;;  %v14727_v53 = vld [vmem:[#allocation98_spill] sm:$0xff] }
 0x3e5   :  { %14711 = vst [vmem:[#allocation156_spill] sm:$0xff] %v10673_v44  ;;  %v5656_v28 = vpop.eup %5655  ;;  %v3667_v12 = vmul.f32 1.442695, %v10673_v44  ;;  %3785 = vadd.xlane.f32.xlu0 %v3784_v3  ;;  %v2112_v44 = vmul.f32 %v14724_v13, %v14723_v24  ;;  %v14725_v3 = vld [vmem:[#allocation44_spill] sm:$0xff]  ;;  %v2399_v52 = vmul.f32 %v10312_v49, %v14583_v62  ;;  %v2409_v13 = vand.u32 2147483648, %v14583_v62 }
 0x3e6   :  { %14714 = vst [vmem:[#allocation165_spill] sm:$0xff] %v10696_v54  ;;  %v5658_v31 = vpop.eup %5657  ;;  %5663 = vlog2.f32 %v14725_v3  ;;  %v3675_v35 = vmul.f32 1.442695, %v10708_v61  ;;  %v3677_v16 = vmul.f32 1.442695, %v10712_v55  ;;  %3782 = vadd.xlane.f32.xlu1 %v3781_v27  ;;  %v14728_v3 = vunpack.c.l.bf16 %v14727_v53 }
 0x3e7   :  { %14716 = vst [vmem:[#allocation159_spill] sm:$0xff] %v10701_v8  ;;  %v5660_v7 = vpop.eup %5659  ;;  %5665 = vpow2.f32 %v3663_v9  ;;  %v3669_v24 = vmul.f32 1.442695, %v10701_v8  ;;  %v14731_v27 = vunpack.c.l.bf16 %v10615_v25  ;;  %v2400_v19 = vsub.f32 1.0, %v2399_v52  ;;  %v14745_v52 = vld [vmem:[#allocation38_spill] sm:$0xff] }
 0x3e8   :  { %14719 = vst [vmem:[#allocation163_spill] sm:$0xff] %v10708_v61  ;;  %v10725_v26 = vpop.eup %5661  ;;  %5667 = vpow2.f32 %v3665_v29  ;;  %v10733_v9 = vsub.f32 %v14728_v3, %v3507_v59  ;;  %v10746_v29 = vsel %vm10657_vm6, %v10567_v63, %v2391_v1  ;;  %v10751_v3 = vsel %vm10667_vm7, %v10569_v48, %v2421_v0  ;;  %v3516_v1 = vpop.xlane.xlu0 %3515 }
 0x3e9   :  { %14721 = vst [vmem:[#allocation93_spill] sm:$0xff] %v10712_v55  ;;  %5669 = vpow2.f32 %v3667_v12  ;;  %v3580_v21 = vmax.f32 %v14731_v27, %v14730_v15  ;;  %v14733_v55 = vunpack.c.l.bf16 %v10675_v58  ;;  %v14736_v12 = vunpack.c.h.bf16 %v14727_v53  ;;  %v14738_v15 = vld [vmem:[#allocation188_spill] sm:$0xff] }
 0x3ea   :  { %14726 = vst [vmem:[#allocation112_spill] sm:$0xff] %v10725_v26  ;;  %v14732_v26 = vunpack.c.h.bf16 %v10675_v58  ;;  %5671 = vpow2.f32 %v3675_v35  ;;  %v2516_v27 = vsub.f32 %v2112_v44, %v14738_v15  ;;  %v2407_v58 = vand.u32 2147483647, %v14583_v62  ;;  %v14742_v35 = vld [vmem:[#allocation81_spill] sm:$0xff] }
 0x3eb   :  { %14729 = vst [vmem:[#allocation48_spill] sm:$0xff] %v10733_v9  ;;  %v10755_v8 = vsub.f32 %v14736_v12, %v3507_v59  ;;  %5673 = vpow2.f32 %v3677_v16  ;;  %v14740_v63 = vunpack.c.l.bf16 %v10696_v54  ;;  %v10766_v48 = vadd.f32 %v2515_v11, %v10171_v50  ;;  %v14743_v50 = vld [vmem:[#allocation53_spill] sm:$0xff] }
 0x3ec   :  { %v3574_v61 = vmax.f32 %v14733_v55, %v14732_v26  ;;  %14734 = vst [vmem:[#allocation164_spill] sm:$0xff] %v10746_v29  ;;  %v14739_v26 = vunpack.c.h.bf16 %v10696_v54  ;;  %v10763_v39 = vpop.eup %5663  ;;  %v2439_v0 = vand.u32 2147483648, %v14588_v40  ;;  %5675 = vpow2.f32 %v3669_v24  ;;  %v14744_v11 = vld [vmem:[#allocation189_spill] sm:$0xff]  ;;  %v3513_v24 = vpop.xlane.xlu2 %3512 }
 0x3ed   :  { %14735 = vst [vmem:[#allocation166_spill] sm:$0xff] %v10751_v3  ;;  %v10769_v59 = vpop.eup %5665  ;;  %v10771_v44 = vmul.f32 0.6931472, %v5654_v23  ;;  %5677 = vlog2.f32 %v14742_v35  ;;  %v10774_v16 = vor.u32 1.1754944e-38, %v2409_v13  ;;  %v3671_v53 = vmul.f32 1.442695, %v10733_v9  ;;  %3581 = vmax.xlane.f32.xlu0 %v3580_v21 }
 0x3ee   :  { %14737 = vst [vmem:[#allocation185_spill] sm:$0xff] %v10755_v8  ;;  %v3577_v55 = vmax.f32 %v14740_v63, %v14739_v26  ;;  %3575 = vmax.xlane.f32.xlu2 %v3574_v61  ;;  %v10777_v12 = vpop.eup %5667  ;;  %v2172_v15 = vmul.f32 %v14744_v11, %v14743_v50  ;;  %5679 = vlog2.f32 %v14745_v52  ;;  %v3673_v23 = vmul.f32 1.442695, %v10755_v8  ;;  %v14747_v63 = vld [vmem:[#allocation94_spill] sm:$0xff]  ;;  %v14770_v8 = vld [vmem:[#allocation77_spill] sm:$0xff]  ;;  %v14771_v9 = vld [vmem:[#allocation155_spill] sm:$0xff] }
 0x3ef   :  { %14741 = vst [vmem:[#allocation44_spill] sm:$0xff] %v10766_v48  ;;  %v10784_v26 = vpop.eup %5669  ;;  %v10787_v13 = vadd.f32 %v2516_v27, %v10245_v51  ;;  %5681 = vlog2.f32 %v14747_v63  ;;  %v10791_v21 = vmul.f32 0.6931472, %v5656_v28  ;;  %v10795_v50 = vmul.f32 0.6931472, %v5658_v31  ;;  %v14750_v11 = vld [vmem:[#allocation42_spill] sm:$0xff] }
 0x3f0   :  { %3578 = vmax.xlane.f32.xlu1 %v3577_v55  ;;  %v10793_v35 = vpop.eup %5671  ;;  %5683 = vlog2.f32 %v14750_v11  ;;  %v10798_v52 = vor.u32 1.1754944e-38, %v2439_v0  ;;  %v2401_v48 = vmul.f32 %v10312_v49, %v2400_v19  ;;  %v14753_v27 = vld [vmem:[#allocation168_spill] sm:$0xff]  ;;  %v14754_v63 = vld [vmem:[#allocation194_spill] sm:$0xff]  ;;  %v14755_v28 = vld [vmem:[#allocation109_spill] sm:$0xff]  ;;  %v3787_v31 = vadd.f32 %v10777_v12, %v10769_v59 }
 0x3f1   :  { %14746 = vst [vmem:[#allocation98_spill] sm:$0xff] %v10787_v13  ;;  %v10802_v51 = vpop.eup %5673  ;;  %v2157_v61 = vmul.f32 %v14754_v63, %v14753_v27  ;;  %5685 = vpow2.f32 %v3671_v53  ;;  %v14756_v55 = vunpack.c.l.bf16 %v14755_v28  ;;  %v10814_v0 = vmul.f32 0.6931472, %v5660_v7  ;;  %v14759_v19 = vld [vmem:[#allocation193_spill] sm:$0xff] }
 0x3f2   :  { %14748 = vst [vmem:[#allocation188_spill] sm:$0xff] %v10791_v21  ;;  %v10812_v11 = vpop.eup %5675  ;;  %5687 = vpow2.f32 %v3673_v23  ;;  %v14760_v54 = vunpack.c.h.bf16 %v14755_v28  ;;  %v14762_v53 = vld [vmem:[#allocation45_spill] sm:$0xff]  ;;  %v2429_v63 = vmul.f32 %v10331_v46, %v14588_v40  ;;  %v14766_v23 = vld [vmem:[#allocation110_spill] sm:$0xff]  ;;  %vm10856_vm10 = vcmp.eq.f32.partialorder %v2407_v58, 8.507059e+37 }
 0x3f3   :  { %14749 = vst [vmem:[#allocation81_spill] sm:$0xff] %v10793_v35  ;;  %v10808_v13 = vsub.f32 %v14756_v55, %v3513_v24  ;;  %v10821_v27 = vpop.eup %5677  ;;  %5689 = vlog2.f32 %v14762_v53  ;;  %v14763_v55 = vld [vmem:[#allocation114_spill] sm:$0xff]  ;;  %v3790_v7 = vadd.f32 %v10812_v11, %v10784_v26  ;;  %v14779_v58 = vld [vmem:[#allocation61_spill] sm:$0xff] }
 0x3f4   :  { %14751 = vst [vmem:[#allocation53_spill] sm:$0xff] %v10798_v52  ;;  %v2520_v52 = vsub.f32 %v2172_v15, %v14759_v19  ;;  %v10819_v25 = vsub.f32 %v14760_v54, %v3513_v24  ;;  %v14764_v21 = vunpack.c.l.bf16 %v14763_v55  ;;  %v10832_v15 = vpop.eup %5679  ;;  %5691 = vlog2.f32 %v14766_v23  ;;  %v14852_v40 = vld [vmem:[#allocation197_spill] sm:$0xff] }
 0x3f5   :  { %14752 = vst [vmem:[#allocation189_spill] sm:$0xff] %v10802_v51  ;;  %v10836_v54 = vadd.f32 %v10312_v49, %v2401_v48  ;;  %v14767_v24 = vunpack.c.h.bf16 %v14763_v55  ;;  %v3796_v19 = vadd.f32 %v10802_v51, %v10793_v35  ;;  %v10844_v53 = vpop.eup %5681  ;;  %v3679_v48 = vmul.f32 1.442695, %v10808_v13 }
 0x3f6   :  { %14757 = vst [vmem:[#allocation38_spill] sm:$0xff] %v10808_v13  ;;  %v10828_v3 = vsub.f32 %v14764_v21, %v3516_v1  ;;  %v14769_v21 = vld [vmem:[#allocation196_spill] sm:$0xff]  ;;  %3788 = vadd.xlane.f32.xlu2 %v3787_v31  ;;  %v10853_v23 = vpop.eup %5683  ;;  %v10868_v31 = vadd.f32 %v2520_v52, %v10397_v34  ;;  %v14781_v34 = vld [vmem:[#allocation203_spill] sm:$0xff]  ;;  %v14790_v52 = vld [vmem:[#allocation85_spill] sm:$0xff] }
 0x3f7   :  { %14758 = vst [vmem:[#allocation94_spill] sm:$0xff] %v10814_v0  ;;  %v10840_v28 = vsub.f32 %v14767_v24, %v3516_v1  ;;  %v2519_v29 = vsub.f32 %v2157_v61, %v14769_v21  ;;  %v10849_v0 = vmul.f32 %v14771_v9, %v14770_v8  ;;  %v14773_v1 = vld [vmem:[#allocation51_spill] sm:$0xff]  ;;  %v14777_v21 = vld [vmem:[#allocation96_spill] sm:$0xff]  ;;  %v3681_v9 = vmul.f32 1.442695, %v10819_v25  ;;  %3797 = vadd.xlane.f32.xlu0 %v3796_v19  ;;  %v10865_v51 = vpop.eup %5685 }
 0x3f8   :  { %14761 = vst [vmem:[#allocation42_spill] sm:$0xff] %v10819_v25  ;;  %v14776_v24 = vld [vmem:[#allocation95_spill] sm:$0xff]  ;;  %v3872_v8 = vsub.f32 %v10446_v22, %v14777_v21  ;;  %v3683_v35 = vmul.f32 1.442695, %v10828_v3  ;;  %3791 = vadd.xlane.f32.xlu1 %v3790_v7  ;;  %v10872_v13 = vpop.eup %5687  ;;  %v3519_v21 = vpop.xlane.xlu1 %3518  ;;  %v2406_v62 = vsel %vm10886_vm11, %v10312_v49, %v10836_v54 }
 0x3f9   :  { %14765 = vst [vmem:[#allocation168_spill] sm:$0xff] %v10832_v15  ;;  %v14772_v15 = vld [vmem:[#allocation59_spill] sm:$0xff]  ;;  %v3871_v61 = vsub.f32 %v10442_v36, %v14776_v24  ;;  %v14780_v36 = vld [vmem:[#allocation18_spill] sm:$0xff]  ;;  %v3685_v19 = vmul.f32 1.442695, %v10840_v28  ;;  %v10878_v25 = vpop.eup %5689 }
 0x3fa   :  { %14768 = vst [vmem:[#allocation194_spill] sm:$0xff] %v10840_v28  ;;  %5693 = vlog2.f32 %v14772_v15  ;;  %v3525_v15 = vpop.xlane.xlu0 %3524  ;;  %v3936_v24 = vmul.f32 %v10523_v17, %v3872_v8  ;;  %v10896_v8 = vpop.eup %5691  ;;  %v14793_v49 = vld [vmem:[#allocation99_spill] sm:$0xff] }
 0x3fb   :  { %5695 = vlog2.f32 %v14773_v1  ;;  %14778 = vst [vmem:[#allocation109_spill] sm:$0xff] %v10868_v31  ;;  %v2430_v1 = vsub.f32 1.0, %v2429_v63  ;;  %v3935_v22 = vmul.f32 %v10514_v18, %v3871_v61  ;;  %v14784_v18 = vld [vmem:[#allocation123_spill] sm:$0xff]  ;;  %v3793_v61 = vadd.f32 %v10872_v13, %v10865_v51 }
 0x3fc   :  { %5697 = vlog2.f32 %v14779_v58  ;;  %v14785_v7 = vunpack.c.l.bf16 %v14784_v18  ;;  %v10899_v58 = vadd.f32 %v2519_v29, %v10355_v38  ;;  %v10914_v31 = vmul.f32 %v10110_v57, %v14790_v52  ;;  %v14791_v29 = vld [vmem:[#allocation117_spill] sm:$0xff] }
 0x3fd   :  { %5699 = vlog2.f32 %v14780_v36  ;;  %v2431_v38 = vmul.f32 %v10331_v46, %v2430_v1  ;;  %v10925_v54 = vmul.f32 %v10117_v2, %v14793_v49  ;;  %v3522_v49 = vpop.xlane.xlu2 %3521 }
 0x3fe   :  { %5701 = vpow2.f32 %v3679_v48  ;;  %v10892_v17 = vsub.f32 %v14785_v7, %v3525_v15  ;;  %14787 = vst [vmem:[#allocation45_spill] sm:$0xff] %v10899_v58  ;;  %v14788_v48 = vunpack.c.h.bf16 %v14784_v18  ;;  %v14792_v58 = vunpack.c.l.bf16 %v14791_v29  ;;  %v14797_v18 = vld [vmem:[#allocation86_spill] sm:$0xff]  ;;  %3794 = vadd.xlane.f32.xlu2 %v3793_v61 }
 0x3ff   :  { %5703 = vpow2.f32 %v3681_v9  ;;  %v14794_v9 = vunpack.c.h.bf16 %v14791_v29  ;;  %v14802_v29 = vld [vmem:[#allocation17_spill] sm:$0xff]  ;;  %v10957_v61 = vsel %vm10856_vm10, %v10774_v16, %v2406_v62  ;;  %v10973_v16 = vadd.f32 %v10331_v46, %v2431_v38  ;;  %v14849_v46 = vld [vmem:[#allocation167_spill] sm:$0xff] }
 0x400   :  { %14786 = vst [vmem:[#allocation193_spill] sm:$0xff] %v10892_v17  ;;  %v10908_v36 = vsub.f32 %v14788_v48, %v3525_v15  ;;  %v10910_v7 = vpop.eup %5693  ;;  %5705 = vpow2.f32 %v3683_v35  ;;  %v10919_v28 = vsub.f32 %v14792_v58, %v3519_v21  ;;  %v3999_v15 = vadd.f32 %v3936_v24, %v3935_v22  ;;  %v14796_v35 = vld [vmem:[#allocation91_spill] sm:$0xff]  ;;  %v14798_v48 = vld [vmem:[#allocation174_spill] sm:$0xff]  ;;  %v14801_v22 = vld [vmem:[#allocation120_spill] sm:$0xff] }
 0x401   :  { %v10921_v63 = vpop.eup %5695  ;;  %5707 = vpow2.f32 %v3685_v19  ;;  %v10930_v57 = vsub.f32 %v14794_v9, %v3519_v21  ;;  %v2202_v52 = vmul.f32 %v10123_v5, %v14796_v35  ;;  %v10938_v58 = vmul.f32 %v10158_v45, %v14797_v18  ;;  %v14800_v21 = vld [vmem:[#allocation175_spill] sm:$0xff]  ;;  %v14803_v18 = vld [vmem:[#allocation177_spill] sm:$0xff]  ;;  %14806 = vst [vmem:[#allocation77_spill] sm:$0xff] %v10973_v16 }
 0x402   :  { %14789 = vst [vmem:[#allocation114_spill] sm:$0xff] %v10908_v36  ;;  %v10932_v1 = vpop.eup %5697  ;;  %5709 = vlog2.f32 %v14798_v48  ;;  %v3695_v2 = vmul.f32 1.442695, %v10892_v17  ;;  %v3875_v24 = vsub.f32 %v10553_v33, %v14801_v22  ;;  %v3876_v5 = vsub.f32 %v10557_v60, %v14802_v29  ;;  %4000 = vadd.xlane.f32.xlu0 %v3999_v15  ;;  %v14804_v22 = vld [vmem:[#allocation130_spill] sm:$0xff]  ;;  %v14847_v16 = vld [vmem:[#allocation169_spill] sm:$0xff]  ;;  %v14874_v17 = vld [vmem:[#allocation16_spill] sm:$0xff] }
 0x403   :  { %14795 = vst [vmem:[#allocation110_spill] sm:$0xff] %v10932_v1  ;;  %v10942_v19 = vpop.eup %5699  ;;  %5711 = vlog2.f32 %v14800_v21  ;;  %v3697_v9 = vmul.f32 1.442695, %v10908_v36  ;;  %v2523_v35 = vsub.f32 %v10914_v31, %v10115_v14  ;;  %v3687_v33 = vmul.f32 1.442695, %v10919_v28 }
 0x404   :  { %14799 = vst [vmem:[#allocation196_spill] sm:$0xff] %v10942_v19  ;;  %v10950_v45 = vpop.eup %5701  ;;  %5713 = vlog2.f32 %v14803_v18  ;;  %v3939_v60 = vmul.f32 %v10677_v47, %v3875_v24  ;;  %v3940_v15 = vmul.f32 %v10688_v32, %v3876_v5  ;;  %v3689_v21 = vmul.f32 1.442695, %v10930_v57  ;;  %v14838_v19 = vld [vmem:[#allocation187_spill] sm:$0xff] }
 0x405   :  { %v10961_v48 = vpop.eup %5703  ;;  %v14805_v29 = vunpack.c.l.bf16 %v14804_v22  ;;  %5715 = vpow2.f32 %v3695_v2  ;;  %v14807_v55 = vunpack.c.h.bf16 %v14804_v22  ;;  %v2521_v24 = vsub.f32 %v10925_v54, %v10121_v43  ;;  %v14808_v2 = vld [vmem:[#allocation19_spill] sm:$0xff]  ;;  %v14809_v22 = vld [vmem:[#allocation72_spill] sm:$0xff] }
 0x406   :  { %v10970_v31 = vpop.eup %5705  ;;  %v3799_v47 = vadd.f32 %v10961_v48, %v10950_v45  ;;  %v2522_v5 = vsub.f32 %v2202_v52, %v10149_v10  ;;  %v2526_v18 = vsub.f32 %v10938_v58, %v10164_v41  ;;  %5717 = vpow2.f32 %v3697_v9  ;;  %v14810_v10 = vld [vmem:[#allocation78_spill] sm:$0xff] }
 0x407   :  { %v10968_v14 = vsub.f32 %v14805_v29, %v3522_v49  ;;  %v10977_v62 = vsub.f32 %v14807_v55, %v3522_v49  ;;  %v10981_v32 = vpop.eup %5707  ;;  %v3873_v49 = vsub.f32 %v10528_v56, %v14808_v2  ;;  %v3874_v29 = vsub.f32 %v10532_v20, %v14809_v22  ;;  %v14814_v20 = vld [vmem:[#allocation180_spill] sm:$0xff]  ;;  %v3528_v22 = vpop.xlane.xlu1 %3527 }
 0x408   :  { %v10988_v38 = vpop.eup %5709  ;;  %5719 = vpow2.f32 %v3687_v33  ;;  %3800 = vadd.xlane.f32.xlu1 %v3799_v47  ;;  %v3802_v55 = vadd.f32 %v10981_v32, %v10970_v31  ;;  %v11000_v54 = vmul.f32 %v10208_v6, %v14810_v10  ;;  %v4005_v52 = vadd.f32 %v3940_v15, %v3939_v60 }
 0x409   :  { %v10996_v43 = vpop.eup %5711  ;;  %5721 = vpow2.f32 %v3689_v21  ;;  %v3691_v41 = vmul.f32 1.442695, %v10968_v14  ;;  %v14811_v56 = vmov 0  ;;  %v3937_v9 = vmul.f32 %v10603_v37, %v3873_v49  ;;  %v14818_v37 = vld [vmem:[#allocation182_spill] sm:$0xff] }
 0x40a   :  { %v11003_v58 = vpop.eup %5713  ;;  %v14812_v56 = vsel %vm11009_vm14, 4294967295, %v14811_v56  ;;  %5723 = vlog2.f32 %v14814_v20  ;;  %v3938_v6 = vmul.f32 %v10617_v30, %v3874_v29  ;;  %v3693_v33 = vmul.f32 1.442695, %v10977_v62  ;;  %3803 = vadd.xlane.f32.xlu2 %v3802_v55  ;;  %v3534_v30 = vpop.xlane.xlu0 %3533  ;;  %4006 = vadd.xlane.f32.xlu0 %v4005_v52  ;;  %v14827_v52 = vld [vmem:[#allocation147_spill] sm:$0xff] }
 0x40b   :  { %14813 = vst [vmem:[#allocation155_spill] sm:$0xff] %v14812_v56  ;;  %v14815_v60 = vsub.f32 %v10849_v0, %v14781_v34  ;;  %v11024_v21 = vadd.f32 %v2523_v35, %v10534_v4  ;;  %5725 = vlog2.f32 %v14818_v37  ;;  %v11031_v2 = vpop.eup %5715  ;;  %v11034_v49 = vmul.f32 0.6931472, %v10763_v39  ;;  %v14820_v0 = vld [vmem:[#allocation221_spill] sm:$0xff]  ;;  %v14822_v34 = vld [vmem:[#allocation224_spill] sm:$0xff]  ;;  %v14824_v35 = vld [vmem:[#allocation183_spill] sm:$0xff] }
 0x40c   :  { %14819 = vst [vmem:[#allocation95_spill] sm:$0xff] %v11031_v2  ;;  %v11040_v4 = vadd.f32 %v2522_v5, %v14822_v34  ;;  %5727 = vlog2.f32 %v14824_v35  ;;  %v11043_v29 = vpop.eup %5717  ;;  %v11046_v55 = vmul.f32 0.6931472, %v10821_v27  ;;  %v11049_v10 = vadd.f32 %v2526_v18, %v10795_v50  ;;  %v14828_v20 = vld [vmem:[#allocation63_spill] sm:$0xff]  ;;  %v14829_v5 = vld [vmem:[#allocation148_spill] sm:$0xff]  ;;  %v14830_v37 = vld [vmem:[#allocation125_spill] sm:$0xff] }
 0x40d   :  { %v11021_v15 = vadd.f32 %v14815_v60, %v10292_v42  ;;  %14817 = vst [vmem:[#allocation51_spill] sm:$0xff] %v11024_v21  ;;  %v11037_v42 = vadd.f32 %v2521_v24, %v14820_v0  ;;  %v2525_v39 = vsub.f32 %v11000_v54, %v14827_v52  ;;  %5729 = vpow2.f32 %v3691_v41  ;;  %v14834_v50 = vld [vmem:[#allocation67_spill] sm:$0xff]  ;;  %v14835_v18 = vld [vmem:[#allocation210_spill] sm:$0xff]  ;;  %v14837_v41 = vld [vmem:[#allocation145_spill] sm:$0xff] }
 0x40e   :  { %14823 = vst [vmem:[#allocation61_spill] sm:$0xff] %v11040_v4  ;;  %v11053_v24 = vpop.eup %5719  ;;  %v11057_v60 = vmul.f32 %v14829_v5, %v14828_v20  ;;  %5731 = vpow2.f32 %v3693_v33  ;;  %v14831_v0 = vunpack.c.l.bf16 %v14830_v37  ;;  %v4002_v27 = vadd.f32 %v3938_v6, %v3937_v9  ;;  %v14836_v54 = vld [vmem:[#allocation83_spill] sm:$0xff]  ;;  %v14839_v20 = vld [vmem:[#allocation158_spill] sm:$0xff]  ;;  %v14854_v21 = vld [vmem:[#allocation124_spill] sm:$0xff] }
 0x40f   :  { %14816 = vst [vmem:[#allocation59_spill] sm:$0xff] %v11021_v15  ;;  %v11063_v35 = vpop.eup %5721  ;;  %v11067_v47 = vmul.f32 %v14835_v18, %v14834_v50  ;;  %v11071_v52 = vmul.f32 %v14837_v41, %v14836_v54  ;;  %5733 = vlog2.f32 %v14838_v19  ;;  %v14840_v5 = vunpack.c.l.bf16 %v14839_v20  ;;  %v14845_v54 = vld [vmem:[#allocation101_spill] sm:$0xff]  ;;  %v14846_v41 = vld [vmem:[#allocation138_spill] sm:$0xff] }
 0x410   :  { %14821 = vst [vmem:[#allocation96_spill] sm:$0xff] %v11037_v42  ;;  %v11061_v34 = vsub.f32 %v14831_v0, %v3534_v30  ;;  %v11078_v1 = vpop.eup %5723  ;;  %v14842_v0 = vld [vmem:[#allocation191_spill] sm:$0xff]  ;;  %v14843_v9 = vunpack.c.h.bf16 %v14839_v20  ;;  %4003 = vadd.xlane.f32.xlu1 %v4002_v27  ;;  %v3805_v50 = vadd.f32 %v11063_v35, %v11053_v24  ;;  %v3811_v18 = vadd.f32 %v11043_v29, %v11031_v2  ;;  %v14855_v42 = vld [vmem:[#allocation73_spill] sm:$0xff] }
 0x411   :  { %14825 = vst [vmem:[#allocation18_spill] sm:$0xff] %v11043_v29  ;;  %v11076_v33 = vsub.f32 %v14840_v5, %v3528_v22  ;;  %5735 = vlog2.f32 %v14842_v0  ;;  %v11089_v19 = vpop.eup %5725  ;;  %v11093_v5 = vmul.f32 %v14846_v41, %v14845_v54  ;;  %v14848_v0 = vld [vmem:[#allocation79_spill] sm:$0xff]  ;;  %v14856_v54 = vld [vmem:[#allocation156_spill] sm:$0xff] }
 0x412   :  { %14826 = vst [vmem:[#allocation203_spill] sm:$0xff] %v11049_v10  ;;  %v11083_v6 = vsub.f32 %v14843_v9, %v3528_v22  ;;  %5737 = vlog2.f32 %v14847_v16  ;;  %v3877_v20 = vsub.f32 %v14849_v46, %v14848_v0  ;;  %v14850_v22 = vunpack.c.h.bf16 %v14830_v37  ;;  %v3531_v9 = vpop.xlane.xlu2 %3530  ;;  %v11102_v56 = vpop.eup %5727  ;;  %v14853_v10 = vld [vmem:[#allocation82_spill] sm:$0xff]  ;;  %3806 = vadd.xlane.f32.xlu2 %v3805_v50  ;;  %v14857_v46 = vld [vmem:[#allocation199_spill] sm:$0xff]  ;;  %3812 = vadd.xlane.f32.xlu0 %v3811_v18 }
 0x413   :  { %14832 = vst [vmem:[#allocation123_spill] sm:$0xff] %v11061_v34  ;;  %5739 = vlog2.f32 %v14852_v40  ;;  %v3878_v4 = vsub.f32 %v14854_v21, %v14853_v10  ;;  %v3881_v41 = vsub.f32 %v14856_v54, %v14855_v42  ;;  %v3707_v16 = vmul.f32 1.442695, %v11061_v34  ;;  %v11110_v15 = vpop.eup %5729  ;;  %v14859_v0 = vld [vmem:[#allocation15_spill] sm:$0xff]  ;;  %v14861_v21 = vld [vmem:[#allocation116_spill] sm:$0xff]  ;;  %v14862_v54 = vld [vmem:[#allocation173_spill] sm:$0xff] }
 0x414   :  { %14833 = vst [vmem:[#allocation85_spill] sm:$0xff] %v11063_v35  ;;  %v11100_v27 = vsub.f32 %v14850_v22, %v3534_v30  ;;  %5741 = vlog2.f32 %v14857_v46  ;;  %v14858_v30 = vld [vmem:[#allocation115_spill] sm:$0xff]  ;;  %v3699_v40 = vmul.f32 1.442695, %v11076_v33  ;;  %v11117_v2 = vpop.eup %5731  ;;  %v3701_v50 = vmul.f32 1.442695, %v11083_v6 }
 0x415   :  { %14841 = vst [vmem:[#allocation117_spill] sm:$0xff] %v11076_v33  ;;  %v3941_v37 = vmul.f32 %v14858_v30, %v3877_v20  ;;  %v14860_v22 = vld [vmem:[#allocation159_spill] sm:$0xff]  ;;  %v3942_v10 = vmul.f32 %v14861_v21, %v3878_v4  ;;  %v3945_v42 = vmul.f32 %v10784_v26, %v3881_v41  ;;  %v14863_v34 = vunpack.c.l.bf16 %v14862_v54  ;;  %v11126_v46 = vpop.eup %5733  ;;  %v14869_v21 = vld [vmem:[#allocation80_spill] sm:$0xff] }
 0x416   :  { %14844 = vst [vmem:[#allocation99_spill] sm:$0xff] %v11083_v6  ;;  %v3882_v29 = vsub.f32 %v14860_v22, %v14859_v0  ;;  %v3709_v30 = vmul.f32 1.442695, %v11100_v27  ;;  %v14865_v18 = vunpack.c.h.bf16 %v14862_v54  ;;  %v3808_v4 = vadd.f32 %v11117_v2, %v11110_v15  ;;  %v14870_v6 = vld [vmem:[#allocation161_spill] sm:$0xff] }
 0x417   :  { %14851 = vst [vmem:[#allocation91_spill] sm:$0xff] %v11100_v27  ;;  %v11124_v36 = vsub.f32 %v14863_v34, %v3531_v9  ;;  %v11136_v26 = vpop.eup %5735  ;;  %v11139_v41 = vadd.f32 %v2525_v39, %v10771_v44  ;;  %v14868_v34 = vld [vmem:[#allocation208_spill] sm:$0xff]  ;;  %5743 = vpow2.f32 %v3707_v16  ;;  %v14871_v54 = vld [vmem:[#allocation133_spill] sm:$0xff]  ;;  %v14875_v39 = vld [vmem:[#allocation126_spill] sm:$0xff]  ;;  %v4008_v16 = vadd.f32 %v3942_v10, %v3941_v37 }
 0x418   :  { %v3946_v20 = vmul.f32 %v10812_v11, %v3882_v29  ;;  %v11132_v0 = vsub.f32 %v14865_v18, %v3531_v9  ;;  %v2529_v22 = vsub.f32 %v11057_v60, %v14868_v34  ;;  %v2352_v11 = vmul.f32 %v14870_v6, %v14869_v21  ;;  %v11145_v29 = vpop.eup %5737  ;;  %v14872_v18 = vld [vmem:[#allocation212_spill] sm:$0xff]  ;;  %v14873_v27 = vld [vmem:[#allocation21_spill] sm:$0xff]  ;;  %v14876_v60 = vld [vmem:[#allocation171_spill] sm:$0xff]  ;;  %3809 = vadd.xlane.f32.xlu1 %v3808_v4 }
 0x419   :  { %14864 = vst [vmem:[#allocation86_spill] sm:$0xff] %v11124_v36  ;;  %v2524_v9 = vsub.f32 %v11067_v47, %v14871_v54  ;;  %v2528_v33 = vsub.f32 %v11071_v52, %v14872_v18  ;;  %v3879_v35 = vsub.f32 %v14874_v17, %v14873_v27  ;;  %5745 = vpow2.f32 %v3699_v40  ;;  %v11153_v44 = vpop.eup %5739  ;;  %v14877_v47 = vld [vmem:[#allocation216_spill] sm:$0xff]  ;;  %v14879_v18 = vld [vmem:[#allocation201_spill] sm:$0xff] }
 0x41a   :  { %14866 = vst [vmem:[#allocation174_spill] sm:$0xff] %v11132_v0  ;;  %v3880_v34 = vsub.f32 %v14876_v60, %v14875_v39  ;;  %5747 = vpow2.f32 %v3701_v50  ;;  %v3703_v6 = vmul.f32 1.442695, %v11124_v36  ;;  %v11158_v21 = vpop.eup %5741  ;;  %v2527_v54 = vsub.f32 %v11093_v5, %v14877_v47  ;;  %v14878_v27 = vld [vmem:[#allocation140_spill] sm:$0xff]  ;;  %v3543_v60 = vpop.xlane.xlu0 %3542  ;;  %4009 = vadd.xlane.f32.xlu2 %v4008_v16  ;;  %v14882_v5 = vld [vmem:[#allocation102_spill] sm:$0xff]  ;;  %v14939_v36 = vld [vmem:[#allocation93_spill] sm:$0xff] }
 0x41b   :  { %14867 = vst [vmem:[#allocation175_spill] sm:$0xff] %v11139_v41  ;;  %5749 = vpow2.f32 %v3709_v30  ;;  %v3705_v52 = vmul.f32 1.442695, %v11132_v0  ;;  %v4014_v17 = vadd.f32 %v3946_v20, %v3945_v42  ;;  %v2532_v40 = vsub.f32 %v2352_v11, %v14878_v27  ;;  %v14880_v37 = vld [vmem:[#allocation168_spill] sm:$0xff]  ;;  %v14883_v30 = vld [vmem:[#allocation218_spill] sm:$0xff]  ;;  %v14884_v42 = vld [vmem:[#allocation37_spill] sm:$0xff]  ;;  %v3537_v20 = vpop.xlane.xlu1 %3536 }
 0x41c   :  { %5751 = vlog2.f32 %v14879_v18  ;;  %v3943_v39 = vmul.f32 %v10769_v59, %v3879_v35  ;;  %v3944_v50 = vmul.f32 %v10777_v12, %v3880_v34  ;;  %v11168_v10 = vmul.f32 0.6931472, %v14880_v37  ;;  %v14886_v12 = vld [vmem:[#allocation90_spill] sm:$0xff]  ;;  %v14919_v41 = vld [vmem:[#allocation207_spill] sm:$0xff] }
 0x41d   :  { %v11171_v4 = vadd.f32 %v2529_v22, %v11046_v55  ;;  %v11175_v47 = vmul.f32 %v14883_v30, %v14882_v5  ;;  %5753 = vlog2.f32 %v14884_v42  ;;  %4015 = vadd.xlane.f32.xlu0 %v4014_v17  ;;  %v11178_v11 = vpop.eup %5743  ;;  %v11181_v59 = vmul.f32 0.6931472, %v10844_v53  ;;  %v14890_v16 = vld [vmem:[#allocation94_spill] sm:$0xff]  ;;  %v14892_v17 = vld [vmem:[#allocation139_spill] sm:$0xff]  ;;  %v14897_v5 = vld [vmem:[#allocation205_spill] sm:$0xff] }
 0x41e   :  { %14885 = vst [vmem:[#allocation17_spill] sm:$0xff] %v11178_v11  ;;  %v11184_v35 = vadd.f32 %v2524_v9, %v14886_v12  ;;  %v1246_v34 = vmul.f32 0.6931472, %v10853_v23  ;;  %5755 = vpow2.f32 %v3703_v6  ;;  %v11190_v22 = vadd.f32 %v2528_v33, %v11034_v49  ;;  %v14898_v23 = vld [vmem:[#allocation178_spill] sm:$0xff] }
 0x41f   :  { %14881 = vst [vmem:[#allocation120_spill] sm:$0xff] %v11171_v4  ;;  %v11187_v55 = vpop.eup %5745  ;;  %v11193_v27 = vadd.f32 %v2527_v54, %v14890_v16  ;;  %5757 = vpow2.f32 %v3705_v52  ;;  %v14893_v18 = vunpack.c.l.bf16 %v14892_v17  ;;  %v14899_v6 = vunpack.c.l.bf16 %v14898_v23  ;;  %v14902_v54 = vld [vmem:[#allocation219_spill] sm:$0xff]  ;;  %v14903_v42 = vld [vmem:[#allocation206_spill] sm:$0xff]  ;;  %v14913_v4 = vld [vmem:[#allocation129_spill] sm:$0xff] }
 0x420   :  { %14887 = vst [vmem:[#allocation177_spill] sm:$0xff] %v11184_v35  ;;  %v11199_v53 = vpop.eup %5747  ;;  %v11201_v9 = vadd.f32 %v2532_v40, %v1246_v34  ;;  %5759 = vlog2.f32 %v14897_v5  ;;  %v4011_v49 = vadd.f32 %v3944_v50, %v3943_v39  ;;  %v14904_v12 = vunpack.c.h.bf16 %v14898_v23  ;;  %v14907_v5 = vld [vmem:[#allocation151_spill] sm:$0xff]  ;;  %v14908_v39 = vld [vmem:[#allocation128_spill] sm:$0xff] }
 0x421   :  { %14888 = vst [vmem:[#allocation130_spill] sm:$0xff] %v11187_v55  ;;  %v11197_v37 = vsub.f32 %v14893_v18, %v3543_v60  ;;  %v11206_v30 = vsub.f32 %v14899_v6, %v3537_v20  ;;  %v11208_v33 = vpop.eup %5749  ;;  %5761 = vlog2.f32 %v14903_v42  ;;  %v3814_v40 = vadd.f32 %v11199_v53, %v11187_v55  ;;  %v14906_v18 = vld [vmem:[#allocation100_spill] sm:$0xff]  ;;  %v14911_v42 = vld [vmem:[#allocation111_spill] sm:$0xff] }
 0x422   :  { %14889 = vst [vmem:[#allocation19_spill] sm:$0xff] %v11190_v22  ;;  %v11215_v16 = vsub.f32 %v14904_v12, %v3537_v20  ;;  %v11219_v34 = vpop.eup %5751  ;;  %v11223_v6 = vmul.f32 %v14907_v5, %v14906_v18  ;;  %5763 = vlog2.f32 %v14908_v39  ;;  %v14909_v50 = vunpack.c.h.bf16 %v14892_v17  ;;  %4012 = vadd.xlane.f32.xlu1 %v4011_v49  ;;  %v14912_v12 = vld [vmem:[#allocation121_spill] sm:$0xff]  ;;  %v14914_v22 = vld [vmem:[#allocation107_spill] sm:$0xff]  ;;  %v14915_v18 = vld [vmem:[#allocation48_spill] sm:$0xff] }
 0x423   :  { %14891 = vst [vmem:[#allocation72_spill] sm:$0xff] %v11193_v27  ;;  %v3820_v20 = vadd.f32 %v11208_v33, %v11178_v11  ;;  %v11232_v23 = vpop.eup %5753  ;;  %5765 = vlog2.f32 %v14913_v4  ;;  %v3883_v5 = vsub.f32 %v14915_v18, %v14914_v22  ;;  %v3719_v39 = vmul.f32 1.442695, %v11197_v37  ;;  %v3540_v27 = vpop.xlane.xlu2 %3539  ;;  %v14918_v49 = vld [vmem:[#allocation170_spill] sm:$0xff]  ;;  %v14920_v35 = vld [vmem:[#allocation108_spill] sm:$0xff]  ;;  %3815 = vadd.xlane.f32.xlu2 %v3814_v40  ;;  %v14925_v11 = vld [vmem:[#allocation23_spill] sm:$0xff] }
 0x424   :  { %14894 = vst [vmem:[#allocation78_spill] sm:$0xff] %v11197_v37  ;;  %v11228_v52 = vsub.f32 %v14909_v50, %v3543_v60  ;;  %v11240_v17 = vpop.eup %5755  ;;  %v14917_v60 = vld [vmem:[#allocation122_spill] sm:$0xff]  ;;  %5767 = vlog2.f32 %v14919_v41  ;;  %v14927_v40 = vld [vmem:[#allocation179_spill] sm:$0xff] }
 0x425   :  { %14895 = vst [vmem:[#allocation180_spill] sm:$0xff] %v11199_v53  ;;  %v2367_v50 = vmul.f32 %v14918_v49, %v14917_v60  ;;  %v11248_v4 = vpop.eup %5757  ;;  %v3947_v22 = vmul.f32 %v10865_v51, %v3883_v5  ;;  %v14924_v18 = vld [vmem:[#allocation38_spill] sm:$0xff]  ;;  %v3713_v60 = vmul.f32 1.442695, %v11215_v16  ;;  %3821 = vadd.xlane.f32.xlu0 %v3820_v20  ;;  %v14928_v49 = vunpack.c.l.bf16 %v14927_v40 }
 0x426   :  { %14896 = vst [vmem:[#allocation182_spill] sm:$0xff] %v11201_v9  ;;  %v2382_v9 = vmul.f32 %v14912_v12, %v14911_v42  ;;  %v3711_v42 = vmul.f32 1.442695, %v11206_v30  ;;  %v14923_v12 = vld [vmem:[#allocation106_spill] sm:$0xff]  ;;  %v11256_v41 = vpop.eup %5759  ;;  %v3817_v51 = vadd.f32 %v11248_v4, %v11240_v17  ;;  %5769 = vpow2.f32 %v3719_v39 }
 0x427   :  { %14900 = vst [vmem:[#allocation221_spill] sm:$0xff] %v11206_v30  ;;  %v3887_v55 = vsub.f32 %v14924_v18, %v14923_v12  ;;  %v14926_v37 = vld [vmem:[#allocation42_spill] sm:$0xff]  ;;  %v11262_v30 = vsub.f32 %v14928_v49, %v3540_v27  ;;  %v11266_v5 = vpop.eup %5761  ;;  %v14929_v20 = vunpack.c.h.bf16 %v14927_v40  ;;  %v14931_v18 = vld [vmem:[#allocation105_spill] sm:$0xff]  ;;  %v14932_v49 = vld [vmem:[#allocation164_spill] sm:$0xff] }
 0x428   :  { %14901 = vst [vmem:[#allocation224_spill] sm:$0xff] %v11208_v33  ;;  %v14921_v33 = vld [vmem:[#allocation185_spill] sm:$0xff]  ;;  %v3888_v0 = vsub.f32 %v14926_v37, %v14925_v11  ;;  %5771 = vpow2.f32 %v3711_v42  ;;  %v14936_v39 = vld [vmem:[#allocation22_spill] sm:$0xff] }
 0x429   :  { %14905 = vst [vmem:[#allocation183_spill] sm:$0xff] %v11215_v16  ;;  %v3884_v53 = vsub.f32 %v14921_v33, %v14920_v35  ;;  %v3721_v33 = vmul.f32 1.442695, %v11228_v52  ;;  %v3951_v11 = vmul.f32 %v10950_v45, %v3887_v55  ;;  %v11272_v12 = vsub.f32 %v14929_v20, %v3540_v27  ;;  %v14934_v45 = vld [vmem:[#allocation32_spill] sm:$0xff]  ;;  %v14937_v27 = vld [vmem:[#allocation163_spill] sm:$0xff]  ;;  %v14940_v42 = vld [vmem:[#allocation141_spill] sm:$0xff] }
 0x42a   :  { %14910 = vst [vmem:[#allocation147_spill] sm:$0xff] %v11228_v52  ;;  %v3952_v37 = vmul.f32 %v10961_v48, %v3888_v0  ;;  %v2397_v16 = vmul.f32 %v14932_v49, %v14931_v18  ;;  %v14933_v52 = vld [vmem:[#allocation152_spill] sm:$0xff]  ;;  %v2534_v48 = vsub.f32 %v2382_v9, %v14934_v45  ;;  %v14935_v0 = vld [vmem:[#allocation181_spill] sm:$0xff]  ;;  %v3885_v40 = vsub.f32 %v14937_v27, %v14936_v39 }
 0x42b   :  { %14916 = vst [vmem:[#allocation63_spill] sm:$0xff] %v11240_v17  ;;  %v3948_v35 = vmul.f32 %v10872_v13, %v3884_v53  ;;  %v11274_v13 = vpop.eup %5763  ;;  %v1248_v53 = vmul.f32 0.6931472, %v10878_v25  ;;  %v2533_v55 = vsub.f32 %v2367_v50, %v14935_v0  ;;  %5773 = vpow2.f32 %v3713_v60  ;;  %v14938_v25 = vld [vmem:[#allocation118_spill] sm:$0xff]  ;;  %3818 = vadd.xlane.f32.xlu1 %v3817_v51  ;;  %v14941_v60 = vld [vmem:[#allocation143_spill] sm:$0xff]  ;;  %v14942_v45 = vld [vmem:[#allocation81_spill] sm:$0xff] }
 0x42c   :  { %14922 = vst [vmem:[#allocation148_spill] sm:$0xff] %v11248_v4  ;;  %v2530_v4 = vsub.f32 %v11223_v6, %v14933_v52  ;;  %v11281_v17 = vpop.eup %5765  ;;  %5775 = vpow2.f32 %v3721_v33  ;;  %v3715_v18 = vmul.f32 1.442695, %v11262_v30  ;;  %v1252_v6 = vmul.f32 0.6931472, %v10910_v7  ;;  %v14943_v39 = vld [vmem:[#allocation189_spill] sm:$0xff]  ;;  %v3552_v33 = vpop.xlane.xlu0 %3551 }
 0x42d   :  { %14930 = vst [vmem:[#allocation125_spill] sm:$0xff] %v11274_v13  ;;  %v11287_v20 = vpop.eup %5767  ;;  %v3886_v13 = vsub.f32 %v14939_v36, %v14938_v25  ;;  %v4017_v52 = vadd.f32 %v3948_v35, %v3947_v22  ;;  %5777 = vlog2.f32 %v14940_v42  ;;  %v3717_v9 = vmul.f32 1.442695, %v11272_v12  ;;  %v14946_v35 = vld [vmem:[#allocation127_spill] sm:$0xff]  ;;  %v14957_v42 = vld [vmem:[#allocation142_spill] sm:$0xff] }
 0x42e   :  { %v4023_v50 = vadd.f32 %v3952_v37, %v3951_v11  ;;  %v1250_v49 = vmul.f32 0.6931472, %v10896_v8  ;;  %5779 = vlog2.f32 %v14941_v60  ;;  %v3949_v0 = vmul.f32 %v14942_v45, %v3885_v40  ;;  %v11299_v27 = vpop.eup %5769  ;;  %v14948_v11 = vld [vmem:[#allocation135_spill] sm:$0xff]  ;;  %v3546_v37 = vpop.xlane.xlu1 %3545 }
 0x42f   :  { %v3950_v36 = vmul.f32 %v14943_v39, %v3886_v13  ;;  %4018 = vadd.xlane.f32.xlu2 %v4017_v52  ;;  %v14944_v7 = vsub.f32 %v11175_v47, %v14902_v54  ;;  %v2535_v51 = vsub.f32 %v2397_v16, %v14946_v35  ;;  %v11309_v8 = vadd.f32 %v2530_v4, %v11168_v10  ;;  %v11312_v13 = vpop.eup %5771  ;;  %v14951_v52 = vld [vmem:[#allocation60_spill] sm:$0xff]  ;;  %v14954_v10 = vld [vmem:[#allocation54_spill] sm:$0xff]  ;;  %v14963_v39 = vld [vmem:[#allocation209_spill] sm:$0xff] }
 0x430   :  { %5781 = vlog2.f32 %v14948_v11  ;;  %4024 = vadd.xlane.f32.xlu0 %v4023_v50  ;;  %v11314_v40 = vadd.f32 %v2534_v48, %v1250_v49  ;;  %v11316_v25 = vadd.f32 %v2533_v55, %v1248_v53  ;;  %v11320_v47 = vmul.f32 %v10957_v61, %v14951_v52  ;;  %v14955_v16 = vld [vmem:[#allocation166_spill] sm:$0xff]  ;;  %v14959_v55 = vld [vmem:[#allocation136_spill] sm:$0xff] }
 0x431   :  { %v11305_v22 = vadd.f32 %v14944_v7, %v11181_v59  ;;  %14947 = vst [vmem:[#allocation210_spill] sm:$0xff] %v11309_v8  ;;  %5783 = vpow2.f32 %v3715_v18  ;;  %v11322_v59 = vpop.eup %5773  ;;  %v11324_v54 = vadd.f32 %v2535_v51, %v1252_v6  ;;  %v11328_v4 = vmul.f32 %v14955_v16, %v14954_v10  ;;  %v14960_v61 = vld [vmem:[#allocation184_spill] sm:$0xff]  ;;  %v14966_v10 = vld [vmem:[#allocation211_spill] sm:$0xff]  ;;  %v15013_v8 = vld [vmem:[#allocation193_spill] sm:$0xff] }
 0x432   :  { %14949 = vst [vmem:[#allocation83_spill] sm:$0xff] %v11314_v40  ;;  %5785 = vpow2.f32 %v3717_v9  ;;  %v14958_v50 = vunpack.c.l.bf16 %v14957_v42  ;;  %v11334_v53 = vpop.eup %5775  ;;  %v14961_v49 = vunpack.c.l.bf16 %v14960_v61  ;;  %v4020_v60 = vadd.f32 %v3950_v36, %v3949_v0 }
 0x433   :  { %14945 = vst [vmem:[#allocation67_spill] sm:$0xff] %v11305_v22  ;;  %5787 = vlog2.f32 %v14959_v55  ;;  %v3823_v6 = vadd.f32 %v11322_v59, %v11312_v13  ;;  %v11343_v45 = vpop.eup %5777  ;;  %v11346_v9 = vmul.f32 0.6931472, %v10921_v63  ;;  %v14964_v7 = vunpack.c.h.bf16 %v14960_v61  ;;  %v14968_v55 = vld [vmem:[#allocation134_spill] sm:$0xff] }
 0x434   :  { %14950 = vst [vmem:[#allocation145_spill] sm:$0xff] %v11316_v25  ;;  %v11332_v48 = vsub.f32 %v14958_v50, %v3552_v33  ;;  %v11339_v18 = vsub.f32 %v14961_v49, %v3546_v37  ;;  %5789 = vlog2.f32 %v14963_v39  ;;  %v3829_v51 = vadd.f32 %v11334_v53, %v11299_v27  ;;  %v11355_v11 = vpop.eup %5779  ;;  %4021 = vadd.xlane.f32.xlu1 %v4020_v60  ;;  %v14969_v61 = vld [vmem:[#allocation26_spill] sm:$0xff]  ;;  %v3549_v39 = vpop.xlane.xlu2 %3548  ;;  %v14971_v60 = vld [vmem:[#allocation132_spill] sm:$0xff] }
 0x435   :  { %14952 = vst [vmem:[#allocation187_spill] sm:$0xff] %v11320_v47  ;;  %v11351_v35 = vsub.f32 %v14964_v7, %v3546_v37  ;;  %v11360_v52 = vmul.f32 0.6931472, %v10988_v38  ;;  %5791 = vlog2.f32 %v14966_v10  ;;  %v14967_v63 = vunpack.c.h.bf16 %v14957_v42  ;;  %v14972_v10 = vld [vmem:[#allocation194_spill] sm:$0xff] }
 0x436   :  { %14953 = vst [vmem:[#allocation158_spill] sm:$0xff] %v11324_v54  ;;  %v11367_v37 = vpop.eup %5781  ;;  %v11370_v50 = vmul.f32 0.6931472, %v10996_v43  ;;  %5793 = vlog2.f32 %v14968_v55  ;;  %v3889_v49 = vsub.f32 %v10828_v3, %v14969_v61  ;;  %v3731_v38 = vmul.f32 1.442695, %v11332_v48  ;;  %v14973_v61 = vld [vmem:[#allocation119_spill] sm:$0xff] }
 0x437   :  { %14956 = vst [vmem:[#allocation191_spill] sm:$0xff] %v11328_v4  ;;  %v11365_v16 = vsub.f32 %v14967_v63, %v3552_v33  ;;  %v11376_v7 = vpop.eup %5783  ;;  %v11379_v42 = vmul.f32 0.6931472, %v11003_v58  ;;  %v14970_v33 = vld [vmem:[#allocation213_spill] sm:$0xff]  ;;  %v3890_v63 = vsub.f32 %v14972_v10, %v14971_v60  ;;  %v3723_v43 = vmul.f32 1.442695, %v11339_v18  ;;  %3824 = vadd.xlane.f32.xlu2 %v3823_v6 }
 0x438   :  { %14962 = vst [vmem:[#allocation101_spill] sm:$0xff] %v11346_v9  ;;  %5795 = vlog2.f32 %v14970_v33  ;;  %v11385_v55 = vpop.eup %5785  ;;  %v3953_v3 = vmul.f32 %v10970_v31, %v3889_v49  ;;  %v3893_v36 = vsub.f32 %v10968_v14, %v14973_v61  ;;  %v14974_v4 = vld [vmem:[#allocation24_spill] sm:$0xff]  ;;  %v3725_v58 = vmul.f32 1.442695, %v11351_v35  ;;  %3830 = vadd.xlane.f32.xlu0 %v3829_v51  ;;  %v14975_v6 = vld [vmem:[#allocation186_spill] sm:$0xff] }
 0x439   :  { %v3894_v54 = vsub.f32 %v10977_v62, %v14974_v4  ;;  %v11393_v33 = vpop.eup %5787  ;;  %v3954_v60 = vmul.f32 %v10981_v32, %v3890_v63  ;;  %v3733_v10 = vmul.f32 1.442695, %v11365_v16  ;;  %v14976_v40 = vunpack.c.l.bf16 %v14975_v6 }
 0x43a   :  { %v3826_v31 = vadd.f32 %v11385_v55, %v11376_v7  ;;  %v5790_v14 = vpop.eup %5789  ;;  %v3957_v49 = vmul.f32 %v11110_v15, %v3893_v36  ;;  %5797 = vpow2.f32 %v3731_v38  ;;  %v14977_v4 = vunpack.c.h.bf16 %v14975_v6  ;;  %v14982_v38 = vld [vmem:[#allocation25_spill] sm:$0xff]  ;;  %v3561_v6 = vpop.xlane.xlu0 %3560 }
 0x43b   :  { %v11399_v0 = vsub.f32 %v14976_v40, %v3549_v39  ;;  %v3958_v62 = vmul.f32 %v11117_v2, %v3894_v54  ;;  %v5792_v32 = vpop.eup %5791  ;;  %v11410_v63 = vmul.f32 0.6931472, %v11078_v1  ;;  %v11413_v40 = vmul.f32 0.6931472, %v11089_v19  ;;  %v14981_v54 = vld [vmem:[#allocation113_spill] sm:$0xff] }
 0x43c   :  { %v11407_v51 = vsub.f32 %v14977_v4, %v3549_v39  ;;  %v11416_v61 = vmul.f32 0.6931472, %v11102_v56  ;;  %5799 = vpow2.f32 %v3723_v43  ;;  %v5794_v47 = vpop.eup %5793  ;;  %v11419_v15 = vmul.f32 0.6931472, %v11126_v46  ;;  %3827 = vadd.xlane.f32.xlu1 %v3826_v31  ;;  %v14984_v46 = vld [vmem:[#allocation149_spill] sm:$0xff] }
 0x43d   :  { %v11422_v2 = vmul.f32 0.6931472, %v11136_v26  ;;  %v3891_v36 = vsub.f32 %v10919_v28, %v14981_v54  ;;  %5801 = vpow2.f32 %v3725_v58  ;;  %v3892_v19 = vsub.f32 %v10930_v57, %v14982_v38  ;;  %v14986_v58 = vld [vmem:[#allocation215_spill] sm:$0xff] }
 0x43e   :  { %14978 = vst [vmem:[#allocation138_spill] sm:$0xff] %v11416_v61  ;;  %v5796_v1 = vpop.eup %5795  ;;  %5803 = vpow2.f32 %v3733_v10  ;;  %v3727_v56 = vmul.f32 1.442695, %v11399_v0  ;;  %v4026_v39 = vadd.f32 %v3954_v60, %v3953_v3  ;;  %v11430_v43 = vmul.f32 0.6931472, %v11145_v29  ;;  %v14987_v10 = vld [vmem:[#allocation85_spill] sm:$0xff] }
 0x43f   :  { %14979 = vst [vmem:[#allocation169_spill] sm:$0xff] %v11419_v15  ;;  %5805 = vlog2.f32 %v14984_v46  ;;  %v3729_v26 = vmul.f32 1.442695, %v11407_v51  ;;  %v4032_v4 = vadd.f32 %v3958_v62, %v3957_v49  ;;  %v11435_v28 = vmul.f32 0.6931472, %v11153_v44  ;;  %v14991_v44 = vld [vmem:[#allocation217_spill] sm:$0xff]  ;;  %v3555_v49 = vpop.xlane.xlu1 %3554 }
 0x440   :  { %14980 = vst [vmem:[#allocation79_spill] sm:$0xff] %v11422_v2  ;;  %5807 = vlog2.f32 %v14986_v58  ;;  %v3955_v57 = vmul.f32 %v11053_v24, %v3891_v36  ;;  %v3956_v54 = vmul.f32 %v14987_v10, %v3892_v19  ;;  %4027 = vadd.xlane.f32.xlu2 %v4026_v39  ;;  %v11440_v3 = vpop.eup %5797  ;;  %v11443_v29 = vmul.f32 0.6931472, %v11158_v21  ;;  %v14994_v21 = vld [vmem:[#allocation125_spill] sm:$0xff]  ;;  %v14998_v39 = vld [vmem:[#allocation144_spill] sm:$0xff]  ;;  %v15072_v61 = vld [vmem:[#allocation50_spill] sm:$0xff] }
 0x441   :  { %14983 = vst [vmem:[#allocation167_spill] sm:$0xff] %v11430_v43  ;;  %v11446_v60 = vmul.f32 0.6931472, %v11219_v34  ;;  %v11449_v31 = vmul.f32 0.6931472, %v11232_v23  ;;  %5809 = vlog2.f32 %v14991_v44  ;;  %4033 = vadd.xlane.f32.xlu0 %v4032_v4  ;;  %v14999_v46 = vunpack.c.l.bf16 %v14998_v39  ;;  %v15001_v58 = vld [vmem:[#allocation192_spill] sm:$0xff] }
 0x442   :  { %14985 = vst [vmem:[#allocation197_spill] sm:$0xff] %v11435_v28  ;;  %v11452_v62 = vpop.eup %5799  ;;  %v11455_v24 = vmul.f32 0.6931472, %v11256_v41  ;;  %v11458_v36 = vmul.f32 0.6931472, %v11266_v5  ;;  %5811 = vpow2.f32 %v3727_v56  ;;  %v15002_v56 = vunpack.c.l.bf16 %v15001_v58  ;;  %v15049_v28 = vld [vmem:[#allocation198_spill] sm:$0xff] }
 0x443   :  { %14988 = vst [vmem:[#allocation82_spill] sm:$0xff] %v11443_v29  ;;  %v11461_v38 = vmul.f32 0.6931472, %v14994_v21  ;;  %v11463_v34 = vpop.eup %5801  ;;  %v11466_v23 = vmul.f32 0.6931472, %v11281_v17  ;;  %5813 = vpow2.f32 %v3729_v26  ;;  %v11473_v41 = vsub.f32 %v14999_v46, %v3561_v6 }
 0x444   :  { %14989 = vst [vmem:[#allocation124_spill] sm:$0xff] %v11446_v60  ;;  %v11469_v19 = vmul.f32 0.6931472, %v11287_v20  ;;  %v11475_v4 = vpop.eup %5803  ;;  %v11478_v5 = vmul.f32 0.6931472, %v11343_v45  ;;  %v11482_v10 = vsub.f32 %v15002_v56, %v3555_v49  ;;  %v4029_v44 = vadd.f32 %v3956_v54, %v3955_v57 }
 0x445   :  { %14990 = vst [vmem:[#allocation73_spill] sm:$0xff] %v11449_v31  ;;  %v3832_v17 = vadd.f32 %v11463_v34, %v11452_v62  ;;  %v5806_v20 = vpop.eup %5805  ;;  %v11487_v26 = vmul.f32 0.6931472, %v11355_v11  ;;  %v11490_v21 = vmul.f32 0.6931472, %v11367_v37  ;;  %v15005_v46 = vunpack.c.h.bf16 %v15001_v58  ;;  %v15033_v31 = vld [vmem:[#allocation39_spill] sm:$0xff] }
 0x446   :  { %14992 = vst [vmem:[#allocation156_spill] sm:$0xff] %v11455_v24  ;;  %v3838_v45 = vadd.f32 %v11475_v4, %v11440_v3  ;;  %v5808_v56 = vpop.eup %5807  ;;  %v11499_v57 = vmul.f32 0.6931472, %v11393_v33  ;;  %v11501_v54 = vmul.f32 0.6931472, %v5790_v14  ;;  %v15009_v11 = vunpack.c.h.bf16 %v14998_v39  ;;  %4030 = vadd.xlane.f32.xlu1 %v4029_v44  ;;  %v15017_v39 = vld [vmem:[#allocation114_spill] sm:$0xff] }
 0x447   :  { %14993 = vst [vmem:[#allocation199_spill] sm:$0xff] %v11458_v36  ;;  %v11494_v9 = vsub.f32 %v15005_v46, %v3555_v49  ;;  %v11503_v25 = vmul.f32 0.6931472, %v5792_v32  ;;  %v5810_v37 = vpop.eup %5809  ;;  %v11509_v58 = vmul.f32 0.6931472, %v5794_v47  ;;  %v15011_v49 = vld [vmem:[#allocation220_spill] sm:$0xff]  ;;  %v15050_v29 = vunpack.c.l.bf16 %v15049_v28 }
 0x448   :  { %14995 = vst [vmem:[#allocation115_spill] sm:$0xff] %v11461_v38  ;;  %v11507_v22 = vsub.f32 %v15009_v11, %v3561_v6  ;;  %5815 = vlog2.f32 %v15011_v49  ;;  %v15012_v46 = vld [vmem:[#allocation30_spill] sm:$0xff]  ;;  %v3743_v33 = vmul.f32 1.442695, %v11473_v41  ;;  %v11515_v14 = vpop.eup %5811  ;;  %v11517_v32 = vmul.f32 0.6931472, %v5796_v1  ;;  %3833 = vadd.xlane.f32.xlu2 %v3832_v17 }
 0x449   :  { %14996 = vst [vmem:[#allocation15_spill] sm:$0xff] %v11466_v23  ;;  %v15016_v6 = vld [vmem:[#allocation137_spill] sm:$0xff]  ;;  %v3735_v47 = vmul.f32 1.442695, %v11482_v10  ;;  %v11523_v11 = vpop.eup %5813  ;;  %v15018_v49 = vld [vmem:[#allocation95_spill] sm:$0xff]  ;;  %3839 = vadd.xlane.f32.xlu0 %v3838_v45 }
 0x44a   :  { %14997 = vst [vmem:[#allocation159_spill] sm:$0xff] %v11469_v19  ;;  %v3896_v44 = vsub.f32 %v15017_v39, %v15016_v6  ;;  %v3737_v1 = vmul.f32 1.442695, %v11494_v9  ;;  %v3745_v6 = vmul.f32 1.442695, %v11507_v22  ;;  %v15024_v39 = vld [vmem:[#allocation195_spill] sm:$0xff] }
 0x44b   :  { %15000 = vst [vmem:[#allocation116_spill] sm:$0xff] %v11478_v5  ;;  %v15021_v5 = vld [vmem:[#allocation27_spill] sm:$0xff]  ;;  %v15025_v17 = vunpack.c.l.bf16 %v15024_v39  ;;  %v11545_v45 = vmul.f32 0.6931472, %v5806_v20  ;;  %v15040_v20 = vld [vmem:[#allocation33_spill] sm:$0xff] }
 0x44c   :  { %15003 = vst [vmem:[#allocation173_spill] sm:$0xff] %v11487_v26  ;;  %v15022_v26 = vld [vmem:[#allocation174_spill] sm:$0xff]  ;;  %v15034_v24 = vld [vmem:[#allocation123_spill] sm:$0xff] }
 0x44d   :  { %15004 = vst [vmem:[#allocation208_spill] sm:$0xff] %v11490_v21  ;;  %v3895_v21 = vsub.f32 %v15013_v8, %v15012_v46  ;;  %v15019_v8 = vld [vmem:[#allocation131_spill] sm:$0xff]  ;;  %v15020_v46 = vld [vmem:[#allocation86_spill] sm:$0xff]  ;;  %v3900_v19 = vsub.f32 %v15022_v26, %v15021_v5  ;;  %v15028_v5 = vunpack.c.h.bf16 %v15024_v39  ;;  %v3901_v60 = vsub.f32 %v15034_v24, %v15033_v31 }
 0x44e   :  { %15006 = vst [vmem:[#allocation80_spill] sm:$0xff] %v11499_v57  ;;  %v3558_v57 = vpop.xlane.xlu2 %3557  ;;  %v15043_v31 = vld [vmem:[#allocation78_spill] sm:$0xff] }
 0x44f   :  { %15007 = vst [vmem:[#allocation161_spill] sm:$0xff] %v11501_v54  ;;  %v3899_v54 = vsub.f32 %v15020_v46, %v15019_v8  ;;  %v11535_v23 = vsub.f32 %v15025_v17, %v3558_v57  ;;  %v15027_v46 = vld [vmem:[#allocation148_spill] sm:$0xff]  ;;  %v11543_v26 = vsub.f32 %v15028_v5, %v3558_v57  ;;  %v11551_v17 = vpop.eup %5815 }
 0x450   :  { %15008 = vst [vmem:[#allocation133_spill] sm:$0xff] %v11503_v25  ;;  %v15015_v25 = vld [vmem:[#allocation222_spill] sm:$0xff]  ;;  %v3964_v36 = vmul.f32 %v15027_v46, %v3900_v19  ;;  %v15038_v46 = vld [vmem:[#allocation117_spill] sm:$0xff] }
 0x451   :  { %15010 = vst [vmem:[#allocation212_spill] sm:$0xff] %v11509_v58  ;;  %5817 = vlog2.f32 %v15015_v25  ;;  %v3959_v58 = vmul.f32 %v15018_v49, %v3895_v21  ;;  %v15023_v25 = vld [vmem:[#allocation18_spill] sm:$0xff]  ;;  %v3835_v21 = vadd.f32 %v11523_v11, %v11515_v14  ;;  %v15026_v49 = vld [vmem:[#allocation63_spill] sm:$0xff] }
 0x452   :  { %15014 = vst [vmem:[#allocation21_spill] sm:$0xff] %v11517_v32  ;;  %v3570_v32 = vpop.xlane.xlu0 %3569  ;;  %v3960_v38 = vmul.f32 %v15023_v25, %v3896_v44  ;;  %v3963_v8 = vmul.f32 %v15026_v49, %v3899_v54  ;;  %5819 = vpow2.f32 %v3743_v33  ;;  %v11547_v44 = vmul.f32 0.6931472, %v5808_v56  ;;  %v15035_v54 = vld [vmem:[#allocation41_spill] sm:$0xff]  ;;  %v15036_v49 = vld [vmem:[#allocation91_spill] sm:$0xff] }
 0x453   :  { %15029 = vst [vmem:[#allocation16_spill] sm:$0xff] %v11545_v45  ;;  %v11549_v25 = vmul.f32 0.6931472, %v5810_v37  ;;  %5821 = vpow2.f32 %v3735_v47  ;;  %v3902_v19 = vsub.f32 %v15036_v49, %v15035_v54  ;;  %v15037_v33 = vld [vmem:[#allocation29_spill] sm:$0xff]  ;;  %v15041_v56 = vld [vmem:[#allocation99_spill] sm:$0xff]  ;;  %v3564_v47 = vpop.xlane.xlu1 %3563  ;;  %3836 = vadd.xlane.f32.xlu1 %v3835_v21  ;;  %v15047_v45 = vld [vmem:[#allocation130_spill] sm:$0xff]  ;;  %v11576_v21 = vsub.f32 %v15050_v29, %v3570_v32 }
 0x454   :  { %15030 = vst [vmem:[#allocation126_spill] sm:$0xff] %v11547_v44  ;;  %v3897_v39 = vsub.f32 %v15038_v46, %v15037_v33  ;;  %5823 = vpow2.f32 %v3737_v1  ;;  %v3898_v5 = vsub.f32 %v15041_v56, %v15040_v20  ;;  %v3739_v37 = vmul.f32 1.442695, %v11535_v23  ;;  %v15042_v44 = vld [vmem:[#allocation56_spill] sm:$0xff]  ;;  %v15045_v54 = vld [vmem:[#allocation147_spill] sm:$0xff]  ;;  %v15046_v46 = vld [vmem:[#allocation17_spill] sm:$0xff] }
 0x455   :  { %15031 = vst [vmem:[#allocation171_spill] sm:$0xff] %v11549_v25  ;;  %5825 = vpow2.f32 %v3745_v6  ;;  %v3907_v24 = vsub.f32 %v15043_v31, %v15042_v44  ;;  %v15044_v25 = vld [vmem:[#allocation58_spill] sm:$0xff]  ;;  %v3741_v33 = vmul.f32 1.442695, %v11543_v26  ;;  %v4041_v1 = vadd.f32 %v3964_v36, %v3963_v8  ;;  %v15048_v6 = vld [vmem:[#allocation180_spill] sm:$0xff]  ;;  %v15053_v31 = vld [vmem:[#allocation221_spill] sm:$0xff] }
 0x456   :  { %15032 = vst [vmem:[#allocation216_spill] sm:$0xff] %v11551_v17  ;;  %v4035_v17 = vadd.f32 %v3960_v38, %v3959_v58  ;;  %v3908_v49 = vsub.f32 %v15045_v54, %v15044_v25  ;;  %v3961_v20 = vmul.f32 %v15047_v45, %v3897_v39  ;;  %v3962_v56 = vmul.f32 %v15048_v6, %v3898_v5  ;;  %v15051_v58 = vld [vmem:[#allocation224_spill] sm:$0xff]  ;;  %v15054_v8 = vld [vmem:[#allocation46_spill] sm:$0xff]  ;;  %v3567_v5 = vpop.xlane.xlu2 %3566 }
 0x457   :  { %v11559_v57 = vpop.eup %5817  ;;  %v11581_v44 = vmul.f32 %v15051_v58, %v3902_v19  ;;  %v15052_v25 = vld [vmem:[#allocation40_spill] sm:$0xff]  ;;  %v15056_v45 = vunpack.c.h.bf16 %v15049_v28  ;;  %4042 = vadd.xlane.f32.xlu0 %v4041_v1  ;;  %v15058_v6 = vld [vmem:[#allocation34_spill] sm:$0xff]  ;;  %5827 = vpow2.f32 %v3739_v37  ;;  %v11604_v28 = vmul.f32 %v11299_v27, %v3907_v24 }
 0x458   :  { %15039 = vst [vmem:[#allocation140_spill] sm:$0xff] %v11559_v57  ;;  %v11570_v57 = vmul.f32 %v15046_v46, %v3901_v60  ;;  %4036 = vadd.xlane.f32.xlu2 %v4035_v17  ;;  %v11578_v38 = vpop.eup %5819  ;;  %v3903_v36 = vsub.f32 %v15053_v31, %v15052_v25  ;;  %v15055_v60 = vld [vmem:[#allocation183_spill] sm:$0xff]  ;;  %v3906_v19 = vsub.f32 %v11272_v12, %v15058_v6  ;;  %v15059_v58 = vld [vmem:[#allocation202_spill] sm:$0xff]  ;;  %5829 = vpow2.f32 %v3741_v33 }
 0x459   :  { %v3904_v54 = vsub.f32 %v15055_v60, %v15054_v8  ;;  %v11589_v39 = vsub.f32 %v15056_v45, %v3570_v32  ;;  %v11591_v29 = vpop.eup %5821  ;;  %v15057_v17 = vld [vmem:[#allocation35_spill] sm:$0xff]  ;;  %v15060_v25 = vunpack.c.l.bf16 %v15059_v58  ;;  %v15062_v60 = vunpack.c.h.bf16 %v15059_v58  ;;  %v15065_v24 = vld [vmem:[#allocation70_spill] sm:$0xff] }
 0x45a   :  { %v3905_v46 = vsub.f32 %v11262_v30, %v15057_v17  ;;  %v11601_v8 = vpop.eup %5823  ;;  %v15061_v32 = vld [vmem:[#allocation71_spill] sm:$0xff]  ;;  %v3573_v45 = vpop.xlane.xlu0 %3572  ;;  %v3755_v37 = vmul.f32 1.442695, %v11576_v21  ;;  %v15063_v17 = vld [vmem:[#allocation204_spill] sm:$0xff]  ;;  %v4038_v43 = vadd.f32 %v3962_v56, %v3961_v20  ;;  %v11634_v20 = vmul.f32 %v11312_v13, %v3903_v36  ;;  %v15070_v36 = vld [vmem:[#allocation57_spill] sm:$0xff] }
 0x45b   :  { %v11599_v31 = vsub.f32 %v15060_v25, %v3564_v47  ;;  %v3913_v1 = vsub.f32 %v11332_v48, %v15061_v32  ;;  %v11610_v30 = vsub.f32 %v15062_v60, %v3564_v47  ;;  %v11612_v12 = vpop.eup %5825  ;;  %v15064_v6 = vunpack.c.l.bf16 %v15063_v17 }
 0x45c   :  { %v3841_v27 = vadd.f32 %v11601_v8, %v11591_v29  ;;  %v3914_v48 = vsub.f32 %v11365_v16, %v15065_v24  ;;  %v3757_v33 = vmul.f32 1.442695, %v11589_v39  ;;  %v15066_v47 = vunpack.c.h.bf16 %v15063_v17  ;;  %4039 = vadd.xlane.f32.xlu1 %v4038_v43  ;;  %v11641_v24 = vpop.xlane.xlu1 %3776 }
 0x45d   :  { %v11617_v25 = vsub.f32 %v15064_v6, %v3567_v5  ;;  %v3847_v32 = vadd.f32 %v11612_v12, %v11578_v38  ;;  %v11631_v60 = vmul.f32 %v11334_v53, %v3908_v49  ;;  %v3747_v56 = vmul.f32 1.442695, %v11599_v31  ;;  %v15067_v6 = vld [vmem:[#allocation153_spill] sm:$0xff]  ;;  %v5828_v13 = vpop.eup %5827 }
 0x45e   :  { %v11626_v58 = vsub.f32 %v15066_v47, %v3567_v5  ;;  %v15068_v15 = vunpack.c.l.bf16 %v15067_v6  ;;  %v11644_v5 = vmul.f32 %v11322_v59, %v3904_v54  ;;  %v3749_v17 = vmul.f32 1.442695, %v11610_v30  ;;  %v5830_v59 = vpop.eup %5829 }
 0x45f   :  { %v15069_v53 = vunpack.c.h.bf16 %v15067_v6  ;;  %5831 = vrcp.f32 %v11641_v24  ;;  %v3909_v47 = vsub.f32 %v11339_v18, %v15070_v36  ;;  %v3751_v2 = vmul.f32 1.442695, %v11617_v25  ;;  %3848 = vadd.xlane.f32.xlu0 %v3847_v32 }
 0x460   :  { %v11639_v16 = vsub.f32 %v15068_v15, %v3573_v45  ;;  %v15071_v15 = vld [vmem:[#allocation64_spill] sm:$0xff]  ;;  %5833 = vpow2.f32 %v3755_v37  ;;  %3842 = vadd.xlane.f32.xlu2 %v3841_v27  ;;  %v3969_v54 = vmul.f32 %v11376_v7, %v3905_v46  ;;  %v3753_v6 = vmul.f32 1.442695, %v11626_v58 }
 0x461   :  { %v11649_v49 = vsub.f32 %v15069_v53, %v3573_v45  ;;  %v3910_v43 = vsub.f32 %v11351_v35, %v15071_v15  ;;  %v3911_v45 = vsub.f32 %v11399_v0, %v15072_v61  ;;  %5835 = vpow2.f32 %v3757_v33  ;;  %v15073_v53 = vld [vmem:[#allocation49_spill] sm:$0xff]  ;;  %v15074_v61 = vld [vmem:[#allocation36_spill] sm:$0xff]  ;;  %v15075_v33 = vld [vmem:[#allocation87_spill] sm:$0xff] }
 0x462   :  { %v3912_v18 = vsub.f32 %v11407_v51, %v15073_v53  ;;  %5837 = vpow2.f32 %v3747_v56  ;;  %v3759_v35 = vmul.f32 1.442695, %v11639_v16  ;;  %v3844_v37 = vadd.f32 %v5830_v59, %v5828_v13 }
 0x463   :  { %v3970_v36 = vmul.f32 %v11385_v55, %v3906_v19  ;;  %v11666_v27 = vmul.f32 %v11440_v3, %v3913_v1  ;;  %5839 = vpow2.f32 %v3749_v17  ;;  %v3761_v7 = vmul.f32 1.442695, %v11649_v49  ;;  %v15076_v3 = vld [vmem:[#allocation157_spill] sm:$0xff]  ;;  %v15077_v1 = vld [vmem:[#allocation162_spill] sm:$0xff] }
 0x464   :  { %v11670_v0 = vmul.f32 %v11475_v4, %v3914_v48  ;;  %v3919_v46 = vsub.f32 %v11473_v41, %v15074_v61  ;;  %v3920_v51 = vsub.f32 %v11507_v22, %v15075_v33  ;;  %5841 = vpow2.f32 %v3751_v2  ;;  %v15078_v41 = vld [vmem:[#allocation66_spill] sm:$0xff]  ;;  %3845 = vadd.xlane.f32.xlu1 %v3844_v37 }
 0x465   :  { %v11676_v32 = vpop.eup %5831  ;;  %v11679_v55 = vmul.f32 %v11452_v62, %v3909_v47  ;;  %v3915_v19 = vsub.f32 %v11482_v10, %v15076_v3  ;;  %v3916_v56 = vsub.f32 %v11494_v9, %v15077_v1  ;;  %5843 = vpow2.f32 %v3753_v6  ;;  %v15080_v6 = vld [vmem:[#allocation62_spill] sm:$0xff]  ;;  %v15087_v3 = vld [vmem:[#allocation103_spill] sm:$0xff] }
 0x466   :  { %v5834_v4 = vpop.eup %5833  ;;  %v3974_v48 = vmul.f32 %v11463_v34, %v3910_v43  ;;  %v3917_v17 = vsub.f32 %v11535_v23, %v15078_v41  ;;  %5845 = vpow2.f32 %v3759_v35  ;;  %v4044_v22 = vadd.f32 %v11581_v44, %v11570_v57  ;;  %v15079_v43 = vld [vmem:[#allocation65_spill] sm:$0xff]  ;;  %v15082_v35 = vld [vmem:[#allocation31_spill] sm:$0xff]  ;;  %v15084_v61 = vld [vmem:[#allocation74_spill] sm:$0xff] }
 0x467   :  { %v5836_v2 = vpop.eup %5835  ;;  %v3975_v62 = vmul.f32 %v11515_v14, %v3911_v45  ;;  %5847 = vpow2.f32 %v3761_v7  ;;  %v4096_v10 = vmul.f32 %v11676_v32, %v11641_v24  ;;  %v4050_v9 = vadd.f32 %v3970_v36, %v3969_v54  ;;  %v15081_v45 = vld [vmem:[#allocation69_spill] sm:$0xff] }
 0x468   :  { %v5838_v47 = vpop.eup %5837  ;;  %v3976_v15 = vmul.f32 %v11523_v11, %v3912_v18  ;;  %v3983_v34 = vmul.f32 %v11578_v38, %v3919_v46  ;;  %v3918_v23 = vsub.f32 %v11543_v26, %v15079_v43  ;;  %v3925_v53 = vsub.f32 %v11576_v21, %v15080_v6  ;;  %4045 = vadd.xlane.f32.xlu2 %v4044_v22  ;;  %v15083_v36 = vld [vmem:[#allocation89_spill] sm:$0xff] }
 0x469   :  { %v5840_v57 = vpop.eup %5839  ;;  %v3984_v14 = vmul.f32 %v11612_v12, %v3920_v51  ;;  %v3979_v44 = vmul.f32 %v11591_v29, %v3915_v19  ;;  %v3926_v54 = vsub.f32 %v11589_v39, %v15081_v45  ;;  %v3921_v11 = vsub.f32 %v11599_v31, %v15082_v35  ;;  %4051 = vadd.xlane.f32.xlu0 %v4050_v9  ;;  %v15085_v29 = vld [vmem:[#allocation52_spill] sm:$0xff]  ;;  %v11714_v31 = vpop.xlane.xlu0 %3785 }
 0x46a   :  { %v5842_v38 = vpop.eup %5841  ;;  %v3980_v18 = vmul.f32 %v11601_v8, %v3916_v56  ;;  %v3981_v26 = vmul.f32 %v5828_v13, %v3917_v17  ;;  %v3982_v37 = vmul.f32 %v5830_v59, %v3918_v23  ;;  %v3922_v21 = vsub.f32 %v11610_v30, %v15083_v36  ;;  %v15086_v39 = vld [vmem:[#allocation28_spill] sm:$0xff]  ;;  %v11716_v51 = vpop.xlane.xlu2 %3779 }
 0x46b   :  { %v5844_v7 = vpop.eup %5843  ;;  %v3923_v12 = vsub.f32 %v11617_v25, %v15084_v61  ;;  %v3924_v46 = vsub.f32 %v11626_v58, %v15085_v29  ;;  %v3927_v33 = vsub.f32 %v11639_v16, %v15086_v39  ;;  %v4097_v8 = vsub.f32 1.0, %v4096_v10  ;;  %v11723_v58 = vpop.xlane.xlu1 %3782 }
 0x46c   :  { %v5846_v13 = vpop.eup %5845  ;;  %v3989_v59 = vmul.f32 %v5834_v4, %v3925_v53  ;;  %v3928_v30 = vsub.f32 %v11649_v49, %v15087_v3  ;;  %v4047_v19 = vadd.f32 %v11644_v5, %v11634_v20  ;;  %v3850_v25 = vadd.f32 %v5840_v57, %v5838_v47 }
 0x46d   :  { %v5848_v1 = vpop.eup %5847  ;;  %v3990_v56 = vmul.f32 %v5836_v2, %v3926_v54  ;;  %5849 = vrcp.f32 %v11716_v51  ;;  %v3856_v16 = vadd.f32 %v5836_v2, %v5834_v4  ;;  %v4098_v41 = vmul.f32 %v11676_v32, %v4097_v8 }
 0x46e   :  { %v3985_v17 = vmul.f32 %v5838_v47, %v3921_v11  ;;  %v3986_v22 = vmul.f32 %v5840_v57, %v3922_v21  ;;  %v3987_v10 = vmul.f32 %v5842_v38, %v3923_v12  ;;  %4048 = vadd.xlane.f32.xlu1 %v4047_v19  ;;  %5851 = vrcp.f32 %v11723_v58  ;;  %v15098_v19 = vld [vmem:[#allocation165_spill] sm:$0xff] }
 0x46f   :  { %v3988_v49 = vmul.f32 %v5844_v7, %v3924_v46  ;;  %v11727_v9 = vmul.f32 %v5846_v13, %v3927_v33  ;;  %5853 = vrcp.f32 %v11714_v31  ;;  %v4104_v20 = vand.u32 2147483647, %v11641_v24 }
 0x470   :  { %v11731_v5 = vmul.f32 %v5848_v1, %v3928_v30  ;;  %3851 = vadd.xlane.f32.xlu2 %v3850_v25  ;;  %v4099_v4 = vadd.f32 %v11676_v32, %v4098_v41  ;;  %vm4100_vm15 = vweird.f32 %v11641_v24  ;;  %vm4101_vm0 = vweird.f32 %v11676_v32 }
 0x471   :  { %3857 = vadd.xlane.f32.xlu0 %v3856_v16  ;;  %v4053_v2 = vadd.f32 %v11631_v60, %v11604_v28  ;;  %v11739_v47 = vadd.f32 %v3974_v48, %v11679_v55  ;;  %v4106_v43 = vand.u32 2147483648, %v11641_v24  ;;  %v11744_v23 = vadd.f32 %v11670_v0, %v11666_v27  ;;  %v3582_v35 = vpop.xlane.xlu0 %3581  ;;  %vm11756_vm1 = vmor %vm4100_vm15, %vm4101_vm0  ;;  %v15103_v27 = vld [vmem:[#allocation97_spill] sm:$0xff] }
 0x472   :  { %v3853_v6 = vadd.f32 %v5844_v7, %v5842_v38  ;;  %v4059_v53 = vadd.f32 %v3976_v15, %v3975_v62  ;;  %v11746_v57 = vadd.f32 %v3980_v18, %v3979_v44  ;;  %v11748_v45 = vadd.f32 %v3984_v14, %v3983_v34  ;;  %v3576_v11 = vpop.xlane.xlu2 %3575  ;;  %v15092_v62 = vld [vmem:[#allocation75_spill] sm:$0xff]  ;;  %v15095_v38 = vld [vmem:[#allocation68_spill] sm:$0xff] }
 0x473   :  { %v11750_v54 = vpop.eup %5849  ;;  %v11752_v28 = vadd.f32 %v5848_v1, %v5846_v13  ;;  %vm11760_vm2 = vcmp.eq.f32.partialorder %v4104_v20, 8.507059e+37  ;;  %v11764_v0 = vadd.f32 %v3982_v37, %v3981_v26  ;;  %v11766_v55 = vadd.f32 %v3990_v56, %v3989_v59  ;;  %v3579_v29 = vpop.xlane.xlu1 %3578 }
 0x474   :  { %v11768_v48 = vpop.eup %5851  ;;  %v15093_v15 = vunpack.c.l.bf16 %v15092_v62  ;;  %v15094_v14 = vunpack.c.h.bf16 %v15092_v62  ;;  %v15096_v18 = vunpack.c.l.bf16 %v15095_v38  ;;  %v4103_v26 = vsel %vm11756_vm1, %v11676_v32, %v4099_v4 }
 0x475   :  { %v11785_v37 = vpop.eup %5853  ;;  %v4111_v21 = vmul.f32 %v11750_v54, %v11716_v51  ;;  %v4126_v7 = vmul.f32 %v11768_v48, %v11723_v58  ;;  %v15097_v61 = vunpack.c.h.bf16 %v15095_v38  ;;  %v4107_v46 = vor.u32 1.1754944e-38, %v4106_v43 }
 0x476   :  { %v11772_v34 = vsub.f32 %v15093_v15, %v3582_v35  ;;  %v11776_v44 = vsub.f32 %v15094_v14, %v3582_v35  ;;  %v11780_v36 = vsub.f32 %v15096_v18, %v3576_v11  ;;  %3854 = vadd.xlane.f32.xlu1 %v3853_v6  ;;  %5855 = vlog2.f32 %v11641_v24  ;;  %v15101_v6 = vld [vmem:[#allocation88_spill] sm:$0xff]  ;;  %v15102_v35 = vld [vmem:[#allocation55_spill] sm:$0xff] }
 0x477   :  { %v11793_v12 = vsub.f32 %v15097_v61, %v3576_v11  ;;  %v11798_v32 = vadd.f32 %v3986_v22, %v3985_v17  ;;  %v11804_v59 = vsel %vm11760_vm2, %v4107_v46, %v4103_v26  ;;  %v11806_v3 = vadd.f32 %v3988_v49, %v3987_v10  ;;  %v15104_v15 = vld [vmem:[#allocation104_spill] sm:$0xff] }
 0x478   :  { %v3771_v39 = vmul.f32 1.442695, %v11772_v34  ;;  %v3773_v33 = vmul.f32 1.442695, %v11776_v44  ;;  %v3763_v8 = vmul.f32 1.442695, %v11780_v36  ;;  %v11810_v30 = vmul.f32 %v11785_v37, %v11714_v31  ;;  %4054 = vadd.xlane.f32.xlu2 %v4053_v2 }
 0x479   :  { %v3765_v13 = vmul.f32 1.442695, %v11793_v12  ;;  %v15099_v25 = vunpack.c.l.bf16 %v15098_v19  ;;  %v15100_v1 = vunpack.c.h.bf16 %v15098_v19  ;;  %4060 = vadd.xlane.f32.xlu0 %v4059_v53  ;;  %v4127_v16 = vsub.f32 1.0, %v4126_v7  ;;  %v11833_v60 = vpop.xlane.xlu0 %3797  ;;  %v15107_v7 = vld [vmem:[#allocation47_spill] sm:$0xff] }
 0x47a   :  { %5857 = vpow2.f32 %v3771_v39  ;;  %v4134_v41 = vand.u32 2147483647, %v11723_v58  ;;  %v4112_v17 = vsub.f32 1.0, %v4111_v21  ;;  %vm4130_vm3 = vweird.f32 %v11723_v58  ;;  %v11824_v49 = vpop.xlane.xlu2 %3788  ;;  %v15108_v39 = vld [vmem:[#allocation76_spill] sm:$0xff] }
 0x47b   :  { %v11814_v24 = vsub.f32 %v15099_v25, %v3579_v29  ;;  %v11818_v56 = vsub.f32 %v15100_v1, %v3579_v29  ;;  %5859 = vpow2.f32 %v3773_v33  ;;  %v4128_v20 = vmul.f32 %v11768_v48, %v4127_v16  ;;  %v11840_v38 = vpop.xlane.xlu1 %3791 }
 0x47c   :  { %5861 = vpow2.f32 %v3763_v8  ;;  %v4136_v4 = vand.u32 2147483648, %v11723_v58  ;;  %v4113_v2 = vmul.f32 %v11750_v54, %v4112_v17  ;;  %v5856_v43 = vpop.eup %5855  ;;  %v3933_v53 = vsub.f32 %v11772_v34, %v15101_v6 }
 0x47d   :  { %v3767_v22 = vmul.f32 1.442695, %v11814_v24  ;;  %v3769_v10 = vmul.f32 1.442695, %v11818_v56  ;;  %5863 = vpow2.f32 %v3765_v13  ;;  %v3934_v11 = vsub.f32 %v11776_v44, %v15102_v35 }
 0x47e   :  { %vm4131_vm4 = vweird.f32 %v11768_v48  ;;  %v3929_v62 = vsub.f32 %v11780_v36, %v15103_v27  ;;  %v3930_v14 = vsub.f32 %v11793_v12, %v15104_v15  ;;  %vm11842_vm5 = vcmp.eq.f32.partialorder %v4134_v41, 8.507059e+37  ;;  %4057 = vadd.xlane.f32.xlu1 %v11739_v47 }
 0x47f   :  { %5865 = vpow2.f32 %v3767_v22  ;;  %v4119_v34 = vand.u32 2147483647, %v11716_v51  ;;  %v4129_v26 = vadd.f32 %v11768_v48, %v4128_v20  ;;  %v4114_v36 = vadd.f32 %v11750_v54, %v4113_v2  ;;  %vm11863_vm7 = vmor %vm4130_vm3, %vm4131_vm4 }
 0x480   :  { %5867 = vpow2.f32 %v3769_v10  ;;  %v5858_v44 = vpop.eup %5857  ;;  %vm4116_vm6 = vweird.f32 %v11750_v54  ;;  %v3931_v61 = vsub.f32 %v11814_v24, %v15107_v7  ;;  %v4576_v12 = vmul.f32 0.6931472, %v5856_v43  ;;  %3860 = vadd.xlane.f32.xlu2 %v11752_v28 }
 0x481   :  { %5869 = vrcp.f32 %v11824_v49  ;;  %v5860_v21 = vpop.eup %5859  ;;  %v4137_v29 = vor.u32 1.1754944e-38, %v4136_v4  ;;  %v3932_v47 = vsub.f32 %v11818_v56, %v15108_v39  ;;  %vm4115_vm8 = vweird.f32 %v11716_v51 }
 0x482   :  { %5871 = vrcp.f32 %v11833_v60  ;;  %v5862_v46 = vpop.eup %5861  ;;  %v4121_v8 = vand.u32 2147483648, %v11716_v51  ;;  %v11869_v19 = vmul.f32 %v5858_v44, %v3933_v53  ;;  %vm11873_vm9 = vmor %vm4115_vm8, %vm4116_vm6  ;;  %vm11877_vm10 = vcmp.eq.f32.partialorder %v4119_v34, 8.507059e+37 }
 0x483   :  { %5873 = vrcp.f32 %v11840_v38  ;;  %v5864_v13 = vpop.eup %5863  ;;  %v4142_v24 = vsub.f32 1.0, %v11810_v30  ;;  %v11884_v1 = vadd.f32 %v11731_v5, %v11727_v9  ;;  %v4133_v41 = vsel %vm11863_vm7, %v11768_v48, %v4129_v26  ;;  %v11895_v30 = vpop.xlane.xlu2 %3794 }
 0x484   :  { %v3862_v16 = vadd.f32 %v5864_v13, %v5862_v46  ;;  %5875 = vlog2.f32 %v11723_v58  ;;  %v4118_v17 = vsel %vm11873_vm9, %v11750_v54, %v4114_v36  ;;  %v11893_v10 = vmul.f32 %v5860_v21, %v3934_v11  ;;  %v4001_v48 = vpop.xlane.xlu0 %4000 }
 0x485   :  { %v5866_v56 = vpop.eup %5865  ;;  %5877 = vlog2.f32 %v11716_v51  ;;  %v4143_v9 = vmul.f32 %v11785_v37, %v4142_v24  ;;  %vm4145_vm11 = vweird.f32 %v11714_v31  ;;  %vm4146_vm12 = vweird.f32 %v11785_v37 }
 0x486   :  { %v5868_v22 = vpop.eup %5867  ;;  %5879 = vrcp.f32 %v11895_v30  ;;  %v4149_v54 = vand.u32 2147483647, %v11714_v31  ;;  %v3993_v4 = vmul.f32 %v5862_v46, %v3929_v62  ;;  %v3994_v2 = vmul.f32 %v5864_v13, %v3930_v14  ;;  %3863 = vadd.xlane.f32.xlu1 %v3862_v16  ;;  %vm11924_vm15 = vmor %vm4145_vm11, %vm4146_vm12 }
 0x487   :  { %v11900_v5 = vpop.eup %5869  ;;  %v3865_v58 = vadd.f32 %v5868_v22, %v5866_v56  ;;  %v4109_v51 = vmul.f32 %v11804_v59, %v4001_v48  ;;  %v4122_v43 = vor.u32 1.1754944e-38, %v4121_v8  ;;  %v4138_v35 = vsel %vm11842_vm5, %v4137_v29, %v4133_v41  ;;  %v11938_v29 = vpop.xlane.xlu1 %3800 }
 0x488   :  { %v11905_v20 = vpop.eup %5871  ;;  %v4156_v53 = vmul.f32 %v11900_v5, %v11824_v49  ;;  %v4144_v11 = vadd.f32 %v11785_v37, %v4143_v9  ;;  %v4151_v27 = vand.u32 2147483648, %v11714_v31  ;;  %v3868_v14 = vadd.f32 %v5860_v21, %v5858_v44  ;;  %4063 = vadd.xlane.f32.xlu2 %v11744_v23 }
 0x489   :  { %v11908_v6 = vpop.eup %5873  ;;  %3866 = vadd.xlane.f32.xlu0 %v3865_v58  ;;  %v4639_v59 = vsub.f32 %v4109_v51, %v4576_v12  ;;  %v4123_v15 = vsel %vm11877_vm10, %v4122_v43, %v4118_v17  ;;  %v3995_v26 = vmul.f32 %v5866_v56, %v3931_v61  ;;  %v3996_v36 = vmul.f32 %v5868_v22, %v3932_v47  ;;  %v15119_v17 = vld [vmem:[#allocation160_spill] sm:$0xff] }
 0x48a   :  { %v4171_v62 = vmul.f32 %v11908_v6, %v11840_v38  ;;  %v5876_v34 = vpop.eup %5875  ;;  %v11930_v7 = vmul.f32 %v11905_v20, %v11833_v60  ;;  %vm11933_vm0 = vcmp.eq.f32.partialorder %v4149_v54, 8.507059e+37  ;;  %5881 = vlog2.f32 %v11714_v31 }
 0x48b   :  { %v5878_v44 = vpop.eup %5877  ;;  %v4671_v21 = vadd.f32 %v4639_v59, %v11370_v50  ;;  %v11941_v46 = vadd.f32 %v3994_v2, %v3993_v4  ;;  %5883 = vrcp.f32 %v11938_v29  ;;  %v4148_v23 = vsel %vm11924_vm15, %v11785_v37, %v4144_v11  ;;  %v11949_v8 = vpop.xlane.xlu2 %3803 }
 0x48c   :  { %v4172_v61 = vsub.f32 1.0, %v4171_v62  ;;  %v11943_v39 = vpop.eup %5879  ;;  %v4152_v47 = vor.u32 1.1754944e-38, %v4151_v27  ;;  %v4157_v33 = vsub.f32 1.0, %v4156_v53  ;;  %v4580_v50 = vmul.f32 0.6931472, %v5876_v34  ;;  %v4007_v31 = vpop.xlane.xlu0 %4006 }
 0x48d   :  { %vm4175_vm1 = vweird.f32 %v11840_v38  ;;  %vm4176_vm2 = vweird.f32 %v11908_v6  ;;  %v4578_v25 = vmul.f32 0.6931472, %v5878_v44  ;;  %v4179_v28 = vand.u32 2147483647, %v11840_v38 }
 0x48e   :  { %v4173_v13 = vmul.f32 %v11908_v6, %v4172_v61  ;;  %v4181_v24 = vand.u32 2147483648, %v11840_v38  ;;  %v4158_v56 = vmul.f32 %v11900_v5, %v4157_v33  ;;  %v4186_v37 = vmul.f32 %v11943_v39, %v11895_v30  ;;  %4066 = vadd.xlane.f32.xlu1 %v11746_v57  ;;  %vm11974_vm3 = vmor %vm4175_vm1, %vm4176_vm2 }
 0x48f   :  { %v4139_v16 = vmul.f32 %v4138_v35, %v4007_v31  ;;  %5885 = vlog2.f32 %v11840_v38  ;;  %v4703_v22 = vadd.f32 %v4671_v21, %v15119_v17  ;;  %v11967_v9 = vsel %vm11933_vm0, %v4152_v47, %v4148_v23  ;;  %v4004_v35 = vpop.xlane.xlu1 %4003  ;;  %v15126_v21 = vld [vmem:[#allocation172_spill] sm:$0xff] }
 0x490   :  { %v4174_v41 = vadd.f32 %v11908_v6, %v4173_v13  ;;  %5887 = vrcp.f32 %v11949_v8  ;;  %v4159_v58 = vadd.f32 %v11900_v5, %v4158_v56  ;;  %v5882_v48 = vpop.eup %5881  ;;  %vm4161_vm4 = vweird.f32 %v11900_v5  ;;  %3869 = vadd.xlane.f32.xlu2 %v3868_v14 }
 0x491   :  { %4069 = vadd.xlane.f32.xlu0 %v11764_v0  ;;  %v4641_v54 = vsub.f32 %v4139_v16, %v4580_v50  ;;  %v4164_v57 = vand.u32 2147483647, %v11824_v49  ;;  %5889 = vlog2.f32 %v11824_v49  ;;  %v11981_v0 = vpop.eup %5883  ;;  %vm4180_vm5 = vcmp.eq.f32.partialorder %v4179_v28, 8.507059e+37 }
 0x492   :  { %v4178_v2 = vsel %vm11974_vm3, %v11908_v6, %v4174_v41  ;;  %v4182_v51 = vor.u32 1.1754944e-38, %v4181_v24  ;;  %v4166_v38 = vand.u32 2147483648, %v11824_v49  ;;  %v4216_v43 = vmul.f32 %v11981_v0, %v11938_v29 }
 0x493   :  { %v4673_v53 = vadd.f32 %v4641_v54, %v11360_v52  ;;  %vm4160_vm6 = vweird.f32 %v11824_v49  ;;  %v4187_v11 = vsub.f32 1.0, %v4186_v37  ;;  %v4736_v27 = vsel %vm4735_vm13, %v4703_v22, 0.0  ;;  %v12002_v34 = vpop.xlane.xlu2 %3806 }
 0x494   :  { %v4124_v62 = vmul.f32 %v4123_v15, %v4004_v35  ;;  %v11992_v59 = vmul.f32 0.6931472, %v5882_v48  ;;  %vm11996_vm7 = vmor %vm4160_vm6, %vm4161_vm4  ;;  %v12000_v14 = vadd.f32 %v3996_v36, %v3995_v26  ;;  %v4183_v52 = vsel %vm4180_vm5, %v4182_v51, %v4178_v2  ;;  %v12015_v36 = vpop.xlane.xlu0 %3812 }
 0x495   :  { %v5886_v18 = vpop.eup %5885  ;;  %v4163_v49 = vsel %vm11996_vm7, %v11900_v5, %v4159_v58  ;;  %vm12007_vm8 = vcmp.eq.f32.partialorder %v4164_v57, 8.507059e+37  ;;  %v4188_v12 = vmul.f32 %v11943_v39, %v4187_v11  ;;  %v4705_v61 = vadd.f32 %v4673_v53, %v15126_v21 }
 0x496   :  { %v12012_v44 = vpop.eup %5887  ;;  %v4640_v26 = vsub.f32 %v4124_v62, %v4578_v25  ;;  %v4167_v23 = vor.u32 1.1754944e-38, %v4166_v38  ;;  %vm4191_vm9 = vweird.f32 %v11943_v39  ;;  %v4194_v5 = vand.u32 2147483647, %v11895_v30  ;;  %4072 = vadd.xlane.f32.xlu1 %v11748_v45 }
 0x497   :  { %v5890_v47 = vpop.eup %5889  ;;  %v4189_v33 = vadd.f32 %v11943_v39, %v4188_v12  ;;  %v4196_v50 = vand.u32 2147483648, %v11895_v30  ;;  %v4217_v13 = vsub.f32 1.0, %v4216_v43  ;;  %v4586_v25 = vmul.f32 0.6931472, %v5886_v18  ;;  %v12051_v16 = vpop.xlane.xlu1 %3809 }
 0x498   :  { %v4672_v31 = vadd.f32 %v4640_v26, %v11379_v42  ;;  %v12026_v28 = vsel %vm12007_vm8, %v4167_v23, %v4163_v49  ;;  %v12030_v24 = vadd.f32 %v11893_v10, %v11869_v19  ;;  %v12034_v56 = vmul.f32 %v12012_v44, %v11949_v8  ;;  %4075 = vadd.xlane.f32.xlu2 %v11798_v32  ;;  %v15136_v26 = vld [vmem:[#allocation84_spill] sm:$0xff] }
 0x499   :  { %4078 = vadd.xlane.f32.xlu0 %v11806_v3  ;;  %5891 = vrcp.f32 %v12002_v34  ;;  %vm4190_vm10 = vweird.f32 %v11895_v30  ;;  %v4218_v42 = vmul.f32 %v11981_v0, %v4217_v13  ;;  %v4739_v45 = vsel %vm4735_vm13, %v4705_v61, 0.0  ;;  %v15127_v3 = vld [vmem:[#allocation214_spill] sm:$0xff] }
 0x49a   :  { %v4704_v37 = vadd.f32 %v4672_v31, %v15127_v3  ;;  %5893 = vrcp.f32 %v12015_v36  ;;  %v12043_v19 = vmul.f32 0.6931472, %v5890_v47  ;;  %vm12047_vm11 = vmor %vm4190_vm10, %vm4191_vm9  ;;  %vm12056_vm12 = vcmp.eq.f32.partialorder %v4194_v5, 8.507059e+37  ;;  %v15148_v47 = vld [vmem:[#allocation79_spill] sm:$0xff] }
 0x49b   :  { %v4193_v41 = vsel %vm12047_vm11, %v11943_v39, %v4189_v33  ;;  %v4197_v22 = vor.u32 1.1754944e-38, %v4196_v50  ;;  %v4202_v32 = vsub.f32 1.0, %v11930_v7  ;;  %5895 = vrcp.f32 %v12051_v16  ;;  %v4010_v4 = vpop.xlane.xlu2 %4009  ;;  %v15139_v50 = vld [vmem:[#allocation154_spill] sm:$0xff] }
 0x49c   :  { %v4737_v58 = vsel %vm4735_vm13, %v4704_v37, 0.0  ;;  %v4219_v48 = vadd.f32 %v11981_v0, %v4218_v42  ;;  %vm4221_vm15 = vweird.f32 %v11981_v0  ;;  %5897 = vlog2.f32 %v11895_v30  ;;  %v4016_v2 = vpop.xlane.xlu0 %4015 }
 0x49d   :  { %v4738_v54 = vadd.f32 %v4737_v58, %v4736_v27  ;;  %vm4220_vm0 = vweird.f32 %v11938_v29  ;;  %v4226_v39 = vand.u32 2147483648, %v11938_v29  ;;  %v4154_v57 = vmul.f32 %v11967_v9, %v4010_v4 }
 0x49e   :  { %v4224_v7 = vand.u32 2147483647, %v11938_v29  ;;  %5899 = vlog2.f32 %v11938_v29  ;;  %v4203_v51 = vmul.f32 %v11905_v20, %v4202_v32  ;;  %v4184_v53 = vmul.f32 %v4183_v52, %v4016_v2  ;;  %vm12074_vm1 = vmor %vm4220_vm0, %vm4221_vm15  ;;  %4081 = vadd.xlane.f32.xlu1 %v11766_v55 }
 0x49f   :  { %v12072_v38 = vpop.eup %5891  ;;  %v4740_v43 = vadd.f32 %v4739_v45, %v4738_v54  ;;  %vm4205_vm2 = vweird.f32 %v11833_v60  ;;  %vm4206_vm3 = vweird.f32 %v11905_v20  ;;  %v4642_v29 = vsub.f32 %v4154_v57, %v11992_v59  ;;  %v15141_v54 = vld [vmem:[#allocation200_spill] sm:$0xff] }
 0x4a0   :  { %v12080_v30 = vpop.eup %5893  ;;  %v4223_v9 = vsel %vm12074_vm1, %v11981_v0, %v4219_v48  ;;  %v4209_v11 = vand.u32 2147483647, %v11833_v60  ;;  %v4211_v27 = vand.u32 2147483648, %v11833_v60  ;;  %v4644_v62 = vsub.f32 %v4184_v53, %v4586_v25  ;;  %4084 = vadd.xlane.f32.xlu2 %v11884_v1  ;;  %vm12106_vm5 = vmor %vm4205_vm2, %vm4206_vm3  ;;  %v4013_v1 = vpop.xlane.xlu1 %4012 }
 0x4a1   :  { %4087 = vadd.xlane.f32.xlu0 %v11941_v46  ;;  %v4227_v6 = vor.u32 1.1754944e-38, %v4226_v39  ;;  %v4204_v18 = vadd.f32 %v11905_v20, %v4203_v51  ;;  %5901 = vlog2.f32 %v11833_v60  ;;  %v12092_v52 = vpop.eup %5895  ;;  %v12096_v55 = vmul.f32 %v12072_v38, %v12002_v34 }
 0x4a2   :  { %v4674_v46 = vadd.f32 %v4642_v29, %v11413_v40  ;;  %v4198_v0 = vsel %vm12056_vm12, %v4197_v22, %v4193_v41  ;;  %vm4225_vm4 = vcmp.eq.f32.partialorder %v4224_v7, 8.507059e+37  ;;  %v5898_v49 = vpop.eup %5897  ;;  %v12112_v15 = vmul.f32 %v12080_v30, %v12015_v36 }
 0x4a3   :  { %v4676_v40 = vadd.f32 %v4644_v62, %v11410_v63  ;;  %v4228_v12 = vsel %vm4225_vm4, %v4227_v6, %v4223_v9  ;;  %v4232_v21 = vsub.f32 1.0, %v12034_v56  ;;  %v4169_v60 = vmul.f32 %v12026_v28, %v4013_v1  ;;  %v12125_v63 = vpop.xlane.xlu2 %3815 }
 0x4a4   :  { %v5900_v61 = vpop.eup %5899  ;;  %v4706_v23 = vadd.f32 %v4674_v46, %v15136_v26  ;;  %vm12118_vm6 = vcmp.eq.f32.partialorder %v4209_v11, 8.507059e+37  ;;  %v4212_v33 = vor.u32 1.1754944e-38, %v4211_v27  ;;  %v4261_v5 = vmul.f32 %v12092_v52, %v12051_v16  ;;  %v12133_v42 = vpop.xlane.xlu0 %3821 }
 0x4a5   :  { %v4708_v13 = vadd.f32 %v4676_v40, %v15139_v50  ;;  %v4208_v31 = vsel %vm12106_vm5, %v11905_v20, %v4204_v18  ;;  %v4233_v25 = vmul.f32 %v12012_v44, %v4232_v21  ;;  %v4643_v56 = vsub.f32 %v4169_v60, %v12043_v19  ;;  %v15140_v20 = vld [vmem:[#allocation138_spill] sm:$0xff] }
 0x4a6   :  { %v4741_v28 = vsel %vm4735_vm13, %v4706_v23, 0.0  ;;  %v4588_v45 = vmul.f32 0.6931472, %v5898_v49  ;;  %v4241_v3 = vand.u32 2147483648, %v11949_v8  ;;  %5903 = vrcp.f32 %v12125_v63  ;;  %4090 = vadd.xlane.f32.xlu1 %v12000_v14 }
 0x4a7   :  { %v5902_v37 = vpop.eup %5901  ;;  %v4742_v10 = vadd.f32 %v4741_v28, %v4740_v43  ;;  %v4234_v41 = vadd.f32 %v12012_v44, %v4233_v25  ;;  %vm4236_vm7 = vweird.f32 %v12012_v44  ;;  %v4675_v17 = vadd.f32 %v4643_v56, %v15140_v20 }
 0x4a8   :  { %v4592_v22 = vmul.f32 0.6931472, %v5900_v61  ;;  %v4213_v19 = vsel %vm12118_vm6, %v4212_v33, %v4208_v31  ;;  %vm4235_vm8 = vweird.f32 %v11949_v8  ;;  %v4745_v32 = vsel %vm4735_vm13, %v4708_v13, 0.0  ;;  %4093 = vadd.xlane.f32.xlu2 %v12030_v24  ;;  %v12156_v2 = vpop.xlane.xlu1 %3818 }
 0x4a9   :  { %5905 = vrcp.f32 %v12133_v42  ;;  %v4239_v58 = vand.u32 2147483647, %v11949_v8  ;;  %v4262_v48 = vsub.f32 1.0, %v4261_v5  ;;  %v4707_v4 = vadd.f32 %v4675_v17, %v15141_v54  ;;  %vm12151_vm9 = vmor %vm4235_vm8, %vm4236_vm7 }
 0x4aa   :  { %v12149_v39 = vmul.f32 0.6931472, %v5902_v37  ;;  %v4242_v57 = vor.u32 1.1754944e-38, %v4241_v3  ;;  %5907 = vlog2.f32 %v11949_v8  ;;  %v4238_v7 = vsel %vm12151_vm9, %v12012_v44, %v4234_v41 }
 0x4ab   :  { %v4263_v51 = vmul.f32 %v12092_v52, %v4262_v48  ;;  %v4269_v43 = vand.u32 2147483647, %v12051_v16  ;;  %v4247_v24 = vsub.f32 1.0, %v12096_v55  ;;  %v4743_v53 = vsel %vm4735_vm13, %v4707_v4, 0.0  ;;  %v4019_v9 = vpop.xlane.xlu2 %4018  ;;  %v15153_v4 = vld [vmem:[#allocation44_spill] sm:$0xff] }
 0x4ac   :  { %5909 = vrcp.f32 %v12156_v2  ;;  %vm4266_vm10 = vweird.f32 %v12092_v52  ;;  %v4271_v8 = vand.u32 2147483648, %v12051_v16  ;;  %v12168_v35 = vpop.eup %5903  ;;  %v4744_v29 = vadd.f32 %v4743_v53, %v4742_v10  ;;  %v4025_v27 = vpop.xlane.xlu0 %4024  ;;  %v15162_v10 = vld [vmem:[#allocation82_spill] sm:$0xff] }
 0x4ad   :  { %vm4240_vm11 = vcmp.eq.f32.partialorder %v4239_v58, 8.507059e+37  ;;  %v4264_v44 = vadd.f32 %v12092_v52, %v4263_v51  ;;  %vm4265_vm12 = vweird.f32 %v12051_v16  ;;  %v4199_v11 = vmul.f32 %v4198_v0, %v4019_v9 }
 0x4ae   :  { %v12172_v62 = vsel %vm4240_vm11, %v4242_v57, %v4238_v7  ;;  %5911 = vlog2.f32 %v12051_v16  ;;  %v4248_v6 = vmul.f32 %v12072_v38, %v4247_v24  ;;  %v4746_v55 = vadd.f32 %v4745_v32, %v4744_v29  ;;  %vm12180_vm15 = vmor %vm4265_vm12, %vm4266_vm10  ;;  %v15156_v7 = vld [vmem:[#allocation167_spill] sm:$0xff]  ;;  %v15157_v29 = vld [vmem:[#allocation92_spill] sm:$0xff] }
 0x4af   :  { %v12176_v18 = vpop.eup %5905  ;;  %v4229_v46 = vmul.f32 %v4228_v12, %v4025_v27  ;;  %vm12184_vm0 = vcmp.eq.f32.partialorder %v4269_v43, 8.507059e+37  ;;  %vm4250_vm1 = vweird.f32 %v12002_v34  ;;  %v12191_v16 = vmul.f32 %v12168_v35, %v12125_v63  ;;  %v15167_v57 = vld [vmem:[#allocation59_spill] sm:$0xff] }
 0x4b0   :  { %v5908_v0 = vpop.eup %5907  ;;  %v4645_v40 = vsub.f32 %v4199_v11, %v4588_v45  ;;  %v4268_v1 = vsel %vm12180_vm15, %v12092_v52, %v4264_v44  ;;  %v4272_v12 = vor.u32 1.1754944e-38, %v4271_v8  ;;  %v4249_v61 = vadd.f32 %v12072_v38, %v4248_v6  ;;  %v15149_v52 = vld [vmem:[#allocation169_spill] sm:$0xff]  ;;  %v4022_v13 = vpop.xlane.xlu1 %4021  ;;  %v15150_v45 = vld [vmem:[#allocation43_spill] sm:$0xff] }
 0x4b1   :  { %v4647_v21 = vsub.f32 %v4229_v46, %v4592_v22  ;;  %vm4251_vm2 = vweird.f32 %v12072_v38  ;;  %v4256_v26 = vand.u32 2147483648, %v12002_v34  ;;  %v12203_v60 = vmul.f32 %v12176_v18, %v12133_v42 }
 0x4b2   :  { %v12199_v23 = vpop.eup %5909  ;;  %v4677_v33 = vadd.f32 %v4645_v40, %v15148_v47  ;;  %v4254_v5 = vand.u32 2147483647, %v12002_v34  ;;  %5913 = vlog2.f32 %v12002_v34  ;;  %v12209_v31 = vmul.f32 0.6931472, %v5908_v0  ;;  %vm12219_vm3 = vmor %vm4250_vm1, %vm4251_vm2 }
 0x4b3   :  { %v4679_v50 = vadd.f32 %v4647_v21, %v15149_v52  ;;  %v4273_v25 = vsel %vm12184_vm0, %v4272_v12, %v4268_v1  ;;  %v4277_v28 = vsub.f32 1.0, %v12112_v15  ;;  %v4214_v37 = vmul.f32 %v4213_v19, %v4022_v13  ;;  %v12227_v15 = vpop.xlane.xlu2 %3824 }
 0x4b4   :  { %v5912_v56 = vpop.eup %5911  ;;  %v4709_v3 = vadd.f32 %v4677_v33, %v15150_v45  ;;  %vm4280_vm4 = vweird.f32 %v12015_v36  ;;  %vm4281_vm5 = vweird.f32 %v12080_v30  ;;  %v4306_v41 = vmul.f32 %v12199_v23, %v12156_v2  ;;  %v12235_v32 = vpop.xlane.xlu0 %3830 }
 0x4b5   :  { %v4253_v20 = vsel %vm12219_vm3, %v12072_v38, %v4249_v61  ;;  %v4257_v17 = vor.u32 1.1754944e-38, %v4256_v26  ;;  %v4278_v34 = vmul.f32 %v12080_v30, %v4277_v28  ;;  %v4646_v19 = vsub.f32 %v4214_v37, %v12149_v39  ;;  %vm12246_vm6 = vmor %vm4280_vm4, %vm4281_vm5 }
 0x4b6   :  { %v4747_v22 = vsel %vm4735_vm13, %v4709_v3, 0.0  ;;  %v4284_v58 = vand.u32 2147483647, %v12015_v36  ;;  %v4286_v48 = vand.u32 2147483648, %v12015_v36  ;;  %v4711_v14 = vadd.f32 %v4679_v50, %v15153_v4  ;;  %v15166_v4 = vld [vmem:[#allocation98_spill] sm:$0xff] }
 0x4b7   :  { %v4748_v54 = vadd.f32 %v4747_v22, %v4746_v55  ;;  %5915 = vrcp.f32 %v12227_v15  ;;  %v4279_v38 = vadd.f32 %v12080_v30, %v4278_v34  ;;  %v4678_v51 = vadd.f32 %v4646_v19, %v15156_v7 }
 0x4b8   :  { %v5914_v39 = vpop.eup %5913  ;;  %5917 = vrcp.f32 %v12235_v32  ;;  %v4598_v43 = vmul.f32 0.6931472, %v5912_v56  ;;  %vm4255_vm7 = vcmp.eq.f32.partialorder %v4254_v5, 8.507059e+37  ;;  %v4287_v53 = vor.u32 1.1754944e-38, %v4286_v48  ;;  %v12259_v6 = vpop.xlane.xlu1 %3827 }
 0x4b9   :  { %v4258_v24 = vsel %vm4255_vm7, %v4257_v17, %v4253_v20  ;;  %5919 = vlog2.f32 %v12015_v36  ;;  %v4307_v8 = vsub.f32 1.0, %v4306_v41  ;;  %v4710_v9 = vadd.f32 %v4678_v51, %v15157_v29  ;;  %v15165_v17 = vld [vmem:[#allocation197_spill] sm:$0xff] }
 0x4ba   :  { %v4283_v44 = vsel %vm12246_vm6, %v12080_v30, %v4279_v38  ;;  %vm4285_vm8 = vcmp.eq.f32.partialorder %v4284_v58, 8.507059e+37  ;;  %v4314_v11 = vand.u32 2147483647, %v12156_v2  ;;  %v4751_v27 = vsel %vm4735_vm13, %v4711_v14, 0.0 }
 0x4bb   :  { %v12261_v55 = vmul.f32 0.6931472, %v5914_v39  ;;  %v4308_v46 = vmul.f32 %v12199_v23, %v4307_v8  ;;  %v4292_v36 = vsub.f32 1.0, %v12191_v16  ;;  %v4749_v59 = vsel %vm4735_vm13, %v4710_v9, 0.0  ;;  %v4028_v0 = vpop.xlane.xlu2 %4027 }
 0x4bc   :  { %5921 = vrcp.f32 %v12259_v6  ;;  %vm4310_vm9 = vweird.f32 %v12156_v2  ;;  %vm4311_vm10 = vweird.f32 %v12199_v23  ;;  %v4750_v49 = vadd.f32 %v4749_v59, %v4748_v54  ;;  %v4034_v61 = vpop.xlane.xlu0 %4033 }
 0x4bd   :  { %v12269_v30 = vpop.eup %5915  ;;  %v12271_v40 = vsel %vm4285_vm8, %v4287_v53, %v4283_v44  ;;  %v4309_v1 = vadd.f32 %v12199_v23, %v4308_v46  ;;  %v4316_v12 = vand.u32 2147483648, %v12156_v2  ;;  %v4244_v16 = vmul.f32 %v12172_v62, %v4028_v0  ;;  %vm12288_vm12 = vmor %vm4310_vm9, %vm4311_vm10 }
 0x4be   :  { %v12275_v21 = vpop.eup %5917  ;;  %vm12278_vm11 = vcmp.eq.f32.partialorder %v4314_v11, 8.507059e+37  ;;  %5923 = vlog2.f32 %v12156_v2  ;;  %v4293_v47 = vmul.f32 %v12168_v35, %v4292_v36  ;;  %v4752_v5 = vadd.f32 %v4751_v27, %v4750_v49  ;;  %v15170_v27 = vld [vmem:[#allocation124_spill] sm:$0xff] }
 0x4bf   :  { %v5920_v33 = vpop.eup %5919  ;;  %v4274_v52 = vmul.f32 %v4273_v25, %v4034_v61  ;;  %vm4295_vm15 = vweird.f32 %v12125_v63  ;;  %vm4296_vm0 = vweird.f32 %v12168_v35  ;;  %v12296_v62 = vmul.f32 %v12269_v30, %v12227_v15 }
 0x4c0   :  { %v4648_v13 = vsub.f32 %v4244_v16, %v12209_v31  ;;  %v4313_v25 = vsel %vm12288_vm12, %v12199_v23, %v4309_v1  ;;  %v4294_v2 = vadd.f32 %v12168_v35, %v4293_v47  ;;  %v12305_v28 = vmul.f32 %v12275_v21, %v12235_v32  ;;  %vm12313_vm1 = vmor %vm4295_vm15, %vm4296_vm0  ;;  %v4031_v22 = vpop.xlane.xlu1 %4030  ;;  %v15171_v1 = vld [vmem:[#allocation190_spill] sm:$0xff] }
 0x4c1   :  { %v4650_v56 = vsub.f32 %v4274_v52, %v4598_v43  ;;  %v4317_v45 = vor.u32 1.1754944e-38, %v4316_v12  ;;  %v4301_v3 = vand.u32 2147483648, %v12125_v63  ;;  %v12311_v20 = vmul.f32 0.6931472, %v5920_v33 }
 0x4c2   :  { %v12308_v37 = vpop.eup %5921  ;;  %v4680_v41 = vadd.f32 %v4648_v13, %v15162_v10  ;;  %v4299_v23 = vand.u32 2147483647, %v12125_v63  ;;  %5925 = vlog2.f32 %v12125_v63  ;;  %v4298_v58 = vsel %vm12313_vm1, %v12168_v35, %v4294_v2 }
 0x4c3   :  { %v4682_v34 = vadd.f32 %v4650_v56, %v15165_v17  ;;  %v4318_v19 = vsel %vm12278_vm11, %v4317_v45, %v4313_v25  ;;  %v4322_v48 = vsub.f32 1.0, %v12203_v60  ;;  %v4259_v38 = vmul.f32 %v4258_v24, %v4031_v22  ;;  %v12332_v7 = vpop.xlane.xlu2 %3833 }
 0x4c4   :  { %v5924_v54 = vpop.eup %5923  ;;  %v4712_v14 = vadd.f32 %v4680_v41, %v15166_v4  ;;  %vm4325_vm2 = vweird.f32 %v12133_v42  ;;  %vm4326_vm3 = vweird.f32 %v12176_v18  ;;  %v4351_v63 = vmul.f32 %v12308_v37, %v12259_v6  ;;  %v12337_v53 = vpop.xlane.xlu0 %3839 }
 0x4c5   :  { %v4714_v39 = vadd.f32 %v4682_v34, %v15167_v57  ;;  %v4302_v51 = vor.u32 1.1754944e-38, %v4301_v3  ;;  %v4323_v35 = vmul.f32 %v12176_v18, %v4322_v48  ;;  %v4649_v43 = vsub.f32 %v4259_v38, %v12261_v55  ;;  %vm12347_vm5 = vmor %vm4325_vm2, %vm4326_vm3 }
 0x4c6   :  { %v4753_v60 = vsel %vm4735_vm13, %v4712_v14, 0.0  ;;  %v4329_v24 = vand.u32 2147483647, %v12133_v42  ;;  %v4331_v8 = vand.u32 2147483648, %v12133_v42  ;;  %5927 = vrcp.f32 %v12332_v7 }
 0x4c7   :  { %v4754_v29 = vadd.f32 %v4753_v60, %v4752_v5  ;;  %vm4300_vm4 = vcmp.eq.f32.partialorder %v4299_v23, 8.507059e+37  ;;  %v4324_v9 = vadd.f32 %v12176_v18, %v4323_v35  ;;  %v4681_v55 = vadd.f32 %v4649_v43, %v15170_v27 }
 0x4c8   :  { %v5926_v11 = vpop.eup %5925  ;;  %5929 = vrcp.f32 %v12337_v53  ;;  %v4604_v46 = vmul.f32 0.6931472, %v5924_v54  ;;  %v4303_v36 = vsel %vm4300_vm4, %v4302_v51, %v4298_v58  ;;  %v4757_v59 = vsel %vm4735_vm13, %v4714_v39, 0.0  ;;  %v12360_v26 = vpop.xlane.xlu1 %3836  ;;  %v15179_v39 = vld [vmem:[#allocation73_spill] sm:$0xff] }
 0x4c9   :  { %v4332_v49 = vor.u32 1.1754944e-38, %v4331_v8  ;;  %5931 = vlog2.f32 %v12133_v42  ;;  %v4352_v0 = vsub.f32 1.0, %v4351_v63  ;;  %v4713_v12 = vadd.f32 %v4681_v55, %v15171_v1  ;;  %v15182_v8 = vld [vmem:[#allocation45_spill] sm:$0xff] }
 0x4ca   :  { %v4328_v16 = vsel %vm12347_vm5, %v12176_v18, %v4324_v9  ;;  %vm4330_vm6 = vcmp.eq.f32.partialorder %v4329_v24, 8.507059e+37  ;;  %v4359_v61 = vand.u32 2147483647, %v12259_v6  ;;  %v12362_v47 = vmul.f32 0.6931472, %v5926_v11  ;;  %v15183_v11 = vld [vmem:[#allocation96_spill] sm:$0xff] }
 0x4cb   :  { %v4353_v33 = vmul.f32 %v12308_v37, %v4352_v0  ;;  %vm4356_vm7 = vweird.f32 %v12308_v37  ;;  %v4337_v42 = vsub.f32 1.0, %v12296_v62  ;;  %v4755_v5 = vsel %vm4735_vm13, %v4713_v12, 0.0  ;;  %v4037_v13 = vpop.xlane.xlu2 %4036 }
 0x4cc   :  { %5933 = vrcp.f32 %v12360_v26  ;;  %vm4355_vm8 = vweird.f32 %v12259_v6  ;;  %v4361_v18 = vand.u32 2147483648, %v12259_v6  ;;  %v12371_v52 = vpop.eup %5927  ;;  %v4756_v50 = vadd.f32 %v4755_v5, %v4754_v29  ;;  %v4043_v45 = vpop.xlane.xlu0 %4042 }
 0x4cd   :  { %v12373_v25 = vsel %vm4330_vm6, %v4332_v49, %v4328_v16  ;;  %v4354_v2 = vadd.f32 %v12308_v37, %v4353_v33  ;;  %5935 = vlog2.f32 %v12259_v6  ;;  %v4289_v62 = vmul.f32 %v12271_v40, %v4037_v13  ;;  %vm12382_vm9 = vmor %vm4355_vm8, %vm4356_vm7  ;;  %v15199_v33 = vld [vmem:[#allocation177_spill] sm:$0xff] }
 0x4ce   :  { %v12377_v56 = vpop.eup %5929  ;;  %vm12386_vm10 = vcmp.eq.f32.partialorder %v4359_v61, 8.507059e+37  ;;  %v4338_v41 = vmul.f32 %v12269_v30, %v4337_v42  ;;  %vm4341_vm11 = vweird.f32 %v12269_v30  ;;  %v4758_v31 = vadd.f32 %v4757_v59, %v4756_v50  ;;  %v15186_v42 = vld [vmem:[#allocation199_spill] sm:$0xff] }
 0x4cf   :  { %v5932_v6 = vpop.eup %5931  ;;  %v4319_v23 = vmul.f32 %v4318_v19, %v4043_v45  ;;  %v4358_v40 = vsel %vm12382_vm9, %v12308_v37, %v4354_v2  ;;  %v4344_v17 = vand.u32 2147483647, %v12227_v15  ;;  %v4651_v34 = vsub.f32 %v4289_v62, %v12311_v20  ;;  %v15176_v20 = vld [vmem:[#allocation156_spill] sm:$0xff]  ;;  %v15187_v62 = vld [vmem:[#allocation109_spill] sm:$0xff] }
 0x4d0   :  { %v4362_v22 = vor.u32 1.1754944e-38, %v4361_v18  ;;  %v4339_v58 = vadd.f32 %v12269_v30, %v4338_v41  ;;  %vm4340_vm12 = vweird.f32 %v12227_v15  ;;  %v12401_v48 = vmul.f32 %v12371_v52, %v12332_v7  ;;  %v4040_v35 = vpop.xlane.xlu1 %4039 }
 0x4d1   :  { %v4653_v54 = vsub.f32 %v4319_v23, %v4604_v46  ;;  %v4346_v19 = vand.u32 2147483648, %v12227_v15  ;;  %5937 = vlog2.f32 %v12227_v15  ;;  %v12409_v37 = vmul.f32 %v12377_v56, %v12337_v53  ;;  %vm12420_vm15 = vmor %vm4340_vm12, %vm4341_vm11 }
 0x4d2   :  { %v12405_v4 = vpop.eup %5933  ;;  %v4683_v14 = vadd.f32 %v4651_v34, %v15176_v20  ;;  %v12412_v38 = vmul.f32 0.6931472, %v5932_v6  ;;  %v12416_v63 = vsel %vm12386_vm10, %v4362_v22, %v4358_v40  ;;  %v4343_v60 = vsel %vm12420_vm15, %v12269_v30, %v4339_v58  ;;  %v15205_v58 = vld [vmem:[#allocation51_spill] sm:$0xff] }
 0x4d3   :  { %v5936_v15 = vpop.eup %5935  ;;  %v4685_v51 = vadd.f32 %v4653_v54, %v15179_v39  ;;  %vm12428_vm0 = vcmp.eq.f32.partialorder %v4344_v17, 8.507059e+37  ;;  %v4367_v24 = vsub.f32 1.0, %v12305_v28  ;;  %v4304_v9 = vmul.f32 %v4303_v36, %v4040_v35  ;;  %v12439_v55 = vpop.xlane.xlu2 %3842 }
 0x4d4   :  { %v4715_v29 = vadd.f32 %v4683_v14, %v15182_v8  ;;  %vm4370_vm1 = vweird.f32 %v12235_v32  ;;  %vm4371_vm2 = vweird.f32 %v12275_v21  ;;  %v4396_v44 = vmul.f32 %v12405_v4, %v12360_v26  ;;  %v12444_v49 = vpop.xlane.xlu0 %3848 }
 0x4d5   :  { %v4717_v27 = vadd.f32 %v4685_v51, %v15183_v11  ;;  %v4347_v30 = vor.u32 1.1754944e-38, %v4346_v19  ;;  %v4368_v46 = vmul.f32 %v12275_v21, %v4367_v24  ;;  %v4652_v28 = vsub.f32 %v4304_v9, %v12362_v47  ;;  %vm12454_vm3 = vmor %vm4370_vm1, %vm4371_vm2  ;;  %v15192_v9 = vld [vmem:[#allocation15_spill] sm:$0xff] }
 0x4d6   :  { %v4759_v59 = vsel %vm4735_vm13, %v4715_v29, 0.0  ;;  %v4374_v36 = vand.u32 2147483647, %v12235_v32  ;;  %v4376_v0 = vand.u32 2147483648, %v12235_v32  ;;  %5939 = vrcp.f32 %v12439_v55 }
 0x4d7   :  { %v5938_v1 = vpop.eup %5937  ;;  %v4760_v12 = vadd.f32 %v4759_v59, %v4758_v31  ;;  %v4610_v16 = vmul.f32 0.6931472, %v5936_v15  ;;  %v4369_v61 = vadd.f32 %v12275_v21, %v4368_v46  ;;  %v4763_v47 = vsel %vm4735_vm13, %v4717_v27, 0.0  ;;  %v15197_v59 = vld [vmem:[#allocation115_spill] sm:$0xff] }
 0x4d8   :  { %v4684_v5 = vadd.f32 %v4652_v28, %v15186_v42  ;;  %5941 = vrcp.f32 %v12444_v49  ;;  %v4348_v18 = vsel %vm12428_vm0, %v4347_v30, %v4343_v60  ;;  %v12463_v50 = vmul.f32 0.6931472, %v5938_v1  ;;  %v12471_v41 = vpop.xlane.xlu1 %3845  ;;  %v15198_v1 = vld [vmem:[#allocation61_spill] sm:$0xff] }
 0x4d9   :  { %v4377_v13 = vor.u32 1.1754944e-38, %v4376_v0  ;;  %5943 = vlog2.f32 %v12235_v32  ;;  %v4397_v2 = vsub.f32 1.0, %v4396_v44  ;;  %v4373_v3 = vsel %vm12454_vm3, %v12275_v21, %v4369_v61 }
 0x4da   :  { %v4716_v45 = vadd.f32 %v4684_v5, %v15187_v62  ;;  %vm4375_vm4 = vcmp.eq.f32.partialorder %v4374_v36, 8.507059e+37  ;;  %v4404_v10 = vand.u32 2147483647, %v12360_v26  ;;  %vm4401_vm5 = vweird.f32 %v12405_v4 }
 0x4db   :  { %v4398_v6 = vmul.f32 %v12405_v4, %v4397_v2  ;;  %5945 = vlog2.f32 %v12360_v26  ;;  %v4382_v32 = vsub.f32 1.0, %v12401_v48  ;;  %vm4400_vm6 = vweird.f32 %v12360_v26  ;;  %v4046_v17 = vpop.xlane.xlu2 %4045 }
 0x4dc   :  { %v4761_v31 = vsel %vm4735_vm13, %v4716_v45, 0.0  ;;  %5947 = vrcp.f32 %v12471_v41  ;;  %v4406_v21 = vand.u32 2147483648, %v12360_v26  ;;  %v12481_v23 = vpop.eup %5939  ;;  %v12483_v34 = vsel %vm4375_vm4, %v4377_v13, %v4373_v3  ;;  %v4052_v19 = vpop.xlane.xlu0 %4051  ;;  %vm12495_vm8 = vmor %vm4400_vm6, %vm4401_vm5 }
 0x4dd   :  { %v4762_v40 = vadd.f32 %v4761_v31, %v4760_v12  ;;  %v4399_v22 = vadd.f32 %v12405_v4, %v4398_v6  ;;  %vm12486_vm7 = vcmp.eq.f32.partialorder %v4404_v10, 8.507059e+37  ;;  %v4334_v54 = vmul.f32 %v12373_v25, %v4046_v17 }
 0x4de   :  { %v12490_v48 = vpop.eup %5941  ;;  %v4383_v20 = vmul.f32 %v12371_v52, %v4382_v32  ;;  %vm4385_vm9 = vweird.f32 %v12332_v7  ;;  %vm4386_vm10 = vweird.f32 %v12371_v52  ;;  %v4364_v15 = vmul.f32 %v12416_v63, %v4052_v19 }
 0x4df   :  { %v5944_v14 = vpop.eup %5943  ;;  %v4764_v57 = vadd.f32 %v4763_v47, %v4762_v40  ;;  %v4403_v25 = vsel %vm12495_vm8, %v12405_v4, %v4399_v22  ;;  %v4389_v39 = vand.u32 2147483647, %v12332_v7  ;;  %v4426_v51 = vmul.f32 %v12481_v23, %v12439_v55  ;;  %vm12530_vm11 = vmor %vm4385_vm9, %vm4386_vm10 }
 0x4e0   :  { %v4654_v35 = vsub.f32 %v4334_v54, %v12412_v38  ;;  %v4407_v60 = vor.u32 1.1754944e-38, %v4406_v21  ;;  %v4384_v43 = vadd.f32 %v12371_v52, %v4383_v20  ;;  %v12513_v8 = vmul.f32 %v12490_v48, %v12444_v49 }
 0x4e1   :  { %v5946_v24 = vpop.eup %5945  ;;  %v4656_v63 = vsub.f32 %v4364_v15, %v4610_v16  ;;  %v4391_v29 = vand.u32 2147483648, %v12332_v7  ;;  %5949 = vlog2.f32 %v12332_v7  ;;  %v12520_v11 = vmul.f32 0.6931472, %v5944_v14  ;;  %v4049_v36 = vpop.xlane.xlu1 %4048 }
 0x4e2   :  { %v12517_v4 = vpop.eup %5947  ;;  %v4686_v44 = vadd.f32 %v4654_v35, %v15192_v9  ;;  %v12524_v38 = vsel %vm12486_vm7, %v4407_v60, %v4403_v25  ;;  %vm12534_vm12 = vcmp.eq.f32.partialorder %v4389_v39, 8.507059e+37  ;;  %v12543_v0 = vmul.f32 0.6931472, %v5946_v24 }
 0x4e3   :  { %v12540_v46 = vmul.f32 %v12517_v4, %v12471_v41  ;;  %v4688_v28 = vadd.f32 %v4656_v63, %v15197_v59  ;;  %v4388_v7 = vsel %vm12530_vm11, %v12371_v52, %v4384_v43  ;;  %v4349_v16 = vmul.f32 %v4348_v18, %v4049_v36  ;;  %v12552_v42 = vpop.xlane.xlu2 %3851 }
 0x4e4   :  { %v4718_v12 = vadd.f32 %v4686_v44, %v15198_v1  ;;  %v4412_v61 = vsub.f32 1.0, %v12409_v37  ;;  %vm4415_vm15 = vweird.f32 %v12337_v53  ;;  %v4392_v5 = vor.u32 1.1754944e-38, %v4391_v29  ;;  %v12559_v18 = vpop.xlane.xlu0 %3857 }
 0x4e5   :  { %v4720_v47 = vadd.f32 %v4688_v28, %v15199_v33  ;;  %vm4416_vm0 = vweird.f32 %v12377_v56  ;;  %v4419_v13 = vand.u32 2147483647, %v12337_v53  ;;  %v4655_v52 = vsub.f32 %v4349_v16, %v12463_v50  ;;  %v15202_v50 = vld [vmem:[#allocation159_spill] sm:$0xff] }
 0x4e6   :  { %v4765_v2 = vsel %vm4735_vm13, %v4718_v12, 0.0  ;;  %5951 = vrcp.f32 %v12552_v42  ;;  %v4413_v37 = vmul.f32 %v12377_v56, %v4412_v61  ;;  %v4393_v10 = vsel %vm12534_vm12, %v4392_v5, %v4388_v7  ;;  %vm12568_vm1 = vmor %vm4415_vm15, %vm4416_vm0 }
 0x4e7   :  { %v5950_v62 = vpop.eup %5949  ;;  %v4766_v45 = vadd.f32 %v4765_v2, %v4764_v57  ;;  %v4769_v3 = vsel %vm4735_vm13, %v4720_v47, 0.0  ;;  %5953 = vrcp.f32 %v12559_v18  ;;  %v4687_v32 = vadd.f32 %v4655_v52, %v15202_v50  ;;  %v15211_v50 = vld [vmem:[#allocation72_spill] sm:$0xff] }
 0x4e8   :  { %v4414_v31 = vadd.f32 %v12377_v56, %v4413_v37  ;;  %vm12574_vm2 = vcmp.eq.f32.partialorder %v4419_v13, 8.507059e+37  ;;  %v4421_v40 = vand.u32 2147483648, %v12337_v53  ;;  %v12579_v17 = vmul.f32 0.6931472, %v5950_v62  ;;  %v15210_v62 = vld [vmem:[#allocation175_spill] sm:$0xff] }
 0x4e9   :  { %5955 = vlog2.f32 %v12337_v53  ;;  %v4427_v22 = vsub.f32 1.0, %v4426_v51  ;;  %vm4430_vm3 = vweird.f32 %v12439_v55  ;;  %v4719_v54 = vadd.f32 %v4687_v32, %v15205_v58  ;;  %v12588_v14 = vpop.xlane.xlu1 %3854 }
 0x4ea   :  { %v4418_v19 = vsel %vm12568_vm1, %v12377_v56, %v4414_v31  ;;  %v4422_v26 = vor.u32 1.1754944e-38, %v4421_v40  ;;  %v4434_v20 = vand.u32 2147483647, %v12439_v55  ;;  %vm4431_vm4 = vweird.f32 %v12481_v23 }
 0x4eb   :  { %v4428_v57 = vmul.f32 %v12481_v23, %v4427_v22  ;;  %v4436_v53 = vand.u32 2147483648, %v12439_v55  ;;  %5957 = vlog2.f32 %v12439_v55  ;;  %v4767_v25 = vsel %vm4735_vm13, %v4719_v54, 0.0  ;;  %v4055_v43 = vpop.xlane.xlu2 %4054  ;;  %vm4432_vm6 = vmor %vm4430_vm3, %vm4431_vm4 }
 0x4ec   :  { %v12594_v15 = vpop.eup %5951  ;;  %5959 = vrcp.f32 %v12588_v14  ;;  %v12600_v56 = vsel %vm12574_vm2, %v4422_v26, %v4418_v19  ;;  %vm12602_vm5 = vcmp.eq.f32.partialorder %v4434_v20, 8.507059e+37  ;;  %v4768_v35 = vadd.f32 %v4767_v25, %v4766_v45  ;;  %v4061_v44 = vpop.xlane.xlu0 %4060  ;;  %v15214_v20 = vld [vmem:[#allocation208_spill] sm:$0xff] }
 0x4ed   :  { %v12606_v51 = vpop.eup %5953  ;;  %v12610_v60 = vmul.f32 %v12594_v15, %v12552_v42  ;;  %v4429_v24 = vadd.f32 %v12481_v23, %v4428_v57  ;;  %v4437_v63 = vor.u32 1.1754944e-38, %v4436_v53  ;;  %v4379_v9 = vmul.f32 %v12483_v34, %v4055_v43 }
 0x4ee   :  { %v12615_v29 = vmul.f32 %v12606_v51, %v12559_v18  ;;  %v4442_v27 = vsub.f32 1.0, %v12540_v46  ;;  %vm4445_vm7 = vweird.f32 %v12471_v41  ;;  %v4770_v59 = vadd.f32 %v4769_v3, %v4768_v35  ;;  %v15215_v35 = vld [vmem:[#allocation203_spill] sm:$0xff] }
 0x4ef   :  { %v5956_v30 = vpop.eup %5955  ;;  %v4409_v28 = vmul.f32 %v12524_v38, %v4061_v44  ;;  %v4433_v36 = vsel %vm4432_vm6, %v12481_v23, %v4429_v24  ;;  %vm4446_vm8 = vweird.f32 %v12517_v4  ;;  %v4657_v34 = vsub.f32 %v4379_v9, %v12520_v11  ;;  %v15208_v11 = vld [vmem:[#allocation173_spill] sm:$0xff] }
 0x4f0   :  { %v12628_v7 = vmul.f32 0.6931472, %v5956_v30  ;;  %v12632_v55 = vsel %vm12602_vm5, %v4437_v63, %v4433_v36  ;;  %v4443_v46 = vmul.f32 %v12517_v4, %v4442_v27  ;;  %v4449_v16 = vand.u32 2147483647, %v12471_v41  ;;  %vm4447_vm9 = vmor %vm4445_vm7, %vm4446_vm8 }
 0x4f1   :  { %v5958_v1 = vpop.eup %5957  ;;  %v4659_v12 = vsub.f32 %v4409_v28, %v12543_v0  ;;  %v4451_v38 = vand.u32 2147483648, %v12471_v41  ;;  %5961 = vlog2.f32 %v12471_v41  ;;  %v4689_v61 = vadd.f32 %v4657_v34, %v15208_v11  ;;  %v15209_v0 = vld [vmem:[#allocation116_spill] sm:$0xff]  ;;  %v4058_v52 = vpop.xlane.xlu1 %4057 }
 0x4f2   :  { %v12639_v23 = vpop.eup %5959  ;;  %v12642_v33 = vmul.f32 0.6931472, %v5958_v1  ;;  %v4444_v47 = vadd.f32 %v12517_v4, %v4443_v46  ;;  %v4457_v5 = vsub.f32 1.0, %v12513_v8  ;;  %vm4450_vm10 = vcmp.eq.f32.partialorder %v4449_v16, 8.507059e+37 }
 0x4f3   :  { %v4486_v13 = vmul.f32 %v12639_v23, %v12588_v14  ;;  %v4691_v2 = vadd.f32 %v4659_v12, %v15209_v0  ;;  %v4452_v37 = vor.u32 1.1754944e-38, %v4451_v38  ;;  %v4721_v45 = vadd.f32 %v4689_v61, %v15210_v62  ;;  %v12657_v31 = vpop.xlane.xlu2 %3860  ;;  %v15222_v62 = vld [vmem:[#allocation161_spill] sm:$0xff] }
 0x4f4   :  { %v4394_v3 = vmul.f32 %v4393_v10, %v4058_v52  ;;  %v4448_v6 = vsel %vm4447_vm9, %v12517_v4, %v4444_v47  ;;  %v4458_v8 = vmul.f32 %v12490_v48, %v4457_v5  ;;  %vm4460_vm11 = vweird.f32 %v12444_v49  ;;  %v15223_v10 = vld [vmem:[#allocation19_spill] sm:$0xff] }
 0x4f5   :  { %v4723_v32 = vadd.f32 %v4691_v2, %v15211_v50  ;;  %v12659_v21 = vsel %vm4450_vm10, %v4452_v37, %v4448_v6  ;;  %vm4461_vm12 = vweird.f32 %v12490_v48  ;;  %v4771_v41 = vsel %vm4735_vm13, %v4721_v45, 0.0 }
 0x4f6   :  { %v4658_v40 = vsub.f32 %v4394_v3, %v12579_v17  ;;  %5963 = vrcp.f32 %v12657_v31  ;;  %v4459_v4 = vadd.f32 %v12490_v48, %v4458_v8  ;;  %vm12667_vm15 = vmor %vm4460_vm11, %vm4461_vm12  ;;  %v4772_v58 = vadd.f32 %v4771_v41, %v4770_v59 }
 0x4f7   :  { %v5962_v22 = vpop.eup %5961  ;;  %v4775_v54 = vsel %vm4735_vm13, %v4723_v32, 0.0  ;;  %v4464_v19 = vand.u32 2147483647, %v12444_v49  ;;  %v4466_v26 = vand.u32 2147483648, %v12444_v49  ;;  %5965 = vlog2.f32 %v12444_v49 }
 0x4f8   :  { %v4690_v57 = vadd.f32 %v4658_v40, %v15214_v20  ;;  %v12675_v53 = vmul.f32 0.6931472, %v5962_v22  ;;  %v4463_v17 = vsel %vm12667_vm15, %v12490_v48, %v4459_v4  ;;  %v4487_v39 = vsub.f32 1.0, %v4486_v13 }
 0x4f9   :  { %vm4465_vm0 = vcmp.eq.f32.partialorder %v4464_v19, 8.507059e+37  ;;  %v4467_v25 = vor.u32 1.1754944e-38, %v4466_v26  ;;  %vm4490_vm1 = vweird.f32 %v12588_v14  ;;  %vm4491_vm2 = vweird.f32 %v12639_v23  ;;  %v12686_v9 = vpop.xlane.xlu1 %3863 }
 0x4fa   :  { %v4722_v43 = vadd.f32 %v4690_v57, %v15215_v35  ;;  %v4494_v24 = vand.u32 2147483647, %v12588_v14  ;;  %v4496_v63 = vand.u32 2147483648, %v12588_v14  ;;  %v4488_v49 = vmul.f32 %v12639_v23, %v4487_v39  ;;  %vm4492_vm4 = vmor %vm4490_vm1, %vm4491_vm2 }
 0x4fb   :  { %v12690_v48 = vsel %vm4465_vm0, %v4467_v25, %v4463_v17  ;;  %5967 = vlog2.f32 %v12588_v14  ;;  %v4472_v27 = vsub.f32 1.0, %v12610_v60  ;;  %v4064_v1 = vpop.xlane.xlu2 %4063  ;;  %vm4475_vm5 = vweird.f32 %v12552_v42 }
 0x4fc   :  { %v12688_v44 = vpop.xlane.xlu0 %3866  ;;  %v12695_v30 = vpop.eup %5963  ;;  %v4773_v59 = vsel %vm4735_vm13, %v4722_v43, 0.0  ;;  %5969 = vrcp.f32 %v12686_v9  ;;  %vm12699_vm3 = vcmp.eq.f32.partialorder %v4494_v24, 8.507059e+37  ;;  %v4497_v36 = vor.u32 1.1754944e-38, %v4496_v63  ;;  %v15226_v24 = vld [vmem:[#allocation133_spill] sm:$0xff] }
 0x4fd   :  { %v4774_v34 = vadd.f32 %v4773_v59, %v4772_v58  ;;  %v12705_v46 = vmul.f32 %v12695_v30, %v12657_v31  ;;  %5971 = vrcp.f32 %v12688_v44  ;;  %v4489_v60 = vadd.f32 %v12639_v23, %v4488_v49  ;;  %v5966_v12 = vpop.eup %5965  ;;  %v15227_v49 = vld [vmem:[#allocation80_spill] sm:$0xff] }
 0x4fe   :  { %v4424_v16 = vmul.f32 %v12600_v56, %v4064_v1  ;;  %v4473_v38 = vmul.f32 %v12594_v15, %v4472_v27  ;;  %vm4476_vm6 = vweird.f32 %v12594_v15  ;;  %v12717_v61 = vmul.f32 0.6931472, %v5966_v12 }
 0x4ff   :  { %v4776_v11 = vadd.f32 %v4775_v54, %v4774_v34  ;;  %v4493_v47 = vsel %vm4492_vm4, %v12639_v23, %v4489_v60  ;;  %v4479_v5 = vand.u32 2147483647, %v12552_v42  ;;  %v4481_v0 = vand.u32 2147483648, %v12552_v42  ;;  %vm12726_vm7 = vmor %vm4475_vm5, %vm4476_vm6  ;;  %v15229_v34 = vld [vmem:[#allocation210_spill] sm:$0xff] }
 0x500   :  { %v4660_v56 = vsub.f32 %v4424_v16, %v12628_v7  ;;  %v4498_v13 = vsel %vm12699_vm3, %v4497_v36, %v4493_v47  ;;  %v4474_v14 = vadd.f32 %v12594_v15, %v4473_v38  ;;  %5973 = vlog2.f32 %v12552_v42  ;;  %v15228_v36 = vld [vmem:[#allocation120_spill] sm:$0xff] }
 0x501   :  { %v5968_v2 = vpop.eup %5967  ;;  %vm12730_vm8 = vcmp.eq.f32.partialorder %v4479_v5, 8.507059e+37  ;;  %v4502_v7 = vsub.f32 1.0, %v12615_v29  ;;  %vm4505_vm9 = vweird.f32 %v12559_v18  ;;  %v4482_v8 = vor.u32 1.1754944e-38, %v4481_v0  ;;  %v4067_v32 = vpop.xlane.xlu1 %4066 }
 0x502   :  { %v12737_v23 = vpop.eup %5969  ;;  %v4692_v45 = vadd.f32 %v4660_v56, %v15222_v62  ;;  %v12740_v3 = vmul.f32 0.6931472, %v5968_v2  ;;  %v4478_v6 = vsel %vm12726_vm7, %v12594_v15, %v4474_v14  ;;  %vm4506_vm10 = vweird.f32 %v12606_v51 }
 0x503   :  { %v12745_v50 = vpop.eup %5971  ;;  %v4531_v42 = vmul.f32 %v12737_v23, %v12686_v9  ;;  %v4503_v41 = vmul.f32 %v12606_v51, %v4502_v7  ;;  %v4509_v40 = vand.u32 2147483647, %v12559_v18  ;;  %v4439_v22 = vmul.f32 %v12632_v55, %v4067_v32  ;;  %v12759_v54 = vpop.xlane.xlu2 %3869  ;;  %vm4507_vm12 = vmor %vm4505_vm9, %vm4506_vm10 }
 0x504   :  { %v4070_v29 = vpop.xlane.xlu0 %4069  ;;  %v12754_v4 = vmul.f32 %v12745_v50, %v12688_v44  ;;  %v4724_v15 = vadd.f32 %v4692_v45, %v15223_v10  ;;  %v4483_v19 = vsel %vm12730_vm8, %v4482_v8, %v4478_v6  ;;  %v4511_v57 = vand.u32 2147483648, %v12559_v18 }
 0x505   :  { %v4454_v58 = vmul.f32 %v12659_v21, %v4070_v29  ;;  %v4504_v26 = vadd.f32 %v12606_v51, %v4503_v41  ;;  %vm12764_vm11 = vcmp.eq.f32.partialorder %v4509_v40, 8.507059e+37  ;;  %v4661_v25 = vsub.f32 %v4439_v22, %v12642_v33  ;;  %v15232_v29 = vld [vmem:[#allocation21_spill] sm:$0xff]  ;;  %v15233_v40 = vld [vmem:[#allocation212_spill] sm:$0xff] }
 0x506   :  { %v4777_v17 = vsel %vm4735_vm13, %v4724_v15, 0.0  ;;  %5975 = vrcp.f32 %v12759_v54  ;;  %v5974_v21 = vpop.eup %5973  ;;  %v4512_v43 = vor.u32 1.1754944e-38, %v4511_v57  ;;  %vm4535_vm15 = vweird.f32 %v12686_v9  ;;  %v15236_v57 = vld [vmem:[#allocation16_spill] sm:$0xff] }
 0x507   :  { %v4662_v55 = vsub.f32 %v4454_v58, %v12675_v53  ;;  %v4778_v39 = vadd.f32 %v4777_v17, %v4776_v11  ;;  %v4508_v35 = vsel %vm4507_vm12, %v12606_v51, %v4504_v26  ;;  %5977 = vlog2.f32 %v12559_v18  ;;  %v15235_v26 = vld [vmem:[#allocation145_spill] sm:$0xff] }
 0x508   :  { %v4693_v63 = vadd.f32 %v4661_v25, %v15226_v24  ;;  %v4626_v27 = vmul.f32 0.6931472, %v5974_v21  ;;  %v4532_v53 = vsub.f32 1.0, %v4531_v42  ;;  %v4513_v59 = vsel %vm12764_vm11, %v4512_v43, %v4508_v35 }
 0x509   :  { %v4694_v33 = vadd.f32 %v4662_v55, %v15227_v49  ;;  %vm4536_vm0 = vweird.f32 %v12737_v23  ;;  %v4539_v28 = vand.u32 2147483647, %v12686_v9  ;;  %v4541_v60 = vand.u32 2147483648, %v12686_v9  ;;  %v4073_v12 = vpop.xlane.xlu1 %4072  ;;  %v15237_v49 = vld [vmem:[#allocation182_spill] sm:$0xff] }
 0x50a   :  { %v4725_v51 = vadd.f32 %v4693_v63, %v15228_v36  ;;  %v4533_v18 = vmul.f32 %v12737_v23, %v4532_v53  ;;  %5979 = vlog2.f32 %v12686_v9  ;;  %v4517_v11 = vsub.f32 1.0, %v12705_v46  ;;  %vm4537_vm3 = vmor %vm4535_vm15, %vm4536_vm0 }
 0x50b   :  { %v4726_v1 = vadd.f32 %v4694_v33, %v15229_v34  ;;  %vm12790_vm1 = vcmp.eq.f32.partialorder %v4539_v28, 8.507059e+37  ;;  %vm4520_vm2 = vweird.f32 %v12657_v31  ;;  %v4469_v14 = vmul.f32 %v12690_v48, %v4073_v12  ;;  %v4076_v7 = vpop.xlane.xlu2 %4075  ;;  %v15238_v34 = vld [vmem:[#allocation146_spill] sm:$0xff] }
 0x50c   :  { %v4079_v16 = vpop.xlane.xlu0 %4078  ;;  %v12797_v47 = vpop.eup %5975  ;;  %v4779_v5 = vsel %vm4735_vm13, %v4725_v51, 0.0  ;;  %v4534_v46 = vadd.f32 %v12737_v23, %v4533_v18  ;;  %v4542_v62 = vor.u32 1.1754944e-38, %v4541_v60  ;;  %v4484_v8 = vmul.f32 %v4483_v19, %v4076_v7  ;;  %v15245_v7 = vld [vmem:[#allocation188_spill] sm:$0xff] }
 0x50d   :  { %v4781_v56 = vsel %vm4735_vm13, %v4726_v1, 0.0  ;;  %v4499_v0 = vmul.f32 %v4498_v13, %v4079_v16  ;;  %v5978_v2 = vpop.eup %5977  ;;  %v4780_v52 = vadd.f32 %v4779_v5, %v4778_v39  ;;  %v12804_v37 = vmul.f32 %v12797_v47, %v12759_v54 }
 0x50e   :  { %v4663_v45 = vsub.f32 %v4469_v14, %v12717_v61  ;;  %v4630_v42 = vmul.f32 0.6931472, %v5978_v2  ;;  %v4538_v13 = vsel %vm4537_vm3, %v12737_v23, %v4534_v46  ;;  %v4518_v32 = vmul.f32 %v12695_v30, %v4517_v11  ;;  %v15234_v23 = vld [vmem:[#allocation67_spill] sm:$0xff]  ;;  %v15243_v2 = vld [vmem:[#allocation101_spill] sm:$0xff] }
 0x50f   :  { %v4665_v6 = vsub.f32 %v4499_v0, %v12740_v3  ;;  %v4782_v48 = vadd.f32 %v4781_v56, %v4780_v52  ;;  %vm4521_vm4 = vweird.f32 %v12695_v30  ;;  %v4664_v10 = vsub.f32 %v4484_v8, %v4626_v27  ;;  %v15242_v11 = vld [vmem:[#allocation171_spill] sm:$0xff] }
 0x510   :  { %v4695_v41 = vadd.f32 %v4663_v45, %v15232_v29  ;;  %v4543_v3 = vsel %vm12790_vm1, %v4542_v62, %v4538_v13  ;;  %v5980_v15 = vpop.eup %5979  ;;  %v4519_v22 = vadd.f32 %v12695_v30, %v4518_v32  ;;  %v4524_v9 = vand.u32 2147483647, %v12657_v31  ;;  %vm4522_vm5 = vmor %vm4520_vm2, %vm4521_vm4  ;;  %v15244_v52 = vld [vmem:[#allocation187_spill] sm:$0xff] }
 0x511   :  { %v4697_v61 = vadd.f32 %v4665_v6, %v15233_v40  ;;  %v4526_v58 = vand.u32 2147483648, %v12657_v31  ;;  %5981 = vlog2.f32 %v12657_v31  ;;  %v4696_v17 = vadd.f32 %v4664_v10, %v15236_v57  ;;  %v4082_v55 = vpop.xlane.xlu1 %4081  ;;  %v15247_v6 = vld [vmem:[#allocation126_spill] sm:$0xff]  ;;  %v15251_v32 = vld [vmem:[#allocation83_spill] sm:$0xff] }
 0x512   :  { %v4727_v19 = vadd.f32 %v4695_v41, %v15234_v23  ;;  %v4634_v25 = vmul.f32 0.6931472, %v5980_v15  ;;  %v4523_v39 = vsel %vm4522_vm5, %v12695_v30, %v4519_v22  ;;  %vm4525_vm6 = vcmp.eq.f32.partialorder %v4524_v9, 8.507059e+37 }
 0x513   :  { %v4729_v20 = vadd.f32 %v4697_v61, %v15235_v26  ;;  %v4527_v35 = vor.u32 1.1754944e-38, %v4526_v58  ;;  %v4547_v43 = vsub.f32 1.0, %v12754_v4  ;;  %v4728_v33 = vadd.f32 %v4696_v17, %v15237_v49  ;;  %v4085_v31 = vpop.xlane.xlu2 %4084  ;;  %v15252_v61 = vld [vmem:[#allocation223_spill] sm:$0xff] }
 0x514   :  { %v4088_v21 = vpop.xlane.xlu0 %4087  ;;  %v4783_v24 = vsel %vm4735_vm13, %v4727_v19, 0.0  ;;  %v4514_v27 = vmul.f32 %v4513_v59, %v4082_v55  ;;  %v15239_v1 = vand.u32 2147483647, %v15238_v34  ;;  %vm4550_vm8 = vweird.f32 %v12688_v44  ;;  %v15261_v34 = vld [vmem:[#allocation191_spill] sm:$0xff] }
 0x515   :  { %v4787_v63 = vsel %vm4735_vm13, %v4729_v20, 0.0  ;;  %v4784_v53 = vadd.f32 %v4783_v24, %v4782_v48  ;;  %v4544_v28 = vmul.f32 %v4543_v3, %v4088_v21  ;;  %v4528_v36 = vsel %vm4525_vm6, %v4527_v35, %v4523_v39  ;;  %v15250_v48 = vld [vmem:[#allocation216_spill] sm:$0xff]  ;;  %v15256_v39 = vld [vmem:[#allocation150_spill] sm:$0xff]  ;;  %v15257_v35 = vld [vmem:[#allocation77_spill] sm:$0xff] }
 0x516   :  { %v4548_v51 = vmul.f32 %v12745_v50, %v4547_v43  ;;  %vm12837_vm7 = vcmp.eq.f32.partialorder %v15239_v1, 8.507059e+37  ;;  %v4785_v4 = vsel %vm4735_vm13, %v4728_v33, 0.0  ;;  %v4666_v18 = vsub.f32 %v4514_v27, %v4630_v42  ;;  %v15259_v24 = vld [vmem:[#allocation53_spill] sm:$0xff]  ;;  %v15260_v33 = vld [vmem:[#allocation110_spill] sm:$0xff] }
 0x517   :  { %v4529_v60 = vmul.f32 %v4528_v36, %v4085_v31  ;;  %v5982_v12 = vpop.eup %5981  ;;  %v4786_v59 = vadd.f32 %v4785_v4, %v4784_v53  ;;  %v4668_v16 = vsub.f32 %v4544_v28, %v4634_v25  ;;  %vm4551_vm9 = vweird.f32 %v12745_v50  ;;  %v15254_v25 = vld [vmem:[#allocation176_spill] sm:$0xff] }
 0x518   :  { %v4549_v38 = vadd.f32 %v12745_v50, %v4548_v51  ;;  %v4698_v5 = vadd.f32 %v4666_v18, %v15242_v11  ;;  %v4632_v56 = vmul.f32 0.6931472, %v5982_v12  ;;  %v4554_v14 = vand.u32 2147483647, %v12688_v44  ;;  %vm12853_vm10 = vmor %vm4550_vm8, %vm4551_vm9  ;;  %v15262_v18 = vld [vmem:[#allocation140_spill] sm:$0xff] }
 0x519   :  { %v4556_v0 = vand.u32 2147483648, %v12688_v44  ;;  %v15246_v46 = vsub.f32 %v15244_v52, %v15245_v7  ;;  %v4788_v45 = vadd.f32 %v4787_v63, %v4786_v59  ;;  %v4700_v8 = vadd.f32 %v4668_v16, %v15247_v6  ;;  %v4091_v10 = vpop.xlane.xlu1 %4090  ;;  %v15263_v16 = vld [vmem:[#allocation20_spill] sm:$0xff] }
 0x51a   :  { %5983 = vlog2.f32 %v12688_v44  ;;  %v3383_v13 = vmul.f32 0.6931472, %v15250_v48  ;;  %v4730_v29 = vadd.f32 %v4698_v5, %v15251_v32  ;;  %v4667_v41 = vsub.f32 %v4529_v60, %v4632_v56  ;;  %v15265_v7 = vld [vmem:[#allocation196_spill] sm:$0xff] }
 0x51b   :  { %v2568_v62 = vadd.f32 %v15246_v46, %v15243_v2  ;;  %v4553_v40 = vsel %vm12853_vm10, %v12745_v50, %v4549_v38  ;;  %5985 = vlog2.f32 %v15252_v61  ;;  %vm4555_vm11 = vcmp.eq.f32.partialorder %v4554_v14, 8.507059e+37  ;;  %v15253_v50 = vld [vmem:[#allocation158_spill] sm:$0xff]  ;;  %v4094_v31 = vpop.xlane.xlu2 %4093  ;;  %v15264_v2 = vld [vmem:[#allocation112_spill] sm:$0xff] }
 0x51c   :  { %v4557_v3 = vor.u32 1.1754944e-38, %v4556_v0  ;;  %v4562_v15 = vsub.f32 1.0, %v12804_v37  ;;  %v4789_v22 = vsel %vm4735_vm13, %v4730_v29, 0.0  ;;  %v4699_v44 = vadd.f32 %v4667_v41, %v3383_v13 }
 0x51d   :  { %v4732_v9 = vadd.f32 %v4700_v8, %v2568_v62  ;;  %vm4566_vm12 = vweird.f32 %v12797_v47  ;;  %v4790_v58 = vadd.f32 %v4789_v22, %v4788_v45  ;;  %v4569_v26 = vand.u32 2147483647, %v12759_v54 }
 0x51e   :  { %v4558_v23 = vsel %vm4555_vm11, %v4557_v3, %v4553_v40  ;;  %v4563_v19 = vmul.f32 %v12797_v47, %v4562_v15  ;;  %v4731_v20 = vadd.f32 %v4699_v44, %v15253_v50  ;;  %v4571_v17 = vand.u32 2147483648, %v12759_v54 }
 0x51f   :  { %v4559_v57 = vmul.f32 %v4558_v23, %v4091_v10  ;;  %5987 = vlog2.f32 %v12759_v54  ;;  %v2504_v55 = vmul.f32 0.6931472, %v15254_v25  ;;  %v15258_v43 = vsel %vm11009_vm14, %v15256_v39, %v15257_v35 }
 0x520   :  { %v5984_v37 = vpop.eup %5983  ;;  %v2441_v63 = vsel %vm12837_vm7, %v15259_v24, %v15258_v43  ;;  %v4564_v49 = vadd.f32 %v12797_v47, %v4563_v19  ;;  %vm4565_vm15 = vweird.f32 %v12759_v54  ;;  %v1256_v27 = vmul.f32 0.6931472, %v15260_v33 }
 0x521   :  { %v4791_v53 = vsel %vm4735_vm13, %v4731_v20, 0.0  ;;  %v4636_v28 = vmul.f32 0.6931472, %v5984_v37  ;;  %vm4567_vm0 = vmor %vm4565_vm15, %vm4566_vm12  ;;  %v4572_v36 = vor.u32 1.1754944e-38, %v4571_v17  ;;  %v5986_v51 = vpop.eup %5985  ;;  %v2537_v1 = vsub.f32 %v15261_v34, %v2504_v55 }
 0x522   :  { %v4792_v4 = vadd.f32 %v4791_v53, %v4790_v58  ;;  %v4568_v30 = vsel %vm4567_vm0, %v12797_v47, %v4564_v49  ;;  %vm4570_vm14 = vcmp.eq.f32.partialorder %v4569_v26, 8.507059e+37  ;;  %v3387_v60 = vmul.f32 0.6931472, %v15262_v18 }
 0x523   :  { %v4793_v54 = vsel %vm4735_vm13, %v4732_v9, 0.0  ;;  %v4669_v12 = vsub.f32 %v4559_v57, %v4636_v28  ;;  %v4573_v59 = vsel %vm4570_vm14, %v4572_v36, %v4568_v30  ;;  %v2442_v38 = vmul.f32 %v2441_v63, %v15263_v16 }
 0x524   :  { %v4574_v11 = vmul.f32 %v4573_v59, %v4094_v31  ;;  %v4794_v5 = vadd.f32 %v4793_v54, %v4792_v4  ;;  %v2569_v14 = vadd.f32 %v2537_v1, %v1256_v27  ;;  %v2506_v52 = vmul.f32 0.6931472, %v15264_v2 }
 0x525   :  { %v5988_v56 = vpop.eup %5987  ;;  %v4701_v0 = vadd.f32 %v4669_v12, %v3387_v60  ;;  %v1258_v46 = vmul.f32 0.6931472, %v15265_v7  ;;  %v3389_v6 = vmul.f32 0.6931472, %v5986_v51 }
 0x526   :  { %v4638_v62 = vmul.f32 0.6931472, %v5988_v56  ;;  %v2538_v45 = vsub.f32 %v2442_v38, %v2506_v52 }
 0x527   :  { %v4733_v47 = vadd.f32 %v4701_v0, %v2569_v14 }
 0x528   :  { %v4670_v8 = vsub.f32 %v4574_v11, %v4638_v62  ;;  %v2570_v48 = vadd.f32 %v2538_v45, %v1258_v46 }
 0x529   :  { %v4795_v42 = vsel %vm4735_vm13, %v4733_v47, 0.0 }
 0x52a   :  { %v4702_v13 = vadd.f32 %v4670_v8, %v3389_v6  ;;  %v4796_v32 = vadd.f32 %v4795_v42, %v4794_v5 }
 0x52c   :  { %v4734_v29 = vadd.f32 %v4702_v13, %v2570_v48 }
 0x52e   :  { %v4797_v41 = vsel %vm4735_vm13, %v4734_v29, 0.0 }
 0x52f   :  { %v4798_v40 = vadd.f32 %v4797_v41, %v4796_v32 }
 0x531   :  { %4799 = vadd.xlane.f32.xlu0 %v4798_v40 }
 0x5a4   :  { %v4800_v61 = vpop.xlane.xlu0 %4799 }
 0x5a5   :  { %v4801_v10 = vrot.slane %v4800_v61, 4 }
 0x5a7   :  { %v4802_v3 = vadd.f32 %v4801_v10, %v4800_v61 }
 0x5a9   :  { %v4803_v15 = vrot.slane %v4802_v3, 2 }
 0x5ab   :  { %v4804_v22 = vadd.f32 %v4803_v15, %v4802_v3 }
 0x5ad   :  { %v4805_v9 = vrot.slane %v4804_v22, 1 }
 0x5af   :  { %v4806_v44 = vadd.f32 %v4805_v9, %v4804_v22 }
 0x5b1   :  { %5080 = vpush %v4806_v44 }
 0x5e2   :  { %s5081_s18 = spop %5080 }
 0x5e3   :  { %s4808_s19 = smul.f32 0.03125, %s5081_s18 }
 0x5e5   :  { %v4809_v58 = vstv %s4808_s19 }
 0x5e6   :  { %4810 = vst [vmem:[#allocation9] sm:$0xff] %v4809_v58 }
 0x5e7   :  { %4821 = dma.vmem_to_hbm [thread:$0]  %s4817_s14, 128, %s4819_s17, [#allocation6]  }
 0x5e8   :  { %6067 = dma.done.wait [#allocation6], 128  }
 0x5e9   :  { %6068 = vsyncadd [#allocation6], 4294967168 }
 0x5ea   :  { %4826 = vsyncpa [#allocation5], 1 }
 0x5eb   :  { %4827 = vsyncpa [#allocation8], 1 }
 0x5ec   :  { %4828 = vsyncpa [#allocation6], 1 }
 0x5ed   :  { %4829 = vsyncmov [#allocation3] }
 0x5f0   :  { %s4830_s20 = vpop.sfrf %4829 }
 0x5f1   :  { %p5031_p0 = scmp.ne.s32.totalorder %s4830_s20, 0 }
 0x5f3   :  { %4834 = shalt.err (%p5031_p0)  }

</bundles_post_ra>
